<compile_context>
chip_gen: v7x
topology: tpu7x:2x2x1
jax: 0.10.0
libtpu: 0.0.40
codegen_flags: <defaults>
</compile_context>

<pallas_src>
import functools

import jax
import jax.numpy as jnp
from jax import lax
from jax.experimental import pallas as pl
from jax.experimental.pallas import tpu as pltpu

# ------------------------- model hyper-parameters -------------------------
CIN = 3              # input channels
IMG = 32             # image size (small stand-in for MODEL_CONFIG.IMAGE_SIZE)
PATCH = 4            # patch-embedding stride
EMBED_DIM = 128      # stage-0 hidden dim (lane-dense; stand-in for 96/128)
DEPTHS = (2, 2)      # blocks per stage (stand-in for (2, 2, 6, 2))
MLP_RATIO = 4
PATCH_IN_PAD = 128   # CIN*PATCH*PATCH = 48 zero-padded to a full lane width
LN_EPS = 1e-5

# Explicit scoped-VMEM limit (review item): 48 MiB is within every generation's
# physical VMEM (v5e/v6e 128 MiB, v7x 64 MiB).  Tune per generation along with
# the row / token tiles when scaling to real SwinV2 sizes.
VMEM_LIMIT_BYTES = 48 * 1024 * 1024


# ------------------------------ kernel helpers ------------------------------
def _ln_f32(x, g, b):
    """LayerNorm over the last axis, computed in f32. g/b are (1, D)."""
    mu = jnp.mean(x, axis=-1, keepdims=True)
    var = jnp.mean(jnp.square(x - mu), axis=-1, keepdims=True)
    return (x - mu) * lax.rsqrt(var + LN_EPS) * g + b


# ----------------------- fused linear + LayerNorm ---------------------------
def _linear_ln_kernel(x_ref, w_ref, vec_ref, o_ref):
    # bf16 x bf16 matmul with f32 accumulation on the MXU.
    y = jnp.dot(x_ref[...], w_ref[...], preferred_element_type=jnp.float32)
    vec = vec_ref[...]                       # (8, Dout): rows [bias, gamma, beta, 0...]
    y = y + vec[0:1, :]
    y = _ln_f32(y, vec[1:2, :], vec[2:3, :])
    o_ref[...] = y.astype(o_ref.dtype)


def pallas_linear_ln(x, w, vec, *, row_tile=None):
    """(M, Din) @ (Din, Dout) + bias, then LayerNorm. bf16 out, batch folded in M."""
    M, Din = x.shape
    Dout = w.shape[1]
    if row_tile is None:
        row_tile = min(M, 512)               # large row tiles: dense stores + MXU fill
    assert M % row_tile == 0 and row_tile % 8 == 0
    return pl.pallas_call(
        _linear_ln_kernel,
        out_shape=jax.ShapeDtypeStruct((M, Dout), jnp.bfloat16),
        grid=(M // row_tile,),
        in_specs=[
            pl.BlockSpec((row_tile, Din), lambda i: (i, 0)),
            pl.BlockSpec((Din, Dout), lambda i: (0, 0)),
            pl.BlockSpec((8, Dout), lambda i: (0, 0)),
        ],
        out_specs=pl.BlockSpec((row_tile, Dout), lambda i: (i, 0)),
        compiler_params=pltpu.CompilerParams(
            dimension_semantics=("parallel",),
            vmem_limit_bytes=VMEM_LIMIT_BYTES),
    )(x, w, vec)


# ----------------- fused SwinV2 stage (depth = grid axis) -------------------
def _stage_kernel(x_ref, wqkv_ref, wo_ref, w1_ref, w2_ref,
                  bqkv_ref, b1_ref, vec_ref, o_ref, acc_ref, *, B, N, D):
    d = pl.program_id(0)

    @pl.when(d == 0)
    def _():
        acc_ref[...] = x_ref[...].astype(jnp.float32)

    vec = vec_ref[0]            # (8, D): rows [bo, ln1_g, ln1_b, b2, ln2_g, ln2_b, 0, 0]
    bo, ln1g, ln1b = vec[0:1, :], vec[1:2, :], vec[2:3, :]
    b2, ln2g, ln2b = vec[3:4, :], vec[4:5, :], vec[5:6, :]

    x = acc_ref[...].reshape(B * N, D)        # f32 residual stream, batch folded in M
    xb = x.astype(jnp.bfloat16)

    # ---- attention (condensed to single-head full attention over the grid) ---
    # The 1/sqrt(D) scale is folded into the Q columns of wqkv at init, so there
    # is no O(N^2) f32 scaling of the score matrix.
    # TODO(synk): multi-head scaled-cosine attention + continuous relative
    # position bias + shifted windows condensed; at real token counts this must
    # become windowed / flash-style so the live score tile stays (tq, tk).
    qkv = jnp.dot(xb, wqkv_ref[0], preferred_element_type=jnp.float32)
    qkv = qkv + bqkv_ref[0]
    q = qkv[:, 0 * D:1 * D].reshape(B, N, D).astype(jnp.bfloat16)
    k = qkv[:, 1 * D:2 * D].reshape(B, N, D).astype(jnp.bfloat16)
    v = qkv[:, 2 * D:3 * D].reshape(B, N, D).astype(jnp.bfloat16)
    # Contract the last dims of Q and K: no in-kernel transpose of K.
    s = jnp.einsum("bqd,bkd->bqk", q, k, preferred_element_type=jnp.float32)
    s = s - jnp.max(s, axis=-1, keepdims=True)
    p = jnp.exp(s)
    p = p * pl.reciprocal(jnp.sum(p, axis=-1, keepdims=True), approx=True)
    attn = jnp.einsum("bqk,bkd->bqd", p.astype(jnp.bfloat16), v,
                      preferred_element_type=jnp.float32)
    attn = attn.reshape(B * N, D).astype(jnp.bfloat16)
    attn = jnp.dot(attn, wo_ref[0], preferred_element_type=jnp.float32) + bo
    # SwinV2 res-post-norm: x = x + LN(attn(x))
    x = x + _ln_f32(attn, ln1g, ln1b)

    # ---- MLP ----
    # TODO(synk): at real sizes chunk the MLP rows (fori_loop) to bound live f32
    # intermediates / spill traffic (v5e has a single vector-store slot).
    h = jnp.dot(x.astype(jnp.bfloat16), w1_ref[0],
                preferred_element_type=jnp.float32) + b1_ref[0]
    h = jax.nn.gelu(h, approximate=True)
    h = jnp.dot(h.astype(jnp.bfloat16), w2_ref[0],
                preferred_element_type=jnp.float32) + b2
    x = x + _ln_f32(h, ln2g, ln2b)

    acc_ref[...] = x.reshape(B, N, D)

    @pl.when(d == pl.num_programs(0) - 1)
    def _():
        o_ref[...] = acc_ref[...].astype(o_ref.dtype)


def pallas_swin_stage(tokens, sp):
    """All transformer blocks of one stage in a single pallas_call.

    The whole (B, N, D) token block is processed per grid step (batch folded
    into the matmul M dim; fold windows too at real sizes so M >= 256).  Depth
    is an "arbitrary" grid axis: only one block's weights are resident at a time
    (double-buffered by the pipeline, so block d+1's weight DMA overlaps block
    d's compute) and the f32 residual stream stays in a VMEM scratch.
    """
    B, N, D = tokens.shape
    depth = sp["wqkv"].shape[0]

    tok_spec = pl.BlockSpec((B, N, D), lambda d: (0, 0, 0))

    def per_block(arr):
        return pl.BlockSpec((1,) + arr.shape[1:], lambda d: (d, 0, 0))

    weights = (sp["wqkv"], sp["wo"], sp["w1"], sp["w2"],
               sp["bqkv"], sp["b1"], sp["vec"])

    return pl.pallas_call(
        functools.partial(_stage_kernel, B=B, N=N, D=D),
        out_shape=jax.ShapeDtypeStruct((B, N, D), jnp.bfloat16),
        grid=(depth,),
        in_specs=[tok_spec] + [per_block(w) for w in weights],
        out_specs=tok_spec,
        scratch_shapes=[pltpu.VMEM((B, N, D), jnp.float32)],
        compiler_params=pltpu.CompilerParams(
            dimension_semantics=("arbitrary",),
            vmem_limit_bytes=VMEM_LIMIT_BYTES),
    )(tokens, *weights)


# ------------------------------ parameter init ------------------------------
def init_params(key):
    keys = iter(jax.random.split(key, 64))

    def nrm(shape):
        return 0.02 * jax.random.normal(next(keys), shape, jnp.float32)

    def stage_params(dim, depth):
        wqkv = nrm((depth, dim, 3 * dim))
        # fold the 1/sqrt(D) attention scale into the Q projection (zero cost).
        wqkv = wqkv.at[:, :, :dim].multiply(1.0 / (dim ** 0.5))
        vec = jnp.zeros((depth, 8, dim), jnp.float32)
        vec = vec.at[:, 1, :].set(1.0)   # ln1 gamma
        vec = vec.at[:, 4, :].set(1.0)   # ln2 gamma
        return {
            "wqkv": wqkv.astype(jnp.bfloat16),
            "wo": nrm((depth, dim, dim)).astype(jnp.bfloat16),
            "w1": nrm((depth, dim, MLP_RATIO * dim)).astype(jnp.bfloat16),
            "w2": nrm((depth, MLP_RATIO * dim, dim)).astype(jnp.bfloat16),
            "bqkv": jnp.zeros((depth, 1, 3 * dim), jnp.float32),
            "b1": jnp.zeros((depth, 1, MLP_RATIO * dim), jnp.float32),
            # packed per-block vectors: rows [bo, ln1_g, ln1_b, b2, ln2_g, ln2_b, 0, 0]
            "vec": vec,
        }

    patch_in = CIN * PATCH * PATCH
    wpe = nrm((patch_in, EMBED_DIM))
    # zero-pad the contraction dim to a full lane width (48 -> 128)
    wpe = jnp.pad(wpe, ((0, PATCH_IN_PAD - patch_in), (0, 0))).astype(jnp.bfloat16)
    patch_vec = jnp.zeros((8, EMBED_DIM), jnp.float32).at[1, :].set(1.0)

    params = {"patch_embed_w": wpe, "patch_vec": patch_vec, "stages": [], "merges": []}
    dims = [EMBED_DIM * (2 ** i) for i in range(len(DEPTHS))]
    for i, depth in enumerate(DEPTHS):
        params["stages"].append(stage_params(dims[i], depth))
        if i < len(DEPTHS) - 1:
            params["merges"].append({
                "w": nrm((4 * dims[i], dims[i + 1])).astype(jnp.bfloat16),
                # rows [bias (=0, HF merge has no bias), gamma (=1), beta (=0), 0...]
                "vec": jnp.zeros((8, dims[i + 1]), jnp.float32).at[1, :].set(1.0),
            })
    return params


# ------------------------------- forward pass -------------------------------
def _to_nchw_raster(t, h, w):
    b, _, d = t.shape
    return jnp.transpose(t.reshape(b, h, w, d), (0, 3, 1, 2)).astype(jnp.float32)


def _to_nchw_window_major(t, h, w):
    # tokens are stored 2x2-merge-window major: n = (ii*(w//2) + jj)*4 + (dj*2 + di)
    b, _, d = t.shape
    t = t.reshape(b, h // 2, w // 2, 2, 2, d)      # (B, ii, jj, dj, di, D)
    t = jnp.transpose(t, (0, 1, 4, 2, 3, 5))       # (B, ii, di, jj, dj, D)
    return jnp.transpose(t.reshape(b, h, w, d), (0, 3, 1, 2)).astype(jnp.float32)


def swinv2_backbone_forward(params, pixel_values, output_hidden_states=True):
    """SwinV2Backbone.forward: returns {'feature_maps': [NCHW tensors]}."""
    B, cin, H, W = pixel_values.shape
    Hf, Wf = H // PATCH, W // PATCH
    P = Hf * Wf
    assert Hf % 2 == 0 and Wf % 2 == 0

    # NCHW -> patch tokens in 2x2-merge-window-major order (plain-JAX glue on the
    # tiny pre-embedding input).  The condensed attention is permutation
    # equivariant and all other ops are per-token, so this ordering makes the
    # later 2x2 patch-merge a contiguous reshape: no strided-gather HBM pass
    # between pallas_calls.
    x = jnp.transpose(pixel_values, (0, 2, 3, 1))
    x = x.reshape(B, Hf, PATCH, Wf, PATCH, cin)
    x = jnp.transpose(x, (0, 1, 3, 2, 4, 5)).reshape(B, Hf, Wf, PATCH * PATCH * cin)
    x = x.reshape(B, Hf // 2, 2, Wf // 2, 2, PATCH * PATCH * cin)   # (B, ii, di, jj, dj, C)
    x = jnp.transpose(x, (0, 1, 3, 4, 2, 5))                        # (B, ii, jj, dj, di, C)
    x = x.reshape(B, P, PATCH * PATCH * cin)
    x = jnp.pad(x, ((0, 0), (0, 0), (0, PATCH_IN_PAD - x.shape[-1]))).astype(jnp.bfloat16)

    # patch embedding + LayerNorm, one fused kernel, batch folded into M.
    tokens = pallas_linear_ln(
        x.reshape(B * P, PATCH_IN_PAD), params["patch_embed_w"], params["patch_vec"],
    ).reshape(B, P, EMBED_DIM)

    # TODO(synk): feature maps are emitted f32/NCHW to match the HF interface;
    # emitting bf16/NHWC would halve feature-map HBM traffic at real resolution.
    # TODO(synk): HF default collects stage outputs *after* downsampling for
    # reshaped_hidden_states; here per-stage features are taken before merging.
    feature_maps = [_to_nchw_window_major(tokens, Hf, Wf)]
    h, w = Hf, Wf
    window_major = True
    for i, stage in enumerate(params["stages"]):
        tokens = pallas_swin_stage(tokens, stage)          # one kernel per stage
        conv = _to_nchw_window_major if window_major else _to_nchw_raster
        feature_maps.append(conv(tokens, h, w))
        if i < len(params["stages"]) - 1:
            # 2x2 patch merging: thanks to window-major token order the 4-way
            # neighbourhood concat is a free contiguous reshape, then
            # linear (no bias) + LayerNorm in one kernel.
            b, n, d = tokens.shape
            mp = params["merges"][i]
            tokens = pallas_linear_ln(
                tokens.reshape(b * (n // 4), 4 * d), mp["w"], mp["vec"],
            ).reshape(b, n // 4, 2 * d)
            h, w = h // 2, w // 2
            window_major = False  # TODO(synk): re-permute if another merge follows

    if output_hidden_states:
        return {"feature_maps": feature_maps}
    # TODO(synk): HF applies a final LayerNorm to last_hidden_state before the
    # single-map reshape; omitted in this condensed stand-in.
    return {"feature_maps": [feature_maps[-1]]}


# ----------------------------------- main -----------------------------------
if __name__ == "__main__":
    key = jax.random.PRNGKey(0)
    pkey, xkey = jax.random.split(key)
    params = init_params(pkey)

    pixel_values = jax.random.normal(xkey, (2, CIN, IMG, IMG), jnp.float32)  # NCHW

    fwd = jax.jit(lambda pv: swinv2_backbone_forward(params, pv))
    out = fwd(pixel_values)
    jax.block_until_ready(out)

    fms = out["feature_maps"]
    assert len(fms) == len(DEPTHS) + 1
    assert fms[0].shape == (2, EMBED_DIM, IMG // PATCH, IMG // PATCH)
    assert fms[1].shape == (2, EMBED_DIM, IMG // PATCH, IMG // PATCH)
    assert fms[2].shape == (2, 2 * EMBED_DIM, IMG // (2 * PATCH), IMG // (2 * PATCH))
    for fm in fms:
        assert bool(jnp.all(jnp.isfinite(fm)))
    print("KERNEL_OK")
</pallas_src>

<mosaic_0001>
module attributes {stable_mosaic.version = 11 : i64} {
  func.func @_linear_ln_kernel(%arg0: i32, %arg1: memref<128x128xbf16, #tpu.memory_space<vmem>>, %arg2: memref<128x128xbf16, #tpu.memory_space<vmem>>, %arg3: memref<8x128xf32, #tpu.memory_space<vmem>>, %arg4: memref<128x128xbf16, #tpu.memory_space<vmem>>) attributes {dimension_semantics = [#tpu.dimension_semantics<parallel>], iteration_bounds = array<i64: 1>, scalar_prefetch = 0 : i64, scratch_operands = 0 : i64, tpu.core_type = #tpu.core_type<tc>, window_params = [{transform_indices = @transform_0, window_bounds = array<i64: 128, 128>}, {pipeline_mode = #tpu.pipeline_mode<synchronous>, transform_indices = @transform_1, window_bounds = array<i64: 128, 128>}, {pipeline_mode = #tpu.pipeline_mode<synchronous>, transform_indices = @transform_2, window_bounds = array<i64: 8, 128>}, {transform_indices = @transform_3, window_bounds = array<i64: 128, 128>}]} {
    %c0 = arith.constant 0 : index
    %c0_0 = arith.constant 0 : index
    %0 = vector.load %arg1[%c0, %c0_0] : memref<128x128xbf16, #tpu.memory_space<vmem>>, vector<128x128xbf16>
    %c0_1 = arith.constant 0 : index
    %c0_2 = arith.constant 0 : index
    %1 = vector.load %arg2[%c0_1, %c0_2] : memref<128x128xbf16, #tpu.memory_space<vmem>>, vector<128x128xbf16>
    %cst = arith.constant dense<0.000000e+00> : vector<128x128xf32>
    %2 = tpu.matmul %0, %1, %cst {dimension_numbers = #tpu.dot_dimension_numbers<[1], [0], [0], [1], [0, 0, 1, 1], [], []>} : vector<128x128xbf16>, vector<128x128xbf16>, vector<128x128xf32> -> vector<128x128xf32>
    %c0_3 = arith.constant 0 : index
    %c0_4 = arith.constant 0 : index
    %3 = vector.load %arg3[%c0_3, %c0_4] : memref<8x128xf32, #tpu.memory_space<vmem>>, vector<8x128xf32>
    %4 = vector.extract_strided_slice %3 {offsets = [0, 0], sizes = [1, 128], strides = [1, 1]} : vector<8x128xf32> to vector<1x128xf32>
    %5 = vector.broadcast %4 : vector<1x128xf32> to vector<128x128xf32>
    %6 = arith.addf %2, %5 : vector<128x128xf32>
    %7 = vector.extract_strided_slice %3 {offsets = [1, 0], sizes = [1, 128], strides = [1, 1]} : vector<8x128xf32> to vector<1x128xf32>
    %8 = vector.extract_strided_slice %3 {offsets = [2, 0], sizes = [1, 128], strides = [1, 1]} : vector<8x128xf32> to vector<1x128xf32>
    %cst_5 = arith.constant dense<0.000000e+00> : vector<128xf32>
    %9 = vector.multi_reduction <add>, %6, %cst_5 [1] : vector<128x128xf32> to vector<128xf32>
    %10 = vector.shape_cast %9 : vector<128xf32> to vector<128x1xf32>
    %cst_6 = arith.constant 1.280000e+02 : f32
    %11 = vector.broadcast %cst_6 : f32 to vector<128x1xf32>
    %12 = arith.divf %10, %11 : vector<128x1xf32>
    %13 = vector.broadcast %12 : vector<128x1xf32> to vector<128x128xf32>
    %14 = arith.subf %6, %13 : vector<128x128xf32>
    %15 = arith.mulf %14, %14 : vector<128x128xf32>
    %cst_7 = arith.constant dense<0.000000e+00> : vector<128xf32>
    %16 = vector.multi_reduction <add>, %15, %cst_7 [1] : vector<128x128xf32> to vector<128xf32>
    %17 = vector.shape_cast %16 : vector<128xf32> to vector<128x1xf32>
    %cst_8 = arith.constant 1.280000e+02 : f32
    %18 = vector.broadcast %cst_8 : f32 to vector<128x1xf32>
    %19 = arith.divf %17, %18 : vector<128x1xf32>
    %20 = vector.broadcast %12 : vector<128x1xf32> to vector<128x128xf32>
    %21 = arith.subf %6, %20 : vector<128x128xf32>
    %cst_9 = arith.constant 9.99999974E-6 : f32
    %22 = vector.broadcast %cst_9 : f32 to vector<128x1xf32>
    %23 = arith.addf %19, %22 : vector<128x1xf32>
    %24 = math.rsqrt %23 : vector<128x1xf32>
    %25 = vector.broadcast %24 : vector<128x1xf32> to vector<128x128xf32>
    %26 = arith.mulf %21, %25 : vector<128x128xf32>
    %27 = vector.broadcast %7 : vector<1x128xf32> to vector<128x128xf32>
    %28 = arith.mulf %26, %27 : vector<128x128xf32>
    %29 = vector.broadcast %8 : vector<1x128xf32> to vector<128x128xf32>
    %30 = arith.addf %28, %29 : vector<128x128xf32>
    %31 = arith.truncf %30 : vector<128x128xf32> to vector<128x128xbf16>
    %c0_10 = arith.constant 0 : index
    %c0_11 = arith.constant 0 : index
    %32 = vector.load %arg4[%c0_10, %c0_11] : memref<128x128xbf16, #tpu.memory_space<vmem>>, vector<128x128xbf16>
    tpu.vector_store %arg4[%c0_10, %c0_11], %31 {strides = array<i32>} : memref<128x128xbf16, #tpu.memory_space<vmem>>, vector<128x128xbf16>,
    return
  }
  func.func @transform_0(%arg0: i32) -> (i32, i32) {
    %c0_i32 = arith.constant 0 : i32
    %c0_i32_0 = arith.constant 0 : i32
    return %arg0, %c0_i32 : i32, i32
  }
  func.func @transform_1(%arg0: i32) -> (i32, i32) {
    %c0_i32 = arith.constant 0 : i32
    %c0_i32_0 = arith.constant 0 : i32
    %c0_i32_1 = arith.constant 0 : i32
    return %c0_i32, %c0_i32_0 : i32, i32
  }
  func.func @transform_2(%arg0: i32) -> (i32, i32) {
    %c0_i32 = arith.constant 0 : i32
    %c0_i32_0 = arith.constant 0 : i32
    %c0_i32_1 = arith.constant 0 : i32
    return %c0_i32, %c0_i32_0 : i32, i32
  }
  func.func @transform_3(%arg0: i32) -> (i32, i32) {
    %c0_i32 = arith.constant 0 : i32
    %c0_i32_0 = arith.constant 0 : i32
    return %arg0, %c0_i32 : i32, i32
  }
}

module attributes {stable_mosaic.version = 11 : i64} {
  func.func @_stage_kernel(%arg0: i32, %arg1: memref<2x64x128xbf16, #tpu.memory_space<vmem>>, %arg2: memref<1x128x384xbf16, #tpu.memory_space<vmem>>, %arg3: memref<1x128x128xbf16, #tpu.memory_space<vmem>>, %arg4: memref<1x128x512xbf16, #tpu.memory_space<vmem>>, %arg5: memref<1x512x128xbf16, #tpu.memory_space<vmem>>, %arg6: memref<1x1x384xf32, #tpu.memory_space<vmem>>, %arg7: memref<1x1x512xf32, #tpu.memory_space<vmem>>, %arg8: memref<1x8x128xf32, #tpu.memory_space<vmem>>, %arg9: memref<2x64x128xbf16, #tpu.memory_space<vmem>>, %arg10: memref<2x64x128xf32, #tpu.memory_space<vmem>>) attributes {dimension_semantics = [#tpu.dimension_semantics<arbitrary>], iteration_bounds = array<i64: 2>, scalar_prefetch = 0 : i64, scratch_operands = 1 : i64, tpu.core_type = #tpu.core_type<tc>, window_params = [{pipeline_mode = #tpu.pipeline_mode<synchronous>, transform_indices = @transform_0, window_bounds = array<i64: 2, 64, 128>}, {transform_indices = @transform_1, window_bounds = array<i64: 1, 128, 384>}, {transform_indices = @transform_2, window_bounds = array<i64: 1, 128, 128>}, {transform_indices = @transform_3, window_bounds = array<i64: 1, 128, 512>}, {transform_indices = @transform_4, window_bounds = array<i64: 1, 512, 128>}, {transform_indices = @transform_5, window_bounds = array<i64: 1, 1, 384>}, {transform_indices = @transform_6, window_bounds = array<i64: 1, 1, 512>}, {transform_indices = @transform_7, window_bounds = array<i64: 1, 8, 128>}, {pipeline_mode = #tpu.pipeline_mode<synchronous>, transform_indices = @transform_8, window_bounds = array<i64: 2, 64, 128>}]} {
    %c0_i32 = arith.constant 0 : i32
    %0 = arith.cmpi eq, %arg0, %c0_i32 : i32
    %1 = arith.extui %0 : i1 to i32
    %c0_i32_0 = arith.constant 0 : i32
    %2 = arith.cmpi ne, %1, %c0_i32_0 : i32
    scf.if %2 {
      %c0_49 = arith.constant 0 : index
      %c0_50 = arith.constant 0 : index
      %c0_51 = arith.constant 0 : index
      %128 = vector.load %arg1[%c0_49, %c0_50, %c0_51] : memref<2x64x128xbf16, #tpu.memory_space<vmem>>, vector<2x64x128xbf16>
      %129 = arith.extf %128 : vector<2x64x128xbf16> to vector<2x64x128xf32>
      %c0_52 = arith.constant 0 : index
      %c0_53 = arith.constant 0 : index
      %c0_54 = arith.constant 0 : index
      %130 = vector.load %arg10[%c0_52, %c0_53, %c0_54] : memref<2x64x128xf32, #tpu.memory_space<vmem>>, vector<2x64x128xf32>
      tpu.vector_store %arg10[%c0_52, %c0_53, %c0_54], %129 {strides = array<i32>} : memref<2x64x128xf32, #tpu.memory_space<vmem>>, vector<2x64x128xf32>,
    } else {
    }
    %c0 = arith.constant 0 : index
    %c0_1 = arith.constant 0 : index
    %c0_2 = arith.constant 0 : index
    %3 = vector.load %arg8[%c0, %c0_1, %c0_2] : memref<1x8x128xf32, #tpu.memory_space<vmem>>, vector<1x8x128xf32>
    %4 = vector.shape_cast %3 : vector<1x8x128xf32> to vector<8x128xf32>
    %5 = vector.extract_strided_slice %4 {offsets = [0, 0], sizes = [1, 128], strides = [1, 1]} : vector<8x128xf32> to vector<1x128xf32>
    %6 = vector.extract_strided_slice %4 {offsets = [1, 0], sizes = [1, 128], strides = [1, 1]} : vector<8x128xf32> to vector<1x128xf32>
    %7 = vector.extract_strided_slice %4 {offsets = [2, 0], sizes = [1, 128], strides = [1, 1]} : vector<8x128xf32> to vector<1x128xf32>
    %8 = vector.extract_strided_slice %4 {offsets = [3, 0], sizes = [1, 128], strides = [1, 1]} : vector<8x128xf32> to vector<1x128xf32>
    %9 = vector.extract_strided_slice %4 {offsets = [4, 0], sizes = [1, 128], strides = [1, 1]} : vector<8x128xf32> to vector<1x128xf32>
    %10 = vector.extract_strided_slice %4 {offsets = [5, 0], sizes = [1, 128], strides = [1, 1]} : vector<8x128xf32> to vector<1x128xf32>
    %c0_3 = arith.constant 0 : index
    %c0_4 = arith.constant 0 : index
    %c0_5 = arith.constant 0 : index
    %11 = vector.load %arg10[%c0_3, %c0_4, %c0_5] : memref<2x64x128xf32, #tpu.memory_space<vmem>>, vector<2x64x128xf32>
    %12 = vector.shape_cast %11 : vector<2x64x128xf32> to vector<128x128xf32>
    %13 = arith.truncf %12 : vector<128x128xf32> to vector<128x128xbf16>
    %c0_6 = arith.constant 0 : index
    %c0_7 = arith.constant 0 : index
    %c0_8 = arith.constant 0 : index
    %14 = vector.load %arg2[%c0_6, %c0_7, %c0_8] : memref<1x128x384xbf16, #tpu.memory_space<vmem>>, vector<1x128x384xbf16>
    %15 = vector.shape_cast %14 : vector<1x128x384xbf16> to vector<128x384xbf16>
    %cst = arith.constant dense<0.000000e+00> : vector<128x384xf32>
    %16 = tpu.matmul %13, %15, %cst {dimension_numbers = #tpu.dot_dimension_numbers<[1], [0], [0], [1], [0, 0, 1, 1], [], []>} : vector<128x128xbf16>, vector<128x384xbf16>, vector<128x384xf32> -> vector<128x384xf32>
    %c0_9 = arith.constant 0 : index
    %c0_10 = arith.constant 0 : index
    %c0_11 = arith.constant 0 : index
    %17 = vector.load %arg6[%c0_9, %c0_10, %c0_11] : memref<1x1x384xf32, #tpu.memory_space<vmem>>, vector<1x1x384xf32>
    %18 = vector.shape_cast %17 : vector<1x1x384xf32> to vector<1x384xf32>
    %19 = vector.broadcast %18 : vector<1x384xf32> to vector<128x384xf32>
    %20 = arith.addf %16, %19 : vector<128x384xf32>
    %21 = vector.extract_strided_slice %20 {offsets = [0, 0], sizes = [128, 128], strides = [1, 1]} : vector<128x384xf32> to vector<128x128xf32>
    %22 = vector.shape_cast %21 : vector<128x128xf32> to vector<2x64x128xf32>
    %23 = arith.truncf %22 : vector<2x64x128xf32> to vector<2x64x128xbf16>
    %24 = vector.extract_strided_slice %20 {offsets = [0, 128], sizes = [128, 128], strides = [1, 1]} : vector<128x384xf32> to vector<128x128xf32>
    %25 = vector.shape_cast %24 : vector<128x128xf32> to vector<2x64x128xf32>
    %26 = arith.truncf %25 : vector<2x64x128xf32> to vector<2x64x128xbf16>
    %27 = vector.extract_strided_slice %20 {offsets = [0, 256], sizes = [128, 128], strides = [1, 1]} : vector<128x384xf32> to vector<128x128xf32>
    %28 = vector.shape_cast %27 : vector<128x128xf32> to vector<2x64x128xf32>
    %29 = arith.truncf %28 : vector<2x64x128xf32> to vector<2x64x128xbf16>
    "tpu.trace_start"() <{level = 10 : i32, message = "bqd,bkd->bqk"}> : () -> ()
    %cst_12 = arith.constant dense<0.000000e+00> : vector<2x64x64xf32>
    %30 = tpu.matmul %23, %26, %cst_12 {dimension_numbers = #tpu.dot_dimension_numbers<[2], [2], [1], [1], [0, 0, 0, 1, 1, 1], [0], [0]>} : vector<2x64x128xbf16>, vector<2x64x128xbf16>, vector<2x64x64xf32> -> vector<2x64x64xf32>
    "tpu.trace_stop"() : () -> ()
    %cst_13 = arith.constant dense<0xFF800000> : vector<2x64xf32>
    %31 = vector.multi_reduction <maximumf>, %30, %cst_13 [2] : vector<2x64x64xf32> to vector<2x64xf32>
    %32 = vector.shape_cast %31 : vector<2x64xf32> to vector<2x64x1xf32>
    %33 = vector.broadcast %32 : vector<2x64x1xf32> to vector<2x64x64xf32>
    %34 = arith.subf %30, %33 : vector<2x64x64xf32>
    %35 = math.exp %34 : vector<2x64x64xf32>
    %cst_14 = arith.constant dense<0.000000e+00> : vector<2x64xf32>
    %36 = vector.multi_reduction <add>, %35, %cst_14 [2] : vector<2x64x64xf32> to vector<2x64xf32>
    %37 = vector.shape_cast %36 : vector<2x64xf32> to vector<2x64x1xf32>
    %38 = tpu.reciprocal %37 {approx = true} : vector<2x64x1xf32> -> vector<2x64x1xf32>
    %39 = vector.broadcast %38 : vector<2x64x1xf32> to vector<2x64x64xf32>
    %40 = arith.mulf %35, %39 : vector<2x64x64xf32>
    %41 = arith.truncf %40 : vector<2x64x64xf32> to vector<2x64x64xbf16>
    "tpu.trace_start"() <{level = 10 : i32, message = "bqk,bkd->bqd"}> : () -> ()
    %cst_15 = arith.constant dense<0.000000e+00> : vector<2x64x128xf32>
    %42 = tpu.matmul %41, %29, %cst_15 {dimension_numbers = #tpu.dot_dimension_numbers<[2], [1], [1], [2], [0, 0, 0, 1, 1, 2], [0], [0]>} : vector<2x64x64xbf16>, vector<2x64x128xbf16>, vector<2x64x128xf32> -> vector<2x64x128xf32>
    "tpu.trace_stop"() : () -> ()
    %43 = vector.shape_cast %42 : vector<2x64x128xf32> to vector<128x128xf32>
    %44 = arith.truncf %43 : vector<128x128xf32> to vector<128x128xbf16>
    %c0_16 = arith.constant 0 : index
    %c0_17 = arith.constant 0 : index
    %c0_18 = arith.constant 0 : index
    %45 = vector.load %arg3[%c0_16, %c0_17, %c0_18] : memref<1x128x128xbf16, #tpu.memory_space<vmem>>, vector<1x128x128xbf16>
    %46 = vector.shape_cast %45 : vector<1x128x128xbf16> to vector<128x128xbf16>
    %cst_19 = arith.constant dense<0.000000e+00> : vector<128x128xf32>
    %47 = tpu.matmul %44, %46, %cst_19 {dimension_numbers = #tpu.dot_dimension_numbers<[1], [0], [0], [1], [0, 0, 1, 1], [], []>} : vector<128x128xbf16>, vector<128x128xbf16>, vector<128x128xf32> -> vector<128x128xf32>
    %48 = vector.broadcast %5 : vector<1x128xf32> to vector<128x128xf32>
    %49 = arith.addf %47, %48 : vector<128x128xf32>
    %cst_20 = arith.constant dense<0.000000e+00> : vector<128xf32>
    %50 = vector.multi_reduction <add>, %49, %cst_20 [1] : vector<128x128xf32> to vector<128xf32>
    %51 = vector.shape_cast %50 : vector<128xf32> to vector<128x1xf32>
    %cst_21 = arith.constant 1.280000e+02 : f32
    %52 = vector.broadcast %cst_21 : f32 to vector<128x1xf32>
    %53 = arith.divf %51, %52 : vector<128x1xf32>
    %54 = vector.broadcast %53 : vector<128x1xf32> to vector<128x128xf32>
    %55 = arith.subf %49, %54 : vector<128x128xf32>
    %56 = arith.mulf %55, %55 : vector<128x128xf32>
    %cst_22 = arith.constant dense<0.000000e+00> : vector<128xf32>
    %57 = vector.multi_reduction <add>, %56, %cst_22 [1] : vector<128x128xf32> to vector<128xf32>
    %58 = vector.shape_cast %57 : vector<128xf32> to vector<128x1xf32>
    %cst_23 = arith.constant 1.280000e+02 : f32
    %59 = vector.broadcast %cst_23 : f32 to vector<128x1xf32>
    %60 = arith.divf %58, %59 : vector<128x1xf32>
    %61 = vector.broadcast %53 : vector<128x1xf32> to vector<128x128xf32>
    %62 = arith.subf %49, %61 : vector<128x128xf32>
    %cst_24 = arith.constant 9.99999974E-6 : f32
    %63 = vector.broadcast %cst_24 : f32 to vector<128x1xf32>
    %64 = arith.addf %60, %63 : vector<128x1xf32>
    %65 = math.rsqrt %64 : vector<128x1xf32>
    %66 = vector.broadcast %65 : vector<128x1xf32> to vector<128x128xf32>
    %67 = arith.mulf %62, %66 : vector<128x128xf32>
    %68 = vector.broadcast %6 : vector<1x128xf32> to vector<128x128xf32>
    %69 = arith.mulf %67, %68 : vector<128x128xf32>
    %70 = vector.broadcast %7 : vector<1x128xf32> to vector<128x128xf32>
    %71 = arith.addf %69, %70 : vector<128x128xf32>
    %72 = arith.addf %12, %71 : vector<128x128xf32>
    %73 = arith.truncf %72 : vector<128x128xf32> to vector<128x128xbf16>
    %c0_25 = arith.constant 0 : index
    %c0_26 = arith.constant 0 : index
    %c0_27 = arith.constant 0 : index
    %74 = vector.load %arg4[%c0_25, %c0_26, %c0_27] : memref<1x128x512xbf16, #tpu.memory_space<vmem>>, vector<1x128x512xbf16>
    %75 = vector.shape_cast %74 : vector<1x128x512xbf16> to vector<128x512xbf16>
    %cst_28 = arith.constant dense<0.000000e+00> : vector<128x512xf32>
    %76 = tpu.matmul %73, %75, %cst_28 {dimension_numbers = #tpu.dot_dimension_numbers<[1], [0], [0], [1], [0, 0, 1, 1], [], []>} : vector<128x128xbf16>, vector<128x512xbf16>, vector<128x512xf32> -> vector<128x512xf32>
    %c0_29 = arith.constant 0 : index
    %c0_30 = arith.constant 0 : index
    %c0_31 = arith.constant 0 : index
    %77 = vector.load %arg7[%c0_29, %c0_30, %c0_31] : memref<1x1x512xf32, #tpu.memory_space<vmem>>, vector<1x1x512xf32>
    %78 = vector.shape_cast %77 : vector<1x1x512xf32> to vector<1x512xf32>
    %79 = vector.broadcast %78 : vector<1x512xf32> to vector<128x512xf32>
    %80 = arith.addf %76, %79 : vector<128x512xf32>
    %81 = arith.mulf %80, %80 : vector<128x512xf32>
    %82 = arith.mulf %80, %81 : vector<128x512xf32>
    %cst_32 = arith.constant 4.471500e-02 : f32
    %83 = vector.broadcast %cst_32 : f32 to vector<128x512xf32>
    %84 = arith.mulf %83, %82 : vector<128x512xf32>
    %85 = arith.addf %80, %84 : vector<128x512xf32>
    %cst_33 = arith.constant 0.797884583 : f32
    %86 = vector.broadcast %cst_33 : f32 to vector<128x512xf32>
    %87 = arith.mulf %86, %85 : vector<128x512xf32>
    %88 = math.tanh %87 : vector<128x512xf32>
    %cst_34 = arith.constant 1.000000e+00 : f32
    %89 = vector.broadcast %cst_34 : f32 to vector<128x512xf32>
    %90 = arith.addf %89, %88 : vector<128x512xf32>
    %cst_35 = arith.constant 5.000000e-01 : f32
    %91 = vector.broadcast %cst_35 : f32 to vector<128x512xf32>
    %92 = arith.mulf %91, %90 : vector<128x512xf32>
    %93 = arith.mulf %80, %92 : vector<128x512xf32>
    %94 = arith.truncf %93 : vector<128x512xf32> to vector<128x512xbf16>
    %c0_36 = arith.constant 0 : index
    %c0_37 = arith.constant 0 : index
    %c0_38 = arith.constant 0 : index
    %95 = vector.load %arg5[%c0_36, %c0_37, %c0_38] : memref<1x512x128xbf16, #tpu.memory_space<vmem>>, vector<1x512x128xbf16>
    %96 = vector.shape_cast %95 : vector<1x512x128xbf16> to vector<512x128xbf16>
    %cst_39 = arith.constant dense<0.000000e+00> : vector<128x128xf32>
    %97 = tpu.matmul %94, %96, %cst_39 {dimension_numbers = #tpu.dot_dimension_numbers<[1], [0], [0], [1], [0, 0, 1, 1], [], []>} : vector<128x512xbf16>, vector<512x128xbf16>, vector<128x128xf32> -> vector<128x128xf32>
    %98 = vector.broadcast %8 : vector<1x128xf32> to vector<128x128xf32>
    %99 = arith.addf %97, %98 : vector<128x128xf32>
    %cst_40 = arith.constant dense<0.000000e+00> : vector<128xf32>
    %100 = vector.multi_reduction <add>, %99, %cst_40 [1] : vector<128x128xf32> to vector<128xf32>
    %101 = vector.shape_cast %100 : vector<128xf32> to vector<128x1xf32>
    %cst_41 = arith.constant 1.280000e+02 : f32
    %102 = vector.broadcast %cst_41 : f32 to vector<128x1xf32>
    %103 = arith.divf %101, %102 : vector<128x1xf32>
    %104 = vector.broadcast %103 : vector<128x1xf32> to vector<128x128xf32>
    %105 = arith.subf %99, %104 : vector<128x128xf32>
    %106 = arith.mulf %105, %105 : vector<128x128xf32>
    %cst_42 = arith.constant dense<0.000000e+00> : vector<128xf32>
    %107 = vector.multi_reduction <add>, %106, %cst_42 [1] : vector<128x128xf32> to vector<128xf32>
    %108 = vector.shape_cast %107 : vector<128xf32> to vector<128x1xf32>
    %cst_43 = arith.constant 1.280000e+02 : f32
    %109 = vector.broadcast %cst_43 : f32 to vector<128x1xf32>
    %110 = arith.divf %108, %109 : vector<128x1xf32>
    %111 = vector.broadcast %103 : vector<128x1xf32> to vector<128x128xf32>
    %112 = arith.subf %99, %111 : vector<128x128xf32>
    %cst_44 = arith.constant 9.99999974E-6 : f32
    %113 = vector.broadcast %cst_44 : f32 to vector<128x1xf32>
    %114 = arith.addf %110, %113 : vector<128x1xf32>
    %115 = math.rsqrt %114 : vector<128x1xf32>
    %116 = vector.broadcast %115 : vector<128x1xf32> to vector<128x128xf32>
    %117 = arith.mulf %112, %116 : vector<128x128xf32>
    %118 = vector.broadcast %9 : vector<1x128xf32> to vector<128x128xf32>
    %119 = arith.mulf %117, %118 : vector<128x128xf32>
    %120 = vector.broadcast %10 : vector<1x128xf32> to vector<128x128xf32>
    %121 = arith.addf %119, %120 : vector<128x128xf32>
    %122 = arith.addf %72, %121 : vector<128x128xf32>
    %123 = vector.shape_cast %122 : vector<128x128xf32> to vector<2x64x128xf32>
    %c0_45 = arith.constant 0 : index
    %c0_46 = arith.constant 0 : index
    %c0_47 = arith.constant 0 : index
    %124 = vector.load %arg10[%c0_45, %c0_46, %c0_47] : memref<2x64x128xf32, #tpu.memory_space<vmem>>, vector<2x64x128xf32>
    tpu.vector_store %arg10[%c0_45, %c0_46, %c0_47], %123 {strides = array<i32>} : memref<2x64x128xf32, #tpu.memory_space<vmem>>, vector<2x64x128xf32>,
    %c1_i32 = arith.constant 1 : i32
    %125 = arith.cmpi eq, %arg0, %c1_i32 : i32
    %126 = arith.extui %125 : i1 to i32
    %c0_i32_48 = arith.constant 0 : i32
    %127 = arith.cmpi ne, %126, %c0_i32_48 : i32
    scf.if %127 {
      %c0_49 = arith.constant 0 : index
      %c0_50 = arith.constant 0 : index
      %c0_51 = arith.constant 0 : index
      %128 = vector.load %arg10[%c0_49, %c0_50, %c0_51] : memref<2x64x128xf32, #tpu.memory_space<vmem>>, vector<2x64x128xf32>
      %129 = arith.truncf %128 : vector<2x64x128xf32> to vector<2x64x128xbf16>
      %c0_52 = arith.constant 0 : index
      %c0_53 = arith.constant 0 : index
      %c0_54 = arith.constant 0 : index
      %130 = vector.load %arg9[%c0_52, %c0_53, %c0_54] : memref<2x64x128xbf16, #tpu.memory_space<vmem>>, vector<2x64x128xbf16>
      tpu.vector_store %arg9[%c0_52, %c0_53, %c0_54], %129 {strides = array<i32>} : memref<2x64x128xbf16, #tpu.memory_space<vmem>>, vector<2x64x128xbf16>,
    } else {
    }
    return
  }
  func.func @transform_0(%arg0: i32) -> (i32, i32, i32) {
    %c0_i32 = arith.constant 0 : i32
    %c0_i32_0 = arith.constant 0 : i32
    %c0_i32_1 = arith.constant 0 : i32
    %c0_i32_2 = arith.constant 0 : i32
    return %c0_i32, %c0_i32_0, %c0_i32_1 : i32, i32, i32
  }
  func.func @transform_1(%arg0: i32) -> (i32, i32, i32) {
    %c0_i32 = arith.constant 0 : i32
    %c0_i32_0 = arith.constant 0 : i32
    %c0_i32_1 = arith.constant 0 : i32
    return %arg0, %c0_i32, %c0_i32_0 : i32, i32, i32
  }
  func.func @transform_2(%arg0: i32) -> (i32, i32, i32) {
    %c0_i32 = arith.constant 0 : i32
    %c0_i32_0 = arith.constant 0 : i32
    %c0_i32_1 = arith.constant 0 : i32
    return %arg0, %c0_i32, %c0_i32_0 : i32, i32, i32
  }
  func.func @transform_3(%arg0: i32) -> (i32, i32, i32) {
    %c0_i32 = arith.constant 0 : i32
    %c0_i32_0 = arith.constant 0 : i32
    %c0_i32_1 = arith.constant 0 : i32
    return %arg0, %c0_i32, %c0_i32_0 : i32, i32, i32
  }
  func.func @transform_4(%arg0: i32) -> (i32, i32, i32) {
    %c0_i32 = arith.constant 0 : i32
    %c0_i32_0 = arith.constant 0 : i32
    %c0_i32_1 = arith.constant 0 : i32
    return %arg0, %c0_i32, %c0_i32_0 : i32, i32, i32
  }
  func.func @transform_5(%arg0: i32) -> (i32, i32, i32) {
    %c0_i32 = arith.constant 0 : i32
    %c0_i32_0 = arith.constant 0 : i32
    %c0_i32_1 = arith.constant 0 : i32
    return %arg0, %c0_i32, %c0_i32_0 : i32, i32, i32
  }
  func.func @transform_6(%arg0: i32) -> (i32, i32, i32) {
    %c0_i32 = arith.constant 0 : i32
    %c0_i32_0 = arith.constant 0 : i32
    %c0_i32_1 = arith.constant 0 : i32
    return %arg0, %c0_i32, %c0_i32_0 : i32, i32, i32
  }
  func.func @transform_7(%arg0: i32) -> (i32, i32, i32) {
    %c0_i32 = arith.constant 0 : i32
    %c0_i32_0 = arith.constant 0 : i32
    %c0_i32_1 = arith.constant 0 : i32
    return %arg0, %c0_i32, %c0_i32_0 : i32, i32, i32
  }
  func.func @transform_8(%arg0: i32) -> (i32, i32, i32) {
    %c0_i32 = arith.constant 0 : i32
    %c0_i32_0 = arith.constant 0 : i32
    %c0_i32_1 = arith.constant 0 : i32
    %c0_i32_2 = arith.constant 0 : i32
    return %c0_i32, %c0_i32_0, %c0_i32_1 : i32, i32, i32
  }
}

module attributes {stable_mosaic.version = 11 : i64} {
  func.func @_linear_ln_kernel(%arg0: i32, %arg1: memref<32x512xbf16, #tpu.memory_space<vmem>>, %arg2: memref<512x256xbf16, #tpu.memory_space<vmem>>, %arg3: memref<8x256xf32, #tpu.memory_space<vmem>>, %arg4: memref<32x256xbf16, #tpu.memory_space<vmem>>) attributes {dimension_semantics = [#tpu.dimension_semantics<parallel>], iteration_bounds = array<i64: 1>, scalar_prefetch = 0 : i64, scratch_operands = 0 : i64, tpu.core_type = #tpu.core_type<tc>, window_params = [{transform_indices = @transform_0, window_bounds = array<i64: 32, 512>}, {pipeline_mode = #tpu.pipeline_mode<synchronous>, transform_indices = @transform_1, window_bounds = array<i64: 512, 256>}, {pipeline_mode = #tpu.pipeline_mode<synchronous>, transform_indices = @transform_2, window_bounds = array<i64: 8, 256>}, {transform_indices = @transform_3, window_bounds = array<i64: 32, 256>}]} {
    %c0 = arith.constant 0 : index
    %c0_0 = arith.constant 0 : index
    %0 = vector.load %arg1[%c0, %c0_0] : memref<32x512xbf16, #tpu.memory_space<vmem>>, vector<32x512xbf16>
    %c0_1 = arith.constant 0 : index
    %c0_2 = arith.constant 0 : index
    %1 = vector.load %arg2[%c0_1, %c0_2] : memref<512x256xbf16, #tpu.memory_space<vmem>>, vector<512x256xbf16>
    %cst = arith.constant dense<0.000000e+00> : vector<32x256xf32>
    %2 = tpu.matmul %0, %1, %cst {dimension_numbers = #tpu.dot_dimension_numbers<[1], [0], [0], [1], [0, 0, 1, 1], [], []>} : vector<32x512xbf16>, vector<512x256xbf16>, vector<32x256xf32> -> vector<32x256xf32>
    %c0_3 = arith.constant 0 : index
    %c0_4 = arith.constant 0 : index
    %3 = vector.load %arg3[%c0_3, %c0_4] : memref<8x256xf32, #tpu.memory_space<vmem>>, vector<8x256xf32>
    %4 = vector.extract_strided_slice %3 {offsets = [0, 0], sizes = [1, 256], strides = [1, 1]} : vector<8x256xf32> to vector<1x256xf32>
    %5 = vector.broadcast %4 : vector<1x256xf32> to vector<32x256xf32>
    %6 = arith.addf %2, %5 : vector<32x256xf32>
    %7 = vector.extract_strided_slice %3 {offsets = [1, 0], sizes = [1, 256], strides = [1, 1]} : vector<8x256xf32> to vector<1x256xf32>
    %8 = vector.extract_strided_slice %3 {offsets = [2, 0], sizes = [1, 256], strides = [1, 1]} : vector<8x256xf32> to vector<1x256xf32>
    %cst_5 = arith.constant dense<0.000000e+00> : vector<32xf32>
    %9 = vector.multi_reduction <add>, %6, %cst_5 [1] : vector<32x256xf32> to vector<32xf32>
    %10 = vector.shape_cast %9 : vector<32xf32> to vector<32x1xf32>
    %cst_6 = arith.constant 2.560000e+02 : f32
    %11 = vector.broadcast %cst_6 : f32 to vector<32x1xf32>
    %12 = arith.divf %10, %11 : vector<32x1xf32>
    %13 = vector.broadcast %12 : vector<32x1xf32> to vector<32x256xf32>
    %14 = arith.subf %6, %13 : vector<32x256xf32>
    %15 = arith.mulf %14, %14 : vector<32x256xf32>
    %cst_7 = arith.constant dense<0.000000e+00> : vector<32xf32>
    %16 = vector.multi_reduction <add>, %15, %cst_7 [1] : vector<32x256xf32> to vector<32xf32>
    %17 = vector.shape_cast %16 : vector<32xf32> to vector<32x1xf32>
    %cst_8 = arith.constant 2.560000e+02 : f32
    %18 = vector.broadcast %cst_8 : f32 to vector<32x1xf32>
    %19 = arith.divf %17, %18 : vector<32x1xf32>
    %20 = vector.broadcast %12 : vector<32x1xf32> to vector<32x256xf32>
    %21 = arith.subf %6, %20 : vector<32x256xf32>
    %cst_9 = arith.constant 9.99999974E-6 : f32
    %22 = vector.broadcast %cst_9 : f32 to vector<32x1xf32>
    %23 = arith.addf %19, %22 : vector<32x1xf32>
    %24 = math.rsqrt %23 : vector<32x1xf32>
    %25 = vector.broadcast %24 : vector<32x1xf32> to vector<32x256xf32>
    %26 = arith.mulf %21, %25 : vector<32x256xf32>
    %27 = vector.broadcast %7 : vector<1x256xf32> to vector<32x256xf32>
    %28 = arith.mulf %26, %27 : vector<32x256xf32>
    %29 = vector.broadcast %8 : vector<1x256xf32> to vector<32x256xf32>
    %30 = arith.addf %28, %29 : vector<32x256xf32>
    %31 = arith.truncf %30 : vector<32x256xf32> to vector<32x256xbf16>
    %c0_10 = arith.constant 0 : index
    %c0_11 = arith.constant 0 : index
    %32 = vector.load %arg4[%c0_10, %c0_11] : memref<32x256xbf16, #tpu.memory_space<vmem>>, vector<32x256xbf16>
    tpu.vector_store %arg4[%c0_10, %c0_11], %31 {strides = array<i32>} : memref<32x256xbf16, #tpu.memory_space<vmem>>, vector<32x256xbf16>,
    return
  }
  func.func @transform_0(%arg0: i32) -> (i32, i32) {
    %c0_i32 = arith.constant 0 : i32
    %c0_i32_0 = arith.constant 0 : i32
    return %arg0, %c0_i32 : i32, i32
  }
  func.func @transform_1(%arg0: i32) -> (i32, i32) {
    %c0_i32 = arith.constant 0 : i32
    %c0_i32_0 = arith.constant 0 : i32
    %c0_i32_1 = arith.constant 0 : i32
    return %c0_i32, %c0_i32_0 : i32, i32
  }
  func.func @transform_2(%arg0: i32) -> (i32, i32) {
    %c0_i32 = arith.constant 0 : i32
    %c0_i32_0 = arith.constant 0 : i32
    %c0_i32_1 = arith.constant 0 : i32
    return %c0_i32, %c0_i32_0 : i32, i32
  }
  func.func @transform_3(%arg0: i32) -> (i32, i32) {
    %c0_i32 = arith.constant 0 : i32
    %c0_i32_0 = arith.constant 0 : i32
    return %arg0, %c0_i32 : i32, i32
  }
}

module attributes {stable_mosaic.version = 11 : i64} {
  func.func @_stage_kernel(%arg0: i32, %arg1: memref<2x16x256xbf16, #tpu.memory_space<vmem>>, %arg2: memref<1x256x768xbf16, #tpu.memory_space<vmem>>, %arg3: memref<1x256x256xbf16, #tpu.memory_space<vmem>>, %arg4: memref<1x256x1024xbf16, #tpu.memory_space<vmem>>, %arg5: memref<1x1024x256xbf16, #tpu.memory_space<vmem>>, %arg6: memref<1x1x768xf32, #tpu.memory_space<vmem>>, %arg7: memref<1x1x1024xf32, #tpu.memory_space<vmem>>, %arg8: memref<1x8x256xf32, #tpu.memory_space<vmem>>, %arg9: memref<2x16x256xbf16, #tpu.memory_space<vmem>>, %arg10: memref<2x16x256xf32, #tpu.memory_space<vmem>>) attributes {dimension_semantics = [#tpu.dimension_semantics<arbitrary>], iteration_bounds = array<i64: 2>, scalar_prefetch = 0 : i64, scratch_operands = 1 : i64, tpu.core_type = #tpu.core_type<tc>, window_params = [{pipeline_mode = #tpu.pipeline_mode<synchronous>, transform_indices = @transform_0, window_bounds = array<i64: 2, 16, 256>}, {transform_indices = @transform_1, window_bounds = array<i64: 1, 256, 768>}, {transform_indices = @transform_2, window_bounds = array<i64: 1, 256, 256>}, {transform_indices = @transform_3, window_bounds = array<i64: 1, 256, 1024>}, {transform_indices = @transform_4, window_bounds = array<i64: 1, 1024, 256>}, {transform_indices = @transform_5, window_bounds = array<i64: 1, 1, 768>}, {transform_indices = @transform_6, window_bounds = array<i64: 1, 1, 1024>}, {transform_indices = @transform_7, window_bounds = array<i64: 1, 8, 256>}, {pipeline_mode = #tpu.pipeline_mode<synchronous>, transform_indices = @transform_8, window_bounds = array<i64: 2, 16, 256>}]} {
    %c0_i32 = arith.constant 0 : i32
    %0 = arith.cmpi eq, %arg0, %c0_i32 : i32
    %1 = arith.extui %0 : i1 to i32
    %c0_i32_0 = arith.constant 0 : i32
    %2 = arith.cmpi ne, %1, %c0_i32_0 : i32
    scf.if %2 {
      %c0_49 = arith.constant 0 : index
      %c0_50 = arith.constant 0 : index
      %c0_51 = arith.constant 0 : index
      %128 = vector.load %arg1[%c0_49, %c0_50, %c0_51] : memref<2x16x256xbf16, #tpu.memory_space<vmem>>, vector<2x16x256xbf16>
      %129 = arith.extf %128 : vector<2x16x256xbf16> to vector<2x16x256xf32>
      %c0_52 = arith.constant 0 : index
      %c0_53 = arith.constant 0 : index
      %c0_54 = arith.constant 0 : index
      %130 = vector.load %arg10[%c0_52, %c0_53, %c0_54] : memref<2x16x256xf32, #tpu.memory_space<vmem>>, vector<2x16x256xf32>
      tpu.vector_store %arg10[%c0_52, %c0_53, %c0_54], %129 {strides = array<i32>} : memref<2x16x256xf32, #tpu.memory_space<vmem>>, vector<2x16x256xf32>,
    } else {
    }
    %c0 = arith.constant 0 : index
    %c0_1 = arith.constant 0 : index
    %c0_2 = arith.constant 0 : index
    %3 = vector.load %arg8[%c0, %c0_1, %c0_2] : memref<1x8x256xf32, #tpu.memory_space<vmem>>, vector<1x8x256xf32>
    %4 = vector.shape_cast %3 : vector<1x8x256xf32> to vector<8x256xf32>
    %5 = vector.extract_strided_slice %4 {offsets = [0, 0], sizes = [1, 256], strides = [1, 1]} : vector<8x256xf32> to vector<1x256xf32>
    %6 = vector.extract_strided_slice %4 {offsets = [1, 0], sizes = [1, 256], strides = [1, 1]} : vector<8x256xf32> to vector<1x256xf32>
    %7 = vector.extract_strided_slice %4 {offsets = [2, 0], sizes = [1, 256], strides = [1, 1]} : vector<8x256xf32> to vector<1x256xf32>
    %8 = vector.extract_strided_slice %4 {offsets = [3, 0], sizes = [1, 256], strides = [1, 1]} : vector<8x256xf32> to vector<1x256xf32>
    %9 = vector.extract_strided_slice %4 {offsets = [4, 0], sizes = [1, 256], strides = [1, 1]} : vector<8x256xf32> to vector<1x256xf32>
    %10 = vector.extract_strided_slice %4 {offsets = [5, 0], sizes = [1, 256], strides = [1, 1]} : vector<8x256xf32> to vector<1x256xf32>
    %c0_3 = arith.constant 0 : index
    %c0_4 = arith.constant 0 : index
    %c0_5 = arith.constant 0 : index
    %11 = vector.load %arg10[%c0_3, %c0_4, %c0_5] : memref<2x16x256xf32, #tpu.memory_space<vmem>>, vector<2x16x256xf32>
    %12 = vector.shape_cast %11 : vector<2x16x256xf32> to vector<32x256xf32>
    %13 = arith.truncf %12 : vector<32x256xf32> to vector<32x256xbf16>
    %c0_6 = arith.constant 0 : index
    %c0_7 = arith.constant 0 : index
    %c0_8 = arith.constant 0 : index
    %14 = vector.load %arg2[%c0_6, %c0_7, %c0_8] : memref<1x256x768xbf16, #tpu.memory_space<vmem>>, vector<1x256x768xbf16>
    %15 = vector.shape_cast %14 : vector<1x256x768xbf16> to vector<256x768xbf16>
    %cst = arith.constant dense<0.000000e+00> : vector<32x768xf32>
    %16 = tpu.matmul %13, %15, %cst {dimension_numbers = #tpu.dot_dimension_numbers<[1], [0], [0], [1], [0, 0, 1, 1], [], []>} : vector<32x256xbf16>, vector<256x768xbf16>, vector<32x768xf32> -> vector<32x768xf32>
    %c0_9 = arith.constant 0 : index
    %c0_10 = arith.constant 0 : index
    %c0_11 = arith.constant 0 : index
    %17 = vector.load %arg6[%c0_9, %c0_10, %c0_11] : memref<1x1x768xf32, #tpu.memory_space<vmem>>, vector<1x1x768xf32>
    %18 = vector.shape_cast %17 : vector<1x1x768xf32> to vector<1x768xf32>
    %19 = vector.broadcast %18 : vector<1x768xf32> to vector<32x768xf32>
    %20 = arith.addf %16, %19 : vector<32x768xf32>
    %21 = vector.extract_strided_slice %20 {offsets = [0, 0], sizes = [32, 256], strides = [1, 1]} : vector<32x768xf32> to vector<32x256xf32>
    %22 = vector.shape_cast %21 : vector<32x256xf32> to vector<2x16x256xf32>
    %23 = arith.truncf %22 : vector<2x16x256xf32> to vector<2x16x256xbf16>
    %24 = vector.extract_strided_slice %20 {offsets = [0, 256], sizes = [32, 256], strides = [1, 1]} : vector<32x768xf32> to vector<32x256xf32>
    %25 = vector.shape_cast %24 : vector<32x256xf32> to vector<2x16x256xf32>
    %26 = arith.truncf %25 : vector<2x16x256xf32> to vector<2x16x256xbf16>
    %27 = vector.extract_strided_slice %20 {offsets = [0, 512], sizes = [32, 256], strides = [1, 1]} : vector<32x768xf32> to vector<32x256xf32>
    %28 = vector.shape_cast %27 : vector<32x256xf32> to vector<2x16x256xf32>
    %29 = arith.truncf %28 : vector<2x16x256xf32> to vector<2x16x256xbf16>
    "tpu.trace_start"() <{level = 10 : i32, message = "bqd,bkd->bqk"}> : () -> ()
    %cst_12 = arith.constant dense<0.000000e+00> : vector<2x16x16xf32>
    %30 = tpu.matmul %23, %26, %cst_12 {dimension_numbers = #tpu.dot_dimension_numbers<[2], [2], [1], [1], [0, 0, 0, 1, 1, 1], [0], [0]>} : vector<2x16x256xbf16>, vector<2x16x256xbf16>, vector<2x16x16xf32> -> vector<2x16x16xf32>
    "tpu.trace_stop"() : () -> ()
    %cst_13 = arith.constant dense<0xFF800000> : vector<2x16xf32>
    %31 = vector.multi_reduction <maximumf>, %30, %cst_13 [2] : vector<2x16x16xf32> to vector<2x16xf32>
    %32 = vector.shape_cast %31 : vector<2x16xf32> to vector<2x16x1xf32>
    %33 = vector.broadcast %32 : vector<2x16x1xf32> to vector<2x16x16xf32>
    %34 = arith.subf %30, %33 : vector<2x16x16xf32>
    %35 = math.exp %34 : vector<2x16x16xf32>
    %cst_14 = arith.constant dense<0.000000e+00> : vector<2x16xf32>
    %36 = vector.multi_reduction <add>, %35, %cst_14 [2] : vector<2x16x16xf32> to vector<2x16xf32>
    %37 = vector.shape_cast %36 : vector<2x16xf32> to vector<2x16x1xf32>
    %38 = tpu.reciprocal %37 {approx = true} : vector<2x16x1xf32> -> vector<2x16x1xf32>
    %39 = vector.broadcast %38 : vector<2x16x1xf32> to vector<2x16x16xf32>
    %40 = arith.mulf %35, %39 : vector<2x16x16xf32>
    %41 = arith.truncf %40 : vector<2x16x16xf32> to vector<2x16x16xbf16>
    "tpu.trace_start"() <{level = 10 : i32, message = "bqk,bkd->bqd"}> : () -> ()
    %cst_15 = arith.constant dense<0.000000e+00> : vector<2x16x256xf32>
    %42 = tpu.matmul %41, %29, %cst_15 {dimension_numbers = #tpu.dot_dimension_numbers<[2], [1], [1], [2], [0, 0, 0, 1, 1, 2], [0], [0]>} : vector<2x16x16xbf16>, vector<2x16x256xbf16>, vector<2x16x256xf32> -> vector<2x16x256xf32>
    "tpu.trace_stop"() : () -> ()
    %43 = vector.shape_cast %42 : vector<2x16x256xf32> to vector<32x256xf32>
    %44 = arith.truncf %43 : vector<32x256xf32> to vector<32x256xbf16>
    %c0_16 = arith.constant 0 : index
    %c0_17 = arith.constant 0 : index
    %c0_18 = arith.constant 0 : index
    %45 = vector.load %arg3[%c0_16, %c0_17, %c0_18] : memref<1x256x256xbf16, #tpu.memory_space<vmem>>, vector<1x256x256xbf16>
    %46 = vector.shape_cast %45 : vector<1x256x256xbf16> to vector<256x256xbf16>
    %cst_19 = arith.constant dense<0.000000e+00> : vector<32x256xf32>
    %47 = tpu.matmul %44, %46, %cst_19 {dimension_numbers = #tpu.dot_dimension_numbers<[1], [0], [0], [1], [0, 0, 1, 1], [], []>} : vector<32x256xbf16>, vector<256x256xbf16>, vector<32x256xf32> -> vector<32x256xf32>
    %48 = vector.broadcast %5 : vector<1x256xf32> to vector<32x256xf32>
    %49 = arith.addf %47, %48 : vector<32x256xf32>
    %cst_20 = arith.constant dense<0.000000e+00> : vector<32xf32>
    %50 = vector.multi_reduction <add>, %49, %cst_20 [1] : vector<32x256xf32> to vector<32xf32>
    %51 = vector.shape_cast %50 : vector<32xf32> to vector<32x1xf32>
    %cst_21 = arith.constant 2.560000e+02 : f32
    %52 = vector.broadcast %cst_21 : f32 to vector<32x1xf32>
    %53 = arith.divf %51, %52 : vector<32x1xf32>
    %54 = vector.broadcast %53 : vector<32x1xf32> to vector<32x256xf32>
    %55 = arith.subf %49, %54 : vector<32x256xf32>
    %56 = arith.mulf %55, %55 : vector<32x256xf32>
    %cst_22 = arith.constant dense<0.000000e+00> : vector<32xf32>
    %57 = vector.multi_reduction <add>, %56, %cst_22 [1] : vector<32x256xf32> to vector<32xf32>
    %58 = vector.shape_cast %57 : vector<32xf32> to vector<32x1xf32>
    %cst_23 = arith.constant 2.560000e+02 : f32
    %59 = vector.broadcast %cst_23 : f32 to vector<32x1xf32>
    %60 = arith.divf %58, %59 : vector<32x1xf32>
    %61 = vector.broadcast %53 : vector<32x1xf32> to vector<32x256xf32>
    %62 = arith.subf %49, %61 : vector<32x256xf32>
    %cst_24 = arith.constant 9.99999974E-6 : f32
    %63 = vector.broadcast %cst_24 : f32 to vector<32x1xf32>
    %64 = arith.addf %60, %63 : vector<32x1xf32>
    %65 = math.rsqrt %64 : vector<32x1xf32>
    %66 = vector.broadcast %65 : vector<32x1xf32> to vector<32x256xf32>
    %67 = arith.mulf %62, %66 : vector<32x256xf32>
    %68 = vector.broadcast %6 : vector<1x256xf32> to vector<32x256xf32>
    %69 = arith.mulf %67, %68 : vector<32x256xf32>
    %70 = vector.broadcast %7 : vector<1x256xf32> to vector<32x256xf32>
    %71 = arith.addf %69, %70 : vector<32x256xf32>
    %72 = arith.addf %12, %71 : vector<32x256xf32>
    %73 = arith.truncf %72 : vector<32x256xf32> to vector<32x256xbf16>
    %c0_25 = arith.constant 0 : index
    %c0_26 = arith.constant 0 : index
    %c0_27 = arith.constant 0 : index
    %74 = vector.load %arg4[%c0_25, %c0_26, %c0_27] : memref<1x256x1024xbf16, #tpu.memory_space<vmem>>, vector<1x256x1024xbf16>
    %75 = vector.shape_cast %74 : vector<1x256x1024xbf16> to vector<256x1024xbf16>
    %cst_28 = arith.constant dense<0.000000e+00> : vector<32x1024xf32>
    %76 = tpu.matmul %73, %75, %cst_28 {dimension_numbers = #tpu.dot_dimension_numbers<[1], [0], [0], [1], [0, 0, 1, 1], [], []>} : vector<32x256xbf16>, vector<256x1024xbf16>, vector<32x1024xf32> -> vector<32x1024xf32>
    %c0_29 = arith.constant 0 : index
    %c0_30 = arith.constant 0 : index
    %c0_31 = arith.constant 0 : index
    %77 = vector.load %arg7[%c0_29, %c0_30, %c0_31] : memref<1x1x1024xf32, #tpu.memory_space<vmem>>, vector<1x1x1024xf32>
    %78 = vector.shape_cast %77 : vector<1x1x1024xf32> to vector<1x1024xf32>
    %79 = vector.broadcast %78 : vector<1x1024xf32> to vector<32x1024xf32>
    %80 = arith.addf %76, %79 : vector<32x1024xf32>
    %81 = arith.mulf %80, %80 : vector<32x1024xf32>
    %82 = arith.mulf %80, %81 : vector<32x1024xf32>
    %cst_32 = arith.constant 4.471500e-02 : f32
    %83 = vector.broadcast %cst_32 : f32 to vector<32x1024xf32>
    %84 = arith.mulf %83, %82 : vector<32x1024xf32>
    %85 = arith.addf %80, %84 : vector<32x1024xf32>
    %cst_33 = arith.constant 0.797884583 : f32
    %86 = vector.broadcast %cst_33 : f32 to vector<32x1024xf32>
    %87 = arith.mulf %86, %85 : vector<32x1024xf32>
    %88 = math.tanh %87 : vector<32x1024xf32>
    %cst_34 = arith.constant 1.000000e+00 : f32
    %89 = vector.broadcast %cst_34 : f32 to vector<32x1024xf32>
    %90 = arith.addf %89, %88 : vector<32x1024xf32>
    %cst_35 = arith.constant 5.000000e-01 : f32
    %91 = vector.broadcast %cst_35 : f32 to vector<32x1024xf32>
    %92 = arith.mulf %91, %90 : vector<32x1024xf32>
    %93 = arith.mulf %80, %92 : vector<32x1024xf32>
    %94 = arith.truncf %93 : vector<32x1024xf32> to vector<32x1024xbf16>
    %c0_36 = arith.constant 0 : index
    %c0_37 = arith.constant 0 : index
    %c0_38 = arith.constant 0 : index
    %95 = vector.load %arg5[%c0_36, %c0_37, %c0_38] : memref<1x1024x256xbf16, #tpu.memory_space<vmem>>, vector<1x1024x256xbf16>
    %96 = vector.shape_cast %95 : vector<1x1024x256xbf16> to vector<1024x256xbf16>
    %cst_39 = arith.constant dense<0.000000e+00> : vector<32x256xf32>
    %97 = tpu.matmul %94, %96, %cst_39 {dimension_numbers = #tpu.dot_dimension_numbers<[1], [0], [0], [1], [0, 0, 1, 1], [], []>} : vector<32x1024xbf16>, vector<1024x256xbf16>, vector<32x256xf32> -> vector<32x256xf32>
    %98 = vector.broadcast %8 : vector<1x256xf32> to vector<32x256xf32>
    %99 = arith.addf %97, %98 : vector<32x256xf32>
    %cst_40 = arith.constant dense<0.000000e+00> : vector<32xf32>
    %100 = vector.multi_reduction <add>, %99, %cst_40 [1] : vector<32x256xf32> to vector<32xf32>
    %101 = vector.shape_cast %100 : vector<32xf32> to vector<32x1xf32>
    %cst_41 = arith.constant 2.560000e+02 : f32
    %102 = vector.broadcast %cst_41 : f32 to vector<32x1xf32>
    %103 = arith.divf %101, %102 : vector<32x1xf32>
    %104 = vector.broadcast %103 : vector<32x1xf32> to vector<32x256xf32>
    %105 = arith.subf %99, %104 : vector<32x256xf32>
    %106 = arith.mulf %105, %105 : vector<32x256xf32>
    %cst_42 = arith.constant dense<0.000000e+00> : vector<32xf32>
    %107 = vector.multi_reduction <add>, %106, %cst_42 [1] : vector<32x256xf32> to vector<32xf32>
    %108 = vector.shape_cast %107 : vector<32xf32> to vector<32x1xf32>
    %cst_43 = arith.constant 2.560000e+02 : f32
    %109 = vector.broadcast %cst_43 : f32 to vector<32x1xf32>
    %110 = arith.divf %108, %109 : vector<32x1xf32>
    %111 = vector.broadcast %103 : vector<32x1xf32> to vector<32x256xf32>
    %112 = arith.subf %99, %111 : vector<32x256xf32>
    %cst_44 = arith.constant 9.99999974E-6 : f32
    %113 = vector.broadcast %cst_44 : f32 to vector<32x1xf32>
    %114 = arith.addf %110, %113 : vector<32x1xf32>
    %115 = math.rsqrt %114 : vector<32x1xf32>
    %116 = vector.broadcast %115 : vector<32x1xf32> to vector<32x256xf32>
    %117 = arith.mulf %112, %116 : vector<32x256xf32>
    %118 = vector.broadcast %9 : vector<1x256xf32> to vector<32x256xf32>
    %119 = arith.mulf %117, %118 : vector<32x256xf32>
    %120 = vector.broadcast %10 : vector<1x256xf32> to vector<32x256xf32>
    %121 = arith.addf %119, %120 : vector<32x256xf32>
    %122 = arith.addf %72, %121 : vector<32x256xf32>
    %123 = vector.shape_cast %122 : vector<32x256xf32> to vector<2x16x256xf32>
    %c0_45 = arith.constant 0 : index
    %c0_46 = arith.constant 0 : index
    %c0_47 = arith.constant 0 : index
    %124 = vector.load %arg10[%c0_45, %c0_46, %c0_47] : memref<2x16x256xf32, #tpu.memory_space<vmem>>, vector<2x16x256xf32>
    tpu.vector_store %arg10[%c0_45, %c0_46, %c0_47], %123 {strides = array<i32>} : memref<2x16x256xf32, #tpu.memory_space<vmem>>, vector<2x16x256xf32>,
    %c1_i32 = arith.constant 1 : i32
    %125 = arith.cmpi eq, %arg0, %c1_i32 : i32
    %126 = arith.extui %125 : i1 to i32
    %c0_i32_48 = arith.constant 0 : i32
    %127 = arith.cmpi ne, %126, %c0_i32_48 : i32
    scf.if %127 {
      %c0_49 = arith.constant 0 : index
      %c0_50 = arith.constant 0 : index
      %c0_51 = arith.constant 0 : index
      %128 = vector.load %arg10[%c0_49, %c0_50, %c0_51] : memref<2x16x256xf32, #tpu.memory_space<vmem>>, vector<2x16x256xf32>
      %129 = arith.truncf %128 : vector<2x16x256xf32> to vector<2x16x256xbf16>
      %c0_52 = arith.constant 0 : index
      %c0_53 = arith.constant 0 : index
      %c0_54 = arith.constant 0 : index
      %130 = vector.load %arg9[%c0_52, %c0_53, %c0_54] : memref<2x16x256xbf16, #tpu.memory_space<vmem>>, vector<2x16x256xbf16>
      tpu.vector_store %arg9[%c0_52, %c0_53, %c0_54], %129 {strides = array<i32>} : memref<2x16x256xbf16, #tpu.memory_space<vmem>>, vector<2x16x256xbf16>,
    } else {
    }
    return
  }
  func.func @transform_0(%arg0: i32) -> (i32, i32, i32) {
    %c0_i32 = arith.constant 0 : i32
    %c0_i32_0 = arith.constant 0 : i32
    %c0_i32_1 = arith.constant 0 : i32
    %c0_i32_2 = arith.constant 0 : i32
    return %c0_i32, %c0_i32_0, %c0_i32_1 : i32, i32, i32
  }
  func.func @transform_1(%arg0: i32) -> (i32, i32, i32) {
    %c0_i32 = arith.constant 0 : i32
    %c0_i32_0 = arith.constant 0 : i32
    %c0_i32_1 = arith.constant 0 : i32
    return %arg0, %c0_i32, %c0_i32_0 : i32, i32, i32
  }
  func.func @transform_2(%arg0: i32) -> (i32, i32, i32) {
    %c0_i32 = arith.constant 0 : i32
    %c0_i32_0 = arith.constant 0 : i32
    %c0_i32_1 = arith.constant 0 : i32
    return %arg0, %c0_i32, %c0_i32_0 : i32, i32, i32
  }
  func.func @transform_3(%arg0: i32) -> (i32, i32, i32) {
    %c0_i32 = arith.constant 0 : i32
    %c0_i32_0 = arith.constant 0 : i32
    %c0_i32_1 = arith.constant 0 : i32
    return %arg0, %c0_i32, %c0_i32_0 : i32, i32, i32
  }
  func.func @transform_4(%arg0: i32) -> (i32, i32, i32) {
    %c0_i32 = arith.constant 0 : i32
    %c0_i32_0 = arith.constant 0 : i32
    %c0_i32_1 = arith.constant 0 : i32
    return %arg0, %c0_i32, %c0_i32_0 : i32, i32, i32
  }
  func.func @transform_5(%arg0: i32) -> (i32, i32, i32) {
    %c0_i32 = arith.constant 0 : i32
    %c0_i32_0 = arith.constant 0 : i32
    %c0_i32_1 = arith.constant 0 : i32
    return %arg0, %c0_i32, %c0_i32_0 : i32, i32, i32
  }
  func.func @transform_6(%arg0: i32) -> (i32, i32, i32) {
    %c0_i32 = arith.constant 0 : i32
    %c0_i32_0 = arith.constant 0 : i32
    %c0_i32_1 = arith.constant 0 : i32
    return %arg0, %c0_i32, %c0_i32_0 : i32, i32, i32
  }
  func.func @transform_7(%arg0: i32) -> (i32, i32, i32) {
    %c0_i32 = arith.constant 0 : i32
    %c0_i32_0 = arith.constant 0 : i32
    %c0_i32_1 = arith.constant 0 : i32
    return %arg0, %c0_i32, %c0_i32_0 : i32, i32, i32
  }
  func.func @transform_8(%arg0: i32) -> (i32, i32, i32) {
    %c0_i32 = arith.constant 0 : i32
    %c0_i32_0 = arith.constant 0 : i32
    %c0_i32_1 = arith.constant 0 : i32
    %c0_i32_2 = arith.constant 0 : i32
    return %c0_i32, %c0_i32_0, %c0_i32_1 : i32, i32, i32
  }
}

</mosaic_0001>

<bundles_post_ra>
// kernel: _lambda_.4
= control target key start
LH: loop header
LB: loop body
LE: loop exit
PB: predicated region body
PF: predicated region fallthrough
CT: control target
= control target key end

     0   :  { %v48_v16 = vlaneseq  ;;  %s994_s1 = inlined_call_operand.vmem [shape: bf16[128,128], index: 1, kind: input, shape index: {}]   ;;  %s995_s0 = inlined_call_operand.vmem [shape: bf16[128,128], index: 0, kind: input, shape index: {}]   ;;  %s996_s2 = inlined_call_operand.vmem [shape: f32[8,128], index: 2, kind: input, shape index: {}]   ;;  %s997_s3 = inlined_call_operand.vmem [shape: bf16[128,128], index: 3, kind: output, shape index: {}]  }
   0x1   :  { %v705_v0 = vld [vmem:[%s994_s1] sm:$0xff]   ;;  %v706_v1 = vld [vmem:[%s994_s1 + $0x8] sm:$0xff]   ;;  %v707_v2 = vld [vmem:[%s994_s1 + $0x10] sm:$0xff]  }
   0x2   :  { %657 = vmatprep.subr.bf16.mxu0 %v705_v0  ;;  %689 = vmatprep.subr.bf16.mxu1 %v705_v0  ;;  %v708_v3 = vld [vmem:[%s994_s1 + $0x18] sm:$0xff]   ;;  %v713_v4 = vld [vmem:[%s995_s0] sm:$0xff]   ;;  %v710_v7 = vld [vmem:[%s994_s1 + $0x28] sm:$0xff]   ;;  %v821_v17 = vshrl.u32 %v48_v16, 7 }
   0x3   :  { %658 = vmatpush3.bf16.msra.mxu0 %v705_v0  ;;  %697 = vmatpush3.bf16.msra.mxu1 %v705_v0  ;;  %v714_v5 = vld [vmem:[%s995_s0 + $0x20] sm:$0xff]   ;;  %v711_v8 = vld [vmem:[%s994_s1 + $0x30] sm:$0xff]   ;;  %v712_v9 = vld [vmem:[%s994_s1 + $0x38] sm:$0xff]  }
   0x4   :  { %659 = vmatprep.subr.bf16.mxu0 %v706_v1  ;;  %690 = vmatprep.subr.bf16.mxu1 %v706_v1  ;;  %v709_v6 = vld [vmem:[%s994_s1 + $0x20] sm:$0xff]   ;;  %v715_v10 = vld [vmem:[%s995_s0 + $0x8] sm:$0xff]   ;;  %v717_v12 = vld [vmem:[%s995_s0 + $0x10] sm:$0xff]   ;;  %v50_v18 = vsub.s32 0, %v821_v17 }
   0x5   :  { %673 = vmatprep.mubr.bf16.mxu0 %v713_v4  ;;  %681 = vmatprep.mubr.bf16.mxu1 %v714_v5  ;;  %v716_v11 = vld [vmem:[%s995_s0 + $0x28] sm:$0xff]   ;;  %v719_v13 = vld [vmem:[%s995_s0 + $0x30] sm:$0xff]   ;;  %v718_v14 = vld [vmem:[%s995_s0 + $0x18] sm:$0xff]  }
   0x6   :  { %v720_v15 = vld [vmem:[%s995_s0 + $0x38] sm:$0xff]   ;;  %v827_v19 = vld [vmem:[%s996_s2] sm:$0xff] }
   0x7   :  { %660 = vmatpush3.bf16.msra.mxu0 %v706_v1  ;;  %698 = vmatpush3.bf16.msra.mxu1 %v706_v1  ;;  %v51_v20 = vrot.slane %v827_v19, %v50_v18 }
   0x8   :  { %661 = vmatprep.subr.bf16.mxu0 %v707_v2  ;;  %691 = vmatprep.subr.bf16.mxu1 %v707_v2 }
   0xb   :  { %662 = vmatpush3.bf16.msra.mxu0 %v707_v2  ;;  %699 = vmatpush3.bf16.msra.mxu1 %v707_v2 }
   0xc   :  { %663 = vmatprep.subr.bf16.mxu0 %v708_v3  ;;  %692 = vmatprep.subr.bf16.mxu1 %v708_v3 }
   0xf   :  { %664 = vmatpush3.bf16.msra.mxu0 %v708_v3  ;;  %700 = vmatpush3.bf16.msra.mxu1 %v708_v3 }
  0x10   :  { %665 = vmatprep.subr.bf16.mxu0 %v709_v6  ;;  %693 = vmatprep.subr.bf16.mxu1 %v709_v6 }
  0x13   :  { %666 = vmatpush3.bf16.msra.mxu0 %v709_v6  ;;  %701 = vmatpush3.bf16.msra.mxu1 %v709_v6 }
  0x14   :  { %667 = vmatprep.subr.bf16.mxu0 %v710_v7  ;;  %694 = vmatprep.subr.bf16.mxu1 %v710_v7 }
  0x17   :  { %668 = vmatpush3.bf16.msra.mxu0 %v710_v7  ;;  %702 = vmatpush3.bf16.msra.mxu1 %v710_v7 }
  0x18   :  { %669 = vmatprep.subr.bf16.mxu0 %v711_v8  ;;  %695 = vmatprep.subr.bf16.mxu1 %v711_v8 }
  0x1b   :  { %670 = vmatpush3.bf16.msra.mxu0 %v711_v8  ;;  %703 = vmatpush3.bf16.msra.mxu1 %v711_v8 }
  0x1c   :  { %671 = vmatprep.subr.bf16.mxu0 %v712_v9  ;;  %696 = vmatprep.subr.bf16.mxu1 %v712_v9 }
  0x1f   :  { %672 = vmatpush3.bf16.msra.mxu0 %v712_v9  ;;  %704 = vmatpush3.bf16.msra.mxu1 %v712_v9 }
  0x22   :  { %674 = vmatmul.mubr.bf16.vlgmr.msra.gmra.mrb[0].mxu0 %v715_v10  ;;  %682 = vmatmul.mubr.bf16.vlgmr.msra.gmra.mrb[0].mxu1 %v716_v11 }
  0x23   :  { %677 = vmatprep.mubr.bf16.mxu0 %v717_v12  ;;  %685 = vmatprep.mubr.bf16.mxu1 %v719_v13 }
  0x2a   :  { %678 = vmatmul.mubr.bf16.gmra.mrb[4].mxu0 %v718_v14  ;;  %686 = vmatmul.mubr.bf16.gmra.mrb[4].mxu1 %v720_v15 }
  0xf5   :  { %v675_v21 = vpop.f32.mrb[0].mxu0  ;;  %v683_v22 = vpop.f32.mrb[0].mxu1 }
  0xf6   :  { %v191_v23 = vadd.f32 %v675_v21, %v51_v20  ;;  %v223_v24 = vadd.f32 %v683_v22, %v51_v20  ;;  %v182_v25 = vpop.f32.mrb[1].mxu0  ;;  %v214_v26 = vpop.f32.mrb[1].mxu1 }
  0xf7   :  { %v676_v27 = vpop.f32.mrb[2].mxu0  ;;  %v684_v28 = vpop.f32.mrb[2].mxu1  ;;  %v183_v31 = vadd.f32 %v182_v25, %v51_v20  ;;  %v215_v35 = vadd.f32 %v214_v26, %v51_v20 }
  0xf8   :  { %265 = vadd.xlane.f32.xlu0 %v223_v24  ;;  %v217_v29 = vpop.f32.mrb[3].mxu1  ;;  %249 = vadd.xlane.f32.xlu1 %v191_v23  ;;  %v185_v30 = vpop.f32.mrb[3].mxu0  ;;  %v194_v32 = vadd.f32 %v676_v27, %v51_v20  ;;  %v226_v36 = vadd.f32 %v684_v28, %v51_v20 }
  0xf9   :  { %v218_v43 = vadd.f32 %v217_v29, %v51_v20  ;;  %v186_v44 = vadd.f32 %v185_v30, %v51_v20 }
  0xfc   :  { %251 = vadd.xlane.f32.xlu1 %v194_v32  ;;  %245 = vadd.xlane.f32.xlu0 %v183_v31 }
  0xfd   :  { %v679_v33 = vpop.f32.mrb[4].mxu0  ;;  %v687_v34 = vpop.f32.mrb[4].mxu1 }
  0xfe   :  { %v198_v37 = vpop.f32.mrb[5].mxu0  ;;  %v230_v38 = vpop.f32.mrb[5].mxu1  ;;  %v207_v45 = vadd.f32 %v679_v33, %v51_v20  ;;  %v839_v51 = vadd.f32 %v687_v34, %v51_v20 }
  0xff   :  { %v680_v39 = vpop.f32.mrb[6].mxu0  ;;  %v688_v40 = vpop.f32.mrb[6].mxu1  ;;  %v199_v47 = vadd.f32 %v198_v37, %v51_v20  ;;  %v832_v49 = vadd.f32 %v230_v38, %v51_v20 }
 0x100   :  { %267 = vadd.xlane.f32.xlu1 %v226_v36  ;;  %261 = vadd.xlane.f32.xlu0 %v215_v35  ;;  %v201_v41 = vpop.f32.mrb[7].mxu0  ;;  %v233_v42 = vpop.f32.mrb[7].mxu1  ;;  %v210_v46 = vadd.f32 %v680_v39, %v51_v20  ;;  %v841_v52 = vadd.f32 %v688_v40, %v51_v20 }
 0x101   :  { %v830_v48 = vadd.f32 %v201_v41, %v51_v20  ;;  %v835_v50 = vadd.f32 %v233_v42, %v51_v20 }
 0x104   :  { %263 = vadd.xlane.f32.xlu1 %v218_v43  ;;  %247 = vadd.xlane.f32.xlu0 %v186_v44 }
 0x108   :  { %259 = vadd.xlane.f32.xlu1 %v210_v46  ;;  %257 = vadd.xlane.f32.xlu0 %v207_v45 }
 0x10c   :  { %255 = vadd.xlane.f32.xlu1 %v830_v48  ;;  %253 = vadd.xlane.f32.xlu0 %v199_v47 }
 0x110   :  { %271 = vadd.xlane.f32.xlu1 %v835_v50  ;;  %269 = vadd.xlane.f32.xlu0 %v832_v49 }
 0x114   :  { %275 = vadd.xlane.f32.xlu1 %v841_v52  ;;  %273 = vadd.xlane.f32.xlu0 %v839_v51 }
 0x185   :  { %v266_v53 = vpop.xlane.xlu0 %265  ;;  %v250_v54 = vpop.xlane.xlu1 %249 }
 0x186   :  { %v288_v55 = vmul.f32 0.0078125, %v266_v53  ;;  %v280_v56 = vmul.f32 0.0078125, %v250_v54 }
 0x188   :  { %v845_v57 = vsub.f32 %v191_v23, %v280_v56  ;;  %v847_v60 = vsub.f32 %v223_v24, %v288_v55 }
 0x189   :  { %v252_v58 = vpop.xlane.xlu1 %251  ;;  %v246_v59 = vpop.xlane.xlu0 %245 }
 0x18a   :  { %v281_v61 = vmul.f32 0.0078125, %v252_v58  ;;  %v278_v62 = vmul.f32 0.0078125, %v246_v59  ;;  %v312_v63 = vmul.f32 %v845_v57, %v845_v57  ;;  %v320_v7 = vmul.f32 %v847_v60, %v847_v60 }
 0x18c   :  { %v851_v0 = vsub.f32 %v194_v32, %v281_v61  ;;  %330 = vadd.xlane.f32.xlu0 %v312_v63  ;;  %v853_v1 = vsub.f32 %v183_v31, %v278_v62 }
 0x18d   :  { %v268_v2 = vpop.xlane.xlu1 %267  ;;  %v262_v3 = vpop.xlane.xlu0 %261 }
 0x18e   :  { %v289_v4 = vmul.f32 0.0078125, %v268_v2  ;;  %v286_v5 = vmul.f32 0.0078125, %v262_v3  ;;  %v313_v6 = vmul.f32 %v851_v0, %v851_v0  ;;  %v310_v11 = vmul.f32 %v853_v1, %v853_v1 }
 0x190   :  { %v859_v8 = vsub.f32 %v226_v36, %v289_v4  ;;  %332 = vadd.xlane.f32.xlu1 %v313_v6  ;;  %346 = vadd.xlane.f32.xlu0 %v320_v7  ;;  %v863_v12 = vsub.f32 %v215_v35, %v286_v5 }
 0x191   :  { %v264_v9 = vpop.xlane.xlu1 %263  ;;  %v248_v10 = vpop.xlane.xlu0 %247 }
 0x192   :  { %v287_v13 = vmul.f32 0.0078125, %v264_v9  ;;  %v279_v14 = vmul.f32 0.0078125, %v248_v10  ;;  %v321_v15 = vmul.f32 %v859_v8, %v859_v8  ;;  %v318_v24 = vmul.f32 %v863_v12, %v863_v12 }
 0x194   :  { %v867_v16 = vsub.f32 %v186_v44, %v279_v14  ;;  %348 = vadd.xlane.f32.xlu1 %v321_v15  ;;  %326 = vadd.xlane.f32.xlu0 %v310_v11  ;;  %v869_v18 = vsub.f32 %v218_v43, %v287_v13  ;;  %v424_v11 = vsub.s32 1, %v821_v17 }
 0x195   :  { %v260_v20 = vpop.xlane.xlu1 %259  ;;  %v258_v21 = vpop.xlane.xlu0 %257 }
 0x196   :  { %v285_v22 = vmul.f32 0.0078125, %v260_v20  ;;  %v284_v23 = vmul.f32 0.0078125, %v258_v21  ;;  %v311_v25 = vmul.f32 %v867_v16, %v867_v16  ;;  %v319_v29 = vmul.f32 %v869_v18, %v869_v18 }
 0x198   :  { %v875_v26 = vsub.f32 %v207_v45, %v284_v23  ;;  %342 = vadd.xlane.f32.xlu0 %v318_v24  ;;  %328 = vadd.xlane.f32.xlu1 %v311_v25  ;;  %v879_v30 = vsub.f32 %v210_v46, %v285_v22  ;;  %v916_v24 = vrot.slane %v827_v19, %v424_v11  ;;  %v444_v25 = vsub.s32 2, %v821_v17 }
 0x199   :  { %v256_v27 = vpop.xlane.xlu1 %255  ;;  %v254_v28 = vpop.xlane.xlu0 %253 }
 0x19a   :  { %v283_v31 = vmul.f32 0.0078125, %v256_v27  ;;  %v282_v32 = vmul.f32 0.0078125, %v254_v28  ;;  %v316_v33 = vmul.f32 %v875_v26, %v875_v26  ;;  %v317_v40 = vmul.f32 %v879_v30, %v879_v30 }
 0x19c   :  { %v883_v34 = vsub.f32 %v199_v47, %v282_v32  ;;  %344 = vadd.xlane.f32.xlu1 %v319_v29  ;;  %338 = vadd.xlane.f32.xlu0 %v316_v33  ;;  %v886_v35 = vsub.f32 %v830_v48, %v283_v31 }
 0x19d   :  { %v272_v36 = vpop.xlane.xlu1 %271  ;;  %v270_v37 = vpop.xlane.xlu0 %269 }
 0x19e   :  { %v291_v38 = vmul.f32 0.0078125, %v272_v36  ;;  %v290_v39 = vmul.f32 0.0078125, %v270_v37  ;;  %v314_v41 = vmul.f32 %v883_v34, %v883_v34  ;;  %v315_v45 = vmul.f32 %v886_v35, %v886_v35 }
 0x1a0   :  { %v893_v42 = vsub.f32 %v832_v49, %v290_v39  ;;  %340 = vadd.xlane.f32.xlu1 %v317_v40  ;;  %334 = vadd.xlane.f32.xlu0 %v314_v41  ;;  %v898_v46 = vsub.f32 %v835_v50, %v291_v38  ;;  %v921_v39 = vrot.slane %v827_v19, %v444_v25 }
 0x1a1   :  { %v276_v43 = vpop.xlane.xlu1 %275  ;;  %v274_v44 = vpop.xlane.xlu0 %273 }
 0x1a2   :  { %v293_v47 = vmul.f32 0.0078125, %v276_v43  ;;  %v292_v48 = vmul.f32 0.0078125, %v274_v44  ;;  %v322_v53 = vmul.f32 %v893_v42, %v893_v42  ;;  %v323_v55 = vmul.f32 %v898_v46, %v898_v46 }
 0x1a4   :  { %v903_v54 = vsub.f32 %v839_v51, %v292_v48  ;;  %336 = vadd.xlane.f32.xlu1 %v315_v45  ;;  %350 = vadd.xlane.f32.xlu0 %v322_v53  ;;  %v906_v49 = vsub.f32 %v841_v52, %v293_v47 }
 0x1a6   :  { %v324_v50 = vmul.f32 %v903_v54, %v903_v54  ;;  %v325_v56 = vmul.f32 %v906_v49, %v906_v49 }
 0x1a8   :  { %352 = vadd.xlane.f32.xlu1 %v323_v55  ;;  %354 = vadd.xlane.f32.xlu0 %v324_v50 }
 0x1ac   :  { %356 = vadd.xlane.f32.xlu1 %v325_v56 }
 0x219   :  { %v331_v58 = vpop.xlane.xlu0 %330 }
 0x21a   :  { %v360_v51 = vmul.f32 0.0078125, %v331_v58 }
 0x21c   :  { %v376_v59 = vadd.f32 1e-05, %v360_v51 }
 0x21d   :  { %v333_v61 = vpop.xlane.xlu1 %332  ;;  %v347_v62 = vpop.xlane.xlu0 %346 }
 0x21e   :  { %721 = vrsqrt.f32 %v376_v59  ;;  %v361_v52 = vmul.f32 0.0078125, %v333_v61  ;;  %v368_v63 = vmul.f32 0.0078125, %v347_v62 }
 0x220   :  { %v377_v2 = vadd.f32 1e-05, %v361_v52  ;;  %v384_v3 = vadd.f32 1e-05, %v368_v63 }
 0x221   :  { %v349_v4 = vpop.xlane.xlu1 %348  ;;  %v327_v5 = vpop.xlane.xlu0 %326 }
 0x222   :  { %723 = vrsqrt.f32 %v377_v2  ;;  %v369_v6 = vmul.f32 0.0078125, %v349_v4  ;;  %v358_v7 = vmul.f32 0.0078125, %v327_v5 }
 0x223   :  { %725 = vrsqrt.f32 %v384_v3 }
 0x224   :  { %v385_v9 = vadd.f32 1e-05, %v369_v6  ;;  %v374_v10 = vadd.f32 1e-05, %v358_v7 }
 0x225   :  { %v329_v13 = vpop.xlane.xlu1 %328  ;;  %v343_v14 = vpop.xlane.xlu0 %342 }
 0x226   :  { %727 = vrsqrt.f32 %v385_v9  ;;  %v359_v15 = vmul.f32 0.0078125, %v329_v13  ;;  %v366_v20 = vmul.f32 0.0078125, %v343_v14 }
 0x227   :  { %729 = vrsqrt.f32 %v374_v10 }
 0x228   :  { %v722_v21 = vpop.eup %721  ;;  %v375_v22 = vadd.f32 1e-05, %v359_v15  ;;  %v382_v23 = vadd.f32 1e-05, %v366_v20 }
 0x229   :  { %v408_v27 = vmul.f32 %v722_v21, %v845_v57  ;;  %v345_v28 = vpop.xlane.xlu1 %344  ;;  %v339_v29 = vpop.xlane.xlu0 %338 }
 0x22a   :  { %731 = vrsqrt.f32 %v375_v22  ;;  %v367_v31 = vmul.f32 0.0078125, %v345_v28  ;;  %v364_v32 = vmul.f32 0.0078125, %v339_v29 }
 0x22b   :  { %733 = vrsqrt.f32 %v382_v23  ;;  %v428_v40 = vmul.f32 %v916_v24, %v408_v27 }
 0x22c   :  { %v724_v33 = vpop.eup %723  ;;  %v383_v36 = vadd.f32 1e-05, %v367_v31  ;;  %v380_v37 = vadd.f32 1e-05, %v364_v32 }
 0x22d   :  { %v726_v38 = vpop.eup %725  ;;  %v409_v41 = vmul.f32 %v724_v33, %v851_v0  ;;  %v341_v17 = vpop.xlane.xlu1 %340  ;;  %v448_v19 = vadd.f32 %v921_v39, %v428_v40 }
 0x22e   :  { %v335_v43 = vpop.xlane.xlu0 %334  ;;  %v416_v57 = vmul.f32 %v726_v38, %v847_v60  ;;  %735 = vrsqrt.f32 %v383_v36  ;;  %v365_v44 = vmul.f32 0.0078125, %v341_v17 }
 0x22f   :  { %v362_v45 = vmul.f32 0.0078125, %v335_v43  ;;  %v429_v47 = vmul.f32 %v916_v24, %v409_v41  ;;  %737 = vrsqrt.f32 %v380_v37 }
 0x230   :  { %v728_v48 = vpop.eup %727  ;;  %v381_v53 = vadd.f32 1e-05, %v365_v44  ;;  %v436_v0 = vmul.f32 %v916_v24, %v416_v57 }
 0x231   :  { %v378_v55 = vadd.f32 1e-05, %v362_v45  ;;  %v730_v50 = vpop.eup %729  ;;  %v449_v56 = vadd.f32 %v921_v39, %v429_v47  ;;  %v417_v58 = vmul.f32 %v728_v48, %v859_v8  ;;  %v337_v51 = vpop.xlane.xlu1 %336 }
 0x232   :  { %v351_v60 = vpop.xlane.xlu0 %350  ;;  %v406_v59 = vmul.f32 %v730_v50, %v853_v1  ;;  %739 = vrsqrt.f32 %v381_v53  ;;  %v363_v61 = vmul.f32 0.0078125, %v337_v51  ;;  %v456_v8 = vadd.f32 %v921_v39, %v436_v0 }
 0x233   :  { %v602_v62 = vpack.c.bf16 %v449_v56, %v448_v19  ;;  %v437_v52 = vmul.f32 %v916_v24, %v417_v58  ;;  %741 = vrsqrt.f32 %v378_v55  ;;  %v370_v63 = vmul.f32 0.0078125, %v351_v60 }
 0x234   :  { %v732_v2 = vpop.eup %731  ;;  %v426_v3 = vmul.f32 %v916_v24, %v406_v59  ;;  %v379_v4 = vadd.f32 1e-05, %v363_v61 }
 0x235   :  { %v734_v5 = vpop.eup %733  ;;  %634 = vst [vmem:[%s997_s3 + $0x8] sm:$0xff] %v602_v62   ;;  %v457_v1 = vadd.f32 %v921_v39, %v437_v52  ;;  %v407_v6 = vmul.f32 %v732_v2, %v867_v16  ;;  %v386_v7 = vadd.f32 1e-05, %v370_v63  ;;  %v353_v9 = vpop.xlane.xlu1 %352 }
 0x236   :  { %v355_v10 = vpop.xlane.xlu0 %354  ;;  %v414_v11 = vmul.f32 %v734_v5, %v863_v12  ;;  %743 = vrsqrt.f32 %v379_v4  ;;  %v371_v13 = vmul.f32 0.0078125, %v353_v9  ;;  %v446_v22 = vadd.f32 %v921_v39, %v426_v3 }
 0x237   :  { %v622_v14 = vpack.c.bf16 %v457_v1, %v456_v8  ;;  %v427_v15 = vmul.f32 %v916_v24, %v407_v6  ;;  %745 = vrsqrt.f32 %v386_v7  ;;  %v372_v20 = vmul.f32 0.0078125, %v355_v10 }
 0x238   :  { %v736_v21 = vpop.eup %735  ;;  %v387_v23 = vadd.f32 1e-05, %v371_v13  ;;  %v434_v12 = vmul.f32 %v916_v24, %v414_v11 }
 0x239   :  { %v738_v25 = vpop.eup %737  ;;  %638 = vst [vmem:[%s997_s3 + $0x28] sm:$0xff] %v622_v14   ;;  %v447_v16 = vadd.f32 %v921_v39, %v427_v15  ;;  %v415_v27 = vmul.f32 %v736_v21, %v869_v18  ;;  %v388_v28 = vadd.f32 1e-05, %v372_v20  ;;  %v357_v29 = vpop.xlane.xlu1 %356 }
 0x23a   :  { %v412_v31 = vmul.f32 %v738_v25, %v875_v26  ;;  %747 = vrsqrt.f32 %v387_v23  ;;  %v373_v32 = vmul.f32 0.0078125, %v357_v29  ;;  %v454_v41 = vadd.f32 %v921_v39, %v434_v12 }
 0x23b   :  { %v597_v33 = vpack.c.bf16 %v447_v16, %v446_v22  ;;  %v435_v36 = vmul.f32 %v916_v24, %v415_v27  ;;  %749 = vrsqrt.f32 %v388_v28 }
 0x23c   :  { %v740_v37 = vpop.eup %739  ;;  %v389_v38 = vadd.f32 1e-05, %v373_v32  ;;  %v432_v17 = vmul.f32 %v916_v24, %v412_v31 }
 0x23d   :  { %v742_v40 = vpop.eup %741  ;;  %598 = vst [vmem:[%s997_s3] sm:$0xff] %v597_v33   ;;  %v455_v18 = vadd.f32 %v921_v39, %v435_v36  ;;  %v413_v26 = vmul.f32 %v740_v37, %v879_v30 }
 0x23e   :  { %v410_v43 = vmul.f32 %v742_v40, %v883_v34  ;;  %751 = vrsqrt.f32 %v389_v38  ;;  %v452_v48 = vadd.f32 %v921_v39, %v432_v17 }
 0x23f   :  { %v617_v57 = vpack.c.bf16 %v455_v18, %v454_v41  ;;  %v433_v44 = vmul.f32 %v916_v24, %v413_v26 }
 0x240   :  { %v744_v45 = vpop.eup %743  ;;  %v430_v55 = vmul.f32 %v916_v24, %v410_v43 }
 0x241   :  { %v746_v47 = vpop.eup %745  ;;  %637 = vst [vmem:[%s997_s3 + $0x20] sm:$0xff] %v617_v57   ;;  %v453_v53 = vadd.f32 %v921_v39, %v433_v44  ;;  %v411_v30 = vmul.f32 %v744_v45, %v886_v35 }
 0x242   :  { %v418_v34 = vmul.f32 %v746_v47, %v893_v42  ;;  %v450_v58 = vadd.f32 %v921_v39, %v430_v55 }
 0x243   :  { %v612_v50 = vpack.c.bf16 %v453_v53, %v452_v48  ;;  %v431_v19 = vmul.f32 %v916_v24, %v411_v30 }
 0x244   :  { %v748_v56 = vpop.eup %747  ;;  %v438_v60 = vmul.f32 %v916_v24, %v418_v34 }
 0x245   :  { %v750_v0 = vpop.eup %749  ;;  %636 = vst [vmem:[%s997_s3 + $0x18] sm:$0xff] %v612_v50   ;;  %v451_v51 = vadd.f32 %v921_v39, %v431_v19  ;;  %v419_v59 = vmul.f32 %v748_v56, %v898_v46 }
 0x246   :  { %v420_v35 = vmul.f32 %v750_v0, %v903_v54  ;;  %v458_v52 = vadd.f32 %v921_v39, %v438_v60 }
 0x247   :  { %v607_v42 = vpack.c.bf16 %v451_v51, %v450_v58  ;;  %v439_v61 = vmul.f32 %v916_v24, %v419_v59 }
 0x248   :  { %v752_v62 = vpop.eup %751  ;;  %v440_v2 = vmul.f32 %v916_v24, %v420_v35 }
 0x249   :  { %635 = vst [vmem:[%s997_s3 + $0x10] sm:$0xff] %v607_v42   ;;  %v459_v63 = vadd.f32 %v921_v39, %v439_v61  ;;  %v421_v3 = vmul.f32 %v752_v62, %v906_v49 }
 0x24a   :  { %v460_v54 = vadd.f32 %v921_v39, %v440_v2 }
 0x24b   :  { %v627_v4 = vpack.c.bf16 %v459_v63, %v458_v52  ;;  %v441_v46 = vmul.f32 %v916_v24, %v421_v3 }
 0x24d   :  { %639 = vst [vmem:[%s997_s3 + $0x30] sm:$0xff] %v627_v4   ;;  %v461_v5 = vadd.f32 %v921_v39, %v441_v46 }
 0x24f   :  { %v632_v8 = vpack.c.bf16 %v461_v5, %v460_v54 }
 0x251   :  { %640 = vst [vmem:[%s997_s3 + $0x38] sm:$0xff] %v632_v8  }

// kernel: _lambda_.6
= control target key start
LH: loop header
LB: loop body
LE: loop exit
PB: predicated region body
PF: predicated region fallthrough
CT: control target
= control target key end

     0   :  { %s1172_s1 = inlined_call_operand.vmem [shape: bf16[512,256], index: 1, kind: input, shape index: {}]   ;;  %s1173_s0 = inlined_call_operand.vmem [shape: bf16[32,512], index: 0, kind: input, shape index: {}]   ;;  %s1174_s2 = inlined_call_operand.vmem [shape: f32[8,256], index: 2, kind: input, shape index: {}]   ;;  %s1175_s3 = inlined_call_operand.vmem [shape: bf16[32,256], index: 3, kind: output, shape index: {}]  }
   0x1   :  { %v787_v0 = vld [vmem:[%s1172_s1 + $0x4] ss:$8 sps:$4 sm:$0xff]   ;;  %v791_v2 = vld [vmem:[%s1172_s1] ss:$8 sps:$4 sm:$0xff]   ;;  %v793_v4 = vld [vmem:[%s1172_s1 + $0x14] ss:$8 sps:$4 sm:$0xff]  }
   0x2   :  { %v789_v1 = vld [vmem:[%s1172_s1 + $0x104] ss:$8 sps:$4 sm:$0xff]   ;;  %456 = vmatprep.subr.bf16.mxu1 %v787_v0  ;;  %v792_v3 = vld [vmem:[%s1172_s1 + $0x100] ss:$8 sps:$4 sm:$0xff]   ;;  %v795_v5 = vld [vmem:[%s1172_s1 + $0x114] ss:$8 sps:$4 sm:$0xff]  }
   0x3   :  { %509 = vmatprep.subr.bf16.mxu0 %v789_v1  ;;  %457 = vmatpush1.bf16.msra.mxu1 %v791_v2  ;;  %v797_v6 = vld [vmem:[%s1172_s1 + $0x10] ss:$8 sps:$4 sm:$0xff]   ;;  %v799_v8 = vld [vmem:[%s1172_s1 + $0x24] ss:$8 sps:$4 sm:$0xff]   ;;  %v803_v10 = vld [vmem:[%s1172_s1 + $0x20] ss:$8 sps:$4 sm:$0xff]  }
   0x4   :  { %510 = vmatpush1.bf16.msra.mxu0 %v792_v3  ;;  %458 = vmatprep.subr.bf16.mxu1 %v793_v4  ;;  %v798_v7 = vld [vmem:[%s1172_s1 + $0x110] ss:$8 sps:$4 sm:$0xff]   ;;  %v801_v9 = vld [vmem:[%s1172_s1 + $0x124] ss:$8 sps:$4 sm:$0xff]   ;;  %v804_v11 = vld [vmem:[%s1172_s1 + $0x120] ss:$8 sps:$4 sm:$0xff]  }
   0x5   :  { %511 = vmatprep.subr.bf16.mxu0 %v795_v5  ;;  %v805_v12 = vld [vmem:[%s1172_s1 + $0x34] ss:$8 sps:$4 sm:$0xff]   ;;  %v809_v14 = vld [vmem:[%s1172_s1 + $0x30] ss:$8 sps:$4 sm:$0xff]   ;;  %v811_v16 = vld [vmem:[%s1172_s1 + $0x44] ss:$8 sps:$4 sm:$0xff]  }
   0x6   :  { %v807_v13 = vld [vmem:[%s1172_s1 + $0x134] ss:$8 sps:$4 sm:$0xff]   ;;  %v810_v15 = vld [vmem:[%s1172_s1 + $0x130] ss:$8 sps:$4 sm:$0xff]   ;;  %v813_v17 = vld [vmem:[%s1172_s1 + $0x144] ss:$8 sps:$4 sm:$0xff]  }
   0x7   :  { %459 = vmatpush1.bf16.msra.mxu1 %v797_v6  ;;  %v815_v18 = vld [vmem:[%s1172_s1 + $0x40] ss:$8 sps:$4 sm:$0xff]   ;;  %v817_v20 = vld [vmem:[%s1172_s1 + $0x54] ss:$8 sps:$4 sm:$0xff]   ;;  %v821_v22 = vld [vmem:[%s1172_s1 + $0x50] ss:$8 sps:$4 sm:$0xff]  }
   0x8   :  { %512 = vmatpush1.bf16.msra.mxu0 %v798_v7  ;;  %460 = vmatprep.subr.bf16.mxu1 %v799_v8  ;;  %v816_v19 = vld [vmem:[%s1172_s1 + $0x140] ss:$8 sps:$4 sm:$0xff]   ;;  %v819_v21 = vld [vmem:[%s1172_s1 + $0x154] ss:$8 sps:$4 sm:$0xff]   ;;  %v822_v23 = vld [vmem:[%s1172_s1 + $0x150] ss:$8 sps:$4 sm:$0xff]   ;;  %v88_v8 = vlaneseq }
   0x9   :  { %513 = vmatprep.subr.bf16.mxu0 %v801_v9  ;;  %v823_v24 = vld [vmem:[%s1172_s1 + $0x64] ss:$8 sps:$4 sm:$0xff]   ;;  %v827_v26 = vld [vmem:[%s1172_s1 + $0x60] ss:$8 sps:$4 sm:$0xff]   ;;  %v829_v28 = vld [vmem:[%s1172_s1 + $0x74] ss:$8 sps:$4 sm:$0xff]  }
   0xa   :  { %v825_v25 = vld [vmem:[%s1172_s1 + $0x164] ss:$8 sps:$4 sm:$0xff]   ;;  %v828_v27 = vld [vmem:[%s1172_s1 + $0x160] ss:$8 sps:$4 sm:$0xff]   ;;  %v831_v29 = vld [vmem:[%s1172_s1 + $0x174] ss:$8 sps:$4 sm:$0xff]  }
   0xb   :  { %461 = vmatpush1.bf16.msra.mxu1 %v803_v10  ;;  %v833_v30 = vld [vmem:[%s1172_s1 + $0x70] ss:$8 sps:$4 sm:$0xff]   ;;  %v835_v32 = vld [vmem:[%s1172_s1 + $0x84] ss:$8 sps:$4 sm:$0xff]   ;;  %v839_v34 = vld [vmem:[%s1172_s1 + $0x80] ss:$8 sps:$4 sm:$0xff]  }
   0xc   :  { %514 = vmatpush1.bf16.msra.mxu0 %v804_v11  ;;  %462 = vmatprep.subr.bf16.mxu1 %v805_v12  ;;  %v834_v31 = vld [vmem:[%s1172_s1 + $0x170] ss:$8 sps:$4 sm:$0xff]   ;;  %v837_v33 = vld [vmem:[%s1172_s1 + $0x184] ss:$8 sps:$4 sm:$0xff]   ;;  %v840_v35 = vld [vmem:[%s1172_s1 + $0x180] ss:$8 sps:$4 sm:$0xff]  }
   0xd   :  { %515 = vmatprep.subr.bf16.mxu0 %v807_v13  ;;  %v841_v36 = vld [vmem:[%s1172_s1 + $0x94] ss:$8 sps:$4 sm:$0xff]   ;;  %v845_v38 = vld [vmem:[%s1172_s1 + $0x90] ss:$8 sps:$4 sm:$0xff]   ;;  %v847_v40 = vld [vmem:[%s1172_s1 + $0xa4] ss:$8 sps:$4 sm:$0xff]  }
   0xe   :  { %v843_v37 = vld [vmem:[%s1172_s1 + $0x194] ss:$8 sps:$4 sm:$0xff]   ;;  %v846_v39 = vld [vmem:[%s1172_s1 + $0x190] ss:$8 sps:$4 sm:$0xff]   ;;  %v849_v41 = vld [vmem:[%s1172_s1 + $0x1a4] ss:$8 sps:$4 sm:$0xff]  }
   0xf   :  { %463 = vmatpush1.bf16.msra.mxu1 %v809_v14  ;;  %v851_v42 = vld [vmem:[%s1172_s1 + $0xa0] ss:$8 sps:$4 sm:$0xff]   ;;  %v853_v44 = vld [vmem:[%s1172_s1 + $0xb4] ss:$8 sps:$4 sm:$0xff]   ;;  %v857_v46 = vld [vmem:[%s1172_s1 + $0xb0] ss:$8 sps:$4 sm:$0xff]  }
  0x10   :  { %516 = vmatpush1.bf16.msra.mxu0 %v810_v15  ;;  %464 = vmatprep.subr.bf16.mxu1 %v811_v16  ;;  %v852_v43 = vld [vmem:[%s1172_s1 + $0x1a0] ss:$8 sps:$4 sm:$0xff]   ;;  %v855_v45 = vld [vmem:[%s1172_s1 + $0x1b4] ss:$8 sps:$4 sm:$0xff]   ;;  %v858_v47 = vld [vmem:[%s1172_s1 + $0x1b0] ss:$8 sps:$4 sm:$0xff]  }
  0x11   :  { %517 = vmatprep.subr.bf16.mxu0 %v813_v17  ;;  %v859_v48 = vld [vmem:[%s1172_s1 + $0xc4] ss:$8 sps:$4 sm:$0xff]   ;;  %v863_v52 = vld [vmem:[%s1172_s1 + $0xc0] ss:$8 sps:$4 sm:$0xff]   ;;  %v865_v54 = vld [vmem:[%s1172_s1 + $0xd4] ss:$8 sps:$4 sm:$0xff]  }
  0x12   :  { %v885_v49 = vld [vmem:[%s1173_s0 + $0x4] ss:$16 sps:$4 sm:$0xff]   ;;  %v888_v51 = vld [vmem:[%s1173_s0 + $0xc] ss:$16 sps:$4 sm:$0xff]   ;;  %v864_v53 = vld [vmem:[%s1172_s1 + $0x1c0] ss:$8 sps:$4 sm:$0xff]  }
  0x13   :  { %465 = vmatpush1.bf16.msra.mxu1 %v815_v18  ;;  %v861_v50 = vld [vmem:[%s1172_s1 + $0x1c4] ss:$8 sps:$4 sm:$0xff]   ;;  %488 = vmatprep.mubr.bf16.mxu1 %v885_v49  ;;  %v867_v55 = vld [vmem:[%s1172_s1 + $0x1d4] ss:$8 sps:$4 sm:$0xff]   ;;  %v869_v56 = vld [vmem:[%s1172_s1 + $0xd0] ss:$8 sps:$4 sm:$0xff]  }
  0x14   :  { %518 = vmatpush1.bf16.msra.mxu0 %v816_v19  ;;  %466 = vmatprep.subr.bf16.mxu1 %v817_v20  ;;  %v870_v57 = vld [vmem:[%s1172_s1 + $0x1d0] ss:$8 sps:$4 sm:$0xff]   ;;  %v871_v58 = vld [vmem:[%s1172_s1 + $0xe4] ss:$8 sps:$4 sm:$0xff]   ;;  %v875_v60 = vld [vmem:[%s1172_s1 + $0xe0] ss:$8 sps:$4 sm:$0xff]  }
  0x15   :  { %519 = vmatprep.subr.bf16.mxu0 %v819_v21  ;;  %541 = vmatprep.mubr.bf16.mxu0 %v888_v51  ;;  %v873_v59 = vld [vmem:[%s1172_s1 + $0x1e4] ss:$8 sps:$4 sm:$0xff]   ;;  %v876_v61 = vld [vmem:[%s1172_s1 + $0x1e0] ss:$8 sps:$4 sm:$0xff]   ;;  %v877_v62 = vld [vmem:[%s1172_s1 + $0xf4] ss:$8 sps:$4 sm:$0xff]  }
  0x16   :  { %v879_v63 = vld [vmem:[%s1172_s1 + $0x1f4] ss:$8 sps:$4 sm:$0xff]   ;;  %v881_v0 = vld [vmem:[%s1172_s1 + $0xf0] ss:$8 sps:$4 sm:$0xff]   ;;  %v1139_v9 = vshrl.u32 %v88_v8, 7  ;;  %v1145_v11 = vld [vmem:[%s1174_s2] sm:$0xff] }
  0x17   :  { %467 = vmatpush1.bf16.msra.mxu1 %v821_v22  ;;  %v882_v1 = vld [vmem:[%s1172_s1 + $0x1f0] ss:$8 sps:$4 sm:$0xff]   ;;  %v889_v4 = vld [vmem:[%s1173_s0 + $0x24] ss:$16 sps:$4 sm:$0xff]   ;;  %v891_v5 = vld [vmem:[%s1173_s0 + $0x2c] ss:$16 sps:$4 sm:$0xff]  }
  0x18   :  { %520 = vmatpush1.bf16.msra.mxu0 %v822_v23  ;;  %468 = vmatprep.subr.bf16.mxu1 %v823_v24  ;;  %v883_v2 = vld [vmem:[%s1173_s0] ss:$16 sps:$4 sm:$0xff]   ;;  %v886_v3 = vld [vmem:[%s1173_s0 + $0x8] ss:$16 sps:$4 sm:$0xff]   ;;  %v90_v10 = vsub.s32 0, %v1139_v9 }
  0x19   :  { %521 = vmatprep.subr.bf16.mxu0 %v825_v25  ;;  %v893_v6 = vld [vmem:[%s1173_s0 + $0x20] ss:$16 sps:$4 sm:$0xff]   ;;  %v894_v7 = vld [vmem:[%s1173_s0 + $0x28] ss:$16 sps:$4 sm:$0xff]  }
  0x1a   :  { %v1150_v12 = vld [vmem:[%s1174_s2 + $0x8] sm:$0xff]  ;;  %v91_v13 = vrot.slane %v1145_v11, %v90_v10 }
  0x1b   :  { %469 = vmatpush1.bf16.msra.mxu1 %v827_v26  ;;  %v95_v14 = vrot.slane %v1150_v12, %v90_v10 }
  0x1c   :  { %522 = vmatpush1.bf16.msra.mxu0 %v828_v27  ;;  %470 = vmatprep.subr.bf16.mxu1 %v829_v28 }
  0x1d   :  { %523 = vmatprep.subr.bf16.mxu0 %v831_v29 }
  0x1f   :  { %471 = vmatpush1.bf16.msra.mxu1 %v833_v30 }
  0x20   :  { %524 = vmatpush1.bf16.msra.mxu0 %v834_v31  ;;  %472 = vmatprep.subr.bf16.mxu1 %v835_v32 }
  0x21   :  { %525 = vmatprep.subr.bf16.mxu0 %v837_v33 }
  0x23   :  { %473 = vmatpush1.bf16.msra.mxu1 %v839_v34 }
  0x24   :  { %526 = vmatpush1.bf16.msra.mxu0 %v840_v35  ;;  %474 = vmatprep.subr.bf16.mxu1 %v841_v36 }
  0x25   :  { %527 = vmatprep.subr.bf16.mxu0 %v843_v37 }
  0x27   :  { %475 = vmatpush1.bf16.msra.mxu1 %v845_v38 }
  0x28   :  { %528 = vmatpush1.bf16.msra.mxu0 %v846_v39  ;;  %476 = vmatprep.subr.bf16.mxu1 %v847_v40 }
  0x29   :  { %529 = vmatprep.subr.bf16.mxu0 %v849_v41 }
  0x2b   :  { %477 = vmatpush1.bf16.msra.mxu1 %v851_v42 }
  0x2c   :  { %530 = vmatpush1.bf16.msra.mxu0 %v852_v43  ;;  %478 = vmatprep.subr.bf16.mxu1 %v853_v44 }
  0x2d   :  { %531 = vmatprep.subr.bf16.mxu0 %v855_v45 }
  0x2f   :  { %479 = vmatpush1.bf16.msra.mxu1 %v857_v46 }
  0x30   :  { %532 = vmatpush1.bf16.msra.mxu0 %v858_v47  ;;  %480 = vmatprep.subr.bf16.mxu1 %v859_v48 }
  0x31   :  { %533 = vmatprep.subr.bf16.mxu0 %v861_v50 }
  0x33   :  { %481 = vmatpush1.bf16.msra.mxu1 %v863_v52 }
  0x34   :  { %534 = vmatpush1.bf16.msra.mxu0 %v864_v53  ;;  %482 = vmatprep.subr.bf16.mxu1 %v865_v54 }
  0x35   :  { %535 = vmatprep.subr.bf16.mxu0 %v867_v55 }
  0x37   :  { %483 = vmatpush1.bf16.msra.mxu1 %v869_v56 }
  0x38   :  { %536 = vmatpush1.bf16.msra.mxu0 %v870_v57  ;;  %484 = vmatprep.subr.bf16.mxu1 %v871_v58 }
  0x39   :  { %537 = vmatprep.subr.bf16.mxu0 %v873_v59 }
  0x3b   :  { %485 = vmatpush1.bf16.msra.mxu1 %v875_v60 }
  0x3c   :  { %538 = vmatpush1.bf16.msra.mxu0 %v876_v61  ;;  %486 = vmatprep.subr.bf16.mxu1 %v877_v62 }
  0x3d   :  { %539 = vmatprep.subr.bf16.mxu0 %v879_v63 }
  0x3f   :  { %487 = vmatpush1.bf16.msra.mxu1 %v881_v0 }
  0x40   :  { %540 = vmatpush1.bf16.msra.mxu0 %v882_v1 }
  0x42   :  { %489 = vmatmul.mubr.bf16.vlgmr.msra.gmra.mrb[0].mxu1 %v883_v2 }
  0x43   :  { %542 = vmatmul.mubr.bf16.vlgmr.msra.gmra.mrb[0].mxu0 %v886_v3  ;;  %498 = vmatprep.mubr.bf16.mxu1 %v889_v4 }
  0x44   :  { %551 = vmatprep.mubr.bf16.mxu0 %v891_v5 }
  0x4a   :  { %499 = vmatmul.mubr.bf16.gmra.mrb[4].mxu1 %v893_v6 }
  0x4b   :  { %552 = vmatmul.mubr.bf16.gmra.mrb[4].mxu0 %v894_v7 }
 0x115   :  { %v490_v15 = vpop.f32.mrb[0].mxu1 }
 0x116   :  { %v543_v16 = vpop.f32.mrb[0].mxu0  ;;  %v491_v17 = vadd.f32 %v490_v15, %v91_v13  ;;  %v492_v18 = vpop.f32.mrb[1].mxu1 }
 0x117   :  { %v545_v19 = vpop.f32.mrb[1].mxu0  ;;  %v493_v20 = vadd.f32 %v492_v18, %v95_v14  ;;  %v494_v21 = vpop.f32.mrb[2].mxu1 }
 0x118   :  { %v547_v22 = vpop.f32.mrb[2].mxu0  ;;  %v544_v23 = vadd.f32 %v543_v16, %v491_v17  ;;  %v495_v24 = vadd.f32 %v494_v21, %v91_v13  ;;  %v496_v25 = vpop.f32.mrb[3].mxu1 }
 0x119   :  { %v549_v26 = vpop.f32.mrb[3].mxu0  ;;  %v546_v27 = vadd.f32 %v545_v19, %v493_v20  ;;  %v497_v28 = vadd.f32 %v496_v25, %v95_v14 }
 0x11a   :  { %v548_v29 = vadd.f32 %v547_v22, %v495_v24 }
 0x11b   :  { %v550_v30 = vadd.f32 %v549_v26, %v497_v28  ;;  %v562_v31 = vadd.f32 %v546_v27, %v544_v23  ;;  %v629_v26 = vsub.s32 1, %v1139_v9  ;;  %v645_v28 = vsub.s32 2, %v1139_v9 }
 0x11d   :  { %v500_v32 = vpop.f32.mrb[4].mxu1  ;;  %563 = vadd.xlane.f32.xlu0 %v562_v31  ;;  %v565_v40 = vadd.f32 %v550_v30, %v548_v29  ;;  %v630_v31 = vrot.slane %v1145_v11, %v629_v26 }
 0x11e   :  { %v553_v33 = vpop.f32.mrb[4].mxu0  ;;  %v501_v34 = vadd.f32 %v500_v32, %v91_v13  ;;  %v502_v35 = vpop.f32.mrb[5].mxu1  ;;  %v634_v32 = vrot.slane %v1150_v12, %v629_v26 }
 0x11f   :  { %v555_v36 = vpop.f32.mrb[5].mxu0  ;;  %v503_v37 = vadd.f32 %v502_v35, %v95_v14  ;;  %v504_v38 = vpop.f32.mrb[6].mxu1  ;;  %v646_v35 = vrot.slane %v1145_v11, %v645_v28 }
 0x120   :  { %v557_v39 = vpop.f32.mrb[6].mxu0  ;;  %v554_v41 = vadd.f32 %v553_v33, %v501_v34  ;;  %v505_v42 = vadd.f32 %v504_v38, %v91_v13  ;;  %v506_v43 = vpop.f32.mrb[7].mxu1 }
 0x121   :  { %v559_v44 = vpop.f32.mrb[7].mxu0  ;;  %v556_v45 = vadd.f32 %v555_v36, %v503_v37  ;;  %v507_v46 = vadd.f32 %v506_v43, %v95_v14  ;;  %566 = vadd.xlane.f32.xlu0 %v565_v40  ;;  %v650_v36 = vrot.slane %v1150_v12, %v645_v28 }
 0x122   :  { %v558_v47 = vadd.f32 %v557_v39, %v505_v42 }
 0x123   :  { %v560_v48 = vadd.f32 %v559_v44, %v507_v46  ;;  %v568_v49 = vadd.f32 %v556_v45, %v554_v41 }
 0x125   :  { %569 = vadd.xlane.f32.xlu1 %v568_v49  ;;  %v571_v50 = vadd.f32 %v560_v48, %v558_v47 }
 0x129   :  { %572 = vadd.xlane.f32.xlu1 %v571_v50 }
 0x1aa   :  { %v564_v51 = vpop.xlane.xlu0 %563 }
 0x1ab   :  { %v575_v52 = vmul.f32 0.00390625, %v564_v51 }
 0x1ad   :  { %v579_v53 = vsub.f32 %v544_v23, %v575_v52  ;;  %v580_v54 = vsub.f32 %v546_v27, %v575_v52 }
 0x1ae   :  { %v567_v55 = vpop.xlane.xlu0 %566 }
 0x1af   :  { %v576_v56 = vmul.f32 0.00390625, %v567_v55  ;;  %v587_v57 = vmul.f32 %v579_v53, %v579_v53  ;;  %v588_v58 = vmul.f32 %v580_v54, %v580_v54 }
 0x1b1   :  { %v581_v59 = vsub.f32 %v548_v29, %v576_v56  ;;  %v582_v60 = vsub.f32 %v550_v30, %v576_v56  ;;  %v595_v61 = vadd.f32 %v588_v58, %v587_v57 }
 0x1b2   :  { %v570_v62 = vpop.xlane.xlu1 %569 }
 0x1b3   :  { %v577_v63 = vmul.f32 0.00390625, %v570_v62  ;;  %596 = vadd.xlane.f32.xlu0 %v595_v61  ;;  %v589_v0 = vmul.f32 %v581_v59, %v581_v59  ;;  %v590_v1 = vmul.f32 %v582_v60, %v582_v60 }
 0x1b5   :  { %v583_v2 = vsub.f32 %v554_v41, %v577_v63  ;;  %v584_v3 = vsub.f32 %v556_v45, %v577_v63  ;;  %v598_v4 = vadd.f32 %v590_v1, %v589_v0 }
 0x1b6   :  { %v573_v5 = vpop.xlane.xlu1 %572 }
 0x1b7   :  { %v578_v6 = vmul.f32 0.00390625, %v573_v5  ;;  %599 = vadd.xlane.f32.xlu1 %v598_v4  ;;  %v591_v7 = vmul.f32 %v583_v2, %v583_v2  ;;  %v592_v8 = vmul.f32 %v584_v3, %v584_v3 }
 0x1b9   :  { %v585_v10 = vsub.f32 %v558_v47, %v578_v6  ;;  %v586_v13 = vsub.f32 %v560_v48, %v578_v6  ;;  %v601_v14 = vadd.f32 %v592_v8, %v591_v7 }
 0x1bb   :  { %602 = vadd.xlane.f32.xlu0 %v601_v14  ;;  %v593_v15 = vmul.f32 %v585_v10, %v585_v10  ;;  %v594_v16 = vmul.f32 %v586_v13, %v586_v13 }
 0x1bd   :  { %v604_v17 = vadd.f32 %v594_v16, %v593_v15 }
 0x1bf   :  { %605 = vadd.xlane.f32.xlu1 %v604_v17 }
 0x240   :  { %v597_v18 = vpop.xlane.xlu0 %596 }
 0x241   :  { %v607_v19 = vmul.f32 0.00390625, %v597_v18 }
 0x243   :  { %v611_v20 = vadd.f32 1e-05, %v607_v19 }
 0x244   :  { %v600_v21 = vpop.xlane.xlu1 %599 }
 0x245   :  { %895 = vrsqrt.f32 %v611_v20  ;;  %v608_v22 = vmul.f32 0.00390625, %v600_v21 }
 0x247   :  { %v612_v23 = vadd.f32 1e-05, %v608_v22 }
 0x248   :  { %v603_v24 = vpop.xlane.xlu0 %602 }
 0x249   :  { %897 = vrsqrt.f32 %v612_v23  ;;  %v609_v25 = vmul.f32 0.00390625, %v603_v24 }
 0x24b   :  { %v613_v27 = vadd.f32 1e-05, %v609_v25 }
 0x24c   :  { %v606_v29 = vpop.xlane.xlu1 %605 }
 0x24d   :  { %899 = vrsqrt.f32 %v613_v27  ;;  %v610_v30 = vmul.f32 0.00390625, %v606_v29 }
 0x24f   :  { %v896_v33 = vpop.eup %895  ;;  %v614_v34 = vadd.f32 1e-05, %v610_v30 }
 0x250   :  { %v619_v37 = vmul.f32 %v896_v33, %v579_v53  ;;  %v620_v38 = vmul.f32 %v896_v33, %v580_v54 }
 0x251   :  { %901 = vrsqrt.f32 %v614_v34 }
 0x252   :  { %v635_v39 = vmul.f32 %v630_v31, %v619_v37  ;;  %v636_v40 = vmul.f32 %v634_v32, %v620_v38 }
 0x253   :  { %v898_v41 = vpop.eup %897 }
 0x254   :  { %v651_v9 = vadd.f32 %v646_v35, %v635_v39  ;;  %v652_v42 = vadd.f32 %v650_v36, %v636_v40  ;;  %v621_v43 = vmul.f32 %v898_v41, %v581_v59  ;;  %v622_v44 = vmul.f32 %v898_v41, %v582_v60 }
 0x256   :  { %v767_v45 = vpack.c.bf16 %v652_v42, %v651_v9  ;;  %v637_v46 = vmul.f32 %v630_v31, %v621_v43  ;;  %v638_v47 = vmul.f32 %v634_v32, %v622_v44 }
 0x257   :  { %v900_v48 = vpop.eup %899 }
 0x258   :  { %683 = vst [vmem:[%s1175_s3] sm:$0xff] %v767_v45  ;;  %v653_v11 = vadd.f32 %v646_v35, %v637_v46  ;;  %v654_v12 = vadd.f32 %v650_v36, %v638_v47  ;;  %v623_v49 = vmul.f32 %v900_v48, %v583_v2  ;;  %v624_v50 = vmul.f32 %v900_v48, %v584_v3 }
 0x25a   :  { %v768_v51 = vpack.c.bf16 %v654_v12, %v653_v11  ;;  %v639_v52 = vmul.f32 %v630_v31, %v623_v49  ;;  %v640_v53 = vmul.f32 %v634_v32, %v624_v50 }
 0x25b   :  { %v902_v54 = vpop.eup %901 }
 0x25c   :  { %684 = vst [vmem:[%s1175_s3 + $0x8] sm:$0xff] %v768_v51  ;;  %v655_v55 = vadd.f32 %v646_v35, %v639_v52  ;;  %v656_v56 = vadd.f32 %v650_v36, %v640_v53  ;;  %v625_v57 = vmul.f32 %v902_v54, %v585_v10  ;;  %v626_v58 = vmul.f32 %v902_v54, %v586_v13 }
 0x25e   :  { %v769_v59 = vpack.c.bf16 %v656_v56, %v655_v55  ;;  %v641_v60 = vmul.f32 %v630_v31, %v625_v57  ;;  %v642_v61 = vmul.f32 %v634_v32, %v626_v58 }
 0x260   :  { %685 = vst [vmem:[%s1175_s3 + $0x10] sm:$0xff] %v769_v59  ;;  %v657_v62 = vadd.f32 %v646_v35, %v641_v60  ;;  %v658_v63 = vadd.f32 %v650_v36, %v642_v61 }
 0x262   :  { %v770_v0 = vpack.c.bf16 %v658_v63, %v657_v62 }
 0x264   :  { %686 = vst [vmem:[%s1175_s3 + $0x18] sm:$0xff] %v770_v0 }

// kernel: _lambda_.5
= control target key start
LH: loop header
LB: loop body
LE: loop exit
PB: predicated region body
PF: predicated region fallthrough
CT: control target
= control target key end

     0   :  { %s4771_s27 = smov 0   ;;  %s6603_s0 = inlined_call_operand.vmem [shape: bf16[2,64,128], index: 0, kind: input, shape index: {}]   ;;  %s6604_s1 = inlined_call_operand.vmem [shape: bf16[2,128,384], index: 1, kind: input, shape index: {}]   ;;  %s6605_s2 = inlined_call_operand.vmem [shape: bf16[2,128,128], index: 2, kind: input, shape index: {}]   ;;  %s6606_s3 = inlined_call_operand.vmem [shape: bf16[2,128,512], index: 3, kind: input, shape index: {}]   ;;  %s6607_s4 = inlined_call_operand.vmem [shape: bf16[2,512,128], index: 4, kind: input, shape index: {}]   ;;  %s6608_s5 = inlined_call_operand.vmem [shape: f32[2,1,384], index: 5, kind: input, shape index: {}]   ;;  %s6609_s6 = inlined_call_operand.vmem [shape: f32[2,1,512], index: 6, kind: input, shape index: {}]   ;;  %s6610_s7 = inlined_call_operand.vmem [shape: f32[2,8,128], index: 7, kind: input, shape index: {}]   ;;  %s6611_s8 = inlined_call_operand.vmem [shape: bf16[2,64,128], index: 8, kind: output, shape index: {}]  }
   0x1 LB: > { %s4777_s28 = sadd.s32 4294967295, %s4723_s27   ;;  %p3727_p0 = scmp.ge.s32.totalorder %s4723_s27, 1  ;;  %s4723_s27 = sphi %s4771_s27, %s18_s27  }
   0x2   : > { %p314_p1 = scmp.lt.s32.totalorder %s4723_s27, 3 }
   0x4   : > { %p315_p2 = pnand %p3727_p0, %p314_p1 }
   0x6   : > { %318 = sbr.rel (%p315_p2) target bundleno = 2552 (0x9f8), region = 52 }
   0xd   : > { %p370_p3 = scmp.lt.s32.totalorder %s4777_s28, 1  ;;  %p3737_p4 = scmp.ne.s32.totalorder %s4777_s28, 0 }
   0xe   : > { %v3881_v0 = vld [vmem:[%s6603_s0] sm:$0xff] (!%p3737_p4)   ;;  %v3952_v1 = vld [vmem:[%s6603_s0 + $0x8] sm:$0xff] (!%p3737_p4)   ;;  %v3953_v2 = vld [vmem:[%s6603_s0 + $0x10] sm:$0xff] (!%p3737_p4)  }
   0xf   : > { %s371_s29 = scalar_select %p370_p3, %s4777_s28, 1 }
  0x10   : > { %v3882_v3 = vunpack.c.l.bf16 (!%p3737_p4), %v3881_v0  ;;  %v3883_v4 = vunpack.c.h.bf16 (!%p3737_p4), %v3881_v0  ;;  %v3886_v5 = vunpack.c.l.bf16 (!%p3737_p4), %v3952_v1  ;;  %v3887_v6 = vunpack.c.h.bf16 (!%p3737_p4), %v3952_v1  ;;  %v3954_v7 = vld [vmem:[%s6603_s0 + $0x18] sm:$0xff] (!%p3737_p4)   ;;  %v3955_v8 = vld [vmem:[%s6603_s0 + $0x20] sm:$0xff] (!%p3737_p4)   ;;  %v3956_v9 = vld [vmem:[%s6603_s0 + $0x28] sm:$0xff] (!%p3737_p4)  }
  0x11   : > { %s4302_s30 = smul.u32 192, %s371_s29  ;;  %s3861_s9 = sshll.u32 %s371_s29, 6  ;;  %v3890_v10 = vunpack.c.l.bf16 (!%p3737_p4), %v3953_v2  ;;  %v3891_v11 = vunpack.c.h.bf16 (!%p3737_p4), %v3953_v2  ;;  %v3894_v12 = vunpack.c.l.bf16 (!%p3737_p4), %v3954_v7  ;;  %v3895_v13 = vunpack.c.h.bf16 (!%p3737_p4), %v3954_v7  ;;  %v3957_v14 = vld [vmem:[%s6603_s0 + $0x30] sm:$0xff] (!%p3737_p4)   ;;  %v3958_v15 = vld [vmem:[%s6603_s0 + $0x38] sm:$0xff] (!%p3737_p4)  }
  0x12   : > { %s4786_s12 = scalar_lea.vmem %s6605_s2, %s3861_s9  ;;  %s3862_s13 = sshll.u32 %s371_s29, 8  ;;  %439 = vst [vmem:[#allocation2] sm:$0xff] (!%p3737_p4), %v3882_v3  ;;  %440 = vst [vmem:[#allocation2 + $0x8] sm:$0xff] (!%p3737_p4), %v3883_v4  ;;  %v3898_v16 = vunpack.c.l.bf16 (!%p3737_p4), %v3955_v8  ;;  %v3899_v17 = vunpack.c.h.bf16 (!%p3737_p4), %v3955_v8  ;;  %v3902_v18 = vunpack.c.l.bf16 (!%p3737_p4), %v3956_v9  ;;  %v3903_v19 = vunpack.c.h.bf16 (!%p3737_p4), %v3956_v9 }
  0x13   : > { %s4791_s16 = scalar_lea.vmem %s6604_s1, %s4302_s30  ;;  %s4796_s19 = scalar_lea.vmem %s6606_s3, %s3862_s13  ;;  %441 = vst [vmem:[#allocation2 + $0x10] sm:$0xff] (!%p3737_p4), %v3886_v5  ;;  %442 = vst [vmem:[#allocation2 + $0x18] sm:$0xff] (!%p3737_p4), %v3887_v6  ;;  %v3906_v20 = vunpack.c.l.bf16 (!%p3737_p4), %v3957_v14  ;;  %v3907_v21 = vunpack.c.h.bf16 (!%p3737_p4), %v3957_v14  ;;  %v3910_v22 = vunpack.c.l.bf16 (!%p3737_p4), %v3958_v15  ;;  %v3911_v23 = vunpack.c.h.bf16 (!%p3737_p4), %v3958_v15 }
  0x14   : > { %s4801_s22 = scalar_lea.vmem %s6607_s4, %s3862_s13  ;;  %s4303_s23 = smul.u32 3, %s371_s29  ;;  %443 = vst [vmem:[#allocation2 + $0x20] sm:$0xff] (!%p3737_p4), %v3890_v10  ;;  %444 = vst [vmem:[#allocation2 + $0x28] sm:$0xff] (!%p3737_p4), %v3891_v11 }
  0x15   : > { %s3735_s24 = sshll.u32 %s371_s29, 2  ;;  %s3736_s25 = sshll.u32 %s371_s29, 3  ;;  %445 = vst [vmem:[#allocation2 + $0x30] sm:$0xff] (!%p3737_p4), %v3894_v12  ;;  %446 = vst [vmem:[#allocation2 + $0x38] sm:$0xff] (!%p3737_p4), %v3895_v13 }
  0x16   : > { %s4806_s10 = scalar_lea.vmem %s6608_s5, %s4303_s23  ;;  %s4811_s14 = scalar_lea.vmem %s6609_s6, %s3735_s24  ;;  %447 = vst [vmem:[#allocation2 + $0x40] sm:$0xff] (!%p3737_p4), %v3898_v16  ;;  %448 = vst [vmem:[#allocation2 + $0x48] sm:$0xff] (!%p3737_p4), %v3899_v17 }
  0x17   : > { %s4816_s18 = scalar_lea.vmem %s6610_s7, %s3736_s25  ;;  %406 = sbr.rel (%p3737_p4) target bundleno = 30 (0x1e), region = 56  ;;  %449 = vst [vmem:[#allocation2 + $0x50] sm:$0xff] (!%p3737_p4), %v3902_v18  ;;  %450 = vst [vmem:[#allocation2 + $0x58] sm:$0xff] (!%p3737_p4), %v3903_v19 }
  0x18   : > { %451 = vst [vmem:[#allocation2 + $0x60] sm:$0xff] (!%p3737_p4), %v3906_v20  ;;  %452 = vst [vmem:[#allocation2 + $0x68] sm:$0xff] (!%p3737_p4), %v3907_v21 }
  0x19   : > { %453 = vst [vmem:[#allocation2 + $0x70] sm:$0xff] (!%p3737_p4), %v3910_v22  ;;  %454 = vst [vmem:[#allocation2 + $0x78] sm:$0xff] (!%p3737_p4), %v3911_v23 }
  0x1e PF: > { %v4313_v24 = vld [vmem:[%s4791_s16 + $0x4] ss:$12 sps:$4 sm:$0xff]   ;;  %v4315_v25 = vld [vmem:[%s4791_s16] ss:$12 sps:$4 sm:$0xff]   ;;  %v4725_v26 = vmov 0   ;;  %v459_v51 = vld [vmem:[#allocation2 + $0x18] sm:$0xff]  ;;  %v514_v9 = vlaneseq }
  0x1f   : > { %689 = vmatprep.mubr.bf16.mxu0 %v4725_v26  ;;  %657 = vmatprep.subr.bf16.mxu0 %v4313_v24  ;;  %v4316_v27 = vld [vmem:[%s4791_s16 + $0x1c] ss:$12 sps:$4 sm:$0xff]   ;;  %v4318_v28 = vld [vmem:[%s4791_s16 + $0x18] ss:$12 sps:$4 sm:$0xff]   ;;  %v4319_v29 = vld [vmem:[%s4791_s16 + $0x34] ss:$12 sps:$4 sm:$0xff]  }
  0x20   : > { %658 = vmatpush1.bf16.msra.mxu0 %v4315_v25  ;;  %v4321_v30 = vld [vmem:[%s4791_s16 + $0x30] ss:$12 sps:$4 sm:$0xff]   ;;  %v4322_v31 = vld [vmem:[%s4791_s16 + $0x4c] ss:$12 sps:$4 sm:$0xff]   ;;  %v456_v32 = vld [vmem:[#allocation2] sm:$0xff]  ;;  %v4875_v10 = vshrl.u32 %v514_v9, 7 }
  0x21   : > { %659 = vmatprep.subr.bf16.mxu0 %v4316_v27  ;;  %v4324_v33 = vld [vmem:[%s4791_s16 + $0x48] ss:$12 sps:$4 sm:$0xff]   ;;  %v4325_v35 = vld [vmem:[%s4791_s16 + $0x64] ss:$12 sps:$4 sm:$0xff]   ;;  %v4327_v37 = vld [vmem:[%s4791_s16 + $0x60] ss:$12 sps:$4 sm:$0xff]  }
  0x22   : > { %v457_v34 = vld [vmem:[#allocation2 + $0x8] sm:$0xff]  ;;  %v4330_v41 = vld [vmem:[%s4791_s16 + $0x78] ss:$12 sps:$4 sm:$0xff]   ;;  %v4331_v42 = vld [vmem:[%s4791_s16 + $0x94] ss:$12 sps:$4 sm:$0xff]   ;;  %6670 = vst [vmem:[#allocation3_spill] sm:$0xff] %v4875_v10 }
  0x23   : > { %v472_v36 = vpack.c.bf16 %v457_v34, %v456_v32  ;;  %v4328_v38 = vld [vmem:[%s4791_s16 + $0x7c] ss:$12 sps:$4 sm:$0xff]   ;;  %v4338_v40 = vld [vmem:[%s4791_s16 + $0x20] ss:$12 sps:$4 sm:$0xff]   ;;  %v4339_v43 = vld [vmem:[%s4791_s16 + $0x38] ss:$12 sps:$4 sm:$0xff]  }
  0x24   : > { %660 = vmatpush1.bf16.msra.mxu0 %v4318_v28  ;;  %v4337_v39 = vld [vmem:[%s4791_s16 + $0x8] ss:$12 sps:$4 sm:$0xff]   ;;  %v4333_v44 = vld [vmem:[%s4791_s16 + $0x90] ss:$12 sps:$4 sm:$0xff]   ;;  %v4334_v45 = vld [vmem:[%s4791_s16 + $0xac] ss:$12 sps:$4 sm:$0xff]  }
  0x25   : > { %661 = vmatprep.subr.bf16.mxu0 %v4319_v29  ;;  %4174 = vmatprep.mubr.bf16.mxu1 %v472_v36  ;;  %v4340_v46 = vld [vmem:[%s4791_s16 + $0x50] ss:$12 sps:$4 sm:$0xff]   ;;  %v4336_v47 = vld [vmem:[%s4791_s16 + $0xa8] ss:$12 sps:$4 sm:$0xff]   ;;  %v4342_v49 = vld [vmem:[%s4791_s16 + $0x80] ss:$12 sps:$4 sm:$0xff]  }
  0x26   : > { %4158 = vmatprep.subr.bf16.mxu1 %v4337_v39  ;;  %v4341_v48 = vld [vmem:[%s4791_s16 + $0x68] ss:$12 sps:$4 sm:$0xff]   ;;  %v4343_v52 = vld [vmem:[%s4791_s16 + $0x98] ss:$12 sps:$4 sm:$0xff]   ;;  %v4344_v54 = vld [vmem:[%s4791_s16 + $0xb0] ss:$12 sps:$4 sm:$0xff]  }
  0x27   : > { %4159 = vmatpush3.bf16.msra.mxu1 %v4337_v39  ;;  %v458_v50 = vld [vmem:[#allocation2 + $0x10] sm:$0xff]  ;;  %v460_v55 = vld [vmem:[#allocation2 + $0x20] sm:$0xff]  ;;  %v461_v56 = vld [vmem:[#allocation2 + $0x28] sm:$0xff]  ;;  %v4878_v11 = vsub.s32 0, %v4875_v10  ;;  %v4882_v13 = vsub.s32 1, %v4875_v10  ;;  %vm1021_vm0 = vcmask 523264  }
  0x28   : > { %662 = vmatpush1.bf16.msra.mxu0 %v4321_v30  ;;  %4160 = vmatprep.subr.bf16.mxu1 %v4338_v40  ;;  %v473_v53 = vpack.c.bf16 %v459_v51, %v458_v50  ;;  %v474_v57 = vpack.c.bf16 %v461_v56, %v460_v55  ;;  %v462_v58 = vld [vmem:[#allocation2 + $0x30] sm:$0xff]  ;;  %v463_v59 = vld [vmem:[#allocation2 + $0x38] sm:$0xff]  ;;  %v464_v60 = vld [vmem:[#allocation2 + $0x40] sm:$0xff]  ;;  %v4895_v30 = vsub.s32 2, %v4875_v10  ;;  %p3842_p5 = scmp.ne.s32.totalorder %s4777_s28, 1 }
  0x29   : > { %663 = vmatprep.subr.bf16.mxu0 %v4322_v31  ;;  %v465_v61 = vld [vmem:[#allocation2 + $0x48] sm:$0xff]  ;;  %v475_v62 = vpack.c.bf16 %v463_v59, %v462_v58  ;;  %v466_v0 = vld [vmem:[#allocation2 + $0x50] sm:$0xff]  ;;  %v467_v1 = vld [vmem:[#allocation2 + $0x58] sm:$0xff] }
  0x2a   : > { %v476_v63 = vpack.c.bf16 %v465_v61, %v464_v60  ;;  %v468_v2 = vld [vmem:[#allocation2 + $0x60] sm:$0xff]  ;;  %v469_v3 = vld [vmem:[#allocation2 + $0x68] sm:$0xff]  ;;  %v477_v4 = vpack.c.bf16 %v467_v1, %v466_v0  ;;  %v470_v6 = vld [vmem:[#allocation2 + $0x70] sm:$0xff] }
  0x2b   : > { %4161 = vmatpush3.bf16.msra.mxu1 %v4338_v40  ;;  %v478_v5 = vpack.c.bf16 %v469_v3, %v468_v2  ;;  %v471_v7 = vld [vmem:[#allocation2 + $0x78] sm:$0xff]  ;;  %v512_v12 = vld [vmem:[%s4806_s10] sm:$0x7] }
  0x2c   : > { %664 = vmatpush1.bf16.msra.mxu0 %v4324_v33  ;;  %4162 = vmatprep.subr.bf16.mxu1 %v4339_v43  ;;  %v479_v8 = vpack.c.bf16 %v471_v7, %v470_v6  ;;  %v4885_v14 = vrot.slane %v512_v12, %v4878_v11  ;;  %v4888_v16 = vrot.slane %v512_v12, %v4882_v13 }
  0x2d   : > { %665 = vmatprep.subr.bf16.mxu0 %v4325_v35 }
  0x2f   : > { %4163 = vmatpush3.bf16.msra.mxu1 %v4339_v43 }
  0x30   : > { %666 = vmatpush1.bf16.msra.mxu0 %v4327_v37  ;;  %4164 = vmatprep.subr.bf16.mxu1 %v4340_v46 }
  0x31   : > { %667 = vmatprep.subr.bf16.mxu0 %v4328_v38  ;;  %v4908_v38 = vrot.slane %v512_v12, %v4895_v30 }
  0x33   : > { %4165 = vmatpush3.bf16.msra.mxu1 %v4340_v46 }
  0x34   : > { %668 = vmatpush1.bf16.msra.mxu0 %v4330_v41  ;;  %4166 = vmatprep.subr.bf16.mxu1 %v4341_v48 }
  0x35   : > { %669 = vmatprep.subr.bf16.mxu0 %v4331_v42 }
  0x37   : > { %4167 = vmatpush3.bf16.msra.mxu1 %v4341_v48 }
  0x38   : > { %670 = vmatpush1.bf16.msra.mxu0 %v4333_v44  ;;  %4168 = vmatprep.subr.bf16.mxu1 %v4342_v49 }
  0x39   : > { %671 = vmatprep.subr.bf16.mxu0 %v4334_v45 }
  0x3b   : > { %4169 = vmatpush3.bf16.msra.mxu1 %v4342_v49 }
  0x3c   : > { %672 = vmatpush1.bf16.msra.mxu0 %v4336_v47  ;;  %4170 = vmatprep.subr.bf16.mxu1 %v4343_v52 }
  0x3f   : > { %690 = vmatmul.mubr.bf16.vlgmr.msra.gmra.mrb[0].mxu0 %v472_v36  ;;  %4171 = vmatpush3.bf16.msra.mxu1 %v4343_v52 }
  0x40   : > { %699 = vmatprep.mubr.bf16.mxu0 %v4725_v26  ;;  %4172 = vmatprep.subr.bf16.mxu1 %v4344_v54 }
  0x43   : > { %4173 = vmatpush3.bf16.msra.mxu1 %v4344_v54 }
  0x46   : > { %4175 = vmatmul.mubr.bf16.vlgmr.msra.gmra.mrb[0].mxu1 %v473_v53 }
  0x47   : > { %700 = vmatmul.mubr.bf16.gmra.mrb[4].mxu0 %v473_v53  ;;  %4178 = vmatprep.mubr.bf16.mxu1 %v474_v57 }
  0x48   : > { %709 = vmatprep.mubr.bf16.mxu0 %v4725_v26 }
  0x4e   : > { %4179 = vmatmul.mubr.bf16.gmra.mrb[4].mxu1 %v475_v62 }
  0x4f   : > { %710 = vmatmul.mubr.bf16.gmra.mrb[8].mxu0 %v474_v57  ;;  %4182 = vmatprep.mubr.bf16.mxu1 %v476_v63 }
  0x50   : > { %719 = vmatprep.mubr.bf16.mxu0 %v4725_v26 }
  0x56   : > { %4183 = vmatmul.mubr.bf16.gmra.mrb[8].mxu1 %v477_v4 }
  0x57   : > { %720 = vmatmul.mubr.bf16.gmra.mrb[12].mxu0 %v475_v62  ;;  %4186 = vmatprep.mubr.bf16.mxu1 %v478_v5 }
  0x58   : > { %729 = vmatprep.mubr.bf16.mxu0 %v4725_v26 }
  0x5e   : > { %4187 = vmatmul.mubr.bf16.gmra.mrb[12].mxu1 %v479_v8 }
  0x5f   : > { %730 = vmatmul.mubr.bf16.gmra.mrb[16].mxu0 %v476_v63 }
  0x60   : > { %739 = vmatprep.mubr.bf16.mxu0 %v4725_v26 }
  0x67   : > { %740 = vmatmul.mubr.bf16.gmra.mrb[20].mxu0 %v477_v4 }
  0x68   : > { %749 = vmatprep.mubr.bf16.mxu0 %v4725_v26 }
  0x6f   : > { %750 = vmatmul.mubr.bf16.gmra.mrb[24].mxu0 %v478_v5 }
  0x70   : > { %759 = vmatprep.mubr.bf16.mxu0 %v4725_v26 }
  0x77   : > { %760 = vmatmul.mubr.bf16.gmra.mrb[28].mxu0 %v479_v8 }
 0x112   : > { %v691_v15 = vpop.f32.mrb[0].mxu0 }
 0x113   : > { %v693_v17 = vpop.f32.mrb[1].mxu0  ;;  %v692_v19 = vadd.f32 %v691_v15, %v4885_v14 }
 0x114   : > { %v695_v18 = vpop.f32.mrb[2].mxu0  ;;  %v694_v22 = vadd.f32 %v693_v17, %v4888_v16 }
 0x115   : > { %v696_v20 = vadd.f32 %v695_v18, %v4885_v14  ;;  %v697_v21 = vpop.f32.mrb[3].mxu0 }
 0x116   : > { %v698_v23 = vadd.f32 %v697_v21, %v4888_v16 }
 0x117   : > { %v867_v24 = vpack.c.bf16 %v696_v20, %v692_v19 }
 0x118   : > { %v875_v25 = vpack.c.bf16 %v698_v23, %v694_v22 }
 0x119   : > { %4198 = vmatprep.mubr.bf16.mxu1 %v867_v24  ;;  %v4176_v40 = vpop.f32.mrb[0].mxu1 }
 0x11a   : > { %v701_v27 = vpop.f32.mrb[4].mxu0  ;;  %4190 = vmatprep.subr.bf16.mxu1 %v875_v25  ;;  %v813_v42 = vadd.f32 %v4176_v40, %v4908_v38  ;;  %v804_v43 = vpop.f32.mrb[1].mxu1 }
 0x11b   : > { %v703_v28 = vpop.f32.mrb[5].mxu0  ;;  %4191 = vmatpush3.bf16.xpose.msra.mxu1 %v875_v25  ;;  %v4898_v31 = vadd.f32 %v701_v27, %v4885_v14  ;;  %v805_v45 = vadd.f32 %v804_v43, %v4908_v38  ;;  %v4177_v46 = vpop.f32.mrb[2].mxu1 }
 0x11c   : > { %v705_v29 = vpop.f32.mrb[6].mxu0  ;;  %v704_v34 = vadd.f32 %v703_v28, %v4888_v16  ;;  %v816_v50 = vadd.f32 %v4177_v46, %v4908_v38  ;;  %v807_v51 = vpop.f32.mrb[3].mxu1 }
 0x11d   : > { %v4901_v32 = vadd.f32 %v705_v29, %v4885_v14  ;;  %v707_v33 = vpop.f32.mrb[7].mxu0  ;;  %v808_v54 = vadd.f32 %v807_v51, %v4908_v38 }
 0x11e   : > { %v708_v35 = vadd.f32 %v707_v33, %v4888_v16  ;;  %v4924_v56 = vpack.c.bf16 %v816_v50, %v813_v42 }
 0x11f   : > { %v868_v36 = vpack.c.bf16 %v4901_v32, %v4898_v31  ;;  %v883_v58 = vpack.c.bf16 %v808_v54, %v805_v45 }
 0x120   : > { %v876_v37 = vpack.c.bf16 %v708_v35, %v704_v34 }
 0x121   : > { %v4180_v60 = vpop.f32.mrb[4].mxu1 }
 0x122   : > { %v711_v39 = vpop.f32.mrb[8].mxu0  ;;  %4192 = vmatprep.subr.bf16.mxu1 %v876_v37  ;;  %v829_v62 = vadd.f32 %v4180_v60, %v4908_v38  ;;  %v820_v63 = vpop.f32.mrb[5].mxu1 }
 0x123   : > { %v713_v41 = vpop.f32.mrb[9].mxu0  ;;  %4193 = vmatpush3.bf16.xpose.msra.mxu1 %v876_v37  ;;  %v4913_v47 = vadd.f32 %v711_v39, %v4885_v14  ;;  %v821_v1 = vadd.f32 %v820_v63, %v4908_v38  ;;  %v4181_v2 = vpop.f32.mrb[6].mxu1 }
 0x124   : > { %v715_v44 = vpop.f32.mrb[10].mxu0  ;;  %v714_v52 = vadd.f32 %v713_v41, %v4888_v16  ;;  %v832_v6 = vadd.f32 %v4181_v2, %v4908_v38  ;;  %v823_v7 = vpop.f32.mrb[7].mxu1 }
 0x125   : > { %v4916_v48 = vadd.f32 %v715_v44, %v4885_v14  ;;  %v717_v49 = vpop.f32.mrb[11].mxu0  ;;  %v824_v12 = vadd.f32 %v823_v7, %v4908_v38 }
 0x126   : > { %v718_v53 = vadd.f32 %v717_v49, %v4888_v16  ;;  %v4940_v17 = vpack.c.bf16 %v832_v6, %v829_v62 }
 0x127   : > { %v869_v55 = vpack.c.bf16 %v4916_v48, %v4913_v47  ;;  %v885_v19 = vpack.c.bf16 %v824_v12, %v821_v1 }
 0x128   : > { %v877_v57 = vpack.c.bf16 %v718_v53, %v714_v52 }
 0x129   : > { %v4184_v21 = vpop.f32.mrb[8].mxu1 }
 0x12a   : > { %v721_v59 = vpop.f32.mrb[12].mxu0  ;;  %4194 = vmatprep.subr.bf16.mxu1 %v877_v57  ;;  %v845_v24 = vadd.f32 %v4184_v21, %v4908_v38  ;;  %v836_v25 = vpop.f32.mrb[9].mxu1 }
 0x12b   : > { %v723_v61 = vpop.f32.mrb[13].mxu0  ;;  %4195 = vmatpush3.bf16.xpose.msra.mxu1 %v877_v57  ;;  %v4929_v3 = vadd.f32 %v721_v59, %v4885_v14  ;;  %v837_v29 = vadd.f32 %v836_v25, %v4908_v38  ;;  %v4185_v33 = vpop.f32.mrb[10].mxu1 }
 0x12c   : > { %v725_v0 = vpop.f32.mrb[14].mxu0  ;;  %v724_v8 = vadd.f32 %v723_v61, %v4888_v16  ;;  %v848_v37 = vadd.f32 %v4185_v33, %v4908_v38  ;;  %v839_v39 = vpop.f32.mrb[11].mxu1 }
 0x12d   : > { %v4932_v4 = vadd.f32 %v725_v0, %v4885_v14  ;;  %v727_v5 = vpop.f32.mrb[15].mxu0  ;;  %v840_v41 = vadd.f32 %v839_v39, %v4908_v38 }
 0x12e   : > { %v728_v9 = vadd.f32 %v727_v5, %v4888_v16  ;;  %v4950_v43 = vpack.c.bf16 %v848_v37, %v845_v24 }
 0x12f   : > { %v870_v15 = vpack.c.bf16 %v4932_v4, %v4929_v3  ;;  %v4952_v45 = vpack.c.bf16 %v840_v41, %v837_v29 }
 0x130   : > { %v878_v18 = vpack.c.bf16 %v728_v9, %v724_v8 }
 0x131   : > { %v4188_v47 = vpop.f32.mrb[12].mxu1 }
 0x132   : > { %v731_v20 = vpop.f32.mrb[16].mxu0  ;;  %4196 = vmatprep.subr.bf16.mxu1 %v878_v18  ;;  %v861_v50 = vadd.f32 %v4188_v47, %v4908_v38  ;;  %v852_v51 = vpop.f32.mrb[13].mxu1 }
 0x133   : > { %v732_v22 = vadd.f32 %v731_v20, %v4885_v14  ;;  %v733_v23 = vpop.f32.mrb[17].mxu0  ;;  %4197 = vmatpush3.bf16.xpose.msra.mxu1 %v878_v18  ;;  %v853_v54 = vadd.f32 %v852_v51, %v4908_v38  ;;  %v4189_v57 = vpop.f32.mrb[14].mxu1 }
 0x134   : > { %v734_v27 = vadd.f32 %v733_v23, %v4888_v16  ;;  %v735_v28 = vpop.f32.mrb[18].mxu0  ;;  %4222 = vmatprep.subr.bf16.mxu1 %v883_v58  ;;  %v855_v59 = vpop.f32.mrb[15].mxu1 }
 0x135   : > { %v736_v34 = vadd.f32 %v735_v28, %v4885_v14  ;;  %v737_v35 = vpop.f32.mrb[19].mxu0  ;;  %v856_v60 = vadd.f32 %v855_v59, %v4908_v38 }
 0x136   : > { %v738_v40 = vadd.f32 %v737_v35, %v4888_v16 }
 0x137   : > { %v871_v42 = vpack.c.bf16 %v736_v34, %v732_v22  ;;  %v4968_v0 = vpack.c.bf16 %v856_v60, %v853_v54 }
 0x138   : > { %v879_v44 = vpack.c.bf16 %v738_v40, %v734_v27 }
 0x139   : > { %4214 = vmatprep.mubr.bf16.mxu0 %v871_v42 }
 0x13a   : > { %v741_v46 = vpop.f32.mrb[20].mxu0  ;;  %4199 = vmatmul.mubr.bf16.vlgmr.msra.gmra.mrb[16].mxu1 %v868_v36  ;;  %4206 = vmatprep.subr.bf16.mxu0 %v879_v44  ;;  %v864_v36 = vadd.f32 %v4189_v57, %v4908_v38 }
 0x13b   : > { %v742_v48 = vadd.f32 %v741_v46, %v4885_v14  ;;  %v743_v49 = vpop.f32.mrb[21].mxu0  ;;  %4202 = vmatprep.mubr.bf16.mxu1 %v869_v55  ;;  %4207 = vmatpush3.bf16.xpose.msra.mxu0 %v879_v44 }
 0x13c   : > { %v744_v52 = vadd.f32 %v743_v49, %v4888_v16  ;;  %v745_v53 = vpop.f32.mrb[22].mxu0  ;;  %4223 = vmatpush3.bf16.msra.mxu1 %v883_v58  ;;  %v4966_v62 = vpack.c.bf16 %v864_v36, %v861_v50 }
 0x13d   : > { %v746_v31 = vadd.f32 %v745_v53, %v4885_v14  ;;  %v747_v32 = vpop.f32.mrb[23].mxu0  ;;  %4224 = vmatprep.subr.bf16.mxu1 %v4924_v56 }
 0x13e   : > { %v748_v55 = vadd.f32 %v747_v32, %v4888_v16 }
 0x13f   : > { %v872_v61 = vpack.c.bf16 %v746_v31, %v742_v48 }
 0x140   : > { %v880_v63 = vpack.c.bf16 %v748_v55, %v744_v52  ;;  %4225 = vmatpush3.bf16.msra.mxu1 %v4924_v56 }
 0x141   : > { %4226 = vmatprep.subr.bf16.mxu1 %v885_v19 }
 0x142   : > { %v751_v58 = vpop.f32.mrb[24].mxu0  ;;  %4203 = vmatmul.mubr.bf16.gmra.mrb[20].mxu1 %v870_v15  ;;  %4208 = vmatprep.subr.bf16.mxu0 %v880_v63 }
 0x143   : > { %v752_v1 = vadd.f32 %v751_v58, %v4885_v14  ;;  %v753_v2 = vpop.f32.mrb[25].mxu0  ;;  %4209 = vmatpush3.bf16.xpose.msra.mxu0 %v880_v63 }
 0x144   : > { %v754_v3 = vadd.f32 %v753_v2, %v4888_v16  ;;  %v755_v4 = vpop.f32.mrb[26].mxu0  ;;  %4227 = vmatpush3.bf16.msra.mxu1 %v885_v19 }
 0x145   : > { %v756_v38 = vadd.f32 %v755_v4, %v4885_v14  ;;  %v757_v5 = vpop.f32.mrb[27].mxu0  ;;  %4228 = vmatprep.subr.bf16.mxu1 %v4940_v17 }
 0x146   : > { %v758_v6 = vadd.f32 %v757_v5, %v4888_v16 }
 0x147   : > { %v873_v56 = vpack.c.bf16 %v756_v38, %v752_v1 }
 0x148   : > { %v881_v7 = vpack.c.bf16 %v758_v6, %v754_v3  ;;  %4229 = vmatpush3.bf16.msra.mxu1 %v4940_v17 }
 0x149   : > { %4238 = vmatprep.subr.bf16.mxu1 %v4952_v45 }
 0x14a   : > { %v761_v8 = vpop.f32.mrb[28].mxu0  ;;  %4210 = vmatprep.subr.bf16.mxu0 %v881_v7 }
 0x14b   : > { %v762_v9 = vadd.f32 %v761_v8, %v4885_v14  ;;  %v763_v12 = vpop.f32.mrb[29].mxu0  ;;  %4211 = vmatpush3.bf16.xpose.msra.mxu0 %v881_v7 }
 0x14c   : > { %v764_v15 = vadd.f32 %v763_v12, %v4888_v16  ;;  %v765_v18 = vpop.f32.mrb[30].mxu0 }
 0x14d   : > { %v766_v19 = vadd.f32 %v765_v18, %v4885_v14  ;;  %v767_v20 = vpop.f32.mrb[31].mxu0 }
 0x14e   : > { %v768_v21 = vadd.f32 %v767_v20, %v4888_v16 }
 0x14f   : > { %v874_v22 = vpack.c.bf16 %v766_v19, %v762_v9 }
 0x150   : > { %v882_v23 = vpack.c.bf16 %v768_v21, %v764_v15 }
 0x152   : > { %4212 = vmatprep.subr.bf16.mxu0 %v882_v23 }
 0x153   : > { %4213 = vmatpush3.bf16.xpose.msra.mxu0 %v882_v23 }
 0x15a   : > { %4215 = vmatmul.mubr.bf16.vlgmr.msra.gmra.mrb[32].mxu0 %v872_v61 }
 0x15b   : > { %4218 = vmatprep.mubr.bf16.mxu0 %v873_v56 }
 0x162   : > { %4219 = vmatmul.mubr.bf16.gmra.mrb[36].mxu0 %v874_v22 }
 0x20d   : > { %v4200_v17 = vpop.f32.mrb[16].mxu1 }
 0x20e   : > { %v925_v24 = vpop.f32.mrb[17].mxu1  ;;  %v1028_v25 = vsel %vm1021_vm0, %v4200_v17, -inf }
 0x20f   : > { %1029 = vmax.xlane.f32.xlu1 %v1028_v25  ;;  %v4201_v27 = vpop.f32.mrb[18].mxu1  ;;  %v1022_v28 = vsel %vm1021_vm0, %v925_v24, -inf }
 0x210   : > { %1023 = vmax.xlane.f32.xlu0 %v1022_v28  ;;  %v928_v14 = vpop.f32.mrb[19].mxu1  ;;  %v1031_v16 = vsel %vm1021_vm0, %v4201_v27, -inf }
 0x211   : > { %v1025_v29 = vsel %vm1021_vm0, %v928_v14, -inf }
 0x213   : > { %1032 = vmax.xlane.f32.xlu1 %v1031_v16 }
 0x214   : > { %1026 = vmax.xlane.f32.xlu0 %v1025_v29 }
 0x215   : > { %v4986_v33 = vpop.f32.mrb[20].mxu1 }
 0x216   : > { %v941_v34 = vpop.f32.mrb[21].mxu1  ;;  %v1040_v41 = vsel %vm1021_vm0, %v4986_v33, -inf }
 0x217   : > { %v4988_v35 = vpop.f32.mrb[22].mxu1  ;;  %v1034_v37 = vsel %vm1021_vm0, %v941_v34, -inf }
 0x218   : > { %1035 = vmax.xlane.f32.xlu0 %v1034_v37  ;;  %v944_v39 = vpop.f32.mrb[23].mxu1  ;;  %v1043_v42 = vsel %vm1021_vm0, %v4988_v35, -inf }
 0x219   : > { %v1037_v40 = vsel %vm1021_vm0, %v944_v39, -inf }
 0x21a   : > { %1038 = vmax.xlane.f32.xlu1 %v1037_v40 }
 0x21c   : > { %1041 = vmax.xlane.f32.xlu0 %v1040_v41 }
 0x21e   : > { %1044 = vmax.xlane.f32.xlu1 %v1043_v42 }
 0x22d   : > { %v4996_v44 = vpop.f32.mrb[32].mxu0 }
 0x22e   : > { %v4998_v46 = vpop.f32.mrb[33].mxu0  ;;  %v1052_v51 = vsel %vm1021_vm0, %v4996_v44, -inf }
 0x22f   : > { %v5000_v47 = vpop.f32.mrb[34].mxu0  ;;  %v1046_v48 = vsel %vm1021_vm0, %v4998_v46, -inf }
 0x230   : > { %v5004_v49 = vpop.f32.mrb[35].mxu0  ;;  %1047 = vmax.xlane.f32.xlu0 %v1046_v48  ;;  %v1055_v53 = vsel %vm1021_vm0, %v5000_v47, -inf }
 0x231   : > { %v1049_v50 = vsel %vm1021_vm0, %v5004_v49, -inf }
 0x232   : > { %1050 = vmax.xlane.f32.xlu1 %v1049_v50 }
 0x234   : > { %1053 = vmax.xlane.f32.xlu0 %v1052_v51 }
 0x235   : > { %v5010_v52 = vpop.f32.mrb[36].mxu0 }
 0x236   : > { %v5014_v54 = vpop.f32.mrb[37].mxu0  ;;  %1056 = vmax.xlane.f32.xlu1 %v1055_v53  ;;  %v1064_v59 = vsel %vm1021_vm0, %v5010_v52, -inf }
 0x237   : > { %v5016_v57 = vpop.f32.mrb[38].mxu0  ;;  %v1058_v31 = vsel %vm1021_vm0, %v5014_v54, -inf }
 0x238   : > { %v5020_v32 = vpop.f32.mrb[39].mxu0  ;;  %1059 = vmax.xlane.f32.xlu0 %v1058_v31  ;;  %v1067_v55 = vsel %vm1021_vm0, %v5016_v57, -inf }
 0x239   : > { %v1061_v36 = vsel %vm1021_vm0, %v5020_v32, -inf }
 0x23a   : > { %1062 = vmax.xlane.f32.xlu1 %v1061_v36 }
 0x23c   : > { %1065 = vmax.xlane.f32.xlu0 %v1064_v59 }
 0x23e   : > { %1068 = vmax.xlane.f32.xlu1 %v1067_v55 }
 0x29c   : > { %v1030_v60 = vpop.xlane.xlu1 %1029 }
 0x29d   : > { %v1072_v61 = vsub.f32 %v4200_v17, %v1030_v60  ;;  %v1024_v63 = vpop.xlane.xlu0 %1023 }
 0x29e   : > { %v1070_v58 = vsub.f32 %v925_v24, %v1024_v63 }
 0x29f   : > { %v1090_v1 = vmul.f32 1.442695, %v1072_v61 }
 0x2a0   : > { %v1086_v2 = vmul.f32 1.442695, %v1070_v58  ;;  %v1033_v3 = vpop.xlane.xlu1 %1032 }
 0x2a1   : > { %v1073_v4 = vsub.f32 %v4201_v27, %v1033_v3  ;;  %v1027_v38 = vpop.xlane.xlu0 %1026 }
 0x2a2   : > { %4433 = vpow2.f32 %v1086_v2  ;;  %v1071_v5 = vsub.f32 %v928_v14, %v1027_v38 }
 0x2a3   : > { %4435 = vpow2.f32 %v1090_v1  ;;  %v1092_v6 = vmul.f32 1.442695, %v1073_v4 }
 0x2a4   : > { %v1088_v56 = vmul.f32 1.442695, %v1071_v5 }
 0x2a5   : > { %v1036_v7 = vpop.xlane.xlu0 %1035 }
 0x2a6   : > { %4437 = vpow2.f32 %v1088_v56  ;;  %v1074_v8 = vsub.f32 %v941_v34, %v1036_v7 }
 0x2a7   : > { %v1039_v9 = vpop.xlane.xlu1 %1038  ;;  %4439 = vpow2.f32 %v1092_v6 }
 0x2a8   : > { %v1094_v12 = vmul.f32 1.442695, %v1074_v8  ;;  %v1075_v15 = vsub.f32 %v944_v39, %v1039_v9 }
 0x2a9   : > { %v1042_v18 = vpop.xlane.xlu0 %1041 }
 0x2aa   : > { %4441 = vpow2.f32 %v1094_v12  ;;  %v1096_v19 = vmul.f32 1.442695, %v1075_v15  ;;  %v1076_v20 = vsub.f32 %v4986_v33, %v1042_v18 }
 0x2ab   : > { %v1045_v21 = vpop.xlane.xlu1 %1044 }
 0x2ac   : > { %v5029_v22 = vpop.eup %4433  ;;  %4443 = vpow2.f32 %v1096_v19  ;;  %v1098_v23 = vmul.f32 1.442695, %v1076_v20  ;;  %v1077_v17 = vsub.f32 %v4988_v35, %v1045_v21 }
 0x2ad   : > { %v1118_v24 = vsel %vm1021_vm0, %v5029_v22, 0.0  ;;  %v5034_v25 = vpop.eup %4435 }
 0x2ae   : > { %4445 = vpow2.f32 %v1098_v23  ;;  %v1100_v27 = vmul.f32 1.442695, %v1077_v17  ;;  %1119 = vadd.xlane.f32.xlu0 %v1118_v24  ;;  %v1124_v14 = vsel %vm1021_vm0, %v5034_v25, 0.0 }
 0x2b0   : > { %v5036_v28 = vpop.eup %4437  ;;  %4447 = vpow2.f32 %v1100_v27 }
 0x2b1   : > { %v1121_v16 = vsel %vm1021_vm0, %v5036_v28, 0.0  ;;  %v5042_v29 = vpop.eup %4439 }
 0x2b2   : > { %1125 = vadd.xlane.f32.xlu0 %v1124_v14  ;;  %1122 = vadd.xlane.f32.xlu1 %v1121_v16  ;;  %v1127_v35 = vsel %vm1021_vm0, %v5042_v29, 0.0  ;;  %v4345_v14 = vld [vmem:[%s4786_s12] sm:$0xff]   ;;  %v4346_v16 = vld [vmem:[%s4786_s12 + $0x8] sm:$0xff]  }
 0x2b3   : > { %4254 = vmatprep.subr.bf16.mxu0 %v4345_v14 }
 0x2b4   : > { %v5044_v33 = vpop.eup %4441  ;;  %4255 = vmatpush3.bf16.msra.mxu0 %v4345_v14 }
 0x2b5   : > { %v1130_v34 = vsel %vm1021_vm0, %v5044_v33, 0.0  ;;  %4256 = vmatprep.subr.bf16.mxu0 %v4346_v16 }
 0x2b6   : > { %v5050_v37 = vpop.eup %4443  ;;  %1131 = vadd.xlane.f32.xlu0 %v1130_v34  ;;  %1128 = vadd.xlane.f32.xlu1 %v1127_v35  ;;  %v4347_v34 = vld [vmem:[%s4786_s12 + $0x10] sm:$0xff]   ;;  %v4348_v35 = vld [vmem:[%s4786_s12 + $0x18] sm:$0xff]  }
 0x2b7   : > { %v1133_v41 = vsel %vm1021_vm0, %v5050_v37, 0.0 }
 0x2b8   : > { %v5052_v39 = vpop.eup %4445  ;;  %4257 = vmatpush3.bf16.msra.mxu0 %v4346_v16 }
 0x2b9   : > { %v1136_v40 = vsel %vm1021_vm0, %v5052_v39, 0.0  ;;  %4258 = vmatprep.subr.bf16.mxu0 %v4347_v34 }
 0x2ba   : > { %v5058_v42 = vpop.eup %4447  ;;  %1137 = vadd.xlane.f32.xlu0 %v1136_v40  ;;  %1134 = vadd.xlane.f32.xlu1 %v1133_v41  ;;  %v4349_v40 = vld [vmem:[%s4786_s12 + $0x20] sm:$0xff]   ;;  %v4350_v41 = vld [vmem:[%s4786_s12 + $0x28] sm:$0xff]  }
 0x2bb   : > { %v1139_v50 = vsel %vm1021_vm0, %v5058_v42, 0.0 }
 0x2bc   : > { %4259 = vmatpush3.bf16.msra.mxu0 %v4347_v34 }
 0x2bd   : > { %v1048_v48 = vpop.xlane.xlu0 %1047  ;;  %4260 = vmatprep.subr.bf16.mxu0 %v4348_v35 }
 0x2be   : > { %v1078_v51 = vsub.f32 %v4998_v46, %v1048_v48  ;;  %1140 = vadd.xlane.f32.xlu1 %v1139_v50  ;;  %v4351_v48 = vld [vmem:[%s4786_s12 + $0x30] sm:$0xff]  }
 0x2bf   : > { %v1051_v53 = vpop.xlane.xlu1 %1050 }
 0x2c0   : > { %v1102_v31 = vmul.f32 1.442695, %v1078_v51  ;;  %v1079_v36 = vsub.f32 %v5004_v49, %v1051_v53  ;;  %4261 = vmatpush3.bf16.msra.mxu0 %v4348_v35 }
 0x2c1   : > { %v1054_v59 = vpop.xlane.xlu0 %1053  ;;  %4262 = vmatprep.subr.bf16.mxu0 %v4349_v40 }
 0x2c2   : > { %4449 = vpow2.f32 %v1102_v31  ;;  %v1104_v55 = vmul.f32 1.442695, %v1079_v36  ;;  %v1080_v60 = vsub.f32 %v4996_v44, %v1054_v59 }
 0x2c3   : > { %v1057_v61 = vpop.xlane.xlu1 %1056 }
 0x2c4   : > { %4451 = vpow2.f32 %v1104_v55  ;;  %v1106_v63 = vmul.f32 1.442695, %v1080_v60  ;;  %v1081_v58 = vsub.f32 %v5000_v47, %v1057_v61  ;;  %4263 = vmatpush3.bf16.msra.mxu0 %v4349_v40 }
 0x2c5   : > { %v1060_v1 = vpop.xlane.xlu0 %1059  ;;  %4264 = vmatprep.subr.bf16.mxu0 %v4350_v41 }
 0x2c6   : > { %4453 = vpow2.f32 %v1106_v63  ;;  %v1108_v2 = vmul.f32 1.442695, %v1081_v58  ;;  %v1082_v46 = vsub.f32 %v5014_v54, %v1060_v1 }
 0x2c7   : > { %v1063_v3 = vpop.xlane.xlu1 %1062 }
 0x2c8   : > { %4455 = vpow2.f32 %v1108_v2  ;;  %v1110_v4 = vmul.f32 1.442695, %v1082_v46  ;;  %v1083_v49 = vsub.f32 %v5020_v32, %v1063_v3  ;;  %4265 = vmatpush3.bf16.msra.mxu0 %v4350_v41 }
 0x2c9   : > { %v1066_v38 = vpop.xlane.xlu0 %1065  ;;  %4266 = vmatprep.subr.bf16.mxu0 %v4351_v48 }
 0x2ca   : > { %4457 = vpow2.f32 %v1110_v4  ;;  %v1112_v5 = vmul.f32 1.442695, %v1083_v49  ;;  %v1084_v44 = vsub.f32 %v5010_v52, %v1066_v38 }
 0x2cb   : > { %v1069_v6 = vpop.xlane.xlu1 %1068 }
 0x2cc   : > { %v5069_v56 = vpop.eup %4449  ;;  %4459 = vpow2.f32 %v1112_v5  ;;  %v1114_v47 = vmul.f32 1.442695, %v1084_v44  ;;  %v1085_v7 = vsub.f32 %v5016_v57, %v1069_v6  ;;  %4267 = vmatpush3.bf16.msra.mxu0 %v4351_v48 }
 0x2cd   : > { %v1142_v54 = vsel %vm1021_vm0, %v5069_v56, 0.0 }
 0x2ce   : > { %v5074_v8 = vpop.eup %4451  ;;  %4461 = vpow2.f32 %v1114_v47  ;;  %v1116_v9 = vmul.f32 1.442695, %v1085_v7  ;;  %1143 = vadd.xlane.f32.xlu0 %v1142_v54 }
 0x2cf   : > { %v1145_v32 = vsel %vm1021_vm0, %v5074_v8, 0.0 }
 0x2d0   : > { %v5078_v12 = vpop.eup %4453  ;;  %4463 = vpow2.f32 %v1116_v9  ;;  %1146 = vadd.xlane.f32.xlu1 %v1145_v32 }
 0x2d1   : > { %v1148_v52 = vsel %vm1021_vm0, %v5078_v12, 0.0 }
 0x2d2   : > { %v5082_v15 = vpop.eup %4455  ;;  %1149 = vadd.xlane.f32.xlu0 %v1148_v52 }
 0x2d3   : > { %v1151_v57 = vsel %vm1021_vm0, %v5082_v15, 0.0 }
 0x2d4   : > { %v5086_v18 = vpop.eup %4457  ;;  %1152 = vadd.xlane.f32.xlu1 %v1151_v57 }
 0x2d5   : > { %v1154_v19 = vsel %vm1021_vm0, %v5086_v18, 0.0 }
 0x2d6   : > { %v5090_v20 = vpop.eup %4459  ;;  %1155 = vadd.xlane.f32.xlu0 %v1154_v19 }
 0x2d7   : > { %v1157_v21 = vsel %vm1021_vm0, %v5090_v20, 0.0 }
 0x2d8   : > { %v5094_v23 = vpop.eup %4461  ;;  %1158 = vadd.xlane.f32.xlu1 %v1157_v21 }
 0x2d9   : > { %v1160_v17 = vsel %vm1021_vm0, %v5094_v23, 0.0 }
 0x2da   : > { %v5098_v24 = vpop.eup %4463  ;;  %1161 = vadd.xlane.f32.xlu0 %v1160_v17 }
 0x2db   : > { %v1163_v27 = vsel %vm1021_vm0, %v5098_v24, 0.0 }
 0x2dc   : > { %1164 = vadd.xlane.f32.xlu1 %v1163_v27 }
 0x33b   : > { %v1120_v50 = vpop.xlane.xlu0 %1119 }
 0x33c   : > { %4465 = vrcp.f32 %v1120_v50 }
 0x33f   : > { %v1126_v51 = vpop.xlane.xlu0 %1125  ;;  %v1123_v53 = vpop.xlane.xlu1 %1122 }
 0x340   : > { %4467 = vrcp.f32 %v1123_v53 }
 0x341   : > { %4469 = vrcp.f32 %v1126_v51  ;;  %v4352_v51 = vld [vmem:[%s4786_s12 + $0x38] sm:$0xff]  }
 0x342   : > { %4268 = vmatprep.subr.bf16.mxu0 %v4352_v51 }
 0x343   : > { %v1132_v31 = vpop.xlane.xlu0 %1131  ;;  %v1129_v36 = vpop.xlane.xlu1 %1128  ;;  %4269 = vmatpush3.bf16.msra.mxu0 %v4352_v51  ;;  %v4353_v51 = vld [vmem:[%s4796_s19] ss:$16 sps:$4 sm:$0xff]  }
 0x344   : > { %4471 = vrcp.f32 %v1129_v36 }
 0x345   : > { %4473 = vrcp.f32 %v1132_v31 }
 0x346   : > { %v4466_v60 = vpop.eup %4465 }
 0x347   : > { %v1138_v59 = vpop.xlane.xlu0 %1137  ;;  %v1135_v55 = vpop.xlane.xlu1 %1134  ;;  %v1182_v58 = vmul.f32 %v4466_v60, %v5029_v22 }
 0x348   : > { %4475 = vrcp.f32 %v1135_v55 }
 0x349   : > { %4477 = vrcp.f32 %v1138_v59 }
 0x34a   : > { %v4468_v61 = vpop.eup %4467 }
 0x34b   : > { %v1141_v63 = vpop.xlane.xlu1 %1140  ;;  %v1183_v1 = vmul.f32 %v4468_v61, %v5036_v28  ;;  %v4470_v2 = vpop.eup %4469 }
 0x34c   : > { %4479 = vrcp.f32 %v1141_v63  ;;  %v1184_v4 = vmul.f32 %v4470_v2, %v5034_v25 }
 0x34d   : > { %v1198_v46 = vpack.c.bf16 %v1183_v1, %v1182_v58 }
 0x34e   : > { %v4472_v3 = vpop.eup %4471 }
 0x34f   : > { %v1185_v49 = vmul.f32 %v4472_v3, %v5042_v29  ;;  %4230 = vmatprep.mubr.msk.bf16.mxu1 %vm1021_vm0, %v1198_v46  ;;  %v4474_v38 = vpop.eup %4473 }
 0x350   : > { %v1186_v47 = vmul.f32 %v4474_v38, %v5044_v33 }
 0x351   : > { %v1199_v5 = vpack.c.bf16 %v1185_v49, %v1184_v4 }
 0x352   : > { %v4476_v44 = vpop.eup %4475 }
 0x353   : > { %v4478_v6 = vpop.eup %4477  ;;  %4231 = vmatmul.mubr.msk.bf16.vlgmr.msra.gmra.mrb[24].mxu1 %vm1021_vm0, %v1199_v5  ;;  %v1187_v22 = vmul.f32 %v4476_v44, %v5050_v37 }
 0x354   : > { %4239 = vmatpush3.bf16.msra.mxu1 %v4952_v45  ;;  %v1188_v29 = vmul.f32 %v4478_v6, %v5052_v39 }
 0x355   : > { %4240 = vmatprep.subr.bf16.mxu1 %v4950_v43  ;;  %v1200_v25 = vpack.c.bf16 %v1187_v22, %v1186_v47  ;;  %v5144_v22 = vld [vmem:[%s4816_s18] sm:$0xff] }
 0x356   : > { %v4480_v28 = vpop.eup %4479 }
 0x357   : > { %v1189_v7 = vmul.f32 %v4480_v28, %v5058_v42  ;;  %4234 = vmatprep.mubr.msk.bf16.mxu1 %vm1021_vm0, %v1200_v25  ;;  %v1387_v28 = vrot.slane %v5144_v22, %v4878_v11 }
 0x358   : > { %4241 = vmatpush3.bf16.msra.mxu1 %v4950_v43 }
 0x359   : > { %v1201_v54 = vpack.c.bf16 %v1189_v7, %v1188_v29  ;;  %4242 = vmatprep.subr.bf16.mxu1 %v4968_v0 }
 0x35b   : > { %v1144_v33 = vpop.xlane.xlu0 %1143  ;;  %4235 = vmatmul.mubr.msk.bf16.gmra.mrb[28].mxu1 %vm1021_vm0, %v1201_v54 }
 0x35c   : > { %4481 = vrcp.f32 %v1144_v33  ;;  %4243 = vmatpush3.bf16.msra.mxu1 %v4968_v0 }
 0x35d   : > { %v1147_v45 = vpop.xlane.xlu1 %1146  ;;  %4244 = vmatprep.subr.bf16.mxu1 %v4966_v62 }
 0x35e   : > { %4483 = vrcp.f32 %v1147_v45 }
 0x35f   : > { %v1150_v37 = vpop.xlane.xlu0 %1149 }
 0x360   : > { %4485 = vrcp.f32 %v1150_v37  ;;  %4245 = vmatpush3.bf16.msra.mxu1 %v4966_v62 }
 0x361   : > { %v1153_v39 = vpop.xlane.xlu1 %1152 }
 0x362   : > { %4487 = vrcp.f32 %v1153_v39 }
 0x363   : > { %v1156_v43 = vpop.xlane.xlu0 %1155 }
 0x364   : > { %4489 = vrcp.f32 %v1156_v43 }
 0x365   : > { %v1159_v42 = vpop.xlane.xlu1 %1158 }
 0x366   : > { %v4482_v9 = vpop.eup %4481  ;;  %4491 = vrcp.f32 %v1159_v42 }
 0x367   : > { %v1162_v32 = vpop.xlane.xlu0 %1161  ;;  %v1190_v0 = vmul.f32 %v4482_v9, %v5069_v56 }
 0x368   : > { %v4484_v52 = vpop.eup %4483  ;;  %4493 = vrcp.f32 %v1162_v32 }
 0x369   : > { %v1165_v57 = vpop.xlane.xlu1 %1164  ;;  %v1191_v19 = vmul.f32 %v4484_v52, %v5074_v8 }
 0x36a   : > { %v4486_v21 = vpop.eup %4485  ;;  %4495 = vrcp.f32 %v1165_v57 }
 0x36b   : > { %v1202_v17 = vpack.c.bf16 %v1191_v19, %v1190_v0  ;;  %v1192_v62 = vmul.f32 %v4486_v21, %v5078_v12 }
 0x36c   : > { %v4488_v27 = vpop.eup %4487 }
 0x36d   : > { %v1193_v14 = vmul.f32 %v4488_v27, %v5082_v15  ;;  %4246 = vmatprep.mubr.msk.bf16.mxu1 %vm1021_vm0, %v1202_v17 }
 0x36e   : > { %v4490_v16 = vpop.eup %4489 }
 0x36f   : > { %v1203_v34 = vpack.c.bf16 %v1193_v14, %v1192_v62  ;;  %v1194_v56 = vmul.f32 %v4490_v16, %v5086_v18 }
 0x370   : > { %v4492_v35 = vpop.eup %4491 }
 0x371   : > { %4247 = vmatmul.mubr.msk.bf16.vlgmr.msra.gmra.mrb[32].mxu1 %vm1021_vm0, %v1203_v34  ;;  %v1195_v8 = vmul.f32 %v4492_v35, %v5090_v20 }
 0x372   : > { %v4494_v40 = vpop.eup %4493 }
 0x373   : > { %v1204_v41 = vpack.c.bf16 %v1195_v8, %v1194_v56  ;;  %v1196_v12 = vmul.f32 %v4494_v40, %v5094_v23 }
 0x374   : > { %v4496_v48 = vpop.eup %4495 }
 0x375   : > { %4250 = vmatprep.mubr.msk.bf16.mxu1 %vm1021_vm0, %v1204_v41  ;;  %v1197_v15 = vmul.f32 %v4496_v48, %v5098_v24 }
 0x377   : > { %v1205_v50 = vpack.c.bf16 %v1197_v15, %v1196_v12 }
 0x379   : > { %4251 = vmatmul.mubr.msk.bf16.gmra.mrb[36].mxu1 %vm1021_vm0, %v1205_v50 }
 0x37a   : > { %2020 = vmatprep.mubr.bf16.mxu1 %v4725_v26 }
 0x426   : > { %v4232_v18 = vpop.f32.mrb[24].mxu1 }
 0x427   : > { %v1252_v53 = vpop.f32.mrb[25].mxu1 }
 0x428   : > { %v4233_v20 = vpop.f32.mrb[26].mxu1 }
 0x429   : > { %v1361_v31 = vpack.c.bf16 %v4233_v20, %v4232_v18  ;;  %v1255_v36 = vpop.f32.mrb[27].mxu1  ;;  %v4355_v18 = vld [vmem:[%s4796_s19 + $0x4] ss:$16 sps:$4 sm:$0xff]   ;;  %v4358_v20 = vld [vmem:[%s4796_s19 + $0xc] ss:$16 sps:$4 sm:$0xff]  }
 0x42a   : > { %v1360_v59 = vpack.c.bf16 %v1255_v36, %v1252_v53  ;;  %v4356_v53 = vld [vmem:[%s4796_s19 + $0x8] ss:$16 sps:$4 sm:$0xff]   ;;  %1988 = vmatprep.subr.bf16.mxu1 %v4355_v18  ;;  %v4364_v36 = vld [vmem:[%s4796_s19 + $0x2c] ss:$16 sps:$4 sm:$0xff]   ;;  %2101 = vmatprep.subr.bf16.mxu0 %v4358_v20  ;;  %v4379_v18 = vld [vmem:[%s4796_s19 + $0x84] ss:$16 sps:$4 sm:$0xff]  }
 0x42b   : > { %1989 = vmatpush1.bf16.msra.mxu1 %v4353_v51 }
 0x42c   : > { %4270 = vmatprep.mubr.bf16.mxu0 %v1360_v59  ;;  %v4359_v59 = vld [vmem:[%s4796_s19 + $0x20] ss:$16 sps:$4 sm:$0xff]  }
 0x42d   : > { %4271 = vmatmul.mubr.bf16.vlgmr.msra.gmra.mrb[40].mxu0 %v1361_v31  ;;  %v4361_v31 = vld [vmem:[%s4796_s19 + $0x24] ss:$16 sps:$4 sm:$0xff]  }
 0x42e   : > { %v4236_v55 = vpop.f32.mrb[28].mxu1  ;;  %2102 = vmatpush1.bf16.msra.mxu0 %v4356_v53  ;;  %1990 = vmatprep.subr.bf16.mxu1 %v4361_v31  ;;  %v4382_v53 = vld [vmem:[%s4796_s19 + $0x8c] ss:$16 sps:$4 sm:$0xff]  }
 0x42f   : > { %v1268_v23 = vpop.f32.mrb[29].mxu1  ;;  %2103 = vmatprep.subr.bf16.mxu0 %v4364_v36  ;;  %1991 = vmatpush1.bf16.msra.mxu1 %v4359_v59  ;;  %v4377_v36 = vld [vmem:[%s4796_s19 + $0x80] ss:$16 sps:$4 sm:$0xff]   ;;  %v4380_v59 = vld [vmem:[%s4796_s19 + $0x88] ss:$16 sps:$4 sm:$0xff]  }
 0x430   : > { %v4237_v60 = vpop.f32.mrb[30].mxu1 }
 0x431   : > { %v1363_v24 = vpack.c.bf16 %v4237_v60, %v4236_v55  ;;  %v1271_v61 = vpop.f32.mrb[31].mxu1  ;;  %v4362_v55 = vld [vmem:[%s4796_s19 + $0x28] ss:$16 sps:$4 sm:$0xff]  }
 0x432   : > { %v1362_v63 = vpack.c.bf16 %v1271_v61, %v1268_v23  ;;  %2104 = vmatpush1.bf16.msra.mxu0 %v4362_v55 }
 0x434   : > { %4274 = vmatprep.mubr.bf16.mxu0 %v1362_v63 }
 0x435   : > { %4275 = vmatmul.mubr.bf16.gmra.mrb[44].mxu0 %v1363_v24 }
 0x444   : > { %v4248_v58 = vpop.f32.mrb[32].mxu1 }
 0x445   : > { %v1329_v1 = vpop.f32.mrb[33].mxu1 }
 0x446   : > { %v4249_v2 = vpop.f32.mrb[34].mxu1 }
 0x447   : > { %v1365_v46 = vpack.c.bf16 %v4249_v2, %v4248_v58  ;;  %v1332_v3 = vpop.f32.mrb[35].mxu1 }
 0x448   : > { %v1364_v4 = vpack.c.bf16 %v1332_v3, %v1329_v1 }
 0x44a   : > { %4278 = vmatprep.mubr.bf16.mxu0 %v1364_v4 }
 0x44b   : > { %4279 = vmatmul.mubr.bf16.gmra.mrb[48].mxu0 %v1365_v46 }
 0x44c   : > { %v4252_v49 = vpop.f32.mrb[36].mxu1 }
 0x44d   : > { %v1345_v38 = vpop.f32.mrb[37].mxu1 }
 0x44e   : > { %v4253_v5 = vpop.f32.mrb[38].mxu1 }
 0x44f   : > { %v1367_v44 = vpack.c.bf16 %v4253_v5, %v4252_v49  ;;  %v1348_v6 = vpop.f32.mrb[39].mxu1 }
 0x450   : > { %v1366_v47 = vpack.c.bf16 %v1348_v6, %v1345_v38 }
 0x452   : > { %4282 = vmatprep.mubr.bf16.mxu0 %v1366_v47 }
 0x453   : > { %4283 = vmatmul.mubr.bf16.gmra.mrb[52].mxu0 %v1367_v44 }
 0x454   : > { %2133 = vmatprep.mubr.bf16.mxu0 %v4725_v26 }
 0x500   : > { %v4272_v25 = vpop.f32.mrb[40].mxu0 }
 0x501   : > { %v1470_v29 = vpop.f32.mrb[41].mxu0  ;;  %v5153_v37 = vadd.f32 %v4272_v25, %v1387_v28 }
 0x502   : > { %v5148_v7 = vadd.f32 %v1470_v29, %v1387_v28  ;;  %v4273_v54 = vpop.f32.mrb[42].mxu0 }
 0x503   : > { %v1473_v33 = vpop.f32.mrb[43].mxu0  ;;  %v5156_v39 = vadd.f32 %v4273_v54, %v1387_v28 }
 0x504   : > { %v5150_v45 = vadd.f32 %v1473_v33, %v1387_v28  ;;  %1533 = vadd.xlane.f32.xlu0 %v5148_v7 }
 0x506   : > { %1535 = vadd.xlane.f32.xlu1 %v5150_v45 }
 0x508   : > { %v4276_v43 = vpop.f32.mrb[44].mxu0  ;;  %1537 = vadd.xlane.f32.xlu0 %v5153_v37 }
 0x509   : > { %v1486_v42 = vpop.f32.mrb[45].mxu0  ;;  %v5165_v0 = vadd.f32 %v4276_v43, %v1387_v28 }
 0x50a   : > { %v5159_v9 = vadd.f32 %v1486_v42, %v1387_v28  ;;  %v4277_v32 = vpop.f32.mrb[46].mxu0  ;;  %1539 = vadd.xlane.f32.xlu1 %v5156_v39 }
 0x50b   : > { %v1489_v52 = vpop.f32.mrb[47].mxu0  ;;  %v5168_v19 = vadd.f32 %v4277_v32, %v1387_v28 }
 0x50c   : > { %v5162_v57 = vadd.f32 %v1489_v52, %v1387_v28  ;;  %1541 = vadd.xlane.f32.xlu0 %v5159_v9 }
 0x50e   : > { %1543 = vadd.xlane.f32.xlu1 %v5162_v57 }
 0x510   : > { %1545 = vadd.xlane.f32.xlu0 %v5165_v0 }
 0x512   : > { %1547 = vadd.xlane.f32.xlu1 %v5168_v19 }
 0x51e   : > { %v4280_v21 = vpop.f32.mrb[48].mxu0 }
 0x51f   : > { %v1502_v17 = vpop.f32.mrb[49].mxu0  ;;  %v5177_v34 = vadd.f32 %v4280_v21, %v1387_v28  ;;  %v4370_v21 = vld [vmem:[%s4796_s19 + $0x4c] ss:$16 sps:$4 sm:$0xff]  }
 0x520   : > { %v5172_v27 = vadd.f32 %v1502_v17, %v1387_v28  ;;  %v4281_v62 = vpop.f32.mrb[50].mxu0  ;;  %v4365_v17 = vld [vmem:[%s4796_s19 + $0x40] ss:$16 sps:$4 sm:$0xff]   ;;  %2105 = vmatprep.subr.bf16.mxu0 %v4370_v21 }
 0x521   : > { %v1505_v14 = vpop.f32.mrb[51].mxu0  ;;  %v5180_v35 = vadd.f32 %v4281_v62, %v1387_v28  ;;  %v4368_v62 = vld [vmem:[%s4796_s19 + $0x48] ss:$16 sps:$4 sm:$0xff]  }
 0x522   : > { %v5174_v16 = vadd.f32 %v1505_v14, %v1387_v28  ;;  %1549 = vadd.xlane.f32.xlu0 %v5172_v27  ;;  %2106 = vmatpush1.bf16.msra.mxu0 %v4368_v62  ;;  %v4376_v14 = vld [vmem:[%s4796_s19 + $0x6c] ss:$16 sps:$4 sm:$0xff]  }
 0x523   : > { %2107 = vmatprep.subr.bf16.mxu0 %v4376_v14 }
 0x524   : > { %1551 = vadd.xlane.f32.xlu1 %v5174_v16 }
 0x526   : > { %v4284_v56 = vpop.f32.mrb[52].mxu0  ;;  %1553 = vadd.xlane.f32.xlu0 %v5177_v34 }
 0x527   : > { %v1518_v8 = vpop.f32.mrb[53].mxu0  ;;  %v5189_v15 = vadd.f32 %v4284_v56, %v1387_v28  ;;  %v4371_v56 = vld [vmem:[%s4796_s19 + $0x60] ss:$16 sps:$4 sm:$0xff]  }
 0x528   : > { %v5183_v40 = vadd.f32 %v1518_v8, %v1387_v28  ;;  %v4285_v41 = vpop.f32.mrb[54].mxu0  ;;  %1555 = vadd.xlane.f32.xlu1 %v5180_v35  ;;  %v4374_v8 = vld [vmem:[%s4796_s19 + $0x68] ss:$16 sps:$4 sm:$0xff]  }
 0x529   : > { %v1521_v48 = vpop.f32.mrb[55].mxu0  ;;  %v5192_v50 = vadd.f32 %v4285_v41, %v1387_v28  ;;  %2108 = vmatpush1.bf16.msra.mxu0 %v4374_v8 }
 0x52a   : > { %v5186_v12 = vadd.f32 %v1521_v48, %v1387_v28  ;;  %1557 = vadd.xlane.f32.xlu0 %v5183_v40  ;;  %2109 = vmatprep.subr.bf16.mxu0 %v4382_v53 }
 0x52c   : > { %1559 = vadd.xlane.f32.xlu1 %v5186_v12 }
 0x52d   : > { %2110 = vmatpush1.bf16.msra.mxu0 %v4380_v59 }
 0x52e   : > { %1561 = vadd.xlane.f32.xlu0 %v5189_v15 }
 0x530   : > { %1563 = vadd.xlane.f32.xlu1 %v5192_v50 }
 0x591   : > { %v1534_v23 = vpop.xlane.xlu0 %1533 }
 0x592   : > { %v1566_v60 = vmul.f32 0.0078125, %v1534_v23 }
 0x593   : > { %v1536_v24 = vpop.xlane.xlu1 %1535 }
 0x594   : > { %v5205_v61 = vsub.f32 %v5148_v7, %v1566_v60  ;;  %v1567_v63 = vmul.f32 0.0078125, %v1536_v24 }
 0x595   : > { %v1538_v58 = vpop.xlane.xlu0 %1537 }
 0x596   : > { %v5208_v1 = vsub.f32 %v5150_v45, %v1567_v63  ;;  %v1568_v2 = vmul.f32 0.0078125, %v1538_v58  ;;  %v1598_v46 = vmul.f32 %v5205_v61, %v5205_v61  ;;  %v4388_v58 = vld [vmem:[%s4796_s19 + $0xac] ss:$16 sps:$4 sm:$0xff]  }
 0x597   : > { %v1540_v3 = vpop.xlane.xlu1 %1539  ;;  %2111 = vmatprep.subr.bf16.mxu0 %v4388_v58 }
 0x598   : > { %v5213_v4 = vsub.f32 %v5153_v37, %v1568_v2  ;;  %v1569_v49 = vmul.f32 0.0078125, %v1540_v3  ;;  %1614 = vadd.xlane.f32.xlu0 %v1598_v46  ;;  %v1599_v38 = vmul.f32 %v5208_v1, %v5208_v1  ;;  %v4383_v3 = vld [vmem:[%s4796_s19 + $0xa0] ss:$16 sps:$4 sm:$0xff]  }
 0x599   : > { %v1542_v5 = vpop.xlane.xlu0 %1541 }
 0x59a   : > { %v5218_v44 = vsub.f32 %v5156_v39, %v1569_v49  ;;  %v1570_v6 = vmul.f32 0.0078125, %v1542_v5  ;;  %1616 = vadd.xlane.f32.xlu1 %v1599_v38  ;;  %v1600_v47 = vmul.f32 %v5213_v4, %v5213_v4  ;;  %v4386_v49 = vld [vmem:[%s4796_s19 + $0xa8] ss:$16 sps:$4 sm:$0xff]  }
 0x59b   : > { %v1544_v28 = vpop.xlane.xlu1 %1543  ;;  %2112 = vmatpush1.bf16.msra.mxu0 %v4386_v49  ;;  %v5310_v49 = vrot.slane %v5144_v22, %v4882_v13 }
 0x59c   : > { %v5223_v25 = vsub.f32 %v5159_v9, %v1570_v6  ;;  %v1571_v29 = vmul.f32 0.0078125, %v1544_v28  ;;  %1618 = vadd.xlane.f32.xlu0 %v1600_v47  ;;  %v1601_v7 = vmul.f32 %v5218_v44, %v5218_v44  ;;  %v4391_v28 = vld [vmem:[%s4796_s19 + $0xc4] ss:$16 sps:$4 sm:$0xff]  }
 0x59d   : > { %v1546_v54 = vpop.xlane.xlu0 %1545 }
 0x59e   : > { %v5228_v33 = vsub.f32 %v5162_v57, %v1571_v29  ;;  %v1572_v45 = vmul.f32 0.0078125, %v1546_v54  ;;  %1620 = vadd.xlane.f32.xlu1 %v1601_v7  ;;  %v1602_v37 = vmul.f32 %v5223_v25, %v5223_v25  ;;  %v4394_v29 = vld [vmem:[%s4796_s19 + $0xcc] ss:$16 sps:$4 sm:$0xff]  }
 0x59f   : > { %v1548_v39 = vpop.xlane.xlu1 %1547  ;;  %2113 = vmatprep.subr.bf16.mxu0 %v4394_v29 }
 0x5a0   : > { %v5233_v43 = vsub.f32 %v5165_v0, %v1572_v45  ;;  %v1573_v42 = vmul.f32 0.0078125, %v1548_v39  ;;  %1622 = vadd.xlane.f32.xlu0 %v1602_v37  ;;  %v1603_v9 = vmul.f32 %v5228_v33, %v5228_v33  ;;  %v4367_v0 = vld [vmem:[%s4796_s19 + $0x44] ss:$16 sps:$4 sm:$0xff]   ;;  %v4389_v45 = vld [vmem:[%s4796_s19 + $0xc0] ss:$16 sps:$4 sm:$0xff]  }
 0x5a1   : > { %1992 = vmatprep.subr.bf16.mxu1 %v4367_v0  ;;  %v4392_v37 = vld [vmem:[%s4796_s19 + $0xc8] ss:$16 sps:$4 sm:$0xff]   ;;  %v4400_v0 = vld [vmem:[%s4796_s19 + $0xec] ss:$16 sps:$4 sm:$0xff]  }
 0x5a2   : > { %v5238_v32 = vsub.f32 %v5168_v19, %v1573_v42  ;;  %1624 = vadd.xlane.f32.xlu1 %v1603_v9  ;;  %v1604_v52 = vmul.f32 %v5233_v43, %v5233_v43  ;;  %1993 = vmatpush1.bf16.msra.mxu1 %v4365_v17  ;;  %v4373_v19 = vld [vmem:[%s4796_s19 + $0x64] ss:$16 sps:$4 sm:$0xff]   ;;  %v4398_v17 = vld [vmem:[%s4796_s19 + $0xe8] ss:$16 sps:$4 sm:$0xff]  }
 0x5a3   : > { %1994 = vmatprep.subr.bf16.mxu1 %v4373_v19  ;;  %v4397_v42 = vld [vmem:[%s4796_s19 + $0xe4] ss:$16 sps:$4 sm:$0xff]   ;;  %2114 = vmatpush1.bf16.msra.mxu0 %v4392_v37 }
 0x5a4   : > { %1626 = vadd.xlane.f32.xlu0 %v1604_v52  ;;  %v1605_v57 = vmul.f32 %v5238_v32, %v5238_v32  ;;  %2115 = vmatprep.subr.bf16.mxu0 %v4400_v0 }
 0x5a6   : > { %1628 = vadd.xlane.f32.xlu1 %v1605_v57  ;;  %1995 = vmatpush1.bf16.msra.mxu1 %v4371_v56  ;;  %v4395_v57 = vld [vmem:[%s4796_s19 + $0xe0] ss:$16 sps:$4 sm:$0xff]  }
 0x5a7   : > { %1996 = vmatprep.subr.bf16.mxu1 %v4379_v18  ;;  %2116 = vmatpush1.bf16.msra.mxu0 %v4398_v17 }
 0x5aa   : > { %1997 = vmatpush1.bf16.msra.mxu1 %v4377_v36 }
 0x5af   : > { %v1550_v41 = vpop.xlane.xlu0 %1549 }
 0x5b0   : > { %v1574_v48 = vmul.f32 0.0078125, %v1550_v41 }
 0x5b1   : > { %v1552_v51 = vpop.xlane.xlu1 %1551 }
 0x5b2   : > { %v5255_v20 = vsub.f32 %v5172_v27, %v1574_v48  ;;  %v1575_v31 = vmul.f32 0.0078125, %v1552_v51  ;;  %v4385_v27 = vld [vmem:[%s4796_s19 + $0xa4] ss:$16 sps:$4 sm:$0xff]  }
 0x5b3   : > { %v1554_v55 = vpop.xlane.xlu0 %1553  ;;  %1998 = vmatprep.subr.bf16.mxu1 %v4385_v27 }
 0x5b4   : > { %v5260_v23 = vsub.f32 %v5174_v16, %v1575_v31  ;;  %v1576_v60 = vmul.f32 0.0078125, %v1554_v55  ;;  %v1606_v24 = vmul.f32 %v5255_v20, %v5255_v20  ;;  %1999 = vmatpush1.bf16.msra.mxu1 %v4383_v3 }
 0x5b5   : > { %v1556_v63 = vpop.xlane.xlu1 %1555  ;;  %2000 = vmatprep.subr.bf16.mxu1 %v4391_v28  ;;  %v5314_v28 = vrot.slane %v5144_v22, %v4895_v30 }
 0x5b6   : > { %v5267_v2 = vsub.f32 %v5177_v34, %v1576_v60  ;;  %v1577_v46 = vmul.f32 0.0078125, %v1556_v63  ;;  %1630 = vadd.xlane.f32.xlu0 %v1606_v24  ;;  %v1607_v16 = vmul.f32 %v5260_v23, %v5260_v23 }
 0x5b7   : > { %v1558_v38 = vpop.xlane.xlu0 %1557 }
 0x5b8   : > { %v5274_v5 = vsub.f32 %v5180_v35, %v1577_v46  ;;  %v1578_v6 = vmul.f32 0.0078125, %v1558_v38  ;;  %1632 = vadd.xlane.f32.xlu1 %v1607_v16  ;;  %v1608_v34 = vmul.f32 %v5267_v2, %v5267_v2  ;;  %2001 = vmatpush1.bf16.msra.mxu1 %v4389_v45 }
 0x5b9   : > { %v1560_v47 = vpop.xlane.xlu1 %1559  ;;  %2002 = vmatprep.subr.bf16.mxu1 %v4397_v42 }
 0x5ba   : > { %v5281_v7 = vsub.f32 %v5183_v40, %v1578_v6  ;;  %v1579_v54 = vmul.f32 0.0078125, %v1560_v47  ;;  %1634 = vadd.xlane.f32.xlu0 %v1608_v34  ;;  %v1609_v35 = vmul.f32 %v5274_v5, %v5274_v5 }
 0x5bb   : > { %v1562_v39 = vpop.xlane.xlu0 %1561 }
 0x5bc   : > { %v5289_v9 = vsub.f32 %v5186_v12, %v1579_v54  ;;  %v1580_v52 = vmul.f32 0.0078125, %v1562_v39  ;;  %1636 = vadd.xlane.f32.xlu1 %v1609_v35  ;;  %v1610_v40 = vmul.f32 %v5281_v7, %v5281_v7  ;;  %2003 = vmatpush1.bf16.msra.mxu1 %v4395_v57 }
 0x5bd   : > { %v1564_v21 = vpop.xlane.xlu1 %1563 }
 0x5be   : > { %v5297_v62 = vsub.f32 %v5189_v15, %v1580_v52  ;;  %v1581_v19 = vmul.f32 0.0078125, %v1564_v21  ;;  %1638 = vadd.xlane.f32.xlu0 %v1610_v40  ;;  %v1611_v12 = vmul.f32 %v5289_v9, %v5289_v9 }
 0x5c0   : > { %v5302_v14 = vsub.f32 %v5192_v50, %v1581_v19  ;;  %1640 = vadd.xlane.f32.xlu1 %v1611_v12  ;;  %v1612_v56 = vmul.f32 %v5297_v62, %v5297_v62  ;;  %v4689_v19 = vld [vmem:[#allocation2] sm:$0xff]  ;;  %v4690_v12 = vld [vmem:[#allocation2 + $0x8] sm:$0xff] }
 0x5c2   : > { %1642 = vadd.xlane.f32.xlu0 %v1612_v56  ;;  %v1613_v15 = vmul.f32 %v5302_v14, %v5302_v14 }
 0x5c4   : > { %1644 = vadd.xlane.f32.xlu1 %v1613_v15 }
 0x625   : > { %v1615_v8 = vpop.xlane.xlu0 %1614 }
 0x626   : > { %v1646_v41 = vmul.f32 0.0078125, %v1615_v8 }
 0x627   : > { %v1617_v48 = vpop.xlane.xlu1 %1616 }
 0x628   : > { %v1662_v51 = vadd.f32 1e-05, %v1646_v41  ;;  %v1647_v18 = vmul.f32 0.0078125, %v1617_v48 }
 0x629   : > { %v1619_v53 = vpop.xlane.xlu0 %1618 }
 0x62a   : > { %4497 = vrsqrt.f32 %v1662_v51  ;;  %v1663_v50 = vadd.f32 1e-05, %v1647_v18  ;;  %v1648_v31 = vmul.f32 0.0078125, %v1619_v53  ;;  %v4691_v53 = vld [vmem:[#allocation2 + $0x18] sm:$0xff] }
 0x62b   : > { %v1621_v36 = vpop.xlane.xlu1 %1620 }
 0x62c   : > { %4499 = vrsqrt.f32 %v1663_v50  ;;  %v1664_v59 = vadd.f32 1e-05, %v1648_v31  ;;  %v1649_v55 = vmul.f32 0.0078125, %v1621_v36 }
 0x62d   : > { %v1623_v60 = vpop.xlane.xlu0 %1622 }
 0x62e   : > { %4501 = vrsqrt.f32 %v1664_v59  ;;  %v1665_v24 = vadd.f32 1e-05, %v1649_v55  ;;  %v1650_v63 = vmul.f32 0.0078125, %v1623_v60 }
 0x62f   : > { %v1625_v27 = vpop.xlane.xlu1 %1624 }
 0x630   : > { %4503 = vrsqrt.f32 %v1665_v24  ;;  %v1666_v58 = vadd.f32 1e-05, %v1650_v63  ;;  %v1651_v46 = vmul.f32 0.0078125, %v1625_v27 }
 0x631   : > { %v1627_v16 = vpop.xlane.xlu0 %1626 }
 0x632   : > { %v1667_v3 = vadd.f32 1e-05, %v1651_v46  ;;  %4505 = vrsqrt.f32 %v1666_v58  ;;  %v1652_v38 = vmul.f32 0.0078125, %v1627_v16 }
 0x633   : > { %v1629_v6 = vpop.xlane.xlu1 %1628 }
 0x634   : > { %v4498_v34 = vpop.eup %4497  ;;  %4507 = vrsqrt.f32 %v1667_v3  ;;  %v1653_v47 = vmul.f32 0.0078125, %v1629_v6  ;;  %v1668_v39 = vadd.f32 1e-05, %v1652_v38 }
 0x635   : > { %v1694_v29 = vmul.f32 %v4498_v34, %v5205_v61 }
 0x636   : > { %v4500_v54 = vpop.eup %4499  ;;  %v1669_v35 = vadd.f32 1e-05, %v1653_v47 }
 0x637   : > { %v1714_v45 = vmul.f32 %v5310_v49, %v1694_v29  ;;  %v1695_v37 = vmul.f32 %v4500_v54, %v5208_v1 }
 0x638   : > { %v4502_v42 = vpop.eup %4501  ;;  %4509 = vrsqrt.f32 %v1669_v35 }
 0x639   : > { %v1715_v52 = vmul.f32 %v5310_v49, %v1695_v37  ;;  %v1734_v40 = vadd.f32 %v5314_v28, %v1714_v45  ;;  %v1696_v57 = vmul.f32 %v4502_v42, %v5213_v4  ;;  %4511 = vrsqrt.f32 %v1668_v39  ;;  %v4693_v39 = vld [vmem:[#allocation2 + $0x28] sm:$0xff] }
 0x63a   : > { %v4504_v0 = vpop.eup %4503 }
 0x63b   : > { %v1735_v22 = vadd.f32 %v5314_v28, %v1715_v52  ;;  %v1697_v61 = vmul.f32 %v4504_v0, %v5218_v44  ;;  %v1716_v21 = vmul.f32 %v5310_v49, %v1696_v57  ;;  %v5325_v1 = vadd.f32 %v4689_v19, %v1734_v40  ;;  %v4694_v57 = vld [vmem:[#allocation2 + $0x20] sm:$0xff] }
 0x63c   : > { %v4506_v17 = vpop.eup %4505 }
 0x63d   : > { %6671 = vst [vmem:[#allocation4_spill] sm:$0xff] %v5325_v1  ;;  %v5327_v56 = vadd.f32 %v4690_v12, %v1735_v22  ;;  %v1717_v15 = vmul.f32 %v5310_v49, %v1697_v61  ;;  %v1736_v44 = vadd.f32 %v5314_v28, %v1716_v21  ;;  %v1698_v51 = vmul.f32 %v4506_v17, %v5223_v25 }
 0x63e   : > { %v4508_v8 = vpop.eup %4507 }
 0x63f   : > { %6672 = vst [vmem:[#allocation5_spill] sm:$0xff] %v5327_v56  ;;  %v1766_v4 = vpack.c.bf16 %v5327_v56, %v5325_v1  ;;  %v1737_v41 = vadd.f32 %v5314_v28, %v1717_v15  ;;  %v1699_v48 = vmul.f32 %v4508_v8, %v5228_v33  ;;  %v4692_v33 = vld [vmem:[#allocation2 + $0x10] sm:$0xff]  ;;  %v1718_v25 = vmul.f32 %v5310_v49, %v1698_v51  ;;  %v4695_v51 = vld [vmem:[#allocation2 + $0x38] sm:$0xff] }
 0x640   : > { %v5341_v60 = vadd.f32 %v4692_v33, %v1736_v44 }
 0x641   : > { %2021 = vmatmul.mubr.bf16.vlgmr.msra.gmra.mrb[40].mxu1 %v1766_v4  ;;  %2134 = vmatmul.mubr.bf16.vlgmr.msra.gmra.mrb[56].mxu0 %v1766_v4  ;;  %v5338_v50 = vadd.f32 %v4691_v53, %v1737_v41  ;;  %v1719_v31 = vmul.f32 %v5310_v49, %v1699_v48  ;;  %v1738_v35 = vadd.f32 %v5314_v28, %v1718_v25 }
 0x642   : > { %2030 = vmatprep.mubr.bf16.mxu1 %v4725_v26  ;;  %2143 = vmatprep.mubr.bf16.mxu0 %v4725_v26  ;;  %v4510_v59 = vpop.eup %4509  ;;  %6674 = vst [vmem:[#allocation7_spill] sm:$0xff] %v5341_v60 }
 0x643   : > { %v1631_v18 = vpop.xlane.xlu0 %1630  ;;  %6673 = vst [vmem:[#allocation6_spill] sm:$0xff] %v5338_v50  ;;  %v4512_v24 = vpop.eup %4511  ;;  %v1767_v46 = vpack.c.bf16 %v5338_v50, %v5341_v60  ;;  %v1739_v16 = vadd.f32 %v5314_v28, %v1719_v31  ;;  %v1701_v6 = vmul.f32 %v4510_v59, %v5238_v32  ;;  %v5355_v0 = vadd.f32 %v4694_v57, %v1738_v35  ;;  %v4700_v57 = vld [vmem:[#allocation2 + $0x50] sm:$0xff] }
 0x644   : > { %v1654_v36 = vmul.f32 0.0078125, %v1631_v18  ;;  %v1700_v47 = vmul.f32 %v4512_v24, %v5233_v43 }
 0x645   : > { %v1633_v55 = vpop.xlane.xlu1 %1632  ;;  %v5352_v42 = vadd.f32 %v4693_v39, %v1739_v16  ;;  %v1721_v32 = vmul.f32 %v5310_v49, %v1701_v6  ;;  %6676 = vst [vmem:[#allocation9_spill] sm:$0xff] %v5355_v0 }
 0x646   : > { %v1670_v63 = vadd.f32 1e-05, %v1654_v36  ;;  %v1655_v27 = vmul.f32 0.0078125, %v1633_v55  ;;  %v1720_v22 = vmul.f32 %v5310_v49, %v1700_v47  ;;  %v4696_v36 = vld [vmem:[#allocation2 + $0x30] sm:$0xff]  ;;  %v4698_v47 = vld [vmem:[#allocation2 + $0x40] sm:$0xff] }
 0x647   : > { %v1635_v58 = vpop.xlane.xlu0 %1634  ;;  %6675 = vst [vmem:[#allocation8_spill] sm:$0xff] %v5352_v42  ;;  %v1768_v21 = vpack.c.bf16 %v5352_v42, %v5355_v0  ;;  %v1741_v17 = vadd.f32 %v5314_v28, %v1721_v32  ;;  %v4699_v32 = vld [vmem:[#allocation2 + $0x58] sm:$0xff] }
 0x648   : > { %4513 = vrsqrt.f32 %v1670_v63  ;;  %v1671_v3 = vadd.f32 1e-05, %v1655_v27  ;;  %v1656_v38 = vmul.f32 0.0078125, %v1635_v58  ;;  %v1740_v4 = vadd.f32 %v5314_v28, %v1720_v22 }
 0x649   : > { %v1637_v34 = vpop.xlane.xlu1 %1636  ;;  %2031 = vmatmul.mubr.bf16.gmra.mrb[44].mxu1 %v1767_v46  ;;  %2144 = vmatmul.mubr.bf16.gmra.mrb[60].mxu0 %v1767_v46  ;;  %v5365_v18 = vadd.f32 %v4695_v51, %v1741_v17 }
 0x64a   : > { %4515 = vrsqrt.f32 %v1671_v3  ;;  %v1672_v29 = vadd.f32 1e-05, %v1656_v38  ;;  %v1657_v54 = vmul.f32 0.0078125, %v1637_v34  ;;  %2040 = vmatprep.mubr.bf16.mxu1 %v4725_v26  ;;  %2153 = vmatprep.mubr.bf16.mxu0 %v4725_v26  ;;  %v5368_v59 = vadd.f32 %v4696_v36, %v1740_v4  ;;  %v4697_v3 = vld [vmem:[#allocation2 + $0x48] sm:$0xff] }
 0x64b   : > { %v1639_v45 = vpop.xlane.xlu0 %1638  ;;  %6677 = vst [vmem:[#allocation10_spill] sm:$0xff] %v5365_v18 }
 0x64c   : > { %v1673_v37 = vadd.f32 1e-05, %v1657_v54  ;;  %4517 = vrsqrt.f32 %v1672_v29  ;;  %v1658_v43 = vmul.f32 0.0078125, %v1639_v45  ;;  %6678 = vst [vmem:[#allocation11_spill] sm:$0xff] %v5368_v59 }
 0x64d   : > { %v1641_v52 = vpop.xlane.xlu1 %1640 }
 0x64e   : > { %4519 = vrsqrt.f32 %v1673_v37  ;;  %v1659_v40 = vmul.f32 0.0078125, %v1641_v52  ;;  %v1674_v19 = vadd.f32 1e-05, %v1658_v43 }
 0x64f   : > { %v1643_v8 = vpop.xlane.xlu0 %1642 }
 0x650   : > { %v1675_v61 = vadd.f32 1e-05, %v1659_v40  ;;  %v1660_v53 = vmul.f32 0.0078125, %v1643_v8 }
 0x651   : > { %v1645_v12 = vpop.xlane.xlu1 %1644  ;;  %2041 = vmatmul.mubr.bf16.gmra.mrb[48].mxu1 %v1768_v21  ;;  %2154 = vmatmul.mubr.bf16.gmra.mrb[64].mxu0 %v1768_v21 }
 0x652   : > { %v4514_v15 = vpop.eup %4513  ;;  %4521 = vrsqrt.f32 %v1675_v61  ;;  %v1661_v41 = vmul.f32 0.0078125, %v1645_v12  ;;  %2050 = vmatprep.mubr.bf16.mxu1 %v4725_v26  ;;  %2163 = vmatprep.mubr.bf16.mxu0 %v4725_v26  ;;  %v1676_v25 = vadd.f32 1e-05, %v1660_v53  ;;  %v4703_v53 = vld [vmem:[#allocation2 + $0x78] sm:$0xff] }
 0x653   : > { %v1702_v48 = vmul.f32 %v4514_v15, %v5255_v20  ;;  %4523 = vrsqrt.f32 %v1674_v19  ;;  %v1769_v20 = vpack.c.bf16 %v5365_v18, %v5368_v59  ;;  %v4701_v15 = vld [vmem:[#allocation2 + $0x68] sm:$0xff] }
 0x654   : > { %v4516_v44 = vpop.eup %4515  ;;  %v1677_v24 = vadd.f32 1e-05, %v1661_v41  ;;  %v4702_v41 = vld [vmem:[#allocation2 + $0x60] sm:$0xff] }
 0x655   : > { %v1703_v31 = vmul.f32 %v4516_v44, %v5260_v23  ;;  %v1722_v55 = vmul.f32 %v5310_v49, %v1702_v48 }
 0x656   : > { %v4518_v33 = vpop.eup %4517  ;;  %4525 = vrsqrt.f32 %v1677_v24  ;;  %v5430_v24 = vld [vmem:[%s4801_s22 + $0x80] sm:$0xff]  }
 0x657   : > { %v1723_v63 = vmul.f32 %v5310_v49, %v1703_v31  ;;  %v1742_v23 = vadd.f32 %v5314_v28, %v1722_v55  ;;  %v1704_v16 = vmul.f32 %v4518_v33, %v5267_v2  ;;  %4527 = vrsqrt.f32 %v1676_v25  ;;  %v4704_v31 = vld [vmem:[#allocation2 + $0x70] sm:$0xff]  ;;  %v4403_v33 = vld [vmem:[%s4801_s22 + $0xc0] sm:$0xff]   ;;  %v5440_v25 = vld [vmem:[%s4801_s22 + $0x88] sm:$0xff]  }
 0x658   : > { %v4520_v27 = vpop.eup %4519  ;;  %4094 = vmatprep.subr.bf16.mxu0 %v4403_v33 }
 0x659   : > { %v1743_v58 = vadd.f32 %v5314_v28, %v1723_v63  ;;  %v1705_v46 = vmul.f32 %v4520_v27, %v5274_v5  ;;  %2051 = vmatmul.mubr.bf16.gmra.mrb[52].mxu1 %v1769_v20  ;;  %2164 = vmatmul.mubr.bf16.gmra.mrb[68].mxu0 %v1769_v20  ;;  %v5383_v5 = vadd.f32 %v4698_v47, %v1742_v23  ;;  %v4405_v63 = vld [vmem:[%s4801_s22 + $0x48] sm:$0xff]   ;;  %v4411_v23 = vld [vmem:[%s4801_s22 + $0x10] sm:$0xff]   ;;  %v4416_v47 = vld [vmem:[%s4801_s22 + $0x98] sm:$0xff]  }
 0x65a   : > { %2060 = vmatprep.mubr.bf16.mxu1 %v4725_v26  ;;  %2173 = vmatprep.mubr.bf16.mxu0 %v4725_v26  ;;  %v1724_v29 = vmul.f32 %v5310_v49, %v1704_v16  ;;  %v5435_v27 = vld [vmem:[%s4801_s22 + $0xc8] sm:$0xff]   ;;  %v4412_v16 = vld [vmem:[%s4801_s22 + $0x90] sm:$0xff]  }
 0x65b   : > { %v5380_v38 = vadd.f32 %v4697_v3, %v1743_v58  ;;  %v1725_v6 = vmul.f32 %v5310_v49, %v1705_v46  ;;  %6680 = vst [vmem:[#allocation13_spill] sm:$0xff] %v5383_v5  ;;  %4095 = vmatpush3.bf16.msra.mxu0 %v5430_v24  ;;  %v4407_v20 = vld [vmem:[%s4801_s22 + $0x8] sm:$0xff]   ;;  %v4409_v58 = vld [vmem:[%s4801_s22 + $0x50] sm:$0xff]   ;;  %v4413_v3 = vld [vmem:[%s4801_s22 + $0x58] sm:$0xff]  }
 0x65c   : > { %v4522_v34 = vpop.eup %4521  ;;  %v1744_v37 = vadd.f32 %v5314_v28, %v1724_v29  ;;  %4096 = vmatprep.subr.bf16.mxu0 %v5435_v27  ;;  %v5445_v46 = vld [vmem:[%s4801_s22 + $0xd0] sm:$0xff]   ;;  %v4417_v29 = vld [vmem:[%s4801_s22 + $0x60] sm:$0xff]  }
 0x65d   : > { %6679 = vst [vmem:[#allocation12_spill] sm:$0xff] %v5380_v38  ;;  %v4524_v54 = vpop.eup %4523  ;;  %v1770_v2 = vpack.c.bf16 %v5380_v38, %v5383_v5  ;;  %v1745_v35 = vadd.f32 %v5314_v28, %v1725_v6  ;;  %v1707_v45 = vmul.f32 %v4522_v34, %v5289_v9  ;;  %v4414_v6 = vld [vmem:[%s4801_s22 + $0xd8] sm:$0xff]  }
 0x65e   : > { %v1706_v39 = vmul.f32 %v4524_v54, %v5281_v7  ;;  %v5397_v22 = vadd.f32 %v4700_v57, %v1744_v37  ;;  %v4415_v34 = vld [vmem:[%s4801_s22 + $0x18] sm:$0xff]   ;;  %v4418_v54 = vld [vmem:[%s4801_s22 + $0xe0] sm:$0xff]   ;;  %v4422_v37 = vld [vmem:[%s4801_s22 + $0xe8] sm:$0xff]  }
 0x65f   : > { %v5394_v43 = vadd.f32 %v4699_v32, %v1745_v35  ;;  %v1727_v52 = vmul.f32 %v5310_v49, %v1707_v45  ;;  %4097 = vmatpush3.bf16.msra.mxu0 %v5440_v25  ;;  %v4420_v35 = vld [vmem:[%s4801_s22 + $0xa0] sm:$0xff]   ;;  %v4421_v45 = vld [vmem:[%s4801_s22 + $0x68] sm:$0xff]   ;;  %v4427_v57 = vld [vmem:[%s4801_s22 + $0x30] sm:$0xff]  }
 0x660   : > { %v4526_v40 = vpop.eup %4525  ;;  %6682 = vst [vmem:[#allocation15_spill] sm:$0xff] %v5397_v22  ;;  %v1726_v9 = vmul.f32 %v5310_v49, %v1706_v39  ;;  %4098 = vmatprep.subr.bf16.mxu0 %v5445_v46  ;;  %v4423_v39 = vld [vmem:[%s4801_s22 + $0x28] sm:$0xff]  }
 0x661   : > { %2061 = vmatmul.mubr.bf16.gmra.mrb[56].mxu1 %v1770_v2  ;;  %2174 = vmatmul.mubr.bf16.gmra.mrb[72].mxu0 %v1770_v2  ;;  %6681 = vst [vmem:[#allocation14_spill] sm:$0xff] %v5394_v43  ;;  %v4528_v61 = vpop.eup %4527  ;;  %v1771_v21 = vpack.c.bf16 %v5394_v43, %v5397_v22  ;;  %v1747_v7 = vadd.f32 %v5314_v28, %v1727_v52  ;;  %v4419_v2 = vld [vmem:[%s4801_s22 + $0x20] sm:$0xff]   ;;  %v4424_v32 = vld [vmem:[%s4801_s22 + $0xa8] sm:$0xff]   ;;  %v4425_v52 = vld [vmem:[%s4801_s22 + $0x70] sm:$0xff]  }
 0x662   : > { %2070 = vmatprep.mubr.bf16.mxu1 %v4725_v26  ;;  %2183 = vmatprep.mubr.bf16.mxu0 %v4725_v26  ;;  %v1709_v17 = vmul.f32 %v4526_v40, %v5302_v14  ;;  %v1746_v19 = vadd.f32 %v5314_v28, %v1726_v9  ;;  %v1708_v12 = vmul.f32 %v4528_v61, %v5297_v62  ;;  %v4426_v40 = vld [vmem:[%s4801_s22 + $0xf0] sm:$0xff]   ;;  %v4429_v61 = vld [vmem:[%s4801_s22 + $0x78] sm:$0xff]  }
 0x663   : > { %v5408_v8 = vadd.f32 %v4701_v15, %v1747_v7  ;;  %4099 = vmatpush3.bf16.msra.mxu0 %v4412_v16  ;;  %v4428_v9 = vld [vmem:[%s4801_s22 + $0xb0] sm:$0xff]   ;;  %v4431_v7 = vld [vmem:[%s4801_s22 + $0x38] sm:$0xff]  }
 0x664   : > { %v1729_v4 = vmul.f32 %v5310_v49, %v1709_v17  ;;  %v5411_v48 = vadd.f32 %v4702_v41, %v1746_v19  ;;  %v1728_v14 = vmul.f32 %v5310_v49, %v1708_v12  ;;  %4100 = vmatprep.subr.bf16.mxu0 %v4414_v6  ;;  %v4432_v17 = vld [vmem:[%s4801_s22 + $0xb8] sm:$0xff]   ;;  %v1806_v19 = vld [vmem:[%s4811_s14] sm:$0xf]  ;;  %v6612_v12 = vsub.s32 3, %v4875_v10 }
 0x665   : > { %6683 = vst [vmem:[#allocation16_spill] sm:$0xff] %v5408_v8  ;;  %v5473_v15 = vrot.slane %v1806_v19, %v4878_v11  ;;  %v5479_v41 = vrot.slane %v1806_v19, %v4882_v13 }
 0x666   : > { %6684 = vst [vmem:[#allocation17_spill] sm:$0xff] %v5411_v48  ;;  %v1772_v44 = vpack.c.bf16 %v5408_v8, %v5411_v48  ;;  %v1749_v62 = vadd.f32 %v5314_v28, %v1729_v4  ;;  %v1748_v51 = vadd.f32 %v5314_v28, %v1728_v14  ;;  %v4401_v28 = vld [vmem:[%s4801_s22 + $0x40] sm:$0xff]   ;;  %v5476_v4 = vrot.slane %v1806_v19, %v4895_v30 }
 0x667   : > { %4030 = vmatprep.subr.bf16.mxu1 %v4401_v28  ;;  %4101 = vmatpush3.bf16.msra.mxu0 %v4416_v47  ;;  %v5483_v14 = vrot.slane %v1806_v19, %v6612_v12 }
 0x668   : > { %v5420_v49 = vadd.f32 %v4703_v53, %v1749_v62  ;;  %v5422_v36 = vadd.f32 %v4704_v31, %v1748_v51  ;;  %4102 = vmatprep.subr.bf16.mxu0 %v4418_v54 }
 0x669   : > { %2071 = vmatmul.mubr.bf16.gmra.mrb[60].mxu1 %v1771_v21  ;;  %2184 = vmatmul.mubr.bf16.gmra.mrb[76].mxu0 %v1771_v21  ;;  %v4430_v21 = vld [vmem:[%s4801_s22 + $0xf8] sm:$0xff]  }
 0x66a   : > { %2080 = vmatprep.mubr.bf16.mxu1 %v4725_v26  ;;  %2193 = vmatprep.mubr.bf16.mxu0 %v4725_v26  ;;  %6685 = vst [vmem:[#allocation18_spill] sm:$0xff] %v5420_v49  ;;  %6686 = vst [vmem:[#allocation19_spill] sm:$0xff] %v5422_v36  ;;  %v1773_v55 = vpack.c.bf16 %v5420_v49, %v5422_v36 }
 0x66b   : > { %4103 = vmatpush3.bf16.msra.mxu0 %v4420_v35 }
 0x66c   : > { %4104 = vmatprep.subr.bf16.mxu0 %v4422_v37 }
 0x66f   : > { %4105 = vmatpush3.bf16.msra.mxu0 %v4424_v32 }
 0x670   : > { %4106 = vmatprep.subr.bf16.mxu0 %v4426_v40 }
 0x671   : > { %2081 = vmatmul.mubr.bf16.gmra.mrb[64].mxu1 %v1772_v44  ;;  %2194 = vmatmul.mubr.bf16.gmra.mrb[80].mxu0 %v1772_v44 }
 0x672   : > { %2090 = vmatprep.mubr.bf16.mxu1 %v4725_v26  ;;  %2203 = vmatprep.mubr.bf16.mxu0 %v4725_v26  ;;  %v4402_v26 = vld [vmem:[%s4801_s22] sm:$0xff]  }
 0x673   : > { %4031 = vmatpush3.bf16.msra.mxu1 %v4402_v26  ;;  %4107 = vmatpush3.bf16.msra.mxu0 %v4428_v9 }
 0x674   : > { %4032 = vmatprep.subr.bf16.mxu1 %v4405_v63  ;;  %4108 = vmatprep.subr.bf16.mxu0 %v4430_v21 }
 0x677   : > { %4033 = vmatpush3.bf16.msra.mxu1 %v4407_v20  ;;  %4109 = vmatpush3.bf16.msra.mxu0 %v4432_v17 }
 0x678   : > { %4034 = vmatprep.subr.bf16.mxu1 %v4409_v58 }
 0x679   : > { %2091 = vmatmul.mubr.bf16.gmra.mrb[68].mxu1 %v1773_v55  ;;  %2204 = vmatmul.mubr.bf16.gmra.mrb[84].mxu0 %v1773_v55 }
 0x67b   : > { %4035 = vmatpush3.bf16.msra.mxu1 %v4411_v23 }
 0x67c   : > { %4036 = vmatprep.subr.bf16.mxu1 %v4413_v3 }
 0x67f   : > { %4037 = vmatpush3.bf16.msra.mxu1 %v4415_v34 }
 0x680   : > { %4038 = vmatprep.subr.bf16.mxu1 %v4417_v29 }
 0x683   : > { %4039 = vmatpush3.bf16.msra.mxu1 %v4419_v2 }
 0x684   : > { %4040 = vmatprep.subr.bf16.mxu1 %v4421_v45 }
 0x687   : > { %4041 = vmatpush3.bf16.msra.mxu1 %v4423_v39 }
 0x688   : > { %4042 = vmatprep.subr.bf16.mxu1 %v4425_v52 }
 0x68b   : > { %4043 = vmatpush3.bf16.msra.mxu1 %v4427_v57 }
 0x68c   : > { %4044 = vmatprep.subr.bf16.mxu1 %v4429_v61 }
 0x68f   : > { %4045 = vmatpush3.bf16.msra.mxu1 %v4431_v7 }
 0x690   : > { %4286 = vmatprep.subr.bf16.mxu1 %v4403_v33 }
 0x714   : > { %v2022_v44 = vpop.f32.mrb[40].mxu1  ;;  %v2135_v62 = vpop.f32.mrb[56].mxu0 }
 0x715   : > { %v5486_v51 = vadd.f32 %v2022_v44, %v5473_v15  ;;  %v5489_v53 = vadd.f32 %v2135_v62, %v5476_v4  ;;  %v2024_v11 = vpop.f32.mrb[41].mxu1  ;;  %v2137_v31 = vpop.f32.mrb[57].mxu0 }
 0x716   : > { %v5492_v30 = vadd.f32 %v2024_v11, %v5479_v41  ;;  %v5495_v13 = vadd.f32 %v2137_v31, %v5483_v14  ;;  %v2026_v55 = vpop.f32.mrb[42].mxu1  ;;  %v2139_v28 = vpop.f32.mrb[58].mxu0 }
 0x717   : > { %v2214_v33 = vmul.f32 %v5486_v51, %v5486_v51  ;;  %v2216_v26 = vmul.f32 %v5489_v53, %v5489_v53  ;;  %v5502_v63 = vadd.f32 %v2026_v55, %v5473_v15  ;;  %v5505_v20 = vadd.f32 %v2139_v28, %v5476_v4  ;;  %v2028_v58 = vpop.f32.mrb[43].mxu1  ;;  %v2141_v23 = vpop.f32.mrb[59].mxu0 }
 0x718   : > { %v2215_v16 = vmul.f32 %v5492_v30, %v5492_v30  ;;  %v2217_v3 = vmul.f32 %v5495_v13, %v5495_v13  ;;  %v5512_v6 = vadd.f32 %v2028_v58, %v5479_v41  ;;  %v5515_v34 = vadd.f32 %v2141_v23, %v5483_v14 }
 0x719   : > { %v2278_v47 = vmul.f32 %v2214_v33, %v5486_v51  ;;  %v2280_v29 = vmul.f32 %v2216_v26, %v5489_v53  ;;  %v2218_v54 = vmul.f32 %v5502_v63, %v5502_v63  ;;  %v2220_v2 = vmul.f32 %v5505_v20, %v5505_v20 }
 0x71a   : > { %v2279_v35 = vmul.f32 %v2215_v16, %v5492_v30  ;;  %v2281_v45 = vmul.f32 %v2217_v3, %v5495_v13  ;;  %v2219_v37 = vmul.f32 %v5512_v6, %v5512_v6  ;;  %v2221_v39 = vmul.f32 %v5515_v34, %v5515_v34 }
 0x71b   : > { %v2342_v32 = vmul.f32 0.044715, %v2278_v47  ;;  %v2344_v52 = vmul.f32 0.044715, %v2280_v29  ;;  %v2282_v40 = vmul.f32 %v2218_v54, %v5502_v63  ;;  %v2284_v57 = vmul.f32 %v2220_v2, %v5505_v20 }
 0x71c   : > { %v2343_v9 = vmul.f32 0.044715, %v2279_v35  ;;  %v2345_v61 = vmul.f32 0.044715, %v2281_v45  ;;  %v2283_v21 = vmul.f32 %v2219_v37, %v5512_v6  ;;  %v2285_v7 = vmul.f32 %v2221_v39, %v5515_v34  ;;  %v2032_v17 = vpop.f32.mrb[44].mxu1  ;;  %v2145_v19 = vpop.f32.mrb[60].mxu0 }
 0x71d   : > { %v2406_v44 = vadd.f32 %v2342_v32, %v5486_v51  ;;  %v2408_v62 = vadd.f32 %v2344_v52, %v5489_v53  ;;  %v2346_v11 = vmul.f32 0.044715, %v2282_v40  ;;  %v2348_v31 = vmul.f32 0.044715, %v2284_v57  ;;  %v2034_v55 = vpop.f32.mrb[45].mxu1  ;;  %v2147_v28 = vpop.f32.mrb[61].mxu0 }
 0x71e   : > { %v2407_v33 = vadd.f32 %v2343_v9, %v5492_v30  ;;  %v2409_v26 = vadd.f32 %v2345_v61, %v5495_v13  ;;  %v2347_v58 = vmul.f32 0.044715, %v2283_v21  ;;  %v2349_v23 = vmul.f32 0.044715, %v2285_v7  ;;  %v2036_v16 = vpop.f32.mrb[46].mxu1  ;;  %v2149_v3 = vpop.f32.mrb[62].mxu0 }
 0x71f   : > { %v2470_v47 = vmul.f32 0.7978846, %v2406_v44  ;;  %v2472_v29 = vmul.f32 0.7978846, %v2408_v62  ;;  %v2410_v54 = vadd.f32 %v2346_v11, %v5502_v63  ;;  %v2412_v2 = vadd.f32 %v2348_v31, %v5505_v20  ;;  %v2038_v35 = vpop.f32.mrb[47].mxu1  ;;  %v2151_v45 = vpop.f32.mrb[63].mxu0 }
 0x720   : > { %v2471_v37 = vmul.f32 0.7978846, %v2407_v33  ;;  %v2473_v39 = vmul.f32 0.7978846, %v2409_v26  ;;  %v2411_v32 = vadd.f32 %v2347_v58, %v5512_v6  ;;  %v2413_v52 = vadd.f32 %v2349_v23, %v5515_v34 }
 0x721   : > { %4529 = vtanh.f32 %v2470_v47  ;;  %v2474_v40 = vmul.f32 0.7978846, %v2410_v54  ;;  %v2476_v57 = vmul.f32 0.7978846, %v2412_v2  ;;  %v5542_v9 = vadd.f32 %v2032_v17, %v5473_v15 }
 0x722   : > { %4531 = vtanh.f32 %v2472_v29  ;;  %v2475_v61 = vmul.f32 0.7978846, %v2411_v32  ;;  %v2477_v21 = vmul.f32 0.7978846, %v2413_v52  ;;  %v5545_v7 = vadd.f32 %v2145_v19, %v5476_v4 }
 0x723   : > { %6687 = vst [vmem:[#allocation20_spill] sm:$0xff] %v5542_v9  ;;  %4533 = vtanh.f32 %v2471_v37  ;;  %v2222_v44 = vmul.f32 %v5542_v9, %v5542_v9  ;;  %v5550_v62 = vadd.f32 %v2034_v55, %v5479_v41  ;;  %v5553_v11 = vadd.f32 %v2147_v28, %v5483_v14 }
 0x724   : > { %6688 = vst [vmem:[#allocation21_spill] sm:$0xff] %v5545_v7  ;;  %4535 = vtanh.f32 %v2473_v39  ;;  %v2224_v17 = vmul.f32 %v5545_v7, %v5545_v7  ;;  %v5558_v31 = vadd.f32 %v2036_v16, %v5473_v15  ;;  %v5561_v19 = vadd.f32 %v2149_v3, %v5476_v4  ;;  %v5563_v33 = vpop.f32.mrb[48].mxu1  ;;  %v5565_v26 = vpop.f32.mrb[64].mxu0 }
 0x725   : > { %6689 = vst [vmem:[#allocation22_spill] sm:$0xff] %v5550_v62  ;;  %6690 = vst [vmem:[#allocation23_spill] sm:$0xff] %v5553_v11  ;;  %4537 = vtanh.f32 %v2474_v40  ;;  %v2286_v55 = vmul.f32 %v2222_v44, %v5542_v9  ;;  %v2223_v28 = vmul.f32 %v5550_v62, %v5550_v62  ;;  %v2225_v58 = vmul.f32 %v5553_v11, %v5553_v11  ;;  %v5572_v23 = vpop.f32.mrb[49].mxu1  ;;  %v5574_v16 = vpop.f32.mrb[65].mxu0 }
 0x726   : > { %6691 = vst [vmem:[#allocation24_spill] sm:$0xff] %v5558_v31  ;;  %6692 = vst [vmem:[#allocation25_spill] sm:$0xff] %v5561_v19  ;;  %4539 = vtanh.f32 %v2476_v57  ;;  %v2288_v3 = vmul.f32 %v2224_v17, %v5545_v7  ;;  %v2226_v47 = vmul.f32 %v5558_v31, %v5558_v31  ;;  %v2228_v29 = vmul.f32 %v5561_v19, %v5561_v19  ;;  %v5581_v54 = vpop.f32.mrb[50].mxu1  ;;  %v5583_v2 = vpop.f32.mrb[66].mxu0 }
 0x727   : > { %4541 = vtanh.f32 %v2475_v61  ;;  %v2350_v37 = vmul.f32 0.044715, %v2286_v55  ;;  %v2287_v39 = vmul.f32 %v2223_v28, %v5550_v62  ;;  %v2289_v32 = vmul.f32 %v2225_v58, %v5553_v11  ;;  %v5587_v52 = vpop.f32.mrb[51].mxu1  ;;  %v5589_v40 = vpop.f32.mrb[67].mxu0 }
 0x728   : > { %4543 = vtanh.f32 %v2477_v21  ;;  %v2352_v57 = vmul.f32 0.044715, %v2288_v3  ;;  %v2290_v44 = vmul.f32 %v2226_v47, %v5558_v31  ;;  %v2292_v17 = vmul.f32 %v2228_v29, %v5561_v19 }
 0x729   : > { %v2414_v12 = vadd.f32 %v2350_v37, %v5542_v9  ;;  %v2351_v49 = vmul.f32 0.044715, %v2287_v39  ;;  %v2353_v36 = vmul.f32 0.044715, %v2289_v32  ;;  %v5595_v61 = vadd.f32 %v2038_v35, %v5479_v41 }
 0x72a   : > { %v2416_v55 = vadd.f32 %v2352_v57, %v5545_v7  ;;  %v2354_v28 = vmul.f32 0.044715, %v2290_v44  ;;  %v2356_v58 = vmul.f32 0.044715, %v2292_v17  ;;  %v5599_v8 = vadd.f32 %v2151_v45, %v5483_v14 }
 0x72b   : > { %6693 = vst [vmem:[#allocation26_spill] sm:$0xff] %v5595_v61  ;;  %v4530_v21 = vpop.eup %4529  ;;  %v2478_v3 = vmul.f32 0.7978846, %v2414_v12  ;;  %v2415_v47 = vadd.f32 %v2351_v49, %v5550_v62  ;;  %v2417_v29 = vadd.f32 %v2353_v36, %v5553_v11  ;;  %v2227_v37 = vmul.f32 %v5595_v61, %v5595_v61 }
 0x72c   : > { %6694 = vst [vmem:[#allocation27_spill] sm:$0xff] %v5599_v8  ;;  %v4532_v39 = vpop.eup %4531  ;;  %v2598_v32 = vadd.f32 1.0, %v4530_v21  ;;  %v2480_v35 = vmul.f32 0.7978846, %v2416_v55  ;;  %v2418_v48 = vadd.f32 %v2354_v28, %v5558_v31  ;;  %v2420_v57 = vadd.f32 %v2356_v58, %v5561_v19  ;;  %v5607_v44 = vpop.f32.mrb[52].mxu1 }
 0x72d   : > { %v5609_v45 = vpop.f32.mrb[68].mxu0  ;;  %v5611_v17 = vpop.eup %4533  ;;  %v2600_v12 = vadd.f32 1.0, %v4532_v39  ;;  %4545 = vtanh.f32 %v2478_v3  ;;  %v2479_v49 = vmul.f32 0.7978846, %v2415_v47  ;;  %v2481_v36 = vmul.f32 0.7978846, %v2417_v29 }
 0x72e   : > { %v5613_v43 = vpop.f32.mrb[53].mxu1  ;;  %v5615_v22 = vpop.eup %4535  ;;  %v2662_v21 = vmul.f32 0.5, %v2598_v32  ;;  %4547 = vtanh.f32 %v2480_v35  ;;  %v2482_v55 = vmul.f32 0.7978846, %v2418_v48  ;;  %v2484_v28 = vmul.f32 0.7978846, %v2420_v57 }
 0x72f   : > { %v5617_v38 = vpop.f32.mrb[69].mxu0  ;;  %v4538_v58 = vpop.eup %4537  ;;  %v2664_v5 = vmul.f32 0.5, %v2600_v12  ;;  %4549 = vtanh.f32 %v2479_v49  ;;  %v2291_v18 = vmul.f32 %v2227_v37, %v5595_v61  ;;  %v2229_v3 = vmul.f32 %v5599_v8, %v5599_v8 }
 0x730   : > { %v5622_v47 = vpop.f32.mrb[54].mxu1  ;;  %v5624_v29 = vpop.f32.mrb[70].mxu0  ;;  %v5627_v32 = vmul.f32 %v2662_v21, %v5486_v51  ;;  %v2602_v48 = vadd.f32 1.0, %v4538_v58  ;;  %4551 = vtanh.f32 %v2481_v36  ;;  %v5631_v35 = vadd.f32 %v5563_v33, %v5473_v15 }
 0x731   : > { %v4540_v39 = vpop.eup %4539  ;;  %v5633_v57 = vpop.f32.mrb[55].mxu1  ;;  %v5640_v49 = vmul.f32 %v2664_v5, %v5489_v53  ;;  %4553 = vtanh.f32 %v2482_v55  ;;  %v2355_v42 = vmul.f32 0.044715, %v2291_v18  ;;  %v2293_v36 = vmul.f32 %v2229_v3, %v5599_v8 }
 0x732   : > { %6695 = vst [vmem:[#allocation28_spill] sm:$0xff] %v5631_v35  ;;  %v5635_v37 = vpop.f32.mrb[71].mxu0  ;;  %v5637_v12 = vpop.eup %4541  ;;  %v2604_v59 = vadd.f32 1.0, %v4540_v39  ;;  %v2666_v21 = vmul.f32 0.5, %v2602_v48  ;;  %4555 = vtanh.f32 %v2484_v28  ;;  %v2230_v33 = vmul.f32 %v5631_v35, %v5631_v35 }
 0x733   : > { %v5642_v51 = vpop.eup %4543  ;;  %v2419_v0 = vadd.f32 %v2355_v42, %v5595_v61  ;;  %v5650_v50 = vadd.f32 %v5565_v26, %v5476_v4  ;;  %v5654_v5 = vadd.f32 %v5572_v23, %v5479_v41  ;;  %v2357_v53 = vmul.f32 0.044715, %v2293_v36 }
 0x734   : > { %v2668_v58 = vmul.f32 0.5, %v2604_v59  ;;  %v5657_v18 = vmul.f32 %v2666_v21, %v5502_v63  ;;  %v2294_v55 = vmul.f32 %v2230_v33, %v5631_v35  ;;  %v5662_v28 = vadd.f32 %v5574_v16, %v5483_v14  ;;  %v5664_v59 = vpop.f32.mrb[56].mxu1  ;;  %v5666_v42 = vpop.f32.mrb[72].mxu0 }
 0x735   : > { %6696 = vst [vmem:[#allocation29_spill] sm:$0xff] %v5650_v50  ;;  %6697 = vst [vmem:[#allocation30_spill] sm:$0xff] %v5654_v5  ;;  %v2483_v3 = vmul.f32 0.7978846, %v2419_v0  ;;  %v2232_v23 = vmul.f32 %v5650_v50, %v5650_v50  ;;  %v2231_v63 = vmul.f32 %v5654_v5, %v5654_v5  ;;  %v5675_v39 = vpop.f32.mrb[57].mxu1  ;;  %v5677_v48 = vpop.f32.mrb[73].mxu0  ;;  %v2421_v21 = vadd.f32 %v2357_v53, %v5599_v8 }
 0x736   : > { %6698 = vst [vmem:[#allocation31_spill] sm:$0xff] %v5662_v28  ;;  %v5669_v26 = vmul.f32 %v2668_v58, %v5505_v20  ;;  %v2358_v36 = vmul.f32 0.044715, %v2294_v55  ;;  %v2233_v20 = vmul.f32 %v5662_v28, %v5662_v28  ;;  %v5684_v0 = vpop.f32.mrb[58].mxu1  ;;  %v5686_v33 = vpop.f32.mrb[74].mxu0  ;;  %v5704_v31 = vadd.f32 %v5581_v54, %v5473_v15 }
 0x737   : > { %v5688_v58 = vpop.eup %4545  ;;  %4557 = vtanh.f32 %v2483_v3  ;;  %v2296_v56 = vmul.f32 %v2232_v23, %v5650_v50  ;;  %v2295_v16 = vmul.f32 %v2231_v63, %v5654_v5  ;;  %v5694_v1 = vpop.f32.mrb[59].mxu1  ;;  %v2485_v10 = vmul.f32 0.7978846, %v2421_v21 }
 0x738   : > { %6699 = vst [vmem:[#allocation32_spill] sm:$0xff] %v5688_v58  ;;  %v5696_v53 = vpop.f32.mrb[75].mxu0  ;;  %v5698_v55 = vpop.eup %4547  ;;  %v2422_v19 = vadd.f32 %v2358_v36, %v5631_v35  ;;  %v2297_v7 = vmul.f32 %v2233_v20, %v5662_v28  ;;  %6701 = vst [vmem:[#allocation34_spill] sm:$0xff] %v5704_v31  ;;  %v5710_v63 = vadd.f32 %v5583_v2, %v5476_v4 }
 0x739   : > { %6700 = vst [vmem:[#allocation33_spill] sm:$0xff] %v5698_v55  ;;  %v5706_v3 = vpop.eup %4549  ;;  %v2360_v23 = vmul.f32 0.044715, %v2296_v56  ;;  %v2359_v60 = vmul.f32 0.044715, %v2295_v16  ;;  %v5714_v9 = vadd.f32 %v5587_v52, %v5479_v41  ;;  %4559 = vtanh.f32 %v2485_v10 }
 0x73a   : > { %6702 = vst [vmem:[#allocation35_spill] sm:$0xff] %v5710_v63  ;;  %v5716_v21 = vpop.eup %4551  ;;  %v2486_v36 = vmul.f32 0.7978846, %v2422_v19  ;;  %v2361_v20 = vmul.f32 0.044715, %v2297_v7  ;;  %v2234_v54 = vmul.f32 %v5704_v31, %v5704_v31  ;;  %v2236_v2 = vmul.f32 %v5710_v63, %v5710_v63 }
 0x73b   : > { %6703 = vst [vmem:[#allocation36_spill] sm:$0xff] %v5714_v9  ;;  %6704 = vst [vmem:[#allocation37_spill] sm:$0xff] %v5716_v21  ;;  %v5720_v35 = vpop.eup %4553  ;;  %v2424_v56 = vadd.f32 %v2360_v23, %v5650_v50  ;;  %v2423_v16 = vadd.f32 %v2359_v60, %v5654_v5  ;;  %v2235_v52 = vmul.f32 %v5714_v9, %v5714_v9 }
 0x73c   : > { %6705 = vst [vmem:[#allocation38_spill] sm:$0xff] %v5720_v35  ;;  %v5728_v55 = vpop.eup %4555  ;;  %4561 = vtanh.f32 %v2486_v36  ;;  %v2425_v10 = vadd.f32 %v2361_v20, %v5662_v28  ;;  %v2298_v7 = vmul.f32 %v2234_v54, %v5704_v31  ;;  %v5734_v19 = vadd.f32 %v5589_v40, %v5483_v14  ;;  %v5736_v23 = vpop.f32.mrb[60].mxu1 }
 0x73d   : > { %6706 = vst [vmem:[#allocation39_spill] sm:$0xff] %v5728_v55  ;;  %v5738_v60 = vpop.f32.mrb[76].mxu0  ;;  %v2488_v50 = vmul.f32 0.7978846, %v2424_v56  ;;  %v2487_v5 = vmul.f32 0.7978846, %v2423_v16  ;;  %v2300_v8 = vmul.f32 %v2236_v2, %v5710_v63  ;;  %v2299_v35 = vmul.f32 %v2235_v52, %v5714_v9 }
 0x73e   : > { %6707 = vst [vmem:[#allocation40_spill] sm:$0xff] %v5734_v19  ;;  %v5742_v55 = vpop.f32.mrb[61].mxu1  ;;  %v5744_v36 = vpop.f32.mrb[77].mxu0  ;;  %v2489_v20 = vmul.f32 0.7978846, %v2425_v10  ;;  %v2237_v40 = vmul.f32 %v5734_v19, %v5734_v19  ;;  %v5750_v28 = vadd.f32 %v5607_v44, %v5473_v15  ;;  %v5758_v52 = vadd.f32 %v5609_v45, %v5476_v4 }
 0x73f   : > { %v2362_v54 = vmul.f32 0.044715, %v2298_v7  ;;  %v5752_v11 = vpop.f32.mrb[62].mxu1  ;;  %v5754_v56 = vpop.f32.mrb[78].mxu0  ;;  %4563 = vtanh.f32 %v2488_v50  ;;  %v2364_v16 = vmul.f32 0.044715, %v2300_v8 }
 0x740   : > { %6708 = vst [vmem:[#allocation41_spill] sm:$0xff] %v5750_v28  ;;  %v2363_v2 = vmul.f32 0.044715, %v2299_v35  ;;  %6709 = vst [vmem:[#allocation42_spill] sm:$0xff] %v5758_v52  ;;  %v5760_v10 = vpop.f32.mrb[63].mxu1  ;;  %v5762_v7 = vpop.f32.mrb[79].mxu0  ;;  %4565 = vtanh.f32 %v2487_v5  ;;  %v2301_v44 = vmul.f32 %v2237_v40, %v5734_v19  ;;  %v2238_v58 = vmul.f32 %v5750_v28, %v5750_v28 }
 0x741   : > { %v2426_v61 = vadd.f32 %v2362_v54, %v5704_v31  ;;  %v5768_v62 = vpop.eup %4557  ;;  %4567 = vtanh.f32 %v2489_v20  ;;  %v2428_v50 = vadd.f32 %v2364_v16, %v5710_v63  ;;  %v2240_v45 = vmul.f32 %v5758_v52, %v5758_v52 }
 0x742   : > { %6710 = vst [vmem:[#allocation43_spill] sm:$0xff] %v5768_v62  ;;  %v2427_v8 = vadd.f32 %v2363_v2, %v5714_v9  ;;  %v2365_v21 = vmul.f32 0.044715, %v2301_v44  ;;  %v2302_v5 = vmul.f32 %v2238_v58, %v5750_v28  ;;  %v5777_v54 = vadd.f32 %v5613_v43, %v5479_v41 }
 0x743   : > { %v2490_v35 = vmul.f32 0.7978846, %v2426_v61  ;;  %v2492_v40 = vmul.f32 0.7978846, %v2428_v50  ;;  %v2304_v62 = vmul.f32 %v2240_v45, %v5758_v52  ;;  %v5782_v20 = vadd.f32 %v5617_v38, %v5483_v14  ;;  %v5784_v16 = vpop.eup %4559 }
 0x744   : > { %6711 = vst [vmem:[#allocation44_spill] sm:$0xff] %v5777_v54  ;;  %v2491_v31 = vmul.f32 0.7978846, %v2427_v8  ;;  %v2429_v61 = vadd.f32 %v2365_v21, %v5734_v19  ;;  %v2366_v2 = vmul.f32 0.044715, %v2302_v5  ;;  %v2239_v58 = vmul.f32 %v5777_v54, %v5777_v54  ;;  %v5789_v44 = vpop.f32.mrb[64].mxu1 }
 0x745   : > { %6712 = vst [vmem:[#allocation45_spill] sm:$0xff] %v5782_v20  ;;  %4569 = vtanh.f32 %v2490_v35  ;;  %v5791_v43 = vpop.f32.mrb[80].mxu0  ;;  %v2368_v50 = vmul.f32 0.044715, %v2304_v62  ;;  %v2241_v8 = vmul.f32 %v5782_v20, %v5782_v20  ;;  %v5797_v38 = vadd.f32 %v5622_v47, %v5473_v15  ;;  %v5799_v45 = vpop.f32.mrb[65].mxu1 }
 0x746   : > { %4571 = vtanh.f32 %v2492_v40  ;;  %6714 = vst [vmem:[#allocation47_spill] sm:$0xff] %v5799_v45  ;;  %v5801_v21 = vpop.f32.mrb[81].mxu0  ;;  %v5803_v35 = vpop.eup %4561  ;;  %v2493_v5 = vmul.f32 0.7978846, %v2429_v61  ;;  %v2430_v63 = vadd.f32 %v2366_v2, %v5750_v28  ;;  %v2303_v40 = vmul.f32 %v2239_v58, %v5777_v54 }
 0x747   : > { %6713 = vst [vmem:[#allocation46_spill] sm:$0xff] %v5797_v38  ;;  %6715 = vst [vmem:[#allocation48_spill] sm:$0xff] %v5803_v35  ;;  %4573 = vtanh.f32 %v2491_v31  ;;  %v5807_v62 = vpop.f32.mrb[66].mxu1  ;;  %v5809_v19 = vpop.f32.mrb[82].mxu0  ;;  %v2432_v9 = vadd.f32 %v2368_v50, %v5758_v52  ;;  %v2305_v47 = vmul.f32 %v2241_v8, %v5782_v20  ;;  %v2242_v45 = vmul.f32 %v5797_v38, %v5797_v38 }
 0x748   : > { %6716 = vst [vmem:[#allocation49_spill] sm:$0xff] %v5807_v62  ;;  %6717 = vst [vmem:[#allocation50_spill] sm:$0xff] %v5809_v19  ;;  %v5817_v35 = vadd.f32 %v5624_v29, %v5476_v4  ;;  %v5819_v31 = vpop.f32.mrb[67].mxu1  ;;  %v5821_v61 = vpop.f32.mrb[83].mxu0  ;;  %4575 = vtanh.f32 %v2493_v5  ;;  %v2494_v2 = vmul.f32 0.7978846, %v2430_v63  ;;  %v5825_v28 = vadd.f32 %v5633_v57, %v5479_v41 }
 0x749   : > { %v2367_v58 = vmul.f32 0.044715, %v2303_v40  ;;  %v5827_v50 = vpop.eup %4563  ;;  %v2496_v8 = vmul.f32 0.7978846, %v2432_v9  ;;  %v2369_v52 = vmul.f32 0.044715, %v2305_v47  ;;  %v2306_v19 = vmul.f32 %v2242_v45, %v5797_v38 }
 0x74a   : > { %6718 = vst [vmem:[#allocation51_spill] sm:$0xff] %v5817_v35  ;;  %6719 = vst [vmem:[#allocation52_spill] sm:$0xff] %v5825_v28  ;;  %v2244_v29 = vmul.f32 %v5817_v35, %v5817_v35  ;;  %v5832_v62 = vpop.eup %4565  ;;  %4577 = vtanh.f32 %v2494_v2  ;;  %v2243_v63 = vmul.f32 %v5825_v28, %v5825_v28  ;;  %v5839_v57 = vadd.f32 %v5635_v37, %v5483_v14 }
 0x74b   : > { %6720 = vst [vmem:[#allocation53_spill] sm:$0xff] %v5827_v50  ;;  %6721 = vst [vmem:[#allocation54_spill] sm:$0xff] %v5832_v62  ;;  %v2431_v5 = vadd.f32 %v2367_v58, %v5777_v54  ;;  %v5841_v40 = vpop.eup %4567  ;;  %4579 = vtanh.f32 %v2496_v8  ;;  %v2433_v9 = vadd.f32 %v2369_v52, %v5782_v20  ;;  %v2370_v45 = vmul.f32 0.044715, %v2306_v19 }
 0x74c   : > { %6722 = vst [vmem:[#allocation55_spill] sm:$0xff] %v5839_v57  ;;  %v2308_v47 = vmul.f32 %v2244_v29, %v5817_v35  ;;  %v2307_v2 = vmul.f32 %v2243_v63, %v5825_v28  ;;  %v2245_v58 = vmul.f32 %v5839_v57, %v5839_v57  ;;  %v5850_v54 = vadd.f32 %v5664_v59, %v5473_v15  ;;  %v5852_v37 = vpop.f32.mrb[68].mxu1  ;;  %v5854_v62 = vpop.f32.mrb[84].mxu0 }
 0x74d   : > { %v2495_v50 = vmul.f32 0.7978846, %v2431_v5  ;;  %6724 = vst [vmem:[#allocation57_spill] sm:$0xff] %v5852_v37  ;;  %6725 = vst [vmem:[#allocation58_spill] sm:$0xff] %v5854_v62  ;;  %v2497_v8 = vmul.f32 0.7978846, %v2433_v9  ;;  %v2434_v52 = vadd.f32 %v2370_v45, %v5797_v38  ;;  %v5859_v29 = vadd.f32 %v5666_v42, %v5476_v4 }
 0x74e   : > { %6723 = vst [vmem:[#allocation56_spill] sm:$0xff] %v5850_v54  ;;  %v2372_v19 = vmul.f32 0.044715, %v2308_v47  ;;  %v5861_v5 = vpop.f32.mrb[69].mxu1  ;;  %v5863_v63 = vpop.f32.mrb[85].mxu0  ;;  %v2309_v37 = vmul.f32 %v2245_v58, %v5839_v57  ;;  %v2246_v9 = vmul.f32 %v5850_v54, %v5850_v54 }
 0x74f   : > { %6726 = vst [vmem:[#allocation59_spill] sm:$0xff] %v5859_v29  ;;  %6727 = vst [vmem:[#allocation60_spill] sm:$0xff] %v5861_v5  ;;  %v5865_v20 = vpop.eup %4569  ;;  %4581 = vtanh.f32 %v2495_v50  ;;  %v2371_v59 = vmul.f32 0.044715, %v2307_v2  ;;  %v5870_v62 = vpop.f32.mrb[70].mxu1 }
 0x750   : > { %6728 = vst [vmem:[#allocation61_spill] sm:$0xff] %v5863_v63  ;;  %6729 = vst [vmem:[#allocation62_spill] sm:$0xff] %v5870_v62  ;;  %v5872_v45 = vpop.f32.mrb[86].mxu0  ;;  %v5874_v47 = vpop.eup %4571  ;;  %4583 = vtanh.f32 %v2497_v8  ;;  %v2498_v42 = vmul.f32 0.7978846, %v2434_v52  ;;  %v2436_v38 = vadd.f32 %v2372_v19, %v5817_v35  ;;  %v2248_v63 = vmul.f32 %v5859_v29, %v5859_v29 }
 0x751   : > { %6730 = vst [vmem:[#allocation63_spill] sm:$0xff] %v5872_v45  ;;  %v5879_v50 = vpop.f32.mrb[71].mxu1  ;;  %v5881_v2 = vpop.f32.mrb[87].mxu0  ;;  %v2435_v5 = vadd.f32 %v2371_v59, %v5825_v28  ;;  %v2373_v62 = vmul.f32 0.044715, %v2309_v37  ;;  %v2310_v45 = vmul.f32 %v2246_v9, %v5850_v54  ;;  %v5889_v8 = vadd.f32 %v5675_v39, %v5479_v41 }
 0x752   : > { %6731 = vst [vmem:[#allocation64_spill] sm:$0xff] %v5879_v50  ;;  %6732 = vst [vmem:[#allocation65_spill] sm:$0xff] %v5881_v2  ;;  %v5883_v58 = vpop.eup %4573  ;;  %4585 = vtanh.f32 %v2498_v42  ;;  %v2500_v52 = vmul.f32 0.7978846, %v2436_v38  ;;  %v2312_v19 = vmul.f32 %v2248_v63, %v5859_v29  ;;  %v5894_v35 = vadd.f32 %v5677_v48, %v5483_v14 }
 0x753   : > { %6733 = vst [vmem:[#allocation66_spill] sm:$0xff] %v5889_v8  ;;  %v5896_v2 = vpop.eup %4575  ;;  %v2499_v50 = vmul.f32 0.7978846, %v2435_v5  ;;  %v2437_v59 = vadd.f32 %v2373_v62, %v5839_v57  ;;  %v2374_v37 = vmul.f32 0.044715, %v2310_v45  ;;  %v2247_v9 = vmul.f32 %v5889_v8, %v5889_v8 }
 0x754   : > { %6734 = vst [vmem:[#allocation67_spill] sm:$0xff] %v5894_v35  ;;  %4587 = vtanh.f32 %v2500_v52  ;;  %v2376_v39 = vmul.f32 0.044715, %v2312_v19  ;;  %v2249_v38 = vmul.f32 %v5894_v35, %v5894_v35  ;;  %v5905_v63 = vadd.f32 %v5684_v0, %v5473_v15  ;;  %v5907_v48 = vpop.eup %4577 }
 0x755   : > { %6735 = vst [vmem:[#allocation68_spill] sm:$0xff] %v5907_v48  ;;  %4589 = vtanh.f32 %v2499_v50  ;;  %v2501_v42 = vmul.f32 0.7978846, %v2437_v59  ;;  %v2438_v5 = vadd.f32 %v2374_v37, %v5850_v54  ;;  %v2311_v62 = vmul.f32 %v2247_v9, %v5889_v8  ;;  %v5911_v45 = vpop.eup %4579 }
 0x756   : > { %6736 = vst [vmem:[#allocation69_spill] sm:$0xff] %v5911_v45  ;;  %v2440_v52 = vadd.f32 %v2376_v39, %v5859_v29  ;;  %v2313_v19 = vmul.f32 %v2249_v38, %v5894_v35  ;;  %v2250_v57 = vmul.f32 %v5905_v63, %v5905_v63  ;;  %v5919_v0 = vadd.f32 %v5686_v33, %v5476_v4 }
 0x757   : > { %4591 = vtanh.f32 %v2501_v42  ;;  %v2502_v50 = vmul.f32 0.7978846, %v2438_v5  ;;  %v2375_v59 = vmul.f32 0.044715, %v2311_v62  ;;  %v5923_v37 = vadd.f32 %v5694_v1, %v5479_v41 }
 0x758   : > { %v2504_v9 = vmul.f32 0.7978846, %v2440_v52  ;;  %v2377_v54 = vmul.f32 0.044715, %v2313_v19  ;;  %v2314_v39 = vmul.f32 %v2250_v57, %v5905_v63  ;;  %v2252_v38 = vmul.f32 %v5919_v0, %v5919_v0 }
 0x759   : > { %v5928_v29 = vpop.eup %4581  ;;  %4593 = vtanh.f32 %v2502_v50  ;;  %v2439_v33 = vadd.f32 %v2375_v59, %v5889_v8  ;;  %v2251_v42 = vmul.f32 %v5923_v37, %v5923_v37  ;;  %v5935_v5 = vadd.f32 %v5696_v53, %v5483_v14 }
 0x75a   : > { %v5937_v1 = vpop.eup %4583  ;;  %4595 = vtanh.f32 %v2504_v9  ;;  %v2441_v57 = vadd.f32 %v2377_v54, %v5894_v35  ;;  %v2378_v62 = vmul.f32 0.044715, %v2314_v39  ;;  %v2316_v52 = vmul.f32 %v2252_v38, %v5919_v0 }
 0x75b   : > { %6737 = vst [vmem:[#allocation70_spill] sm:$0xff] %v5937_v1  ;;  %v2503_v19 = vmul.f32 0.7978846, %v2439_v33  ;;  %v2315_v50 = vmul.f32 %v2251_v42, %v5923_v37  ;;  %v2253_v59 = vmul.f32 %v5935_v5, %v5935_v5  ;;  %v2599_v8 = vadd.f32 1.0, %v5611_v17 }
 0x75c   : > { %v5945_v45 = vpop.eup %4585  ;;  %v2505_v53 = vmul.f32 0.7978846, %v2441_v57  ;;  %v2442_v48 = vadd.f32 %v2378_v62, %v5905_v63  ;;  %v2380_v28 = vmul.f32 0.044715, %v2316_v52  ;;  %v2603_v9 = vadd.f32 1.0, %v5637_v12 }
 0x75d   : > { %4597 = vtanh.f32 %v2503_v19  ;;  %v2379_v54 = vmul.f32 0.044715, %v2315_v50  ;;  %v2317_v39 = vmul.f32 %v2253_v59, %v5935_v5  ;;  %v2663_v38 = vmul.f32 0.5, %v2599_v8 }
 0x75e   : > { %v5950_v33 = vpop.eup %4587  ;;  %4599 = vtanh.f32 %v2505_v53  ;;  %v2506_v42 = vmul.f32 0.7978846, %v2442_v48  ;;  %v2444_v35 = vadd.f32 %v2380_v28, %v5919_v0  ;;  %v2667_v17 = vmul.f32 0.5, %v2603_v9 }
 0x75f   : > { %v5953_v1 = vpop.eup %4589  ;;  %v2443_v57 = vadd.f32 %v2379_v54, %v5923_v37  ;;  %v2381_v62 = vmul.f32 0.044715, %v2317_v39  ;;  %v2727_v52 = vmul.f32 %v2663_v38, %v5492_v30  ;;  %v2601_v12 = vadd.f32 1.0, %v5615_v22 }
 0x760   : > { %4601 = vtanh.f32 %v2506_v42  ;;  %v2508_v19 = vmul.f32 0.7978846, %v2444_v35  ;;  %v2731_v8 = vmul.f32 %v2667_v17, %v5512_v6  ;;  %v2605_v50 = vadd.f32 1.0, %v5642_v51 }
 0x761   : > { %v5960_v59 = vpop.eup %4591  ;;  %v2507_v48 = vmul.f32 0.7978846, %v2443_v57  ;;  %v2445_v28 = vadd.f32 %v2381_v62, %v5935_v5  ;;  %v2665_v53 = vmul.f32 0.5, %v2601_v12  ;;  %v5965_v9 = vadd.f32 %v5736_v23, %v5473_v15 }
 0x762   : > { %4603 = vtanh.f32 %v2508_v19  ;;  %v2791_v30 = vpack.c.bf16 %v2731_v8, %v2727_v52  ;;  %v2669_v54 = vmul.f32 0.5, %v2605_v50  ;;  %v5969_v22 = vadd.f32 %v5738_v60, %v5476_v4 }
 0x763   : > { %6738 = vst [vmem:[#allocation71_spill] sm:$0xff] %v5965_v9  ;;  %v5971_v6 = vpop.eup %4593  ;;  %4605 = vtanh.f32 %v2507_v48  ;;  %v2509_v51 = vmul.f32 0.7978846, %v2445_v28  ;;  %v2729_v35 = vmul.f32 %v2665_v53, %v5495_v13  ;;  %v2254_v39 = vmul.f32 %v5965_v9, %v5965_v9 }
 0x764   : > { %6739 = vst [vmem:[#allocation72_spill] sm:$0xff] %v5969_v22  ;;  %v5976_v38 = vpop.eup %4595  ;;  %3114 = vmatprep.mubr.bf16.mxu1 %v2791_v30  ;;  %v2733_v23 = vmul.f32 %v2669_v54, %v5515_v34  ;;  %v2256_v42 = vmul.f32 %v5969_v22, %v5969_v22  ;;  %v5983_v60 = vadd.f32 %v5742_v55, %v5479_v41 }
 0x765   : > { %v5987_v17 = vadd.f32 %v5744_v36, %v5483_v14  ;;  %4607 = vtanh.f32 %v2509_v51  ;;  %v6740_v13 = vpack.c.bf16 %v5657_v18, %v5627_v32  ;;  %v2318_v57 = vmul.f32 %v2254_v39, %v5965_v9 }
 0x766   : > { %v5995_v34 = vadd.f32 %v5752_v11, %v5473_v15  ;;  %v5999_v62 = vadd.f32 %v5754_v56, %v5476_v4  ;;  %v2793_v55 = vpack.c.bf16 %v2733_v23, %v2729_v35  ;;  %v2320_v52 = vmul.f32 %v2256_v42, %v5969_v22 }
 0x767   : > { %3115 = vmatmul.mubr.bf16.vlgmr.msra.gmra.mrb[72].mxu1 %v6740_v13  ;;  %v2255_v36 = vmul.f32 %v5983_v60, %v5983_v60  ;;  %v2257_v32 = vmul.f32 %v5987_v17, %v5987_v17  ;;  %v6007_v18 = vpop.eup %4597  ;;  %v2382_v12 = vmul.f32 0.044715, %v2318_v57  ;;  %v6015_v19 = vadd.f32 %v5760_v10, %v5479_v41 }
 0x768   : > { %6741 = vst [vmem:[#allocation73_spill] sm:$0xff] %v5995_v34  ;;  %6742 = vst [vmem:[#allocation74_spill] sm:$0xff] %v5999_v62  ;;  %4294 = vmatpush3.bf16.msra.mxu1 %v5430_v24  ;;  %v2258_v11 = vmul.f32 %v5995_v34, %v5995_v34  ;;  %v2260_v56 = vmul.f32 %v5999_v62, %v5999_v62  ;;  %v6018_v8 = vpop.eup %4599  ;;  %3211 = vmatprep.mubr.bf16.mxu0 %v2793_v55  ;;  %v2384_v50 = vmul.f32 0.044715, %v2320_v52 }
 0x769   : > { %4287 = vmatprep.subr.bf16.mxu1 %v5435_v27  ;;  %v2319_v24 = vmul.f32 %v2255_v36, %v5983_v60  ;;  %v2321_v48 = vmul.f32 %v2257_v32, %v5987_v17  ;;  %v6024_v28 = vadd.f32 %v5762_v7, %v5483_v14  ;;  %v6743_v53 = vpack.c.bf16 %v5669_v26, %v5640_v49 }
 0x76a   : > { %v2446_v10 = vadd.f32 %v2382_v12, %v5965_v9  ;;  %v2322_v27 = vmul.f32 %v2258_v11, %v5995_v34  ;;  %v2324_v30 = vmul.f32 %v2260_v56, %v5999_v62  ;;  %v2259_v54 = vmul.f32 %v6015_v19, %v6015_v19  ;;  %v6034_v51 = vpop.eup %4601 }
 0x76b   : > { %3212 = vmatmul.mubr.bf16.vlgmr.msra.gmra.mrb[88].mxu0 %v6743_v53  ;;  %v2448_v35 = vadd.f32 %v2384_v50, %v5969_v22  ;;  %v2383_v39 = vmul.f32 0.044715, %v2319_v24  ;;  %v2385_v7 = vmul.f32 0.044715, %v2321_v48  ;;  %v2261_v23 = vmul.f32 %v6024_v28, %v6024_v28  ;;  %v4705_v48 = vld [vmem:[%s4801_s22 + $0x90] sm:$0xff]  }
 0x76c   : > { %4295 = vmatpush3.bf16.msra.mxu1 %v5440_v25  ;;  %v2510_v49 = vmul.f32 0.7978846, %v2446_v10  ;;  %v2386_v26 = vmul.f32 0.044715, %v2322_v27  ;;  %v2388_v42 = vmul.f32 0.044715, %v2324_v30  ;;  %v2323_v13 = vmul.f32 %v2259_v54, %v6015_v19  ;;  %v6042_v57 = vpop.eup %4603 }
 0x76d   : > { %4288 = vmatprep.subr.bf16.mxu1 %v5445_v46  ;;  %v2512_v55 = vmul.f32 0.7978846, %v2448_v35  ;;  %v2447_v52 = vadd.f32 %v2383_v39, %v5983_v60  ;;  %v2449_v36 = vadd.f32 %v2385_v7, %v5987_v17  ;;  %v2325_v32 = vmul.f32 %v2261_v23, %v6024_v28  ;;  %v6047_v12 = vpop.eup %4605  ;;  %v4706_v35 = vld [vmem:[%s4801_s22 + $0xd8] sm:$0xff]   ;;  %v6744_v7 = vld [vmem:[#allocation43_spill] sm:$0xff] }
 0x76e   : > { %4609 = vtanh.f32 %v2510_v49  ;;  %v2450_v25 = vadd.f32 %v2386_v26, %v5995_v34  ;;  %v2452_v11 = vadd.f32 %v2388_v42, %v5999_v62  ;;  %v2387_v56 = vmul.f32 0.044715, %v2323_v13  ;;  %v6745_v49 = vld [vmem:[#allocation37_spill] sm:$0xff] }
 0x76f   : > { %4611 = vtanh.f32 %v2512_v55  ;;  %v2511_v46 = vmul.f32 0.7978846, %v2447_v52  ;;  %v2513_v50 = vmul.f32 0.7978846, %v2449_v36  ;;  %v2389_v24 = vmul.f32 0.044715, %v2325_v32  ;;  %v6052_v53 = vpop.eup %4607 }
 0x770   : > { %4296 = vmatpush3.bf16.msra.mxu1 %v4705_v48  ;;  %v2514_v10 = vmul.f32 0.7978846, %v2450_v25  ;;  %v2516_v27 = vmul.f32 0.7978846, %v2452_v11  ;;  %v2451_v30 = vadd.f32 %v2387_v56, %v6015_v19  ;;  %v2607_v54 = vadd.f32 1.0, %v5706_v3  ;;  %v4707_v3 = vld [vmem:[%s4801_s22 + $0x98] sm:$0xff]  }
 0x771   : > { %4289 = vmatprep.subr.bf16.mxu1 %v4706_v35  ;;  %4613 = vtanh.f32 %v2511_v46  ;;  %v2453_v39 = vadd.f32 %v2389_v24, %v6024_v28  ;;  %v2611_v23 = vadd.f32 1.0, %v6744_v7  ;;  %v2609_v26 = vadd.f32 1.0, %v6745_v49  ;;  %v6746_v25 = vld [vmem:[#allocation22_spill] sm:$0xff]  ;;  %v6747_v46 = vld [vmem:[#allocation32_spill] sm:$0xff]  ;;  %v4708_v48 = vld [vmem:[%s4801_s22 + $0xe0] sm:$0xff]  }
 0x772   : > { %4615 = vtanh.f32 %v2513_v50  ;;  %v2515_v42 = vmul.f32 0.7978846, %v2451_v30  ;;  %v2671_v13 = vmul.f32 0.5, %v2607_v54  ;;  %v2613_v55 = vadd.f32 1.0, %v5784_v16  ;;  %v6748_v50 = vld [vmem:[#allocation26_spill] sm:$0xff]  ;;  %v6749_v54 = vld [vmem:[#allocation23_spill] sm:$0xff] }
 0x773   : > { %4617 = vtanh.f32 %v2514_v10  ;;  %v2517_v52 = vmul.f32 0.7978846, %v2453_v39  ;;  %v2675_v36 = vmul.f32 0.5, %v2611_v23  ;;  %v2673_v32 = vmul.f32 0.5, %v2609_v26  ;;  %v6750_v10 = vld [vmem:[#allocation38_spill] sm:$0xff]  ;;  %v6751_v39 = vld [vmem:[#allocation27_spill] sm:$0xff] }
 0x774   : > { %4297 = vmatpush3.bf16.msra.mxu1 %v4707_v3  ;;  %4619 = vtanh.f32 %v2516_v27  ;;  %v2735_v11 = vmul.f32 %v2671_v13, %v6746_v25  ;;  %v2677_v56 = vmul.f32 0.5, %v2613_v55  ;;  %v2606_v24 = vadd.f32 1.0, %v6747_v46  ;;  %v6752_v23 = vld [vmem:[#allocation33_spill] sm:$0xff]  ;;  %v6753_v55 = vld [vmem:[#allocation39_spill] sm:$0xff]  ;;  %v6755_v46 = vld [vmem:[#allocation20_spill] sm:$0xff] }
 0x775   : > { %4290 = vmatprep.subr.bf16.mxu1 %v4708_v48  ;;  %4621 = vtanh.f32 %v2515_v42  ;;  %v2739_v30 = vmul.f32 %v2675_v36, %v6748_v50  ;;  %v2737_v16 = vmul.f32 %v2673_v32, %v6749_v54  ;;  %v2610_v35 = vadd.f32 1.0, %v6750_v10  ;;  %v4709_v36 = vld [vmem:[%s4801_s22 + $0xa0] sm:$0xff]  }
 0x776   : > { %4623 = vtanh.f32 %v2517_v52  ;;  %v2741_v7 = vmul.f32 %v2677_v56, %v6751_v39  ;;  %v2670_v27 = vmul.f32 0.5, %v2606_v24  ;;  %v2608_v49 = vadd.f32 1.0, %v6752_v23 }
 0x777   : > { %v2795_v26 = vpack.c.bf16 %v2739_v30, %v2735_v11  ;;  %v2674_v13 = vmul.f32 0.5, %v2610_v35  ;;  %v2612_v3 = vadd.f32 1.0, %v6753_v55  ;;  %v6073_v42 = vadd.f32 %v5789_v44, %v5473_v15  ;;  %v4710_v11 = vld [vmem:[%s4801_s22 + $0xe8] sm:$0xff]   ;;  %v6759_v35 = vld [vmem:[#allocation21_spill] sm:$0xff] }
 0x778   : > { %4298 = vmatpush3.bf16.msra.mxu1 %v4709_v36  ;;  %v6076_v32 = vpop.eup %4609  ;;  %v2797_v25 = vpack.c.bf16 %v2741_v7, %v2737_v16  ;;  %v2734_v52 = vmul.f32 %v2670_v27, %v6755_v46  ;;  %v2672_v48 = vmul.f32 0.5, %v2608_v49  ;;  %v6081_v56 = vadd.f32 %v5791_v43, %v5476_v4  ;;  %v6756_v44 = vld [vmem:[#allocation24_spill] sm:$0xff]  ;;  %v6757_v16 = vld [vmem:[#allocation47_spill] sm:$0xff]  ;;  %v6761_v27 = vld [vmem:[#allocation49_spill] sm:$0xff] }
 0x779   : > { %6754 = vst [vmem:[#allocation43_spill] sm:$0xff] %v6073_v42  ;;  %4291 = vmatprep.subr.bf16.mxu1 %v4710_v11  ;;  %v6084_v24 = vpop.eup %4611  ;;  %3122 = vmatprep.mubr.bf16.mxu1 %v2795_v26  ;;  %v2738_v50 = vmul.f32 %v2674_v13, %v6756_v44  ;;  %v2676_v30 = vmul.f32 0.5, %v2612_v3  ;;  %v2262_v54 = vmul.f32 %v6073_v42, %v6073_v42  ;;  %v6762_v13 = vld [vmem:[#allocation25_spill] sm:$0xff] }
 0x77a   : > { %v6091_v10 = vadd.f32 %v6757_v16, %v5479_v41  ;;  %3219 = vmatprep.mubr.bf16.mxu0 %v2797_v25  ;;  %v2736_v43 = vmul.f32 %v2672_v48, %v6759_v35  ;;  %v2264_v39 = vmul.f32 %v6081_v56, %v6081_v56  ;;  %v6098_v7 = vadd.f32 %v5801_v21, %v5483_v14  ;;  %v4711_v25 = vld [vmem:[%s4801_s22 + $0xa8] sm:$0xff]  }
 0x77b   : > { %v6102_v23 = vadd.f32 %v6761_v27, %v5473_v15  ;;  %v6104_v49 = vpop.eup %4613  ;;  %v2794_v26 = vpack.c.bf16 %v2738_v50, %v2734_v52  ;;  %v2740_v55 = vmul.f32 %v2676_v30, %v6762_v13  ;;  %v2326_v3 = vmul.f32 %v2262_v54, %v6073_v42  ;;  %v6763_v52 = vld [vmem:[#allocation50_spill] sm:$0xff]  ;;  %v4712_v50 = vld [vmem:[%s4801_s22 + $0xf0] sm:$0xff]  }
 0x77c   : > { %6758 = vst [vmem:[#allocation37_spill] sm:$0xff] %v6091_v10  ;;  %6760 = vst [vmem:[#allocation22_spill] sm:$0xff] %v6098_v7  ;;  %v2263_v36 = vmul.f32 %v6091_v10, %v6091_v10  ;;  %4299 = vmatpush3.bf16.msra.mxu1 %v4711_v25  ;;  %v6111_v46 = vpop.eup %4615  ;;  %v2328_v21 = vmul.f32 %v2264_v39, %v6081_v56  ;;  %v2265_v48 = vmul.f32 %v6098_v7, %v6098_v7 }
 0x77d   : > { %v2266_v11 = vmul.f32 %v6102_v23, %v6102_v23  ;;  %v6120_v44 = vadd.f32 %v6763_v52, %v5476_v4  ;;  %4292 = vmatprep.subr.bf16.mxu1 %v4712_v50  ;;  %v6123_v30 = vpop.eup %4617  ;;  %3123 = vmatmul.mubr.bf16.gmra.mrb[76].mxu1 %v2794_v26  ;;  %v2796_v54 = vpack.c.bf16 %v2740_v55, %v2736_v43  ;;  %v2390_v16 = vmul.f32 0.044715, %v2326_v3 }
 0x77e   : > { %v2327_v35 = vmul.f32 %v2263_v36, %v6091_v10  ;;  %v6128_v39 = vadd.f32 %v5819_v31, %v5479_v41  ;;  %v6130_v27 = vpop.eup %4619  ;;  %v2392_v13 = vmul.f32 0.044715, %v2328_v21  ;;  %v2329_v25 = vmul.f32 %v2265_v48, %v6098_v7  ;;  %v4713_v36 = vld [vmem:[%s4801_s22 + $0xb0] sm:$0xff]  }
 0x77f   : > { %v2330_v52 = vmul.f32 %v2266_v11, %v6102_v23  ;;  %v2268_v26 = vmul.f32 %v6120_v44, %v6120_v44  ;;  %v6136_v50 = vpop.eup %4621  ;;  %3220 = vmatmul.mubr.bf16.gmra.mrb[92].mxu0 %v2796_v54  ;;  %v2454_v43 = vadd.f32 %v2390_v16, %v6073_v42  ;;  %v6143_v3 = vadd.f32 %v5821_v61, %v5483_v14  ;;  %v4714_v16 = vld [vmem:[%s4801_s22 + $0xf8] sm:$0xff]  }
 0x780   : > { %v2391_v55 = vmul.f32 0.044715, %v2327_v35  ;;  %v2267_v31 = vmul.f32 %v6128_v39, %v6128_v39  ;;  %4300 = vmatpush3.bf16.msra.mxu1 %v4713_v36  ;;  %v6146_v21 = vpop.eup %4623  ;;  %v2456_v48 = vadd.f32 %v2392_v13, %v6081_v56  ;;  %v2393_v11 = vmul.f32 0.044715, %v2329_v25 }
 0x781   : > { %6764 = vst [vmem:[#allocation32_spill] sm:$0xff] %v6143_v3  ;;  %v2394_v62 = vmul.f32 0.044715, %v2330_v52  ;;  %v2332_v54 = vmul.f32 %v2268_v26, %v6120_v44  ;;  %4293 = vmatprep.subr.bf16.mxu1 %v4714_v16  ;;  %v2518_v35 = vmul.f32 0.7978846, %v2454_v43  ;;  %v2269_v61 = vmul.f32 %v6143_v3, %v6143_v3  ;;  %v4715_v16 = vld [vmem:[%s4801_s22 + $0xb8] sm:$0xff]  }
 0x782   : > { %v2455_v42 = vadd.f32 %v2391_v55, %v6091_v10  ;;  %v2331_v22 = vmul.f32 %v2267_v31, %v6128_v39  ;;  %v2520_v36 = vmul.f32 0.7978846, %v2456_v48  ;;  %v2457_v34 = vadd.f32 %v2393_v11, %v6098_v7  ;;  %v6765_v11 = vld [vmem:[#allocation54_spill] sm:$0xff] }
 0x783   : > { %v2458_v13 = vadd.f32 %v2394_v62, %v6102_v23  ;;  %v2396_v25 = vmul.f32 0.044715, %v2332_v54  ;;  %4625 = vtanh.f32 %v2518_v35  ;;  %v2333_v26 = vmul.f32 %v2269_v61, %v6143_v3 }
 0x784   : > { %v2519_v52 = vmul.f32 0.7978846, %v2455_v42  ;;  %v2395_v9 = vmul.f32 0.044715, %v2331_v22  ;;  %4301 = vmatpush3.bf16.msra.mxu1 %v4715_v16  ;;  %4627 = vtanh.f32 %v2520_v36  ;;  %v2521_v43 = vmul.f32 0.7978846, %v2457_v34 }
 0x785   : > { %v2522_v55 = vmul.f32 0.7978846, %v2458_v13  ;;  %v2460_v31 = vadd.f32 %v2396_v25, %v6120_v44  ;;  %v2397_v10 = vmul.f32 0.044715, %v2333_v26  ;;  %v2615_v7 = vadd.f32 1.0, %v6765_v11  ;;  %v6766_v25 = vld [vmem:[#allocation30_spill] sm:$0xff] }
 0x786   : > { %4629 = vtanh.f32 %v2519_v52  ;;  %v2459_v48 = vadd.f32 %v2395_v9, %v6128_v39  ;;  %v2619_v42 = vadd.f32 1.0, %v5883_v58  ;;  %v2617_v22 = vadd.f32 1.0, %v5841_v40  ;;  %v6767_v26 = vld [vmem:[#allocation48_spill] sm:$0xff]  ;;  %v6769_v40 = vld [vmem:[#allocation31_spill] sm:$0xff] }
 0x787   : > { %4631 = vtanh.f32 %v2521_v43  ;;  %v2524_v62 = vmul.f32 0.7978846, %v2460_v31  ;;  %v2461_v35 = vadd.f32 %v2397_v10, %v6143_v3  ;;  %v2679_v34 = vmul.f32 0.5, %v2615_v7  ;;  %v6768_v43 = vld [vmem:[#allocation36_spill] sm:$0xff]  ;;  %v6770_v7 = vld [vmem:[#allocation53_spill] sm:$0xff] }
 0x788   : > { %4633 = vtanh.f32 %v2522_v55  ;;  %v2523_v54 = vmul.f32 0.7978846, %v2459_v48  ;;  %v2683_v61 = vmul.f32 0.5, %v2619_v42  ;;  %v2621_v36 = vadd.f32 1.0, %v5896_v2  ;;  %v6771_v42 = vld [vmem:[#allocation40_spill] sm:$0xff] }
 0x789   : > { %4635 = vtanh.f32 %v2524_v62  ;;  %v2681_v13 = vmul.f32 0.5, %v2617_v22  ;;  %v2525_v9 = vmul.f32 0.7978846, %v2461_v35  ;;  %v2743_v52 = vmul.f32 %v2679_v34, %v6766_v25  ;;  %v6772_v35 = vld [vmem:[#allocation57_spill] sm:$0xff] }
 0x78a   : > { %4637 = vtanh.f32 %v2523_v54  ;;  %v2614_v16 = vadd.f32 1.0, %v6767_v26  ;;  %v2747_v58 = vmul.f32 %v2683_v61, %v6768_v43  ;;  %v2685_v31 = vmul.f32 0.5, %v2621_v36  ;;  %v6774_v36 = vld [vmem:[#allocation28_spill] sm:$0xff] }
 0x78b   : > { %v2745_v55 = vmul.f32 %v2681_v13, %v6769_v40  ;;  %v2618_v48 = vadd.f32 1.0, %v5865_v20  ;;  %4639 = vtanh.f32 %v2525_v9  ;;  %v2616_v11 = vadd.f32 1.0, %v6770_v7  ;;  %v6775_v9 = vld [vmem:[#allocation58_spill] sm:$0xff]  ;;  %v6778_v7 = vld [vmem:[#allocation29_spill] sm:$0xff] }
 0x78c   : > { %v2678_v10 = vmul.f32 0.5, %v2614_v16  ;;  %v2620_v2 = vadd.f32 1.0, %v5874_v47  ;;  %v2799_v62 = vpack.c.bf16 %v2747_v58, %v2743_v52  ;;  %v2749_v22 = vmul.f32 %v2685_v31, %v6771_v42  ;;  %v6776_v52 = vld [vmem:[#allocation34_spill] sm:$0xff]  ;;  %v6777_v31 = vld [vmem:[#allocation60_spill] sm:$0xff] }
 0x78d   : > { %v2682_v54 = vmul.f32 0.5, %v2618_v48  ;;  %v6176_v34 = vadd.f32 %v6772_v35, %v5473_v15  ;;  %v6178_v61 = vpop.eup %4625  ;;  %v2680_v25 = vmul.f32 0.5, %v2616_v11  ;;  %v6183_v26 = vadd.f32 %v6775_v9, %v5476_v4 }
 0x78e   : > { %v2742_v13 = vmul.f32 %v2678_v10, %v6774_v36  ;;  %v2684_v20 = vmul.f32 0.5, %v2620_v2  ;;  %v4628_v16 = vpop.eup %4627  ;;  %3130 = vmatprep.mubr.bf16.mxu1 %v2799_v62  ;;  %v2801_v47 = vpack.c.bf16 %v2749_v22, %v2745_v55  ;;  %v6190_v40 = vadd.f32 %v6777_v31, %v5479_v41  ;;  %v6779_v2 = vld [vmem:[#allocation35_spill] sm:$0xff]  ;;  %v6780_v36 = vld [vmem:[#allocation61_spill] sm:$0xff]  ;;  %v6781_v31 = vld [vmem:[#allocation62_spill] sm:$0xff] }
 0x78f   : > { %6773 = vst [vmem:[#allocation26_spill] sm:$0xff] %v6176_v34  ;;  %v2746_v43 = vmul.f32 %v2682_v54, %v6776_v52  ;;  %v2270_v58 = vmul.f32 %v6176_v34, %v6176_v34  ;;  %v2648_v10 = vadd.f32 1.0, %v4628_v16  ;;  %v2744_v11 = vmul.f32 %v2680_v25, %v6778_v7 }
 0x790   : > { %v6192_v48 = vpop.eup %4629  ;;  %v2748_v42 = vmul.f32 %v2684_v20, %v6779_v2  ;;  %v2272_v62 = vmul.f32 %v6183_v26, %v6183_v26  ;;  %3227 = vmatprep.mubr.bf16.mxu0 %v2801_v47  ;;  %v2271_v35 = vmul.f32 %v6190_v40, %v6190_v40  ;;  %v6205_v9 = vadd.f32 %v6780_v36, %v5483_v14  ;;  %v6782_v2 = vld [vmem:[#allocation63_spill] sm:$0xff] }
 0x791   : > { %v6198_v55 = vpop.eup %4631  ;;  %v2798_v22 = vpack.c.bf16 %v2746_v43, %v2742_v13  ;;  %v2334_v54 = vmul.f32 %v2270_v58, %v6176_v34  ;;  %v2712_v25 = vmul.f32 0.5, %v2648_v10  ;;  %v6212_v7 = vadd.f32 %v6781_v31, %v5473_v15 }
 0x792   : > { %v6207_v16 = vpop.eup %4633  ;;  %v2800_v20 = vpack.c.bf16 %v2748_v42, %v2744_v11  ;;  %v2336_v52 = vmul.f32 %v2272_v62, %v6183_v26  ;;  %v2335_v43 = vmul.f32 %v2271_v35, %v6190_v40  ;;  %v2273_v58 = vmul.f32 %v6205_v9, %v6205_v9 }
 0x793   : > { %v4636_v13 = vpop.eup %4635  ;;  %3131 = vmatmul.mubr.bf16.gmra.mrb[80].mxu1 %v2798_v22  ;;  %v2398_v47 = vmul.f32 0.044715, %v2334_v54  ;;  %v6219_v36 = vadd.f32 %v6782_v2, %v5476_v4  ;;  %v6224_v11 = vmul.f32 %v2712_v25, %v6081_v56  ;;  %v2274_v62 = vmul.f32 %v6212_v7, %v6212_v7 }
 0x794   : > { %v6221_v10 = vpop.eup %4637  ;;  %v2652_v42 = vadd.f32 1.0, %v4636_v13  ;;  %3228 = vmatmul.mubr.bf16.gmra.mrb[96].mxu0 %v2800_v20  ;;  %v2400_v15 = vmul.f32 0.044715, %v2336_v52  ;;  %v2399_v54 = vmul.f32 0.044715, %v2335_v43  ;;  %v2337_v35 = vmul.f32 %v2273_v58, %v6205_v9  ;;  %v6785_v20 = vld [vmem:[#allocation64_spill] sm:$0xff] }
 0x795   : > { %6783 = vst [vmem:[#allocation23_spill] sm:$0xff] %v6224_v11  ;;  %v2462_v22 = vadd.f32 %v2398_v47, %v6176_v34  ;;  %v2276_v4 = vmul.f32 %v6219_v36, %v6219_v36  ;;  %v6232_v31 = vpop.eup %4639  ;;  %v2338_v25 = vmul.f32 %v2274_v62, %v6212_v7  ;;  %v6238_v52 = vadd.f32 %v6785_v20, %v5479_v41 }
 0x796   : > { %6784 = vst [vmem:[#allocation38_spill] sm:$0xff] %v6232_v31  ;;  %v2716_v2 = vmul.f32 0.5, %v2652_v42  ;;  %v2464_v56 = vadd.f32 %v2400_v15, %v6183_v26  ;;  %v2463_v47 = vadd.f32 %v2399_v54, %v6190_v40  ;;  %v2401_v43 = vmul.f32 0.044715, %v2337_v35 }
 0x797   : > { %v2526_v13 = vmul.f32 0.7978846, %v2462_v22  ;;  %v2340_v58 = vmul.f32 %v2276_v4, %v6219_v36  ;;  %v2402_v31 = vmul.f32 0.044715, %v2338_v25  ;;  %v2275_v42 = vmul.f32 %v6238_v52, %v6238_v52 }
 0x798   : > { %v6243_v3 = vmul.f32 %v2716_v2, %v6120_v44  ;;  %v2528_v34 = vmul.f32 0.7978846, %v2464_v56  ;;  %v2527_v15 = vmul.f32 0.7978846, %v2463_v47  ;;  %v2465_v62 = vadd.f32 %v2401_v43, %v6205_v9  ;;  %v6787_v2 = vld [vmem:[#allocation65_spill] sm:$0xff]  ;;  %v6788_v43 = vld [vmem:[#allocation70_spill] sm:$0xff] }
 0x799   : > { %4641 = vtanh.f32 %v2526_v13  ;;  %v2404_v41 = vmul.f32 0.044715, %v2340_v58  ;;  %v2466_v54 = vadd.f32 %v2402_v31, %v6212_v7  ;;  %v2339_v35 = vmul.f32 %v2275_v42, %v6238_v52 }
 0x79a   : > { %6786 = vst [vmem:[#allocation27_spill] sm:$0xff] %v6243_v3  ;;  %4643 = vtanh.f32 %v2528_v34  ;;  %v2529_v44 = vmul.f32 0.7978846, %v2465_v62  ;;  %v6255_v56 = vadd.f32 %v6787_v2, %v5483_v14  ;;  %v2623_v13 = vadd.f32 1.0, %v5928_v29  ;;  %v6791_v2 = vld [vmem:[#allocation68_spill] sm:$0xff] }
 0x79b   : > { %4645 = vtanh.f32 %v2527_v15  ;;  %v2468_v4 = vadd.f32 %v2404_v41, %v6219_v36  ;;  %v2530_v25 = vmul.f32 0.7978846, %v2466_v54  ;;  %v2403_v20 = vmul.f32 0.044715, %v2339_v35 }
 0x79c   : > { %v2627_v47 = vadd.f32 1.0, %v5953_v1  ;;  %4647 = vtanh.f32 %v2529_v44  ;;  %v2277_v31 = vmul.f32 %v6255_v56, %v6255_v56  ;;  %v2625_v58 = vadd.f32 1.0, %v6788_v43  ;;  %v6789_v1 = vld [vmem:[#allocation44_spill] sm:$0xff] }
 0x79d   : > { %v2532_v34 = vmul.f32 0.7978846, %v2468_v4  ;;  %4649 = vtanh.f32 %v2530_v25  ;;  %v2467_v42 = vadd.f32 %v2403_v20, %v6238_v52  ;;  %v2687_v15 = vmul.f32 0.5, %v2623_v13  ;;  %v6790_v44 = vld [vmem:[#allocation52_spill] sm:$0xff]  ;;  %v6792_v25 = vld [vmem:[#allocation45_spill] sm:$0xff] }
 0x79e   : > { %v2691_v62 = vmul.f32 0.5, %v2627_v47  ;;  %v2341_v14 = vmul.f32 %v2277_v31, %v6255_v56  ;;  %v2629_v41 = vadd.f32 1.0, %v5960_v59  ;;  %v2689_v29 = vmul.f32 0.5, %v2625_v58 }
 0x79f   : > { %4651 = vtanh.f32 %v2532_v34  ;;  %v2531_v54 = vmul.f32 0.7978846, %v2467_v42  ;;  %v2751_v35 = vmul.f32 %v2687_v15, %v6789_v1  ;;  %v2622_v22 = vadd.f32 1.0, %v6791_v2  ;;  %v6793_v34 = vld [vmem:[#allocation69_spill] sm:$0xff]  ;;  %v6794_v42 = vld [vmem:[#allocation55_spill] sm:$0xff] }
 0x7a0   : > { %v2755_v4 = vmul.f32 %v2691_v62, %v6790_v44  ;;  %v2405_v11 = vmul.f32 0.044715, %v2341_v14  ;;  %v2693_v43 = vmul.f32 0.5, %v2629_v41  ;;  %v2753_v3 = vmul.f32 %v2689_v29, %v6792_v25  ;;  %v6795_v41 = vld [vmem:[#allocation41_spill] sm:$0xff]  ;;  %v6797_v25 = vld [vmem:[#allocation42_spill] sm:$0xff] }
 0x7a1   : > { %v2626_v20 = vadd.f32 1.0, %v5945_v45  ;;  %4653 = vtanh.f32 %v2531_v54  ;;  %v2686_v47 = vmul.f32 0.5, %v2622_v22  ;;  %v2624_v31 = vadd.f32 1.0, %v6793_v34 }
 0x7a2   : > { %v2803_v13 = vpack.c.bf16 %v2755_v4, %v2751_v35  ;;  %v2469_v58 = vadd.f32 %v2405_v11, %v6255_v56  ;;  %v2757_v15 = vmul.f32 %v2693_v43, %v6794_v42  ;;  %v2628_v1 = vadd.f32 1.0, %v5950_v33  ;;  %v6796_v11 = vld [vmem:[#allocation46_spill] sm:$0xff] }
 0x7a3   : > { %v6271_v59 = vpop.eup %4641  ;;  %v2690_v62 = vmul.f32 0.5, %v2626_v20  ;;  %v2750_v29 = vmul.f32 %v2686_v47, %v6795_v41  ;;  %v2688_v45 = vmul.f32 0.5, %v2624_v31  ;;  %v2631_v54 = vadd.f32 1.0, %v6007_v18  ;;  %v6798_v47 = vld [vmem:[#allocation51_spill] sm:$0xff] }
 0x7a4   : > { %v6276_v14 = vpop.eup %4643  ;;  %3138 = vmatprep.mubr.bf16.mxu1 %v2803_v13  ;;  %v2635_v22 = vadd.f32 1.0, %v6047_v12  ;;  %v2533_v44 = vmul.f32 0.7978846, %v2469_v58  ;;  %v2805_v4 = vpack.c.bf16 %v2757_v15, %v2753_v3  ;;  %v2692_v43 = vmul.f32 0.5, %v2628_v1  ;;  %v6799_v3 = vld [vmem:[#allocation66_spill] sm:$0xff] }
 0x7a5   : > { %v6281_v35 = vpop.eup %4645  ;;  %v2754_v2 = vmul.f32 %v2690_v62, %v6796_v11  ;;  %v2752_v20 = vmul.f32 %v2688_v45, %v6797_v25  ;;  %v2695_v33 = vmul.f32 0.5, %v2631_v54  ;;  %v2633_v13 = vadd.f32 1.0, %v6018_v8 }
 0x7a6   : > { %v2699_v34 = vmul.f32 0.5, %v2635_v22  ;;  %v6286_v42 = vpop.eup %4647  ;;  %4655 = vtanh.f32 %v2533_v44  ;;  %3235 = vmatprep.mubr.bf16.mxu0 %v2805_v4  ;;  %v2756_v12 = vmul.f32 %v2692_v43, %v6798_v47  ;;  %v2637_v31 = vadd.f32 1.0, %v6052_v53  ;;  %v6800_v53 = vld [vmem:[#allocation67_spill] sm:$0xff] }
 0x7a7   : > { %v2802_v18 = vpack.c.bf16 %v2754_v2, %v2750_v29  ;;  %v6290_v58 = vpop.eup %4649  ;;  %v2759_v15 = vmul.f32 %v2695_v33, %v6799_v3  ;;  %v2697_v1 = vmul.f32 0.5, %v2633_v13  ;;  %v2630_v41 = vadd.f32 1.0, %v5971_v6 }
 0x7a8   : > { %v2763_v62 = vmul.f32 %v2699_v34, %v5923_v37  ;;  %v2804_v8 = vpack.c.bf16 %v2756_v12, %v2752_v20  ;;  %v2701_v54 = vmul.f32 0.5, %v2637_v31  ;;  %v2634_v29 = vadd.f32 1.0, %v6034_v51  ;;  %v6801_v20 = vld [vmem:[#allocation56_spill] sm:$0xff] }
 0x7a9   : > { %v6295_v45 = vpop.eup %4651  ;;  %3139 = vmatmul.mubr.bf16.gmra.mrb[84].mxu1 %v2802_v18  ;;  %v2632_v22 = vadd.f32 1.0, %v5976_v38  ;;  %v2761_v4 = vmul.f32 %v2697_v1, %v6800_v53  ;;  %v2694_v11 = vmul.f32 0.5, %v2630_v41  ;;  %v2636_v2 = vadd.f32 1.0, %v6042_v57  ;;  %v6802_v57 = vld [vmem:[#allocation59_spill] sm:$0xff] }
 0x7aa   : > { %v2807_v44 = vpack.c.bf16 %v2763_v62, %v2759_v15  ;;  %3236 = vmatmul.mubr.bf16.gmra.mrb[100].mxu0 %v2804_v8  ;;  %v2765_v37 = vmul.f32 %v2701_v54, %v5935_v5  ;;  %v2698_v43 = vmul.f32 0.5, %v2634_v29  ;;  %v2639_v25 = vadd.f32 1.0, %v6104_v49 }
 0x7ab   : > { %v2696_v6 = vmul.f32 0.5, %v2632_v22  ;;  %v4654_v33 = vpop.eup %4653  ;;  %v2758_v34 = vmul.f32 %v2694_v11, %v6801_v20  ;;  %v2700_v51 = vmul.f32 0.5, %v2636_v2  ;;  %v2643_v38 = vadd.f32 1.0, %v6136_v50  ;;  %v6804_v11 = vld [vmem:[#allocation73_spill] sm:$0xff]  ;;  %v6805_v20 = vld [vmem:[#allocation72_spill] sm:$0xff] }
 0x7ac   : > { %3146 = vmatprep.mubr.bf16.mxu1 %v2807_v44  ;;  %v2641_v13 = vadd.f32 1.0, %v6111_v46  ;;  %v2809_v18 = vpack.c.bf16 %v2765_v37, %v2761_v4  ;;  %v2762_v47 = vmul.f32 %v2698_v43, %v5905_v63  ;;  %v2703_v31 = vmul.f32 0.5, %v2639_v25 }
 0x7ad   : > { %v2760_v12 = vmul.f32 %v2696_v6, %v6802_v57  ;;  %v2764_v5 = vmul.f32 %v2700_v51, %v5919_v0  ;;  %v2707_v3 = vmul.f32 0.5, %v2643_v38  ;;  %v2645_v49 = vadd.f32 1.0, %v6146_v21  ;;  %v6807_v51 = vld [vmem:[#allocation37_spill] sm:$0xff] }
 0x7ae   : > { %v2705_v15 = vmul.f32 0.5, %v2641_v13  ;;  %3243 = vmatprep.mubr.bf16.mxu0 %v2809_v18  ;;  %v2806_v62 = vpack.c.bf16 %v2762_v47, %v2758_v34  ;;  %v2767_v1 = vmul.f32 %v2703_v31, %v5983_v60  ;;  %v2638_v50 = vadd.f32 1.0, %v6076_v32  ;;  %v6806_v34 = vld [vmem:[#allocation74_spill] sm:$0xff] }
 0x7af   : > { %v2642_v46 = vadd.f32 1.0, %v6123_v30  ;;  %v2808_v41 = vpack.c.bf16 %v2764_v5, %v2760_v12  ;;  %v2771_v63 = vmul.f32 %v2707_v3, %v6015_v19  ;;  %v2709_v8 = vmul.f32 0.5, %v2645_v49  ;;  %v6803_v19 = vld [vmem:[#allocation71_spill] sm:$0xff] }
 0x7b0   : > { %v2769_v54 = vmul.f32 %v2705_v15, %v5987_v17  ;;  %v4656_v29 = vpop.eup %4655  ;;  %v2702_v0 = vmul.f32 0.5, %v2638_v50  ;;  %v2640_v21 = vadd.f32 1.0, %v6084_v24  ;;  %v2644_v44 = vadd.f32 1.0, %v6130_v27  ;;  %v6808_v3 = vld [vmem:[#allocation43_spill] sm:$0xff] }
 0x7b1   : > { %3147 = vmatmul.mubr.bf16.gmra.mrb[88].mxu1 %v2806_v62  ;;  %v2706_v22 = vmul.f32 0.5, %v2642_v46  ;;  %v2811_v53 = vpack.c.bf16 %v2771_v63, %v2767_v1  ;;  %v2773_v60 = vmul.f32 %v2709_v8, %v6024_v28  ;;  %v2647_v32 = vadd.f32 1.0, %v6192_v48 }
 0x7b2   : > { %v2651_v30 = vadd.f32 1.0, %v6221_v10  ;;  %3244 = vmatmul.mubr.bf16.gmra.mrb[104].mxu0 %v2808_v41  ;;  %v2766_v4 = vmul.f32 %v2702_v0, %v6803_v19  ;;  %v2704_v2 = vmul.f32 0.5, %v2640_v21  ;;  %v2708_v37 = vmul.f32 0.5, %v2644_v44 }
 0x7b3   : > { %v2770_v17 = vmul.f32 %v2706_v22, %v6804_v11  ;;  %3154 = vmatprep.mubr.bf16.mxu1 %v2811_v53  ;;  %v2813_v43 = vpack.c.bf16 %v2773_v60, %v2769_v54  ;;  %v2711_v6 = vmul.f32 0.5, %v2647_v32  ;;  %v2646_v27 = vadd.f32 1.0, %v6178_v61  ;;  %v6811_v32 = vld [vmem:[#allocation22_spill] sm:$0xff] }
 0x7b4   : > { %v2715_v24 = vmul.f32 0.5, %v2651_v30  ;;  %v2768_v28 = vmul.f32 %v2704_v2, %v6805_v20  ;;  %v2772_v48 = vmul.f32 %v2708_v37, %v6806_v34  ;;  %v2650_v10 = vadd.f32 1.0, %v6207_v16  ;;  %v6812_v30 = vld [vmem:[#allocation32_spill] sm:$0xff] }
 0x7b5   : > { %v2810_v25 = vpack.c.bf16 %v2770_v17, %v2766_v4  ;;  %3251 = vmatprep.mubr.bf16.mxu0 %v2813_v43  ;;  %v2775_v38 = vmul.f32 %v2711_v6, %v6807_v51  ;;  %v2710_v18 = vmul.f32 0.5, %v2646_v27  ;;  %v2655_v47 = vadd.f32 1.0, %v6281_v35  ;;  %v6813_v43 = vld [vmem:[#allocation27_spill] sm:$0xff] }
 0x7b6   : > { %v2779_v13 = vmul.f32 %v2715_v24, %v6128_v39  ;;  %v2812_v57 = vpack.c.bf16 %v2772_v48, %v2768_v28  ;;  %v2714_v12 = vmul.f32 0.5, %v2650_v10  ;;  %v2659_v31 = vadd.f32 1.0, %v4654_v33  ;;  %v6809_v33 = vld [vmem:[#allocation38_spill] sm:$0xff]  ;;  %v6814_v6 = vld [vmem:[#allocation23_spill] sm:$0xff] }
 0x7b7   : > { %v2654_v61 = vadd.f32 1.0, %v6271_v59  ;;  %v2774_v49 = vmul.f32 %v2710_v18, %v6808_v3  ;;  %v2719_v15 = vmul.f32 0.5, %v2655_v47  ;;  %v2658_v62 = vadd.f32 1.0, %v6290_v58  ;;  %v6810_v58 = vld [vmem:[#allocation26_spill] sm:$0xff] }
 0x7b8   : > { %v2815_v5 = vpack.c.bf16 %v2779_v13, %v2775_v38  ;;  %v2778_v16 = vmul.f32 %v2714_v12, %v6102_v23  ;;  %v2723_v1 = vmul.f32 0.5, %v2659_v31  ;;  %v2649_v39 = vadd.f32 1.0, %v6198_v55 }
 0x7b9   : > { %3155 = vmatmul.mubr.bf16.gmra.mrb[92].mxu1 %v2810_v25  ;;  %v2718_v50 = vmul.f32 0.5, %v2654_v61  ;;  %v2783_v35 = vmul.f32 %v2719_v15, %v6190_v40  ;;  %v2722_v46 = vmul.f32 0.5, %v2658_v62  ;;  %v2653_v41 = vadd.f32 1.0, %v6809_v33 }
 0x7ba   : > { %3162 = vmatprep.mubr.bf16.mxu1 %v2815_v5  ;;  %v2657_v59 = vadd.f32 1.0, %v6286_v42  ;;  %3252 = vmatmul.mubr.bf16.gmra.mrb[108].mxu0 %v2812_v57  ;;  %v2814_v63 = vpack.c.bf16 %v2778_v16, %v2774_v49  ;;  %v2787_v8 = vmul.f32 %v2723_v1, %v6238_v52  ;;  %v2713_v0 = vmul.f32 0.5, %v2649_v39 }
 0x7bb   : > { %v2782_v54 = vmul.f32 %v2718_v50, %v6810_v58  ;;  %v2786_v23 = vmul.f32 %v2722_v46, %v6212_v7  ;;  %v2717_v22 = vmul.f32 0.5, %v2653_v41  ;;  %v2661_v21 = vadd.f32 1.0, %v4656_v29 }
 0x7bc   : > { %v2721_v55 = vmul.f32 0.5, %v2657_v59  ;;  %v2819_v44 = vpack.c.bf16 %v2787_v8, %v2783_v35  ;;  %v2656_v40 = vadd.f32 1.0, %v6276_v14  ;;  %v2660_v53 = vadd.f32 1.0, %v6295_v45 }
 0x7bd   : > { %v2818_v60 = vpack.c.bf16 %v2786_v23, %v2782_v54  ;;  %v2777_v42 = vmul.f32 %v2713_v0, %v6811_v32  ;;  %v2781_v19 = vmul.f32 %v2717_v22, %v6812_v30  ;;  %v2725_v4 = vmul.f32 0.5, %v2661_v21 }
 0x7be   : > { %v2720_v52 = vmul.f32 0.5, %v2656_v40  ;;  %v2724_v11 = vmul.f32 0.5, %v2660_v53  ;;  %v2785_v7 = vmul.f32 %v2721_v55, %v6205_v9  ;;  %v6815_v24 = vpack.c.bf16 %v6813_v43, %v6814_v6  ;;  %v6352_v9 = vld [vmem:[%s4816_s18] sm:$0xff] }
 0x7bf   : > { %v2817_v17 = vpack.c.bf16 %v2781_v19, %v2777_v42  ;;  %v2789_v29 = vmul.f32 %v2725_v4, %v6255_v56  ;;  %v6816_v56 = vld [vmem:[#allocation3_spill] sm:$0xff] }
 0x7c0   : > { %v2784_v2 = vmul.f32 %v2720_v52, %v6183_v26  ;;  %v2788_v14 = vmul.f32 %v2724_v11, %v6219_v36  ;;  %v6817_v25 = vsub.s32 3, %v6816_v56 }
 0x7c1   : > { %3163 = vmatmul.mubr.bf16.gmra.mrb[96].mxu1 %v2814_v63  ;;  %v2821_v45 = vpack.c.bf16 %v2789_v29, %v2785_v7 }
 0x7c2   : > { %3170 = vmatprep.mubr.bf16.mxu1 %v2819_v44  ;;  %v2820_v37 = vpack.c.bf16 %v2788_v14, %v2784_v2  ;;  %v6357_v26 = vrot.slane %v6352_v9, %v6817_v25 }
 0x7c9   : > { %3171 = vmatmul.mubr.bf16.gmra.mrb[100].mxu1 %v2818_v60 }
 0x7ca   : > { %3259 = vmatprep.mubr.bf16.mxu1 %v2817_v17 }
 0x7d1   : > { %3260 = vmatmul.mubr.bf16.vlgmr.msra.gmra.mrb[104].mxu1 %v6815_v24 }
 0x7d2   : > { %3267 = vmatprep.mubr.bf16.mxu1 %v2821_v45 }
 0x7d9   : > { %3268 = vmatmul.mubr.bf16.gmra.mrb[108].mxu1 %v2820_v37 }
 0x83a   : > { %v4046_v27 = vpop.f32.mrb[72].mxu1 }
 0x83b   : > { %v4047_v36 = vpop.f32.mrb[73].mxu1 }
 0x83c   : > { %v4048_v20 = vadd.f32 %v4047_v36, %v4046_v27  ;;  %v4049_v28 = vpop.f32.mrb[74].mxu1 }
 0x83d   : > { %v4050_v34 = vpop.f32.mrb[75].mxu1 }
 0x83e   : > { %v4110_v48 = vpop.f32.mrb[88].mxu0  ;;  %v3117_v10 = vadd.f32 %v4048_v20, %v6357_v26  ;;  %v4051_v51 = vadd.f32 %v4050_v34, %v4049_v28 }
 0x83f   : > { %v4111_v38 = vpop.f32.mrb[89].mxu0 }
 0x840   : > { %v4112_v13 = vadd.f32 %v4111_v38, %v4110_v48  ;;  %v4113_v18 = vpop.f32.mrb[90].mxu0  ;;  %v3120_v47 = vadd.f32 %v4051_v51, %v6357_v26 }
 0x841   : > { %v4114_v57 = vpop.f32.mrb[91].mxu0 }
 0x842   : > { %v4115_v12 = vadd.f32 %v4114_v57, %v4113_v18  ;;  %v6361_v31 = vadd.f32 %v4112_v13, %v3117_v10 }
 0x844   : > { %3276 = vadd.xlane.f32.xlu0 %v6361_v31  ;;  %v6364_v61 = vadd.f32 %v4115_v12, %v3120_v47 }
 0x846   : > { %3278 = vadd.xlane.f32.xlu1 %v6364_v61 }
 0x850   : > { %v4052_v5 = vpop.f32.mrb[76].mxu1 }
 0x851   : > { %v4053_v3 = vpop.f32.mrb[77].mxu1 }
 0x852   : > { %v4116_v49 = vpop.f32.mrb[92].mxu0  ;;  %v4054_v15 = vadd.f32 %v4053_v3, %v4052_v5  ;;  %v4055_v62 = vpop.f32.mrb[78].mxu1 }
 0x853   : > { %v4117_v16 = vpop.f32.mrb[93].mxu0  ;;  %v4056_v1 = vpop.f32.mrb[79].mxu1 }
 0x854   : > { %v3125_v50 = vadd.f32 %v4054_v15, %v6357_v26  ;;  %v4118_v39 = vadd.f32 %v4117_v16, %v4116_v49  ;;  %v4119_v35 = vpop.f32.mrb[94].mxu0  ;;  %v4057_v46 = vadd.f32 %v4056_v1, %v4055_v62 }
 0x855   : > { %v4120_v33 = vpop.f32.mrb[95].mxu0 }
 0x856   : > { %v3128_v41 = vadd.f32 %v4057_v46, %v6357_v26  ;;  %v4121_v59 = vadd.f32 %v4120_v33, %v4119_v35  ;;  %v6369_v63 = vadd.f32 %v4118_v39, %v3125_v50 }
 0x858   : > { %3280 = vadd.xlane.f32.xlu0 %v6369_v63  ;;  %v6372_v8 = vadd.f32 %v4121_v59, %v3128_v41 }
 0x85a   : > { %3282 = vadd.xlane.f32.xlu1 %v6372_v8 }
 0x866   : > { %v4058_v58 = vpop.f32.mrb[80].mxu1 }
 0x867   : > { %v4122_v54 = vpop.f32.mrb[96].mxu0  ;;  %v4059_v0 = vpop.f32.mrb[81].mxu1 }
 0x868   : > { %v4060_v23 = vadd.f32 %v4059_v0, %v4058_v58  ;;  %v4123_v22 = vpop.f32.mrb[97].mxu0  ;;  %v4061_v21 = vpop.f32.mrb[82].mxu1 }
 0x869   : > { %v4124_v55 = vadd.f32 %v4123_v22, %v4122_v54  ;;  %v4125_v44 = vpop.f32.mrb[98].mxu0  ;;  %v4062_v40 = vpop.f32.mrb[83].mxu1 }
 0x86a   : > { %v3133_v53 = vadd.f32 %v4060_v23, %v6357_v26  ;;  %v4063_v60 = vadd.f32 %v4062_v40, %v4061_v21  ;;  %v4126_v32 = vpop.f32.mrb[99].mxu0 }
 0x86b   : > { %v4127_v42 = vadd.f32 %v4126_v32, %v4125_v44 }
 0x86c   : > { %v3136_v30 = vadd.f32 %v4063_v60, %v6357_v26  ;;  %v6377_v19 = vadd.f32 %v4124_v55, %v3133_v53 }
 0x86e   : > { %3284 = vadd.xlane.f32.xlu0 %v6377_v19  ;;  %v6380_v4 = vadd.f32 %v4127_v42, %v3136_v30 }
 0x870   : > { %3286 = vadd.xlane.f32.xlu1 %v6380_v4 }
 0x87c   : > { %v4064_v52 = vpop.f32.mrb[84].mxu1 }
 0x87d   : > { %v4065_v11 = vpop.f32.mrb[85].mxu1  ;;  %v4128_v17 = vpop.f32.mrb[100].mxu0 }
 0x87e   : > { %v4066_v7 = vadd.f32 %v4065_v11, %v4064_v52  ;;  %v4067_v29 = vpop.f32.mrb[86].mxu1  ;;  %v4129_v2 = vpop.f32.mrb[101].mxu0 }
 0x87f   : > { %v4068_v14 = vpop.f32.mrb[87].mxu1  ;;  %v4130_v37 = vadd.f32 %v4129_v2, %v4128_v17  ;;  %v4131_v43 = vpop.f32.mrb[102].mxu0 }
 0x880   : > { %v3141_v45 = vadd.f32 %v4066_v7, %v6357_v26  ;;  %v4069_v6 = vadd.f32 %v4068_v14, %v4067_v29  ;;  %v4132_v24 = vpop.f32.mrb[103].mxu0 }
 0x881   : > { %v4133_v25 = vadd.f32 %v4132_v24, %v4131_v43 }
 0x882   : > { %v3144_v27 = vadd.f32 %v4069_v6, %v6357_v26  ;;  %v6385_v36 = vadd.f32 %v4130_v37, %v3141_v45 }
 0x884   : > { %v4070_v20 = vpop.f32.mrb[88].mxu1  ;;  %3288 = vadd.xlane.f32.xlu0 %v6385_v36  ;;  %v6388_v28 = vadd.f32 %v4133_v25, %v3144_v27 }
 0x885   : > { %v4071_v34 = vpop.f32.mrb[89].mxu1  ;;  %v4134_v48 = vpop.f32.mrb[104].mxu0 }
 0x886   : > { %v4072_v10 = vadd.f32 %v4071_v34, %v4070_v20  ;;  %v4073_v51 = vpop.f32.mrb[90].mxu1  ;;  %3290 = vadd.xlane.f32.xlu1 %v6388_v28  ;;  %v4135_v38 = vpop.f32.mrb[105].mxu0 }
 0x887   : > { %v4074_v13 = vpop.f32.mrb[91].mxu1  ;;  %v4136_v47 = vadd.f32 %v4135_v38, %v4134_v48  ;;  %v4137_v57 = vpop.f32.mrb[106].mxu0 }
 0x888   : > { %v3149_v18 = vadd.f32 %v4072_v10, %v6357_v26  ;;  %v4075_v12 = vadd.f32 %v4074_v13, %v4073_v51  ;;  %v4138_v5 = vpop.f32.mrb[107].mxu0 }
 0x889   : > { %v4139_v49 = vadd.f32 %v4138_v5, %v4137_v57 }
 0x88a   : > { %v3152_v3 = vadd.f32 %v4075_v12, %v6357_v26  ;;  %v6393_v15 = vadd.f32 %v4136_v47, %v3149_v18 }
 0x88c   : > { %v4076_v62 = vpop.f32.mrb[92].mxu1  ;;  %3292 = vadd.xlane.f32.xlu0 %v6393_v15  ;;  %v6396_v16 = vadd.f32 %v4139_v49, %v3152_v3 }
 0x88d   : > { %v4077_v1 = vpop.f32.mrb[93].mxu1  ;;  %v4140_v50 = vpop.f32.mrb[108].mxu0 }
 0x88e   : > { %v4078_v39 = vadd.f32 %v4077_v1, %v4076_v62  ;;  %v4079_v35 = vpop.f32.mrb[94].mxu1  ;;  %3294 = vadd.xlane.f32.xlu1 %v6396_v16  ;;  %v4141_v46 = vpop.f32.mrb[109].mxu0 }
 0x88f   : > { %v4080_v33 = vpop.f32.mrb[95].mxu1  ;;  %v4142_v59 = vadd.f32 %v4141_v46, %v4140_v50  ;;  %v4143_v58 = vpop.f32.mrb[110].mxu0 }
 0x890   : > { %v3157_v41 = vadd.f32 %v4078_v39, %v6357_v26  ;;  %v4081_v54 = vadd.f32 %v4080_v33, %v4079_v35  ;;  %v4144_v0 = vpop.f32.mrb[111].mxu0 }
 0x891   : > { %v4145_v22 = vadd.f32 %v4144_v0, %v4143_v58 }
 0x892   : > { %v3160_v23 = vadd.f32 %v4081_v54, %v6357_v26  ;;  %v6401_v21 = vadd.f32 %v4142_v59, %v3157_v41 }
 0x894   : > { %v4082_v55 = vpop.f32.mrb[96].mxu1  ;;  %3296 = vadd.xlane.f32.xlu0 %v6401_v21  ;;  %v6404_v44 = vadd.f32 %v4145_v22, %v3160_v23 }
 0x895   : > { %v4083_v40 = vpop.f32.mrb[97].mxu1 }
 0x896   : > { %v4084_v53 = vadd.f32 %v4083_v40, %v4082_v55  ;;  %v4085_v60 = vpop.f32.mrb[98].mxu1  ;;  %3298 = vadd.xlane.f32.xlu1 %v6404_v44 }
 0x897   : > { %v4086_v32 = vpop.f32.mrb[99].mxu1 }
 0x898   : > { %v4087_v42 = vadd.f32 %v4086_v32, %v4085_v60  ;;  %v3165_v45 = vadd.f32 %v4084_v53, %v6357_v26 }
 0x89a   : > { %v3168_v24 = vadd.f32 %v4087_v42, %v6357_v26 }
 0x89c   : > { %v4088_v30 = vpop.f32.mrb[100].mxu1 }
 0x89d   : > { %v4089_v52 = vpop.f32.mrb[101].mxu1 }
 0x89e   : > { %v4090_v11 = vadd.f32 %v4089_v52, %v4088_v30  ;;  %v4091_v17 = vpop.f32.mrb[102].mxu1 }
 0x89f   : > { %v4092_v7 = vpop.f32.mrb[103].mxu1 }
 0x8a0   : > { %v4093_v29 = vadd.f32 %v4092_v7, %v4091_v17  ;;  %v3173_v10 = vadd.f32 %v4090_v11, %v6357_v26 }
 0x8a2   : > { %v3176_v18 = vadd.f32 %v4093_v29, %v6357_v26 }
 0x8a4   : > { %v4146_v2 = vpop.f32.mrb[104].mxu1 }
 0x8a5   : > { %v4147_v14 = vpop.f32.mrb[105].mxu1 }
 0x8a6   : > { %v4148_v37 = vadd.f32 %v4147_v14, %v4146_v2  ;;  %v4149_v43 = vpop.f32.mrb[106].mxu1 }
 0x8a7   : > { %v4150_v6 = vpop.f32.mrb[107].mxu1 }
 0x8a8   : > { %v4151_v27 = vadd.f32 %v4150_v6, %v4149_v43  ;;  %v6409_v25 = vadd.f32 %v4148_v37, %v3165_v45 }
 0x8aa   : > { %3300 = vadd.xlane.f32.xlu0 %v6409_v25  ;;  %v6412_v20 = vadd.f32 %v4151_v27, %v3168_v24 }
 0x8ac   : > { %v4152_v34 = vpop.f32.mrb[108].mxu1  ;;  %3302 = vadd.xlane.f32.xlu1 %v6412_v20 }
 0x8ad   : > { %v4153_v48 = vpop.f32.mrb[109].mxu1 }
 0x8ae   : > { %v4154_v51 = vadd.f32 %v4153_v48, %v4152_v34  ;;  %v4155_v38 = vpop.f32.mrb[110].mxu1 }
 0x8af   : > { %v4156_v13 = vpop.f32.mrb[111].mxu1 }
 0x8b0   : > { %v4157_v47 = vadd.f32 %v4156_v13, %v4155_v38  ;;  %v6417_v57 = vadd.f32 %v4154_v51, %v3173_v10 }
 0x8b2   : > { %3304 = vadd.xlane.f32.xlu0 %v6417_v57  ;;  %v6420_v12 = vadd.f32 %v4157_v47, %v3176_v18 }
 0x8b4   : > { %3306 = vadd.xlane.f32.xlu1 %v6420_v12 }
 0x8d1   : > { %v3277_v5 = vpop.xlane.xlu0 %3276 }
 0x8d2   : > { %v3308_v3 = vmul.f32 0.0078125, %v3277_v5 }
 0x8d3   : > { %v3279_v49 = vpop.xlane.xlu1 %3278 }
 0x8d4   : > { %v6424_v62 = vsub.f32 %v6361_v31, %v3308_v3  ;;  %v3309_v1 = vmul.f32 0.0078125, %v3279_v49 }
 0x8d6   : > { %v6427_v50 = vsub.f32 %v6364_v61, %v3309_v1  ;;  %v3340_v26 = vmul.f32 %v6424_v62, %v6424_v62 }
 0x8d8   : > { %3356 = vadd.xlane.f32.xlu0 %v3340_v26  ;;  %v3341_v39 = vmul.f32 %v6427_v50, %v6427_v50 }
 0x8da   : > { %3358 = vadd.xlane.f32.xlu1 %v3341_v39 }
 0x8e5   : > { %v3281_v35 = vpop.xlane.xlu0 %3280 }
 0x8e6   : > { %v3310_v46 = vmul.f32 0.0078125, %v3281_v35 }
 0x8e7   : > { %v3283_v33 = vpop.xlane.xlu1 %3282 }
 0x8e8   : > { %v6434_v41 = vsub.f32 %v6369_v63, %v3310_v46  ;;  %v3311_v31 = vmul.f32 0.0078125, %v3283_v33 }
 0x8ea   : > { %v6437_v59 = vsub.f32 %v6372_v8, %v3311_v31  ;;  %v3342_v61 = vmul.f32 %v6434_v41, %v6434_v41  ;;  %v3454_v31 = vsub.s32 4, %v6816_v56 }
 0x8ec   : > { %3360 = vadd.xlane.f32.xlu0 %v3342_v61  ;;  %v3343_v58 = vmul.f32 %v6437_v59, %v6437_v59  ;;  %v6506_v61 = vrot.slane %v6352_v9, %v3454_v31  ;;  %v6823_v31 = vld [vmem:[#allocation8_spill] sm:$0xff] }
 0x8ee   : > { %3362 = vadd.xlane.f32.xlu1 %v3343_v58 }
 0x8fb   : > { %v3285_v54 = vpop.xlane.xlu0 %3284 }
 0x8fc   : > { %v3312_v0 = vmul.f32 0.0078125, %v3285_v54 }
 0x8fd   : > { %v3287_v23 = vpop.xlane.xlu1 %3286 }
 0x8fe   : > { %v6444_v22 = vsub.f32 %v6377_v19, %v3312_v0  ;;  %v3313_v63 = vmul.f32 0.0078125, %v3287_v23 }
 0x900   : > { %v6447_v55 = vsub.f32 %v6380_v4, %v3313_v63  ;;  %v3344_v8 = vmul.f32 %v6444_v22, %v6444_v22 }
 0x902   : > { %3364 = vadd.xlane.f32.xlu0 %v3344_v8  ;;  %v3345_v40 = vmul.f32 %v6447_v55, %v6447_v55 }
 0x904   : > { %3366 = vadd.xlane.f32.xlu1 %v3345_v40 }
 0x911   : > { %v3289_v53 = vpop.xlane.xlu0 %3288 }
 0x912   : > { %v3314_v60 = vmul.f32 0.0078125, %v3289_v53 }
 0x913   : > { %v3291_v32 = vpop.xlane.xlu1 %3290 }
 0x914   : > { %v6454_v42 = vsub.f32 %v6385_v36, %v3314_v60  ;;  %v3315_v19 = vmul.f32 0.0078125, %v3291_v32 }
 0x916   : > { %v6457_v30 = vsub.f32 %v6388_v28, %v3315_v19  ;;  %v3346_v4 = vmul.f32 %v6454_v42, %v6454_v42 }
 0x918   : > { %3368 = vadd.xlane.f32.xlu0 %v3346_v4  ;;  %v3347_v52 = vmul.f32 %v6457_v30, %v6457_v30 }
 0x919   : > { %v3293_v11 = vpop.xlane.xlu0 %3292 }
 0x91a   : > { %v3316_v17 = vmul.f32 0.0078125, %v3293_v11  ;;  %3370 = vadd.xlane.f32.xlu1 %v3347_v52 }
 0x91b   : > { %v3295_v7 = vpop.xlane.xlu1 %3294 }
 0x91c   : > { %v6464_v29 = vsub.f32 %v6393_v15, %v3316_v17  ;;  %v3317_v36 = vmul.f32 0.0078125, %v3295_v7 }
 0x91e   : > { %v6467_v2 = vsub.f32 %v6396_v16, %v3317_v36  ;;  %v3348_v28 = vmul.f32 %v6464_v29, %v6464_v29 }
 0x920   : > { %3372 = vadd.xlane.f32.xlu0 %v3348_v28  ;;  %v3349_v14 = vmul.f32 %v6467_v2, %v6467_v2 }
 0x921   : > { %v3297_v45 = vpop.xlane.xlu0 %3296 }
 0x922   : > { %v3318_v37 = vmul.f32 0.0078125, %v3297_v45  ;;  %3374 = vadd.xlane.f32.xlu1 %v3349_v14 }
 0x923   : > { %v3299_v43 = vpop.xlane.xlu1 %3298 }
 0x924   : > { %v6474_v6 = vsub.f32 %v6401_v21, %v3318_v37  ;;  %v3319_v15 = vmul.f32 0.0078125, %v3299_v43 }
 0x926   : > { %v6477_v24 = vsub.f32 %v6404_v44, %v3319_v15  ;;  %v3350_v16 = vmul.f32 %v6474_v6, %v6474_v6 }
 0x928   : > { %3376 = vadd.xlane.f32.xlu0 %v3350_v16  ;;  %v3351_v27 = vmul.f32 %v6477_v24, %v6477_v24  ;;  %v6820_v16 = vld [vmem:[#allocation7_spill] sm:$0xff] }
 0x92a   : > { %3378 = vadd.xlane.f32.xlu1 %v3351_v27 }
 0x937   : > { %v3301_v34 = vpop.xlane.xlu0 %3300 }
 0x938   : > { %v3320_v48 = vmul.f32 0.0078125, %v3301_v34 }
 0x939   : > { %v3303_v10 = vpop.xlane.xlu1 %3302 }
 0x93a   : > { %v6484_v51 = vsub.f32 %v6409_v25, %v3320_v48  ;;  %v3321_v21 = vmul.f32 0.0078125, %v3303_v10 }
 0x93c   : > { %v6487_v38 = vsub.f32 %v6412_v20, %v3321_v21  ;;  %v3352_v44 = vmul.f32 %v6484_v51, %v6484_v51  ;;  %v6821_v21 = vld [vmem:[#allocation6_spill] sm:$0xff] }
 0x93e   : > { %3380 = vadd.xlane.f32.xlu0 %v3352_v44  ;;  %v3353_v13 = vmul.f32 %v6487_v38, %v6487_v38 }
 0x93f   : > { %v3305_v18 = vpop.xlane.xlu0 %3304 }
 0x940   : > { %v3322_v47 = vmul.f32 0.0078125, %v3305_v18  ;;  %3382 = vadd.xlane.f32.xlu1 %v3353_v13 }
 0x941   : > { %v3307_v5 = vpop.xlane.xlu1 %3306 }
 0x942   : > { %v6494_v3 = vsub.f32 %v6417_v57, %v3322_v47  ;;  %v3323_v25 = vmul.f32 0.0078125, %v3307_v5 }
 0x944   : > { %v6497_v49 = vsub.f32 %v6420_v12, %v3323_v25  ;;  %v3354_v20 = vmul.f32 %v6494_v3, %v6494_v3  ;;  %v3474_v12 = vsub.s32 5, %v6816_v56  ;;  %v6818_v56 = vld [vmem:[#allocation4_spill] sm:$0xff] }
 0x946   : > { %3384 = vadd.xlane.f32.xlu0 %v3354_v20  ;;  %v3355_v1 = vmul.f32 %v6497_v49, %v6497_v49  ;;  %v6509_v54 = vrot.slane %v6352_v9, %v3474_v12  ;;  %v6819_v9 = vld [vmem:[#allocation5_spill] sm:$0xff] }
 0x948   : > { %3386 = vadd.xlane.f32.xlu1 %v3355_v1 }
 0x965   : > { %v3357_v26 = vpop.xlane.xlu0 %3356 }
 0x966   : > { %v3388_v39 = vmul.f32 0.0078125, %v3357_v26 }
 0x967   : > { %v3359_v35 = vpop.xlane.xlu1 %3358 }
 0x968   : > { %v3404_v46 = vadd.f32 1e-05, %v3388_v39  ;;  %v3389_v33 = vmul.f32 0.0078125, %v3359_v35  ;;  %v6822_v39 = vld [vmem:[#allocation9_spill] sm:$0xff] }
 0x96a   : > { %4657 = vrsqrt.f32 %v3404_v46  ;;  %v3405_v57 = vadd.f32 1e-05, %v3389_v33 }
 0x96c   : > { %4659 = vrsqrt.f32 %v3405_v57 }
 0x974   : > { %v4658_v58 = vpop.eup %4657 }
 0x975   : > { %v3436_v0 = vmul.f32 %v4658_v58, %v6424_v62 }
 0x976   : > { %v4660_v23 = vpop.eup %4659 }
 0x977   : > { %v3456_v63 = vmul.f32 %v6506_v61, %v3436_v0  ;;  %v3437_v8 = vmul.f32 %v4660_v23, %v6427_v50 }
 0x979   : > { %v3476_v40 = vadd.f32 %v6509_v54, %v3456_v63  ;;  %v3457_v53 = vmul.f32 %v6506_v61, %v3437_v8  ;;  %v3361_v60 = vpop.xlane.xlu0 %3360 }
 0x97a   : > { %v3390_v4 = vmul.f32 0.0078125, %v3361_v60 }
 0x97b   : > { %v3492_v32 = vadd.f32 %v3476_v40, %v6818_v56  ;;  %v3477_v19 = vadd.f32 %v6509_v54, %v3457_v53  ;;  %v3363_v52 = vpop.xlane.xlu1 %3362 }
 0x97c   : > { %v3406_v62 = vadd.f32 1e-05, %v3390_v4  ;;  %v3391_v17 = vmul.f32 0.0078125, %v3363_v52 }
 0x97d   : > { %3508 = vst [vmem:[#allocation2] sm:$0xff] %v3492_v32  ;;  %v3493_v11 = vadd.f32 %v3477_v19, %v6819_v9 }
 0x97e   : > { %4661 = vrsqrt.f32 %v3406_v62  ;;  %v3407_v7 = vadd.f32 1e-05, %v3391_v17 }
 0x97f   : > { %3509 = vst [vmem:[#allocation2 + $0x8] sm:$0xff] %v3493_v11 }
 0x980   : > { %4663 = vrsqrt.f32 %v3407_v7 }
 0x988   : > { %v4662_v50 = vpop.eup %4661 }
 0x989   : > { %v3438_v36 = vmul.f32 %v4662_v50, %v6434_v41 }
 0x98a   : > { %v4664_v28 = vpop.eup %4663 }
 0x98b   : > { %v3458_v14 = vmul.f32 %v6506_v61, %v3438_v36  ;;  %v3439_v45 = vmul.f32 %v4664_v28, %v6437_v59 }
 0x98d   : > { %v3478_v37 = vadd.f32 %v6509_v54, %v3458_v14  ;;  %v3459_v43 = vmul.f32 %v6506_v61, %v3439_v45  ;;  %v6824_v14 = vld [vmem:[#allocation11_spill] sm:$0xff] }
 0x98f   : > { %v3365_v15 = vpop.xlane.xlu0 %3364  ;;  %v3494_v27 = vadd.f32 %v3478_v37, %v6820_v16  ;;  %v3479_v34 = vadd.f32 %v6509_v54, %v3459_v43  ;;  %v6825_v43 = vld [vmem:[#allocation10_spill] sm:$0xff] }
 0x990   : > { %v3392_v48 = vmul.f32 0.0078125, %v3365_v15 }
 0x991   : > { %v3367_v10 = vpop.xlane.xlu1 %3366  ;;  %3510 = vst [vmem:[#allocation2 + $0x10] sm:$0xff] %v3494_v27  ;;  %v3495_v44 = vadd.f32 %v3479_v34, %v6821_v21  ;;  %v6826_v21 = vld [vmem:[#allocation13_spill] sm:$0xff] }
 0x992   : > { %v3408_v41 = vadd.f32 1e-05, %v3392_v48  ;;  %v3393_v13 = vmul.f32 0.0078125, %v3367_v10 }
 0x993   : > { %3511 = vst [vmem:[#allocation2 + $0x18] sm:$0xff] %v3495_v44 }
 0x994   : > { %4665 = vrsqrt.f32 %v3408_v41  ;;  %v3409_v18 = vadd.f32 1e-05, %v3393_v13 }
 0x996   : > { %4667 = vrsqrt.f32 %v3409_v18  ;;  %v6827_v18 = vld [vmem:[#allocation12_spill] sm:$0xff] }
 0x99e   : > { %v4666_v59 = vpop.eup %4665 }
 0x99f   : > { %v3440_v47 = vmul.f32 %v4666_v59, %v6444_v22 }
 0x9a0   : > { %v4668_v5 = vpop.eup %4667 }
 0x9a1   : > { %v3460_v25 = vmul.f32 %v6506_v61, %v3440_v47  ;;  %v3441_v20 = vmul.f32 %v4668_v5, %v6447_v55 }
 0x9a3   : > { %v3480_v1 = vadd.f32 %v6509_v54, %v3460_v25  ;;  %v3461_v26 = vmul.f32 %v6506_v61, %v3441_v20 }
 0x9a5   : > { %v3496_v35 = vadd.f32 %v3480_v1, %v6822_v39  ;;  %v3481_v46 = vadd.f32 %v6509_v54, %v3461_v26  ;;  %v3369_v33 = vpop.xlane.xlu0 %3368  ;;  %v6828_v1 = vld [vmem:[#allocation15_spill] sm:$0xff] }
 0x9a6   : > { %v3394_v57 = vmul.f32 0.0078125, %v3369_v33  ;;  %v6829_v33 = vld [vmem:[#allocation14_spill] sm:$0xff] }
 0x9a7   : > { %3512 = vst [vmem:[#allocation2 + $0x20] sm:$0xff] %v3496_v35  ;;  %v3497_v12 = vadd.f32 %v3481_v46, %v6823_v31  ;;  %v3371_v58 = vpop.xlane.xlu1 %3370 }
 0x9a8   : > { %v3410_v22 = vadd.f32 1e-05, %v3394_v57  ;;  %v3395_v0 = vmul.f32 0.0078125, %v3371_v58 }
 0x9a9   : > { %3513 = vst [vmem:[#allocation2 + $0x28] sm:$0xff] %v3497_v12 }
 0x9aa   : > { %4669 = vrsqrt.f32 %v3410_v22  ;;  %v3411_v23 = vadd.f32 1e-05, %v3395_v0 }
 0x9ac   : > { %4671 = vrsqrt.f32 %v3411_v23 }
 0x9ad   : > { %v3373_v55 = vpop.xlane.xlu0 %3372 }
 0x9ae   : > { %v3396_v63 = vmul.f32 0.0078125, %v3373_v55 }
 0x9af   : > { %v3375_v8 = vpop.xlane.xlu1 %3374 }
 0x9b0   : > { %v3412_v40 = vadd.f32 1e-05, %v3396_v63  ;;  %v3397_v53 = vmul.f32 0.0078125, %v3375_v8 }
 0x9b2   : > { %4673 = vrsqrt.f32 %v3412_v40  ;;  %v3413_v60 = vadd.f32 1e-05, %v3397_v53 }
 0x9b4   : > { %v4670_v56 = vpop.eup %4669  ;;  %4675 = vrsqrt.f32 %v3413_v60 }
 0x9b5   : > { %v3442_v32 = vmul.f32 %v4670_v56, %v6454_v42  ;;  %v3377_v19 = vpop.xlane.xlu0 %3376 }
 0x9b6   : > { %v4672_v4 = vpop.eup %4671  ;;  %v3398_v52 = vmul.f32 0.0078125, %v3377_v19 }
 0x9b7   : > { %v3462_v9 = vmul.f32 %v6506_v61, %v3442_v32  ;;  %v3443_v11 = vmul.f32 %v4672_v4, %v6457_v30  ;;  %v3379_v62 = vpop.xlane.xlu1 %3378  ;;  %v6830_v4 = vld [vmem:[#allocation17_spill] sm:$0xff] }
 0x9b8   : > { %v3414_v17 = vadd.f32 1e-05, %v3398_v52  ;;  %v3399_v7 = vmul.f32 0.0078125, %v3379_v62  ;;  %v6831_v62 = vld [vmem:[#allocation16_spill] sm:$0xff] }
 0x9b9   : > { %v3482_v50 = vadd.f32 %v6509_v54, %v3462_v9  ;;  %v3463_v36 = vmul.f32 %v6506_v61, %v3443_v11 }
 0x9ba   : > { %4677 = vrsqrt.f32 %v3414_v17  ;;  %v3415_v28 = vadd.f32 1e-05, %v3399_v7 }
 0x9bb   : > { %v3498_v45 = vadd.f32 %v3482_v50, %v6824_v14  ;;  %v3483_v42 = vadd.f32 %v6509_v54, %v3463_v36  ;;  %v6832_v14 = vld [vmem:[#allocation19_spill] sm:$0xff] }
 0x9bc   : > { %v4674_v37 = vpop.eup %4673  ;;  %4679 = vrsqrt.f32 %v3415_v28 }
 0x9bd   : > { %3514 = vst [vmem:[#allocation2 + $0x30] sm:$0xff] %v3498_v45  ;;  %v3499_v15 = vadd.f32 %v3483_v42, %v6825_v43  ;;  %v3444_v30 = vmul.f32 %v4674_v37, %v6464_v29  ;;  %v6833_v37 = vld [vmem:[#allocation18_spill] sm:$0xff] }
 0x9be   : > { %v4676_v16 = vpop.eup %4675 }
 0x9bf   : > { %3515 = vst [vmem:[#allocation2 + $0x38] sm:$0xff] %v3499_v15  ;;  %v3464_v27 = vmul.f32 %v6506_v61, %v3444_v30  ;;  %v3445_v34 = vmul.f32 %v4676_v16, %v6467_v2  ;;  %v3529_v15 = vld [vmem:[#allocation2 + $0x8] sm:$0xff] (!%p3842_p5)  ;;  %v3530_v30 = vld [vmem:[#allocation2 + $0x10] sm:$0xff] (!%p3842_p5) }
 0x9c1   : > { %v3484_v48 = vadd.f32 %v6509_v54, %v3464_v27  ;;  %v3465_v10 = vmul.f32 %v6506_v61, %v3445_v34  ;;  %v3532_v27 = vld [vmem:[#allocation2 + $0x20] sm:$0xff] (!%p3842_p5)  ;;  %v3533_v34 = vld [vmem:[#allocation2 + $0x28] sm:$0xff] (!%p3842_p5) }
 0x9c3   : > { %v3500_v44 = vadd.f32 %v3484_v48, %v6826_v21  ;;  %v3485_v41 = vadd.f32 %v6509_v54, %v3465_v10 }
 0x9c4   : > { %v4678_v13 = vpop.eup %4677  ;;  %v3534_v10 = vld [vmem:[#allocation2 + $0x30] sm:$0xff] (!%p3842_p5) }
 0x9c5   : > { %3516 = vst [vmem:[#allocation2 + $0x40] sm:$0xff] %v3500_v44  ;;  %v3501_v59 = vadd.f32 %v3485_v41, %v6827_v18  ;;  %v3446_v29 = vmul.f32 %v4678_v13, %v6474_v6 }
 0x9c6   : > { %v4680_v47 = vpop.eup %4679  ;;  %v3535_v21 = vld [vmem:[#allocation2 + $0x38] sm:$0xff] (!%p3842_p5) }
 0x9c7   : > { %3517 = vst [vmem:[#allocation2 + $0x48] sm:$0xff] %v3501_v59  ;;  %v3466_v5 = vmul.f32 %v6506_v61, %v3446_v29  ;;  %v3447_v2 = vmul.f32 %v4680_v47, %v6477_v24 }
 0x9c9   : > { %v3486_v25 = vadd.f32 %v6509_v54, %v3466_v5  ;;  %v3467_v20 = vmul.f32 %v6506_v61, %v3447_v2 }
 0x9cb   : > { %v3502_v26 = vadd.f32 %v3486_v25, %v6828_v1  ;;  %v3487_v39 = vadd.f32 %v6509_v54, %v3467_v20  ;;  %v3381_v35 = vpop.xlane.xlu0 %3380 }
 0x9cc   : > { %v3400_v46 = vmul.f32 0.0078125, %v3381_v35  ;;  %v3536_v44 = vld [vmem:[#allocation2 + $0x40] sm:$0xff] (!%p3842_p5) }
 0x9cd   : > { %3518 = vst [vmem:[#allocation2 + $0x50] sm:$0xff] %v3502_v26  ;;  %v3503_v57 = vadd.f32 %v3487_v39, %v6829_v33  ;;  %v3383_v6 = vpop.xlane.xlu1 %3382 }
 0x9ce   : > { %v3416_v31 = vadd.f32 1e-05, %v3400_v46  ;;  %v3401_v12 = vmul.f32 0.0078125, %v3383_v6  ;;  %v3537_v41 = vld [vmem:[#allocation2 + $0x48] sm:$0xff] (!%p3842_p5) }
 0x9cf   : > { %3519 = vst [vmem:[#allocation2 + $0x58] sm:$0xff] %v3503_v57  ;;  %v3935_v59 = vpack.c.bf16 (!%p3842_p5), %v3537_v41, %v3536_v44 }
 0x9d0   : > { %4681 = vrsqrt.f32 %v3416_v31  ;;  %v3417_v58 = vadd.f32 1e-05, %v3401_v12 }
 0x9d1   : > { %3962 = vst [vmem:[%s6611_s8 + $0x20] sm:$0xff] (!%p3842_p5), %v3935_v59  }
 0x9d2   : > { %4683 = vrsqrt.f32 %v3417_v58 }
 0x9d3   : > { %v3385_v24 = vpop.xlane.xlu0 %3384 }
 0x9d4   : > { %v3402_v22 = vmul.f32 0.0078125, %v3385_v24  ;;  %v3538_v13 = vld [vmem:[#allocation2 + $0x50] sm:$0xff] (!%p3842_p5) }
 0x9d5   : > { %v3387_v0 = vpop.xlane.xlu1 %3386 }
 0x9d6   : > { %v3418_v23 = vadd.f32 1e-05, %v3402_v22  ;;  %v3403_v55 = vmul.f32 0.0078125, %v3387_v0  ;;  %v3539_v18 = vld [vmem:[#allocation2 + $0x58] sm:$0xff] (!%p3842_p5) }
 0x9d7   : > { %v3940_v29 = vpack.c.bf16 (!%p3842_p5), %v3539_v18, %v3538_v13 }
 0x9d8   : > { %4685 = vrsqrt.f32 %v3418_v23  ;;  %v3419_v63 = vadd.f32 1e-05, %v3403_v55 }
 0x9d9   : > { %3963 = vst [vmem:[%s6611_s8 + $0x28] sm:$0xff] (!%p3842_p5), %v3940_v29  }
 0x9da   : > { %v4682_v8 = vpop.eup %4681  ;;  %4687 = vrsqrt.f32 %v3419_v63 }
 0x9db   : > { %v3448_v40 = vmul.f32 %v4682_v8, %v6484_v51 }
 0x9dc   : > { %v4684_v53 = vpop.eup %4683 }
 0x9dd   : > { %v3468_v60 = vmul.f32 %v6506_v61, %v3448_v40  ;;  %v3449_v56 = vmul.f32 %v4684_v53, %v6487_v38 }
 0x9df   : > { %v3488_v32 = vadd.f32 %v6509_v54, %v3468_v60  ;;  %v3469_v19 = vmul.f32 %v6506_v61, %v3449_v56 }
 0x9e1   : > { %v3504_v52 = vadd.f32 %v3488_v32, %v6830_v4  ;;  %v3489_v9 = vadd.f32 %v6509_v54, %v3469_v19 }
 0x9e2   : > { %v4686_v11 = vpop.eup %4685 }
 0x9e3   : > { %3520 = vst [vmem:[#allocation2 + $0x60] sm:$0xff] %v3504_v52  ;;  %v3505_v17 = vadd.f32 %v3489_v9, %v6831_v62  ;;  %v3450_v7 = vmul.f32 %v4686_v11, %v6494_v3  ;;  %v3528_v3 = vld [vmem:[#allocation2] sm:$0xff] (!%p3842_p5) }
 0x9e4   : > { %v4688_v51 = vpop.eup %4687  ;;  %v3915_v16 = vpack.c.bf16 (!%p3842_p5), %v3529_v15, %v3528_v3 }
 0x9e5   : > { %3521 = vst [vmem:[#allocation2 + $0x68] sm:$0xff] %v3505_v17  ;;  %v3470_v50 = vmul.f32 %v6506_v61, %v3450_v7  ;;  %v3451_v38 = vmul.f32 %v4688_v51, %v6497_v49  ;;  %v3531_v49 = vld [vmem:[#allocation2 + $0x18] sm:$0xff] (!%p3842_p5) }
 0x9e6   : > { %v3920_v48 = vpack.c.bf16 (!%p3842_p5), %v3531_v49, %v3530_v30  ;;  %3916 = vst [vmem:[%s6611_s8] sm:$0xff] (!%p3842_p5), %v3915_v16  }
 0x9e7   : > { %v3490_v36 = vadd.f32 %v6509_v54, %v3470_v50  ;;  %v3471_v28 = vmul.f32 %v6506_v61, %v3451_v38  ;;  %3527 = sbr.rel (%p3842_p5) target bundleno = 2552 (0x9f8), region = 60  ;;  %v3925_v61 = vpack.c.bf16 (!%p3842_p5), %v3533_v34, %v3532_v27 }
 0x9e8   : > { %3959 = vst [vmem:[%s6611_s8 + $0x8] sm:$0xff] (!%p3842_p5), %v3920_v48  }
 0x9e9   : > { %v3506_v45 = vadd.f32 %v3490_v36, %v6832_v14  ;;  %v3491_v42 = vadd.f32 %v6509_v54, %v3471_v28  ;;  %v3930_v54 = vpack.c.bf16 (!%p3842_p5), %v3535_v21, %v3534_v10  ;;  %3960 = vst [vmem:[%s6611_s8 + $0x10] sm:$0xff] (!%p3842_p5), %v3925_v61  }
 0x9ea   : > { %v3540_v47 = vld [vmem:[#allocation2 + $0x60] sm:$0xff] (!%p3842_p5) }
 0x9eb   : > { %3522 = vst [vmem:[#allocation2 + $0x70] sm:$0xff] %v3506_v45  ;;  %v3507_v43 = vadd.f32 %v3491_v42, %v6833_v37  ;;  %3961 = vst [vmem:[%s6611_s8 + $0x18] sm:$0xff] (!%p3842_p5), %v3930_v54  }
 0x9ec   : > { %v3541_v5 = vld [vmem:[#allocation2 + $0x68] sm:$0xff] (!%p3842_p5) }
 0x9ed   : > { %3523 = vst [vmem:[#allocation2 + $0x78] sm:$0xff] %v3507_v43  ;;  %v3945_v25 = vpack.c.bf16 (!%p3842_p5), %v3541_v5, %v3540_v47 }
 0x9ef   : > { %3964 = vst [vmem:[%s6611_s8 + $0x30] sm:$0xff] %v3945_v25  }
 0x9f2   : > { %v3542_v2 = vld [vmem:[#allocation2 + $0x70] sm:$0xff] }
 0x9f4   : > { %v3543_v20 = vld [vmem:[#allocation2 + $0x78] sm:$0xff] }
 0x9f5   : > { %v3950_v1 = vpack.c.bf16 %v3543_v20, %v3542_v2 }
 0x9f7   : > { %3965 = vst [vmem:[%s6611_s8 + $0x38] sm:$0xff] %v3950_v1  }
 0x9f8 PF: > { %s18_s27 = sadd.s32 1, %s4723_s27  }
 0x9f9   : > { %p15_p6 = scmp.ge.s32.totalorder %s18_s27, 4  }
 0x9fb   :  { %17 = sbr.rel (!%p15_p6) target bundleno = 1 (0x1), region = 104 }

// kernel: _lambda_.7
= control target key start
LH: loop header
LB: loop body
LE: loop exit
PB: predicated region body
PF: predicated region fallthrough
CT: control target
= control target key end

     0   :  { %s5379_s27 = smov 0   ;;  %s6459_s0 = inlined_call_operand.vmem [shape: bf16[2,16,256], index: 0, kind: input, shape index: {}]   ;;  %s6460_s1 = inlined_call_operand.vmem [shape: bf16[2,256,768], index: 1, kind: input, shape index: {}]   ;;  %s6461_s2 = inlined_call_operand.vmem [shape: bf16[2,256,256], index: 2, kind: input, shape index: {}]   ;;  %s6462_s3 = inlined_call_operand.vmem [shape: bf16[2,256,1024], index: 3, kind: input, shape index: {}]   ;;  %s6463_s4 = inlined_call_operand.vmem [shape: bf16[2,1024,256], index: 4, kind: input, shape index: {}]   ;;  %s6464_s5 = inlined_call_operand.vmem [shape: f32[2,1,768], index: 5, kind: input, shape index: {}]   ;;  %s6465_s6 = inlined_call_operand.vmem [shape: f32[2,1,1024], index: 6, kind: input, shape index: {}]   ;;  %s6466_s7 = inlined_call_operand.vmem [shape: f32[2,8,256], index: 7, kind: input, shape index: {}]   ;;  %s6467_s8 = inlined_call_operand.vmem [shape: bf16[2,16,256], index: 8, kind: output, shape index: {}]  }
   0x1 LB: > { %s5385_s28 = sadd.s32 4294967295, %s5331_s27   ;;  %p4379_p0 = scmp.ge.s32.totalorder %s5331_s27, 1  ;;  %s5331_s27 = sphi %s5379_s27, %s18_s27  }
   0x2   : > { %p315_p1 = scmp.lt.s32.totalorder %s5331_s27, 3 }
   0x4   : > { %p316_p2 = pnand %p4379_p0, %p315_p1 }
   0x5   : > { %p372_p3 = scmp.lt.s32.totalorder (!%p316_p2), %s5385_s28, 1  ;;  %p4390_p4 = scmp.ne.s32.totalorder (!%p316_p2), %s5385_s28, 0 }
   0x6   : > { %319 = sbr.rel (%p316_p2) target bundleno = 2666 (0xa6a), region = 52 }
   0xd   : > { %s373_s29 = scalar_select %p372_p3, %s5385_s28, 1 }
   0xe   : > { %v410_v0 = vld [vmem:[%s6459_s0] sm:$0xff] (!%p4390_p4)  ;;  %v411_v1 = vld [vmem:[%s6459_s0 + $0x8] sm:$0xff] (!%p4390_p4)  ;;  %v412_v2 = vld [vmem:[%s6459_s0 + $0x10] sm:$0xff] (!%p4390_p4) }
   0xf   : > { %s4824_s30 = smul.u32 768, %s373_s29  ;;  %s4784_s9 = sshll.u32 %s373_s29, 8  ;;  %v414_v3 = vunpack.c.l.bf16 (!%p4390_p4), %v410_v0  ;;  %v415_v4 = vunpack.c.h.bf16 (!%p4390_p4), %v410_v0  ;;  %v416_v5 = vunpack.c.l.bf16 (!%p4390_p4), %v411_v1  ;;  %v417_v6 = vunpack.c.h.bf16 (!%p4390_p4), %v411_v1  ;;  %v413_v7 = vld [vmem:[%s6459_s0 + $0x18] sm:$0xff] (!%p4390_p4) }
  0x10   : > { %s5394_s12 = scalar_lea.vmem %s6461_s2, %s4784_s9  ;;  %s4785_s13 = sshll.u32 %s373_s29, 10  ;;  %v418_v8 = vunpack.c.l.bf16 (!%p4390_p4), %v412_v2  ;;  %v419_v9 = vunpack.c.h.bf16 (!%p4390_p4), %v412_v2  ;;  %v420_v10 = vunpack.c.l.bf16 (!%p4390_p4), %v413_v7  ;;  %v421_v11 = vunpack.c.h.bf16 (!%p4390_p4), %v413_v7 }
  0x11   : > { %s5399_s16 = scalar_lea.vmem %s6460_s1, %s4824_s30  ;;  %s5404_s19 = scalar_lea.vmem %s6462_s3, %s4785_s13  ;;  %422 = vst [vmem:[#allocation2] sm:$0xff] (!%p4390_p4), %v414_v3  ;;  %423 = vst [vmem:[#allocation2 + $0x8] sm:$0xff] (!%p4390_p4), %v415_v4 }
  0x12   : > { %s5409_s22 = scalar_lea.vmem %s6463_s4, %s4785_s13  ;;  %s4825_s23 = smul.u32 6, %s373_s29  ;;  %424 = vst [vmem:[#allocation2 + $0x10] sm:$0xff] (!%p4390_p4), %v416_v5  ;;  %425 = vst [vmem:[#allocation2 + $0x18] sm:$0xff] (!%p4390_p4), %v417_v6 }
  0x13   : > { %s4387_s24 = sshll.u32 %s373_s29, 3  ;;  %s4787_s25 = sshll.u32 %s373_s29, 4  ;;  %426 = vst [vmem:[#allocation2 + $0x20] sm:$0xff] (!%p4390_p4), %v418_v8  ;;  %427 = vst [vmem:[#allocation2 + $0x28] sm:$0xff] (!%p4390_p4), %v419_v9 }
  0x14   : > { %s5414_s10 = scalar_lea.vmem %s6464_s5, %s4825_s23  ;;  %s5419_s14 = scalar_lea.vmem %s6465_s6, %s4387_s24  ;;  %428 = vst [vmem:[#allocation2 + $0x30] sm:$0xff] (!%p4390_p4), %v420_v10  ;;  %429 = vst [vmem:[#allocation2 + $0x38] sm:$0xff] (!%p4390_p4), %v421_v11 }
  0x15   : > { %s5424_s18 = scalar_lea.vmem %s6466_s7, %s4787_s25  ;;  %409 = sbr.rel (%p4390_p4) target bundleno = 28 (0x1c), region = 56 }
  0x1c PF: > { %v4835_v12 = vld [vmem:[%s5399_s16 + $0x4] ss:$24 sps:$4 sm:$0xff]   ;;  %v4837_v13 = vld [vmem:[%s5399_s16] ss:$24 sps:$4 sm:$0xff]   ;;  %v4838_v14 = vld [vmem:[%s5399_s16 + $0x34] ss:$24 sps:$4 sm:$0xff]  }
  0x1d   : > { %1052 = vmatprep.subr.bf16.mxu1 %v4835_v12  ;;  %v4840_v15 = vld [vmem:[%s5399_s16 + $0x30] ss:$24 sps:$4 sm:$0xff]   ;;  %v4841_v16 = vld [vmem:[%s5399_s16 + $0x64] ss:$24 sps:$4 sm:$0xff]   ;;  %v4843_v17 = vld [vmem:[%s5399_s16 + $0x60] ss:$24 sps:$4 sm:$0xff]  }
  0x1e   : > { %1053 = vmatpush1.bf16.msra.mxu1 %v4837_v13  ;;  %v4844_v18 = vld [vmem:[%s5399_s16 + $0x94] ss:$24 sps:$4 sm:$0xff]   ;;  %v4846_v19 = vld [vmem:[%s5399_s16 + $0x90] ss:$24 sps:$4 sm:$0xff]   ;;  %v4847_v20 = vld [vmem:[%s5399_s16 + $0xc4] ss:$24 sps:$4 sm:$0xff]  }
  0x1f   : > { %1054 = vmatprep.subr.bf16.mxu1 %v4838_v14  ;;  %v4849_v21 = vld [vmem:[%s5399_s16 + $0xc0] ss:$24 sps:$4 sm:$0xff]   ;;  %v4850_v22 = vld [vmem:[%s5399_s16 + $0xf4] ss:$24 sps:$4 sm:$0xff]   ;;  %v4852_v23 = vld [vmem:[%s5399_s16 + $0xf0] ss:$24 sps:$4 sm:$0xff]  }
  0x20   : > { %v4853_v24 = vld [vmem:[%s5399_s16 + $0x124] ss:$24 sps:$4 sm:$0xff]   ;;  %v433_v25 = vld [vmem:[#allocation2 + $0x8] sm:$0xff]  ;;  %v4855_v28 = vld [vmem:[%s5399_s16 + $0x120] ss:$24 sps:$4 sm:$0xff]   ;;  %vm1305_vm0 = vcmask 130048  }
  0x21   : > { %v435_v26 = vld [vmem:[#allocation2 + $0x18] sm:$0xff]  ;;  %v4856_v29 = vld [vmem:[%s5399_s16 + $0x154] ss:$24 sps:$4 sm:$0xff]   ;;  %v4858_v30 = vld [vmem:[%s5399_s16 + $0x150] ss:$24 sps:$4 sm:$0xff]   ;;  %p4777_p5 = scmp.ne.s32.totalorder %s5385_s28, 1 }
  0x22   : > { %1055 = vmatpush1.bf16.msra.mxu1 %v4840_v15  ;;  %v5452_v27 = vpack.c.bf16 %v435_v26, %v433_v25  ;;  %v4859_v31 = vld [vmem:[%s5399_s16 + $0x184] ss:$24 sps:$4 sm:$0xff]   ;;  %v4861_v32 = vld [vmem:[%s5399_s16 + $0x180] ss:$24 sps:$4 sm:$0xff]   ;;  %v4862_v33 = vld [vmem:[%s5399_s16 + $0x1b4] ss:$24 sps:$4 sm:$0xff]  }
  0x23   : > { %1056 = vmatprep.subr.bf16.mxu1 %v4841_v16  ;;  %v4864_v34 = vld [vmem:[%s5399_s16 + $0x1b0] ss:$24 sps:$4 sm:$0xff]   ;;  %v4865_v35 = vld [vmem:[%s5399_s16 + $0x1e4] ss:$24 sps:$4 sm:$0xff]   ;;  %v4867_v36 = vld [vmem:[%s5399_s16 + $0x1e0] ss:$24 sps:$4 sm:$0xff]  }
  0x24   : > { %1084 = vmatprep.mubr.bf16.mxu1 %v5452_v27  ;;  %v4868_v37 = vld [vmem:[%s5399_s16 + $0x214] ss:$24 sps:$4 sm:$0xff]   ;;  %v4870_v38 = vld [vmem:[%s5399_s16 + $0x210] ss:$24 sps:$4 sm:$0xff]   ;;  %v4871_v39 = vld [vmem:[%s5399_s16 + $0x244] ss:$24 sps:$4 sm:$0xff]  }
  0x25   : > { %v4873_v40 = vld [vmem:[%s5399_s16 + $0x240] ss:$24 sps:$4 sm:$0xff]   ;;  %v4874_v41 = vld [vmem:[%s5399_s16 + $0x274] ss:$24 sps:$4 sm:$0xff]   ;;  %v4876_v42 = vld [vmem:[%s5399_s16 + $0x270] ss:$24 sps:$4 sm:$0xff]  }
  0x26   : > { %1057 = vmatpush1.bf16.msra.mxu1 %v4843_v17  ;;  %v4877_v43 = vld [vmem:[%s5399_s16 + $0x2a4] ss:$24 sps:$4 sm:$0xff]   ;;  %v4879_v44 = vld [vmem:[%s5399_s16 + $0x2a0] ss:$24 sps:$4 sm:$0xff]   ;;  %v4880_v45 = vld [vmem:[%s5399_s16 + $0x2d4] ss:$24 sps:$4 sm:$0xff]  }
  0x27   : > { %1058 = vmatprep.subr.bf16.mxu1 %v4844_v18  ;;  %v4882_v46 = vld [vmem:[%s5399_s16 + $0x2d0] ss:$24 sps:$4 sm:$0xff]   ;;  %v432_v47 = vld [vmem:[#allocation2] sm:$0xff]  ;;  %v439_v51 = vld [vmem:[#allocation2 + $0x38] sm:$0xff] }
  0x28   : > { %v434_v48 = vld [vmem:[#allocation2 + $0x10] sm:$0xff]  ;;  %v4885_v49 = vld [vmem:[%s5399_s16 + $0xc] ss:$24 sps:$4 sm:$0xff]   ;;  %v4883_v52 = vld [vmem:[%s5399_s16 + $0x8] ss:$24 sps:$4 sm:$0xff]  }
  0x29   : > { %v437_v50 = vld [vmem:[#allocation2 + $0x28] sm:$0xff]  ;;  %v5476_v53 = vpack.c.bf16 %v434_v48, %v432_v47  ;;  %v4888_v54 = vld [vmem:[%s5399_s16 + $0x3c] ss:$24 sps:$4 sm:$0xff]   ;;  %v4886_v56 = vld [vmem:[%s5399_s16 + $0x38] ss:$24 sps:$4 sm:$0xff]  }
  0x2a   : > { %1059 = vmatpush1.bf16.msra.mxu1 %v4846_v19  ;;  %v5479_v55 = vpack.c.bf16 %v439_v51, %v437_v50  ;;  %v436_v57 = vld [vmem:[#allocation2 + $0x20] sm:$0xff]  ;;  %v438_v58 = vld [vmem:[#allocation2 + $0x30] sm:$0xff] }
  0x2b   : > { %1060 = vmatprep.subr.bf16.mxu1 %v4847_v20  ;;  %v4891_v59 = vld [vmem:[%s5399_s16 + $0x6c] ss:$24 sps:$4 sm:$0xff]   ;;  %v4889_v60 = vld [vmem:[%s5399_s16 + $0x68] ss:$24 sps:$4 sm:$0xff]   ;;  %v4894_v61 = vld [vmem:[%s5399_s16 + $0x9c] ss:$24 sps:$4 sm:$0xff]   ;;  %v5487_v62 = vpack.c.bf16 %v438_v58, %v436_v57 }
  0x2c   : > { %v4892_v63 = vld [vmem:[%s5399_s16 + $0x98] ss:$24 sps:$4 sm:$0xff]   ;;  %v4897_v0 = vld [vmem:[%s5399_s16 + $0xcc] ss:$24 sps:$4 sm:$0xff]   ;;  %v4895_v1 = vld [vmem:[%s5399_s16 + $0xc8] ss:$24 sps:$4 sm:$0xff]  }
  0x2d   : > { %v4900_v2 = vld [vmem:[%s5399_s16 + $0xfc] ss:$24 sps:$4 sm:$0xff]   ;;  %v4898_v3 = vld [vmem:[%s5399_s16 + $0xf8] ss:$24 sps:$4 sm:$0xff]   ;;  %v4903_v4 = vld [vmem:[%s5399_s16 + $0x12c] ss:$24 sps:$4 sm:$0xff]  }
  0x2e   : > { %1061 = vmatpush1.bf16.msra.mxu1 %v4849_v21  ;;  %v4901_v5 = vld [vmem:[%s5399_s16 + $0x128] ss:$24 sps:$4 sm:$0xff]   ;;  %v4906_v6 = vld [vmem:[%s5399_s16 + $0x15c] ss:$24 sps:$4 sm:$0xff]   ;;  %v4904_v7 = vld [vmem:[%s5399_s16 + $0x158] ss:$24 sps:$4 sm:$0xff]  }
  0x2f   : > { %1062 = vmatprep.subr.bf16.mxu1 %v4850_v22  ;;  %v4909_v8 = vld [vmem:[%s5399_s16 + $0x18c] ss:$24 sps:$4 sm:$0xff]   ;;  %v4907_v9 = vld [vmem:[%s5399_s16 + $0x188] ss:$24 sps:$4 sm:$0xff]   ;;  %v4912_v10 = vld [vmem:[%s5399_s16 + $0x1bc] ss:$24 sps:$4 sm:$0xff]  }
  0x30   : > { %v4910_v11 = vld [vmem:[%s5399_s16 + $0x1b8] ss:$24 sps:$4 sm:$0xff]   ;;  %v4915_v12 = vld [vmem:[%s5399_s16 + $0x1ec] ss:$24 sps:$4 sm:$0xff]   ;;  %v4913_v13 = vld [vmem:[%s5399_s16 + $0x1e8] ss:$24 sps:$4 sm:$0xff]  }
  0x31   : > { %v4918_v14 = vld [vmem:[%s5399_s16 + $0x21c] ss:$24 sps:$4 sm:$0xff]   ;;  %v4916_v15 = vld [vmem:[%s5399_s16 + $0x218] ss:$24 sps:$4 sm:$0xff]   ;;  %v4921_v16 = vld [vmem:[%s5399_s16 + $0x24c] ss:$24 sps:$4 sm:$0xff]  }
  0x32   : > { %1063 = vmatpush1.bf16.msra.mxu1 %v4852_v23  ;;  %v4919_v17 = vld [vmem:[%s5399_s16 + $0x248] ss:$24 sps:$4 sm:$0xff]   ;;  %v4924_v18 = vld [vmem:[%s5399_s16 + $0x27c] ss:$24 sps:$4 sm:$0xff]   ;;  %v4922_v19 = vld [vmem:[%s5399_s16 + $0x278] ss:$24 sps:$4 sm:$0xff]  }
  0x33   : > { %1064 = vmatprep.subr.bf16.mxu1 %v4853_v24  ;;  %v4927_v20 = vld [vmem:[%s5399_s16 + $0x2ac] ss:$24 sps:$4 sm:$0xff]   ;;  %v4925_v21 = vld [vmem:[%s5399_s16 + $0x2a8] ss:$24 sps:$4 sm:$0xff]   ;;  %v4930_v22 = vld [vmem:[%s5399_s16 + $0x2dc] ss:$24 sps:$4 sm:$0xff]   ;;  %v542_v24 = vlaneseq }
  0x34   : > { %v4928_v23 = vld [vmem:[%s5399_s16 + $0x2d8] ss:$24 sps:$4 sm:$0xff]  }
  0x35   : > { %v5520_v25 = vshrl.u32 %v542_v24, 7  ;;  %v4948_v24 = vld [vmem:[%s5399_s16 + $0x104] ss:$24 sps:$4 sm:$0xff]  }
  0x36   : > { %1065 = vmatpush1.bf16.msra.mxu1 %v4855_v28  ;;  %v5526_v28 = vld [vmem:[%s5414_s10] sm:$0x3f] }
  0x37   : > { %1066 = vmatprep.subr.bf16.mxu1 %v4856_v29  ;;  %v5523_v26 = vsub.s32 0, %v5520_v25  ;;  %v5529_v29 = vsub.s32 1, %v5520_v25  ;;  %v5536_v51 = vsub.s32 2, %v5520_v25 }
  0x3a   : > { %1067 = vmatpush1.bf16.msra.mxu1 %v4858_v30  ;;  %v545_v30 = vrot.slane %v5526_v28, %v5523_v26 }
  0x3b   : > { %1068 = vmatprep.subr.bf16.mxu1 %v4859_v31 }
  0x3e   : > { %1069 = vmatpush1.bf16.msra.mxu1 %v4861_v32  ;;  %v549_v32 = vrot.slane %v5526_v28, %v5529_v29 }
  0x3f   : > { %1070 = vmatprep.subr.bf16.mxu1 %v4862_v33 }
  0x42   : > { %1071 = vmatpush1.bf16.msra.mxu1 %v4864_v34 }
  0x43   : > { %1072 = vmatprep.subr.bf16.mxu1 %v4865_v35 }
  0x46   : > { %1073 = vmatpush1.bf16.msra.mxu1 %v4867_v36 }
  0x47   : > { %1074 = vmatprep.subr.bf16.mxu1 %v4868_v37 }
  0x4a   : > { %1075 = vmatpush1.bf16.msra.mxu1 %v4870_v38 }
  0x4b   : > { %1076 = vmatprep.subr.bf16.mxu1 %v4871_v39 }
  0x4e   : > { %1077 = vmatpush1.bf16.msra.mxu1 %v4873_v40 }
  0x4f   : > { %1078 = vmatprep.subr.bf16.mxu1 %v4874_v41 }
  0x52   : > { %1079 = vmatpush1.bf16.msra.mxu1 %v4876_v42 }
  0x53   : > { %1080 = vmatprep.subr.bf16.mxu1 %v4877_v43 }
  0x56   : > { %1081 = vmatpush1.bf16.msra.mxu1 %v4879_v44 }
  0x57   : > { %1082 = vmatprep.subr.bf16.mxu1 %v4880_v45 }
  0x5a   : > { %1083 = vmatpush1.bf16.msra.mxu1 %v4882_v46 }
  0x5b   : > { %1105 = vmatprep.subr.bf16.mxu1 %v4885_v49 }
  0x5d   : > { %1085 = vmatmul.mubr.bf16.vlgmr.msra.gmra.mrb[0].mxu1 %v5476_v53 }
  0x5e   : > { %1106 = vmatpush1.bf16.msra.mxu1 %v4883_v52  ;;  %1094 = vmatprep.mubr.bf16.mxu1 %v5479_v55  ;;  %v5539_v52 = vsub.s32 3, %v5520_v25 }
  0x5f   : > { %1107 = vmatprep.subr.bf16.mxu1 %v4888_v54  ;;  %v553_v54 = vrot.slane %v5526_v28, %v5536_v51 }
  0x60   : > { %v557_v57 = vrot.slane %v5526_v28, %v5539_v52 }
  0x62   : > { %1108 = vmatpush1.bf16.msra.mxu1 %v4886_v56 }
  0x63   : > { %1109 = vmatprep.subr.bf16.mxu1 %v4891_v59 }
  0x65   : > { %1095 = vmatmul.mubr.bf16.gmra.mrb[4].mxu1 %v5487_v62 }
  0x66   : > { %1110 = vmatpush1.bf16.msra.mxu1 %v4889_v60  ;;  %1137 = vmatprep.mubr.bf16.mxu1 %v5452_v27 }
  0x67   : > { %1111 = vmatprep.subr.bf16.mxu1 %v4894_v61 }
  0x6a   : > { %1112 = vmatpush1.bf16.msra.mxu1 %v4892_v63 }
  0x6b   : > { %1113 = vmatprep.subr.bf16.mxu1 %v4897_v0 }
  0x6e   : > { %1114 = vmatpush1.bf16.msra.mxu1 %v4895_v1 }
  0x6f   : > { %1115 = vmatprep.subr.bf16.mxu1 %v4900_v2 }
  0x72   : > { %1116 = vmatpush1.bf16.msra.mxu1 %v4898_v3 }
  0x73   : > { %1117 = vmatprep.subr.bf16.mxu1 %v4903_v4 }
  0x76   : > { %1118 = vmatpush1.bf16.msra.mxu1 %v4901_v5 }
  0x77   : > { %1119 = vmatprep.subr.bf16.mxu1 %v4906_v6 }
  0x7a   : > { %1120 = vmatpush1.bf16.msra.mxu1 %v4904_v7 }
  0x7b   : > { %1121 = vmatprep.subr.bf16.mxu1 %v4909_v8 }
  0x7e   : > { %1122 = vmatpush1.bf16.msra.mxu1 %v4907_v9 }
  0x7f   : > { %1123 = vmatprep.subr.bf16.mxu1 %v4912_v10 }
  0x82   : > { %1124 = vmatpush1.bf16.msra.mxu1 %v4910_v11 }
  0x83   : > { %1125 = vmatprep.subr.bf16.mxu1 %v4915_v12 }
  0x86   : > { %1126 = vmatpush1.bf16.msra.mxu1 %v4913_v13 }
  0x87   : > { %1127 = vmatprep.subr.bf16.mxu1 %v4918_v14  ;;  %v4931_v14 = vld [vmem:[%s5399_s16 + $0x10] ss:$24 sps:$4 sm:$0xff]  }
  0x8a   : > { %1128 = vmatpush1.bf16.msra.mxu1 %v4916_v15  ;;  %v4933_v15 = vld [vmem:[%s5399_s16 + $0x14] ss:$24 sps:$4 sm:$0xff]  }
  0x8b   : > { %1129 = vmatprep.subr.bf16.mxu1 %v4921_v16  ;;  %v4936_v16 = vld [vmem:[%s5399_s16 + $0x44] ss:$24 sps:$4 sm:$0xff]  }
  0x8e   : > { %1130 = vmatpush1.bf16.msra.mxu1 %v4919_v17  ;;  %v4934_v17 = vld [vmem:[%s5399_s16 + $0x40] ss:$24 sps:$4 sm:$0xff]  }
  0x8f   : > { %1131 = vmatprep.subr.bf16.mxu1 %v4924_v18  ;;  %v4939_v18 = vld [vmem:[%s5399_s16 + $0x74] ss:$24 sps:$4 sm:$0xff]  }
  0x92   : > { %1132 = vmatpush1.bf16.msra.mxu1 %v4922_v19  ;;  %v4937_v19 = vld [vmem:[%s5399_s16 + $0x70] ss:$24 sps:$4 sm:$0xff]  }
  0x93   : > { %1133 = vmatprep.subr.bf16.mxu1 %v4927_v20  ;;  %v4942_v20 = vld [vmem:[%s5399_s16 + $0xa4] ss:$24 sps:$4 sm:$0xff]  }
  0x96   : > { %1134 = vmatpush1.bf16.msra.mxu1 %v4925_v21  ;;  %v4940_v21 = vld [vmem:[%s5399_s16 + $0xa0] ss:$24 sps:$4 sm:$0xff]  }
  0x97   : > { %1135 = vmatprep.subr.bf16.mxu1 %v4930_v22  ;;  %v4945_v22 = vld [vmem:[%s5399_s16 + $0xd4] ss:$24 sps:$4 sm:$0xff]  }
  0x9a   : > { %1136 = vmatpush1.bf16.msra.mxu1 %v4928_v23  ;;  %v4943_v23 = vld [vmem:[%s5399_s16 + $0xd0] ss:$24 sps:$4 sm:$0xff]  }
  0x9b   : > { %1158 = vmatprep.subr.bf16.mxu1 %v4933_v15 }
  0x9d   : > { %1138 = vmatmul.mubr.bf16.vlgmr.msra.gmra.mrb[8].mxu1 %v5476_v53 }
  0x9e   : > { %1147 = vmatprep.mubr.bf16.mxu1 %v5479_v55  ;;  %1159 = vmatpush1.bf16.msra.mxu1 %v4931_v14 }
  0x9f   : > { %1160 = vmatprep.subr.bf16.mxu1 %v4936_v16 }
  0xa2   : > { %1161 = vmatpush1.bf16.msra.mxu1 %v4934_v17 }
  0xa3   : > { %1162 = vmatprep.subr.bf16.mxu1 %v4939_v18 }
  0xa5   : > { %1148 = vmatmul.mubr.bf16.gmra.mrb[12].mxu1 %v5487_v62 }
  0xa6   : > { %1190 = vmatprep.mubr.bf16.mxu1 %v5452_v27  ;;  %1163 = vmatpush1.bf16.msra.mxu1 %v4937_v19 }
  0xa7   : > { %1164 = vmatprep.subr.bf16.mxu1 %v4942_v20 }
  0xaa   : > { %1165 = vmatpush1.bf16.msra.mxu1 %v4940_v21 }
  0xab   : > { %1166 = vmatprep.subr.bf16.mxu1 %v4945_v22 }
  0xae   : > { %1167 = vmatpush1.bf16.msra.mxu1 %v4943_v23 }
  0xaf   : > { %1168 = vmatprep.subr.bf16.mxu1 %v4948_v24 }
 0x130   : > { %v1086_v31 = vpop.f32.mrb[0].mxu1 }
 0x131   : > { %v1087_v33 = vadd.f32 %v1086_v31, %v545_v30  ;;  %v1088_v27 = vpop.f32.mrb[1].mxu1  ;;  %v4951_v31 = vld [vmem:[%s5399_s16 + $0x134] ss:$24 sps:$4 sm:$0xff]  }
 0x132   : > { %v1090_v34 = vpop.f32.mrb[2].mxu1  ;;  %v1089_v37 = vadd.f32 %v1088_v27, %v549_v32  ;;  %v4952_v27 = vld [vmem:[%s5399_s16 + $0x160] ss:$24 sps:$4 sm:$0xff]  }
 0x133   : > { %v1091_v35 = vadd.f32 %v1090_v34, %v545_v30  ;;  %v1092_v36 = vpop.f32.mrb[3].mxu1  ;;  %v4957_v34 = vld [vmem:[%s5399_s16 + $0x194] ss:$24 sps:$4 sm:$0xff]  }
 0x134   : > { %v1093_v38 = vadd.f32 %v1092_v36, %v549_v32  ;;  %v4960_v36 = vld [vmem:[%s5399_s16 + $0x1c4] ss:$24 sps:$4 sm:$0xff]  }
 0x135   : > { %v1211_v39 = vpack.c.bf16 %v1091_v35, %v1087_v33  ;;  %v4954_v33 = vld [vmem:[%s5399_s16 + $0x164] ss:$24 sps:$4 sm:$0xff]   ;;  %v4955_v35 = vld [vmem:[%s5399_s16 + $0x190] ss:$24 sps:$4 sm:$0xff]  }
 0x136   : > { %v1212_v40 = vpack.c.bf16 %v1093_v38, %v1089_v37  ;;  %v4958_v37 = vld [vmem:[%s5399_s16 + $0x1c0] ss:$24 sps:$4 sm:$0xff]   ;;  %v4963_v38 = vld [vmem:[%s5399_s16 + $0x1f4] ss:$24 sps:$4 sm:$0xff]  }
 0x138   : > { %1255 = vmatprep.mubr.bf16.mxu0 %v1212_v40  ;;  %v1096_v41 = vpop.f32.mrb[4].mxu1  ;;  %v4966_v40 = vld [vmem:[%s5399_s16 + $0x224] ss:$24 sps:$4 sm:$0xff]  }
 0x139   : > { %v1097_v42 = vadd.f32 %v1096_v41, %v545_v30  ;;  %v1098_v43 = vpop.f32.mrb[5].mxu1  ;;  %v4964_v41 = vld [vmem:[%s5399_s16 + $0x220] ss:$24 sps:$4 sm:$0xff]  }
 0x13a   : > { %v1099_v44 = vadd.f32 %v1098_v43, %v549_v32  ;;  %v1100_v45 = vpop.f32.mrb[6].mxu1  ;;  %v4967_v43 = vld [vmem:[%s5399_s16 + $0x250] ss:$24 sps:$4 sm:$0xff]  }
 0x13b   : > { %v1101_v46 = vadd.f32 %v1100_v45, %v545_v30  ;;  %v1102_v47 = vpop.f32.mrb[7].mxu1  ;;  %v4946_v30 = vld [vmem:[%s5399_s16 + $0x100] ss:$24 sps:$4 sm:$0xff]  }
 0x13c   : > { %v1103_v48 = vadd.f32 %v1102_v47, %v549_v32  ;;  %1169 = vmatpush1.bf16.msra.mxu1 %v4946_v30  ;;  %v4949_v32 = vld [vmem:[%s5399_s16 + $0x130] ss:$24 sps:$4 sm:$0xff]   ;;  %v4970_v45 = vld [vmem:[%s5399_s16 + $0x280] ss:$24 sps:$4 sm:$0xff]  }
 0x13d   : > { %v1213_v49 = vpack.c.bf16 %v1101_v46, %v1097_v42  ;;  %1170 = vmatprep.subr.bf16.mxu1 %v4951_v31  ;;  %v4969_v42 = vld [vmem:[%s5399_s16 + $0x254] ss:$24 sps:$4 sm:$0xff]   ;;  %v4973_v47 = vld [vmem:[%s5399_s16 + $0x2b0] ss:$24 sps:$4 sm:$0xff]  }
 0x13e   : > { %v1214_v50 = vpack.c.bf16 %v1103_v48, %v1099_v44  ;;  %v4972_v44 = vld [vmem:[%s5399_s16 + $0x284] ss:$24 sps:$4 sm:$0xff]   ;;  %v4975_v46 = vld [vmem:[%s5399_s16 + $0x2b4] ss:$24 sps:$4 sm:$0xff]  }
 0x13f   : > { %v4978_v48 = vld [vmem:[%s5399_s16 + $0x2e4] ss:$24 sps:$4 sm:$0xff]  }
 0x140   : > { %1171 = vmatpush1.bf16.msra.mxu1 %v4949_v32 }
 0x141   : > { %1172 = vmatprep.subr.bf16.mxu1 %v4954_v33 }
 0x144   : > { %1173 = vmatpush1.bf16.msra.mxu1 %v4952_v27 }
 0x145   : > { %1174 = vmatprep.subr.bf16.mxu1 %v4957_v34 }
 0x148   : > { %1175 = vmatpush1.bf16.msra.mxu1 %v4955_v35 }
 0x149   : > { %1176 = vmatprep.subr.bf16.mxu1 %v4960_v36 }
 0x14c   : > { %1177 = vmatpush1.bf16.msra.mxu1 %v4958_v37 }
 0x14d   : > { %1178 = vmatprep.subr.bf16.mxu1 %v4963_v38 }
 0x170   : > { %v1139_v56 = vpop.f32.mrb[8].mxu1 }
 0x171   : > { %v1141_v58 = vpop.f32.mrb[9].mxu1  ;;  %v1140_v60 = vadd.f32 %v1139_v56, %v553_v54 }
 0x172   : > { %v1143_v59 = vpop.f32.mrb[10].mxu1  ;;  %v1142_v0 = vadd.f32 %v1141_v58, %v557_v57 }
 0x173   : > { %v1144_v61 = vadd.f32 %v1143_v59, %v553_v54  ;;  %v1145_v63 = vpop.f32.mrb[11].mxu1 }
 0x174   : > { %v1146_v1 = vadd.f32 %v1145_v63, %v557_v57 }
 0x175   : > { %v1215_v2 = vpack.c.bf16 %v1144_v61, %v1140_v60 }
 0x176   : > { %v1216_v3 = vpack.c.bf16 %v1146_v1, %v1142_v0 }
 0x178   : > { %v1149_v4 = vpop.f32.mrb[12].mxu1  ;;  %1223 = vmatprep.subr.bf16.mxu0 %v1216_v3 }
 0x179   : > { %v1150_v5 = vadd.f32 %v1149_v4, %v553_v54  ;;  %v1151_v6 = vpop.f32.mrb[13].mxu1  ;;  %1224 = vmatpush1.bf16.xpose.msra.mxu0 %v1215_v2 }
 0x17a   : > { %v1152_v7 = vadd.f32 %v1151_v6, %v557_v57  ;;  %v1153_v8 = vpop.f32.mrb[14].mxu1 }
 0x17b   : > { %v1154_v9 = vadd.f32 %v1153_v8, %v553_v54  ;;  %v1155_v10 = vpop.f32.mrb[15].mxu1 }
 0x17c   : > { %v1156_v11 = vadd.f32 %v1155_v10, %v557_v57 }
 0x17d   : > { %v1217_v12 = vpack.c.bf16 %v1154_v9, %v1150_v5 }
 0x17e   : > { %v1218_v13 = vpack.c.bf16 %v1156_v11, %v1152_v7  ;;  %v5585_v11 = vsub.s32 4, %v5520_v25 }
 0x180   : > { %1256 = vmatmul.mubr.bf16.vlgmr.msra.gmra.mrb[0].mxu0 %v1211_v39  ;;  %1264 = vmatprep.subr.bf16.mxu0 %v1218_v13  ;;  %v4961_v39 = vld [vmem:[%s5399_s16 + $0x1f0] ss:$24 sps:$4 sm:$0xff]   ;;  %v561_v16 = vrot.slane %v5526_v28, %v5585_v11 }
 0x181   : > { %1265 = vmatpush1.bf16.xpose.msra.mxu0 %v1217_v12  ;;  %1296 = vmatprep.mubr.bf16.mxu0 %v1214_v50  ;;  %v5588_v12 = vsub.s32 5, %v5520_v25 }
 0x182   : > { %1179 = vmatpush1.bf16.msra.mxu1 %v4961_v39 }
 0x183   : > { %1180 = vmatprep.subr.bf16.mxu1 %v4966_v40  ;;  %v565_v17 = vrot.slane %v5526_v28, %v5588_v12 }
 0x186   : > { %1181 = vmatpush1.bf16.msra.mxu1 %v4964_v41  ;;  %v5333_v41 = vmov 0  }
 0x187   : > { %1182 = vmatprep.subr.bf16.mxu1 %v4969_v42 }
 0x188   : > { %1297 = vmatmul.mubr.bf16.vlgmr.msra.gmra.mrb[4].mxu0 %v1213_v49  ;;  %v4976_v49 = vld [vmem:[%s5399_s16 + $0x2e0] ss:$24 sps:$4 sm:$0xff]  }
 0x18a   : > { %1183 = vmatpush1.bf16.msra.mxu1 %v4967_v43 }
 0x18b   : > { %1184 = vmatprep.subr.bf16.mxu1 %v4972_v44 }
 0x18e   : > { %1185 = vmatpush1.bf16.msra.mxu1 %v4970_v45 }
 0x18f   : > { %1186 = vmatprep.subr.bf16.mxu1 %v4975_v46 }
 0x192   : > { %1187 = vmatpush1.bf16.msra.mxu1 %v4973_v47 }
 0x193   : > { %1188 = vmatprep.subr.bf16.mxu1 %v4978_v48 }
 0x196   : > { %1189 = vmatpush1.bf16.msra.mxu1 %v4976_v49 }
 0x199   : > { %1191 = vmatmul.mubr.bf16.vlgmr.msra.gmra.mrb[16].mxu1 %v5476_v53 }
 0x19a   : > { %1200 = vmatprep.mubr.bf16.mxu1 %v5479_v55 }
 0x1a1   : > { %1201 = vmatmul.mubr.bf16.gmra.mrb[20].mxu1 %v5487_v62 }
 0x1a2   : > { %1387 = vmatprep.mubr.bf16.mxu1 %v5333_v41 }
 0x253   : > { %v1257_v50 = vpop.f32.mrb[0].mxu0 }
 0x254   : > { %v1259_v54 = vpop.f32.mrb[1].mxu0  ;;  %v1306_v56 = vsel %vm1305_vm0, %v1257_v50, -inf }
 0x255   : > { %1307 = vmax.xlane.f32.xlu0 %v1306_v56  ;;  %v1260_v57 = vpop.f32.mrb[2].mxu0 }
 0x256   : > { %v1262_v58 = vpop.f32.mrb[3].mxu0  ;;  %v1309_v59 = vsel %vm1305_vm0, %v1260_v57, -inf }
 0x259   : > { %1310 = vmax.xlane.f32.xlu0 %v1309_v59 }
 0x25b   : > { %v1298_v60 = vpop.f32.mrb[4].mxu0 }
 0x25c   : > { %v1300_v61 = vpop.f32.mrb[5].mxu0  ;;  %v1312_v63 = vsel %vm1305_vm0, %v1298_v60, -inf }
 0x25d   : > { %1313 = vmax.xlane.f32.xlu1 %v1312_v63  ;;  %v1301_v53 = vpop.f32.mrb[6].mxu0  ;;  %v4981_v61 = vld [vmem:[%s5394_s12 + $0x4] ss:$8 sps:$4 sm:$0xff]  }
 0x25e   : > { %v1303_v55 = vpop.f32.mrb[7].mxu0  ;;  %v1315_v62 = vsel %vm1305_vm0, %v1301_v53, -inf }
 0x261   : > { %1316 = vmax.xlane.f32.xlu1 %v1315_v62 }
 0x26c   : > { %v1192_v20 = vpop.f32.mrb[16].mxu1 }
 0x26d   : > { %v1193_v21 = vadd.f32 %v1192_v20, %v561_v16  ;;  %v1194_v22 = vpop.f32.mrb[17].mxu1  ;;  %v5008_v20 = vld [vmem:[%s5394_s12 + $0x94] ss:$8 sps:$4 sm:$0xff]  }
 0x26e   : > { %v1195_v23 = vadd.f32 %v1194_v22, %v565_v17  ;;  %v1196_v24 = vpop.f32.mrb[18].mxu1  ;;  %v5011_v22 = vld [vmem:[%s5394_s12 + $0xa4] ss:$8 sps:$4 sm:$0xff]  }
 0x26f   : > { %v1197_v31 = vadd.f32 %v1196_v24, %v561_v16  ;;  %v1198_v32 = vpop.f32.mrb[19].mxu1  ;;  %v5014_v24 = vld [vmem:[%s5394_s12 + $0xb4] ss:$8 sps:$4 sm:$0xff]  }
 0x270   : > { %v1199_v27 = vadd.f32 %v1198_v32, %v565_v17  ;;  %v5015_v32 = vld [vmem:[%s5394_s12 + $0xc0] ss:$8 sps:$4 sm:$0xff]  }
 0x271   : > { %v1219_v34 = vpack.c.bf16 %v1197_v31, %v1193_v21  ;;  %v5006_v21 = vld [vmem:[%s5394_s12 + $0x90] ss:$8 sps:$4 sm:$0xff]   ;;  %v5017_v31 = vld [vmem:[%s5394_s12 + $0xc4] ss:$8 sps:$4 sm:$0xff]  }
 0x272   : > { %v1220_v35 = vpack.c.bf16 %v1199_v27, %v1195_v23  ;;  %v5009_v23 = vld [vmem:[%s5394_s12 + $0xa0] ss:$8 sps:$4 sm:$0xff]   ;;  %v5018_v27 = vld [vmem:[%s5394_s12 + $0xd0] ss:$8 sps:$4 sm:$0xff]  }
 0x274   : > { %1355 = vmatprep.subr.bf16.mxu1 %v1220_v35  ;;  %v1202_v37 = vpop.f32.mrb[20].mxu1  ;;  %v5021_v35 = vld [vmem:[%s5394_s12 + $0xe0] ss:$8 sps:$4 sm:$0xff]  }
 0x275   : > { %1356 = vmatpush1.bf16.msra.mxu1 %v1219_v34  ;;  %v1204_v38 = vpop.f32.mrb[21].mxu1  ;;  %v1203_v44 = vadd.f32 %v1202_v37, %v561_v16  ;;  %v5023_v34 = vld [vmem:[%s5394_s12 + $0xe4] ss:$8 sps:$4 sm:$0xff]  }
 0x276   : > { %v1206_v39 = vpop.f32.mrb[22].mxu1  ;;  %v1205_v42 = vadd.f32 %v1204_v38, %v565_v17 }
 0x277   : > { %v1208_v40 = vpop.f32.mrb[23].mxu1  ;;  %v1207_v45 = vadd.f32 %v1206_v39, %v561_v16  ;;  %v5002_v16 = vld [vmem:[%s5394_s12 + $0x74] ss:$8 sps:$4 sm:$0xff]  }
 0x278   : > { %v1209_v43 = vadd.f32 %v1208_v40, %v565_v17  ;;  %v5000_v17 = vld [vmem:[%s5394_s12 + $0x70] ss:$8 sps:$4 sm:$0xff]  }
 0x279   : > { %v1221_v47 = vpack.c.bf16 %v1207_v45, %v1203_v44 }
 0x27a   : > { %v1222_v46 = vpack.c.bf16 %v1209_v43, %v1205_v42 }
 0x27c   : > { %1401 = vmatprep.subr.bf16.mxu1 %v1222_v46 }
 0x2e2   : > { %v1308_v0 = vpop.xlane.xlu0 %1307 }
 0x2e3   : > { %v1318_v1 = vsub.f32 %v1257_v50, %v1308_v0  ;;  %v4979_v0 = vld [vmem:[%s5394_s12] ss:$8 sps:$4 sm:$0xff]  }
 0x2e5   : > { %v1322_v2 = vmul.f32 1.442695, %v1318_v1 }
 0x2e6   : > { %v1311_v3 = vpop.xlane.xlu0 %1310 }
 0x2e7   : > { %5219 = vpow2.f32 %v1322_v2  ;;  %v1319_v4 = vsub.f32 %v1260_v57, %v1311_v3  ;;  %v4984_v2 = vld [vmem:[%s5394_s12 + $0x14] ss:$8 sps:$4 sm:$0xff]   ;;  %v4982_v3 = vld [vmem:[%s5394_s12 + $0x10] ss:$8 sps:$4 sm:$0xff]  }
 0x2e9   : > { %v1324_v5 = vmul.f32 1.442695, %v1319_v4  ;;  %v4987_v4 = vld [vmem:[%s5394_s12 + $0x24] ss:$8 sps:$4 sm:$0xff]  }
 0x2ea   : > { %v1314_v6 = vpop.xlane.xlu1 %1313 }
 0x2eb   : > { %5221 = vpow2.f32 %v1324_v5  ;;  %v1320_v7 = vsub.f32 %v1298_v60, %v1314_v6  ;;  %v4985_v5 = vld [vmem:[%s5394_s12 + $0x20] ss:$8 sps:$4 sm:$0xff]   ;;  %v4990_v6 = vld [vmem:[%s5394_s12 + $0x34] ss:$8 sps:$4 sm:$0xff]  }
 0x2ed   : > { %v1326_v8 = vmul.f32 1.442695, %v1320_v7  ;;  %v4988_v7 = vld [vmem:[%s5394_s12 + $0x30] ss:$8 sps:$4 sm:$0xff]  }
 0x2ee   : > { %v1317_v9 = vpop.xlane.xlu1 %1316 }
 0x2ef   : > { %5223 = vpow2.f32 %v1326_v8  ;;  %v1321_v10 = vsub.f32 %v1301_v53, %v1317_v9  ;;  %v4993_v8 = vld [vmem:[%s5394_s12 + $0x44] ss:$8 sps:$4 sm:$0xff]   ;;  %v4991_v9 = vld [vmem:[%s5394_s12 + $0x40] ss:$8 sps:$4 sm:$0xff]  }
 0x2f1   : > { %v5220_v13 = vpop.eup %5219  ;;  %v1328_v14 = vmul.f32 1.442695, %v1321_v10  ;;  %v4996_v10 = vld [vmem:[%s5394_s12 + $0x54] ss:$8 sps:$4 sm:$0xff]  }
 0x2f2   : > { %v1330_v15 = vsel %vm1305_vm0, %v5220_v13, 0.0 }
 0x2f3   : > { %5225 = vpow2.f32 %v1328_v14  ;;  %1331 = vadd.xlane.f32.xlu0 %v1330_v15  ;;  %v4999_v14 = vld [vmem:[%s5394_s12 + $0x64] ss:$8 sps:$4 sm:$0xff]   ;;  %v4997_v15 = vld [vmem:[%s5394_s12 + $0x60] ss:$8 sps:$4 sm:$0xff]  }
 0x2f5   : > { %v5222_v18 = vpop.eup %5221 }
 0x2f6   : > { %v1333_v19 = vsel %vm1305_vm0, %v5222_v18, 0.0 }
 0x2f7   : > { %1334 = vadd.xlane.f32.xlu1 %v1333_v19  ;;  %v5003_v19 = vld [vmem:[%s5394_s12 + $0x80] ss:$8 sps:$4 sm:$0xff]  }
 0x2f9   : > { %v5224_v30 = vpop.eup %5223 }
 0x2fa   : > { %v1336_v33 = vsel %vm1305_vm0, %v5224_v30, 0.0 }
 0x2fb   : > { %1337 = vadd.xlane.f32.xlu0 %v1336_v33  ;;  %v5020_v33 = vld [vmem:[%s5394_s12 + $0xd4] ss:$8 sps:$4 sm:$0xff]  }
 0x2fd   : > { %v5226_v36 = vpop.eup %5225 }
 0x2fe   : > { %v1339_v28 = vsel %vm1305_vm0, %v5226_v36, 0.0 }
 0x2ff   : > { %1340 = vadd.xlane.f32.xlu1 %v1339_v28  ;;  %v5024_v28 = vld [vmem:[%s5394_s12 + $0xf0] ss:$8 sps:$4 sm:$0xff]  }
 0x380   : > { %v1332_v48 = vpop.xlane.xlu0 %1331 }
 0x381   : > { %5227 = vrcp.f32 %v1332_v48 }
 0x384   : > { %v1335_v49 = vpop.xlane.xlu1 %1334 }
 0x385   : > { %5229 = vrcp.f32 %v1335_v49  ;;  %v5633_v49 = vld [vmem:[%s5424_s18] sm:$0xff] }
 0x388   : > { %v1338_v50 = vpop.xlane.xlu0 %1337 }
 0x389   : > { %5231 = vrcp.f32 %v1338_v50  ;;  %v5636_v50 = vld [vmem:[%s5424_s18 + $0x8] sm:$0xff] }
 0x38b   : > { %v5228_v56 = vpop.eup %5227 }
 0x38c   : > { %v1341_v54 = vpop.xlane.xlu1 %1340  ;;  %v1346_v58 = vmul.f32 %v5228_v56, %v5220_v13  ;;  %v4994_v13 = vld [vmem:[%s5394_s12 + $0x50] ss:$8 sps:$4 sm:$0xff]   ;;  %v1487_v56 = vrot.slane %v5636_v50, %v5523_v26 }
 0x38d   : > { %5233 = vrcp.f32 %v1341_v54  ;;  %v1483_v54 = vrot.slane %v5633_v49, %v5523_v26 }
 0x38f   : > { %v5230_v57 = vpop.eup %5229 }
 0x390   : > { %v1347_v59 = vmul.f32 %v5230_v57, %v5222_v18  ;;  %v5005_v18 = vld [vmem:[%s5394_s12 + $0x84] ss:$8 sps:$4 sm:$0xff]  }
 0x392   : > { %v1350_v60 = vpack.c.bf16 %v1347_v59, %v1346_v58 }
 0x393   : > { %v5232_v63 = vpop.eup %5231 }
 0x394   : > { %4487 = vmatmul.mubr.msk.bf16.vlgmr.msra.gmra.mrb[24].mxu1 %vm1305_vm0, %v1350_v60  ;;  %v1348_v55 = vmul.f32 %v5232_v63, %v5224_v30  ;;  %v5012_v30 = vld [vmem:[%s5394_s12 + $0xb0] ss:$8 sps:$4 sm:$0xff]  }
 0x395   : > { %1402 = vmatpush1.bf16.msra.mxu1 %v1221_v47  ;;  %1433 = vmatprep.mubr.bf16.mxu1 %v5333_v41 }
 0x396   : > { %1648 = vmatprep.subr.bf16.mxu1 %v4981_v61 }
 0x397   : > { %v5234_v53 = vpop.eup %5233 }
 0x398   : > { %v1349_v62 = vmul.f32 %v5234_v53, %v5226_v36  ;;  %v5026_v36 = vld [vmem:[%s5394_s12 + $0xf4] ss:$8 sps:$4 sm:$0xff]  }
 0x39a   : > { %v1351_v1 = vpack.c.bf16 %v1349_v62, %v1348_v55 }
 0x39c   : > { %4488 = vmatmul.mubr.msk.bf16.vlgmr.msra.gmra.mrb[28].mxu1 %vm1305_vm0, %v1351_v1 }
 0x39d   : > { %1649 = vmatpush1.bf16.msra.mxu1 %v4979_v0 }
 0x39e   : > { %1650 = vmatprep.subr.bf16.mxu1 %v4984_v2 }
 0x3a1   : > { %1651 = vmatpush1.bf16.msra.mxu1 %v4982_v3 }
 0x3a2   : > { %1652 = vmatprep.subr.bf16.mxu1 %v4987_v4 }
 0x3a5   : > { %1653 = vmatpush1.bf16.msra.mxu1 %v4985_v5 }
 0x3a6   : > { %1654 = vmatprep.subr.bf16.mxu1 %v4990_v6 }
 0x3a9   : > { %1655 = vmatpush1.bf16.msra.mxu1 %v4988_v7 }
 0x3aa   : > { %1656 = vmatprep.subr.bf16.mxu1 %v4993_v8 }
 0x3ad   : > { %1657 = vmatpush1.bf16.msra.mxu1 %v4991_v9 }
 0x3ae   : > { %1658 = vmatprep.subr.bf16.mxu1 %v4996_v10 }
 0x3b1   : > { %1659 = vmatpush1.bf16.msra.mxu1 %v4994_v13  ;;  %v1810_v13 = vld [vmem:[%s5404_s19] sm:$0xff] }
 0x3b2   : > { %1660 = vmatprep.subr.bf16.mxu1 %v4999_v14  ;;  %v1814_v14 = vld [vmem:[%s5404_s19 + $0x20] sm:$0xff] }
 0x3b5   : > { %1661 = vmatpush1.bf16.msra.mxu1 %v4997_v15  ;;  %v1811_v15 = vld [vmem:[%s5404_s19 + $0x8] sm:$0xff] }
 0x3b6   : > { %1662 = vmatprep.subr.bf16.mxu1 %v5002_v16  ;;  %v4521_v16 = vcombine.low %v1810_v13, %v1814_v14 }
 0x3b9   : > { %1663 = vmatpush1.bf16.msra.mxu1 %v5000_v17  ;;  %v4522_v17 = vcombine.high %v1810_v13, %v1814_v14  ;;  %v1862_v13 = vld [vmem:[%s5404_s19 + $0x1a0] sm:$0xff]  ;;  %v1859_v14 = vld [vmem:[%s5404_s19 + $0x188] sm:$0xff] }
 0x3ba   : > { %1664 = vmatprep.subr.bf16.mxu1 %v5005_v18  ;;  %v1815_v18 = vld [vmem:[%s5404_s19 + $0x28] sm:$0xff] }
 0x3bb   : > { %2620 = vmatprep.subr.bf16.mxu0 %v4522_v17 }
 0x3bc   : > { %2621 = vmatpush1.bf16.msra.mxu0 %v4521_v16 }
 0x3bd   : > { %1665 = vmatpush1.bf16.msra.mxu1 %v5003_v19  ;;  %v1818_v19 = vld [vmem:[%s5404_s19 + $0x40] sm:$0xff] }
 0x3be   : > { %1666 = vmatprep.subr.bf16.mxu1 %v5008_v20  ;;  %v1822_v20 = vld [vmem:[%s5404_s19 + $0x60] sm:$0xff] }
 0x3c1   : > { %1667 = vmatpush1.bf16.msra.mxu1 %v5006_v21  ;;  %v4523_v21 = vcombine.low %v1811_v15, %v1815_v18 }
 0x3c2   : > { %1668 = vmatprep.subr.bf16.mxu1 %v5011_v22  ;;  %v4524_v22 = vcombine.high %v1811_v15, %v1815_v18  ;;  %v1863_v15 = vld [vmem:[%s5404_s19 + $0x1a8] sm:$0xff] }
 0x3c5   : > { %1669 = vmatpush1.bf16.msra.mxu1 %v5009_v23  ;;  %v4530_v23 = vcombine.high %v1818_v19, %v1822_v20 }
 0x3c6   : > { %1670 = vmatprep.subr.bf16.mxu1 %v5014_v24  ;;  %v1819_v24 = vld [vmem:[%s5404_s19 + $0x48] sm:$0xff] }
 0x3c7   : > { %2622 = vmatprep.subr.bf16.mxu0 %v4530_v23  ;;  %v1871_v23 = vld [vmem:[%s5404_s19 + $0x1e8] sm:$0xff] }
 0x3c9   : > { %1671 = vmatpush1.bf16.msra.mxu1 %v5012_v30  ;;  %v1823_v30 = vld [vmem:[%s5404_s19 + $0x68] sm:$0xff] }
 0x3ca   : > { %1672 = vmatprep.subr.bf16.mxu1 %v5017_v31  ;;  %v1826_v31 = vld [vmem:[%s5404_s19 + $0x80] sm:$0xff] }
 0x3cd   : > { %1673 = vmatpush1.bf16.msra.mxu1 %v5015_v32  ;;  %v4532_v32 = vcombine.high %v1819_v24, %v1823_v30 }
 0x3ce   : > { %1674 = vmatprep.subr.bf16.mxu1 %v5020_v33  ;;  %v1830_v33 = vld [vmem:[%s5404_s19 + $0xa0] sm:$0xff] }
 0x3d1   : > { %1675 = vmatpush1.bf16.msra.mxu1 %v5018_v27  ;;  %v1827_v27 = vld [vmem:[%s5404_s19 + $0x88] sm:$0xff] }
 0x3d2   : > { %1676 = vmatprep.subr.bf16.mxu1 %v5023_v34  ;;  %v1831_v34 = vld [vmem:[%s5404_s19 + $0xa8] sm:$0xff] }
 0x3d5   : > { %1677 = vmatpush1.bf16.msra.mxu1 %v5021_v35  ;;  %v4529_v35 = vcombine.low %v1818_v19, %v1822_v20  ;;  %v4572_v19 = vcombine.high %v1859_v14, %v1863_v15  ;;  %v1866_v20 = vld [vmem:[%s5404_s19 + $0x1c0] sm:$0xff] }
 0x3d6   : > { %1678 = vmatprep.subr.bf16.mxu1 %v5026_v36  ;;  %v4531_v36 = vcombine.low %v1819_v24, %v1823_v30  ;;  %v4571_v30 = vcombine.low %v1859_v14, %v1863_v15 }
 0x3d7   : > { %2623 = vmatpush1.bf16.msra.mxu0 %v4529_v35  ;;  %v1879_v35 = vld [vmem:[%s5404_s19 + $0x228] sm:$0xff] }
 0x3d9   : > { %1679 = vmatpush1.bf16.msra.mxu1 %v5024_v28  ;;  %v4538_v28 = vcombine.high %v1826_v31, %v1830_v33 }
 0x3da   : > { %2673 = vmatprep.subr.bf16.mxu1 %v4524_v22  ;;  %v1867_v22 = vld [vmem:[%s5404_s19 + $0x1c8] sm:$0xff] }
 0x3db   : > { %2624 = vmatprep.subr.bf16.mxu0 %v4538_v28  ;;  %v4579_v28 = vcombine.low %v1867_v22, %v1871_v23 }
 0x467   : > { %v1389_v37 = vpop.f32.mrb[24].mxu1 }
 0x468   : > { %v1391_v38 = vpop.f32.mrb[25].mxu1 }
 0x469   : > { %v1393_v39 = vpop.f32.mrb[26].mxu1 }
 0x46a   : > { %v1444_v40 = vpack.c.bf16 %v1393_v39, %v1389_v37  ;;  %v1395_v41 = vpop.f32.mrb[27].mxu1  ;;  %v4540_v37 = vcombine.high %v1827_v27, %v1831_v34  ;;  %v1838_v39 = vld [vmem:[%s5404_s19 + $0xe0] sm:$0xff] }
 0x46b   : > { %v1445_v42 = vpack.c.bf16 %v1395_v41, %v1391_v38  ;;  %v1834_v38 = vld [vmem:[%s5404_s19 + $0xc0] sm:$0xff]  ;;  %v1839_v41 = vld [vmem:[%s5404_s19 + $0xe8] sm:$0xff] }
 0x46d   : > { %1680 = vmatprep.mubr.bf16.mxu1 %v1445_v42  ;;  %v4537_v42 = vcombine.low %v1826_v31, %v1830_v33  ;;  %v1874_v33 = vld [vmem:[%s5404_s19 + $0x200] sm:$0xff] }
 0x46e   : > { %1681 = vmatmul.mubr.bf16.vlgmr.msra.gmra.mrb[32].mxu1 %v1444_v40  ;;  %v1835_v40 = vld [vmem:[%s5404_s19 + $0xc8] sm:$0xff] }
 0x46f   : > { %v1435_v43 = vpop.f32.mrb[28].mxu1  ;;  %2674 = vmatpush1.bf16.msra.mxu1 %v4523_v21  ;;  %2625 = vmatpush1.bf16.msra.mxu0 %v4537_v42  ;;  %v1870_v21 = vld [vmem:[%s5404_s19 + $0x1e0] sm:$0xff]  ;;  %v1887_v42 = vld [vmem:[%s5404_s19 + $0x268] sm:$0xff] }
 0x470   : > { %v1437_v44 = vpop.f32.mrb[29].mxu1  ;;  %2675 = vmatprep.subr.bf16.mxu1 %v4532_v32  ;;  %v4578_v31 = vcombine.high %v1866_v20, %v1870_v21  ;;  %v4580_v32 = vcombine.high %v1867_v22, %v1871_v23  ;;  %v1895_v23 = vld [vmem:[%s5404_s19 + $0x2a8] sm:$0xff] }
 0x471   : > { %v1439_v45 = vpop.f32.mrb[30].mxu1 }
 0x472   : > { %v1446_v46 = vpack.c.bf16 %v1439_v45, %v1435_v43  ;;  %v1441_v47 = vpop.f32.mrb[31].mxu1  ;;  %v4539_v43 = vcombine.low %v1827_v27, %v1831_v34  ;;  %v4548_v45 = vcombine.high %v1835_v40, %v1839_v41  ;;  %v1878_v27 = vld [vmem:[%s5404_s19 + $0x220] sm:$0xff]  ;;  %v1875_v34 = vld [vmem:[%s5404_s19 + $0x208] sm:$0xff] }
 0x473   : > { %v1447_v48 = vpack.c.bf16 %v1441_v47, %v1437_v44  ;;  %2676 = vmatpush1.bf16.msra.mxu1 %v4531_v36  ;;  %v4546_v44 = vcombine.high %v1834_v38, %v1838_v39  ;;  %v1846_v47 = vld [vmem:[%s5404_s19 + $0x120] sm:$0xff]  ;;  %v4577_v36 = vcombine.low %v1866_v20, %v1870_v21  ;;  %v1891_v21 = vld [vmem:[%s5404_s19 + $0x288] sm:$0xff] }
 0x474   : > { %2677 = vmatprep.subr.bf16.mxu1 %v4540_v37  ;;  %v4586_v37 = vcombine.high %v1874_v33, %v1878_v27  ;;  %v1894_v20 = vld [vmem:[%s5404_s19 + $0x2a0] sm:$0xff] }
 0x475   : > { %1690 = vmatprep.mubr.bf16.mxu1 %v1447_v48  ;;  %v1843_v48 = vld [vmem:[%s5404_s19 + $0x108] sm:$0xff]  ;;  %2626 = vmatprep.subr.bf16.mxu0 %v4546_v44  ;;  %v4587_v44 = vcombine.low %v1875_v34, %v1879_v35 }
 0x476   : > { %1691 = vmatmul.mubr.bf16.gmra.mrb[36].mxu1 %v1446_v46  ;;  %v1842_v46 = vld [vmem:[%s5404_s19 + $0x100] sm:$0xff] }
 0x477   : > { %2678 = vmatpush1.bf16.msra.mxu1 %v4539_v43  ;;  %v4585_v43 = vcombine.low %v1874_v33, %v1878_v27  ;;  %v1902_v33 = vld [vmem:[%s5404_s19 + $0x2e0] sm:$0xff]  ;;  %v1899_v27 = vld [vmem:[%s5404_s19 + $0x2c8] sm:$0xff] }
 0x478   : > { %2679 = vmatprep.subr.bf16.mxu1 %v4548_v45 }
 0x541   : > { %v1682_v57 = vpop.f32.mrb[32].mxu1 }
 0x542   : > { %v5642_v58 = vadd.f32 %v1682_v57, %v1483_v54  ;;  %v1684_v59 = vpop.f32.mrb[33].mxu1  ;;  %v4547_v57 = vcombine.low %v1835_v40, %v1839_v41  ;;  %v1886_v40 = vld [vmem:[%s5404_s19 + $0x260] sm:$0xff]  ;;  %v1883_v41 = vld [vmem:[%s5404_s19 + $0x248] sm:$0xff] }
 0x543   : > { %v5644_v60 = vadd.f32 %v1684_v59, %v1487_v56  ;;  %v1686_v61 = vpop.f32.mrb[34].mxu1  ;;  %v4554_v59 = vcombine.high %v1842_v46, %v1846_v47 }
 0x544   : > { %v5646_v63 = vadd.f32 %v1686_v61, %v1483_v54  ;;  %v1688_v53 = vpop.f32.mrb[35].mxu1  ;;  %2680 = vmatpush1.bf16.msra.mxu1 %v4547_v57 }
 0x545   : > { %v5648_v55 = vadd.f32 %v1688_v53, %v1487_v56  ;;  %v1701_v62 = vadd.f32 %v5644_v60, %v5642_v58  ;;  %v1850_v53 = vld [vmem:[%s5404_s19 + $0x140] sm:$0xff] }
 0x547   : > { %1702 = vadd.xlane.f32.xlu0 %v1701_v62  ;;  %v1704_v0 = vadd.f32 %v5648_v55, %v5646_v63  ;;  %v1854_v62 = vld [vmem:[%s5404_s19 + $0x160] sm:$0xff] }
 0x548   : > { %v4561_v16 = vcombine.low %v1850_v53, %v1854_v62 }
 0x549   : > { %v1692_v1 = vpop.f32.mrb[36].mxu1  ;;  %1705 = vadd.xlane.f32.xlu1 %v1704_v0  ;;  %v1851_v0 = vld [vmem:[%s5404_s19 + $0x148] sm:$0xff] }
 0x54a   : > { %v5654_v2 = vadd.f32 %v1692_v1, %v1483_v54  ;;  %v1694_v3 = vpop.f32.mrb[37].mxu1  ;;  %v1855_v1 = vld [vmem:[%s5404_s19 + $0x168] sm:$0xff] }
 0x54b   : > { %v5656_v4 = vadd.f32 %v1694_v3, %v1487_v56  ;;  %v1696_v5 = vpop.f32.mrb[38].mxu1  ;;  %v4553_v3 = vcombine.low %v1842_v46, %v1846_v47  ;;  %v4563_v17 = vcombine.low %v1851_v0, %v1855_v1  ;;  %v4596_v46 = vcombine.high %v1883_v41, %v1887_v42 }
 0x54c   : > { %v5658_v6 = vadd.f32 %v1696_v5, %v1483_v54  ;;  %v1698_v7 = vpop.f32.mrb[39].mxu1  ;;  %v1847_v54 = vld [vmem:[%s5404_s19 + $0x128] sm:$0xff] }
 0x54d   : > { %v5660_v8 = vadd.f32 %v1698_v7, %v1487_v56  ;;  %v1707_v9 = vadd.f32 %v5656_v4, %v5654_v2  ;;  %v4545_v56 = vcombine.low %v1834_v38, %v1838_v39  ;;  %v4556_v61 = vcombine.high %v1843_v48, %v1847_v54  ;;  %v1882_v39 = vld [vmem:[%s5404_s19 + $0x240] sm:$0xff] }
 0x54e   : > { %v4555_v5 = vcombine.low %v1843_v48, %v1847_v54  ;;  %v4562_v7 = vcombine.high %v1850_v53, %v1854_v62  ;;  %v4588_v38 = vcombine.high %v1875_v34, %v1879_v35  ;;  %v4594_v45 = vcombine.high %v1882_v39, %v1886_v40  ;;  %v1903_v35 = vld [vmem:[%s5404_s19 + $0x2e8] sm:$0xff] }
 0x54f   : > { %1708 = vadd.xlane.f32.xlu0 %v1707_v9  ;;  %v1710_v10 = vadd.f32 %v5660_v8, %v5658_v6  ;;  %2627 = vmatpush1.bf16.msra.mxu0 %v4545_v56  ;;  %v4564_v9 = vcombine.high %v1851_v0, %v1855_v1  ;;  %v4593_v47 = vcombine.low %v1882_v39, %v1886_v40  ;;  %v1910_v39 = vld [vmem:[%s5404_s19 + $0x320] sm:$0xff]  ;;  %v1907_v40 = vld [vmem:[%s5404_s19 + $0x308] sm:$0xff] }
 0x550   : > { %2628 = vmatprep.subr.bf16.mxu0 %v4554_v59  ;;  %2681 = vmatprep.subr.bf16.mxu1 %v4556_v61  ;;  %v4595_v48 = vcombine.low %v1883_v41, %v1887_v42  ;;  %v1911_v42 = vld [vmem:[%s5404_s19 + $0x328] sm:$0xff] }
 0x551   : > { %1711 = vadd.xlane.f32.xlu1 %v1710_v10  ;;  %v1858_v10 = vld [vmem:[%s5404_s19 + $0x180] sm:$0xff]  ;;  %2682 = vmatpush1.bf16.msra.mxu1 %v4555_v5 }
 0x552   : > { %v4570_v18 = vcombine.high %v1858_v10, %v1862_v13  ;;  %2683 = vmatprep.subr.bf16.mxu1 %v4564_v9  ;;  %v4569_v24 = vcombine.low %v1858_v10, %v1862_v13 }
 0x553   : > { %2629 = vmatpush1.bf16.msra.mxu0 %v4553_v3 }
 0x554   : > { %2630 = vmatprep.subr.bf16.mxu0 %v4562_v7 }
 0x555   : > { %2684 = vmatpush1.bf16.msra.mxu1 %v4563_v17 }
 0x556   : > { %2685 = vmatprep.subr.bf16.mxu1 %v4572_v19 }
 0x557   : > { %2631 = vmatpush1.bf16.msra.mxu0 %v4561_v16 }
 0x558   : > { %2632 = vmatprep.subr.bf16.mxu0 %v4570_v18 }
 0x559   : > { %2686 = vmatpush1.bf16.msra.mxu1 %v4571_v30  ;;  %v4603_v30 = vcombine.low %v1891_v21, %v1895_v23 }
 0x55a   : > { %2687 = vmatprep.subr.bf16.mxu1 %v4580_v32  ;;  %v1898_v32 = vld [vmem:[%s5404_s19 + $0x2c0] sm:$0xff] }
 0x55b   : > { %2633 = vmatpush1.bf16.msra.mxu0 %v4569_v24  ;;  %v4610_v34 = vcombine.high %v1898_v32, %v1902_v33 }
 0x55c   : > { %2634 = vmatprep.subr.bf16.mxu0 %v4578_v31  ;;  %v4604_v31 = vcombine.high %v1891_v21, %v1895_v23  ;;  %v5774_v21 = vld [vmem:[%s5404_s19 + $0x30] sm:$0xff] }
 0x55d   : > { %2688 = vmatpush1.bf16.msra.mxu1 %v4579_v28  ;;  %v4611_v28 = vcombine.low %v1899_v27, %v1903_v35 }
 0x55e   : > { %2689 = vmatprep.subr.bf16.mxu1 %v4588_v38  ;;  %v1906_v38 = vld [vmem:[%s5404_s19 + $0x300] sm:$0xff] }
 0x55f   : > { %2635 = vmatpush1.bf16.msra.mxu0 %v4577_v36  ;;  %v4609_v36 = vcombine.low %v1898_v32, %v1902_v33  ;;  %v4618_v41 = vcombine.high %v1906_v38, %v1910_v39 }
 0x560   : > { %2636 = vmatprep.subr.bf16.mxu0 %v4586_v37  ;;  %v4612_v37 = vcombine.high %v1899_v27, %v1903_v35 }
 0x561   : > { %2690 = vmatpush1.bf16.msra.mxu1 %v4587_v44  ;;  %v4619_v44 = vcombine.low %v1907_v40, %v1911_v42 }
 0x562   : > { %2691 = vmatprep.subr.bf16.mxu1 %v4596_v46  ;;  %v1914_v46 = vld [vmem:[%s5404_s19 + $0x340] sm:$0xff] }
 0x563   : > { %2637 = vmatpush1.bf16.msra.mxu0 %v4585_v43  ;;  %v4617_v43 = vcombine.low %v1906_v38, %v1910_v39 }
 0x564   : > { %2638 = vmatprep.subr.bf16.mxu0 %v4594_v45  ;;  %v4620_v45 = vcombine.high %v1907_v40, %v1911_v42 }
 0x565   : > { %2692 = vmatpush1.bf16.msra.mxu1 %v4595_v48  ;;  %v1915_v48 = vld [vmem:[%s5404_s19 + $0x348] sm:$0xff] }
 0x566   : > { %2693 = vmatprep.subr.bf16.mxu1 %v4604_v31 }
 0x567   : > { %2639 = vmatpush1.bf16.msra.mxu0 %v4593_v47  ;;  %v1918_v47 = vld [vmem:[%s5404_s19 + $0x360] sm:$0xff] }
 0x569   : > { %2694 = vmatpush1.bf16.msra.mxu1 %v4603_v30 }
 0x56a   : > { %2695 = vmatprep.subr.bf16.mxu1 %v4612_v37 }
 0x56d   : > { %2696 = vmatpush1.bf16.msra.mxu1 %v4611_v28 }
 0x56e   : > { %2697 = vmatprep.subr.bf16.mxu1 %v4620_v45 }
 0x571   : > { %2698 = vmatpush1.bf16.msra.mxu1 %v4619_v44  ;;  %v1769_v44 = vrot.slane %v5633_v49, %v5529_v29 }
 0x5d4   : > { %v1703_v54 = vpop.xlane.xlu0 %1702 }
 0x5d5   : > { %v1714_v56 = vmul.f32 0.00390625, %v1703_v54  ;;  %v4626_v54 = vcombine.high %v1914_v46, %v1918_v47 }
 0x5d6   : > { %v1706_v57 = vpop.xlane.xlu1 %1705 }
 0x5d7   : > { %v5707_v59 = vsub.f32 %v5642_v58, %v1714_v56  ;;  %v5710_v61 = vsub.f32 %v5644_v60, %v1714_v56  ;;  %v1715_v53 = vmul.f32 0.00390625, %v1706_v57  ;;  %v1919_v56 = vld [vmem:[%s5404_s19 + $0x368] sm:$0xff]  ;;  %v4625_v57 = vcombine.low %v1914_v46, %v1918_v47 }
 0x5d9   : > { %v5713_v62 = vsub.f32 %v5646_v63, %v1715_v53  ;;  %v5716_v0 = vsub.f32 %v5648_v55, %v1715_v53  ;;  %v1726_v1 = vmul.f32 %v5707_v59, %v5707_v59  ;;  %v1727_v3 = vmul.f32 %v5710_v61, %v5710_v61 }
 0x5da   : > { %v4627_v53 = vcombine.low %v1915_v48, %v1919_v56 }
 0x5db   : > { %v1734_v5 = vadd.f32 %v1727_v3, %v1726_v1  ;;  %v1728_v58 = vmul.f32 %v5713_v62, %v5713_v62  ;;  %v1729_v60 = vmul.f32 %v5716_v0, %v5716_v0  ;;  %v4628_v1 = vcombine.high %v1915_v48, %v1919_v56  ;;  %v1922_v3 = vld [vmem:[%s5404_s19 + $0x380] sm:$0xff] }
 0x5dc   : > { %v1709_v7 = vpop.xlane.xlu0 %1708  ;;  %v1789_v48 = vrot.slane %v5636_v50, %v5536_v51 }
 0x5dd   : > { %v1716_v9 = vmul.f32 0.00390625, %v1709_v7  ;;  %1735 = vadd.xlane.f32.xlu0 %v1734_v5  ;;  %v1737_v63 = vadd.f32 %v1729_v60, %v1728_v58  ;;  %2699 = vmatprep.subr.bf16.mxu1 %v4628_v1  ;;  %v1926_v5 = vld [vmem:[%s5404_s19 + $0x3a0] sm:$0xff]  ;;  %v1923_v58 = vld [vmem:[%s5404_s19 + $0x388] sm:$0xff] }
 0x5de   : > { %v1712_v55 = vpop.xlane.xlu1 %1711  ;;  %2700 = vmatpush1.bf16.msra.mxu1 %v4627_v53  ;;  %v4634_v60 = vcombine.high %v1922_v3, %v1926_v5  ;;  %v1927_v7 = vld [vmem:[%s5404_s19 + $0x3a8] sm:$0xff] }
 0x5df   : > { %v5727_v10 = vsub.f32 %v5654_v2, %v1716_v9  ;;  %v5730_v13 = vsub.f32 %v5656_v4, %v1716_v9  ;;  %v1717_v14 = vmul.f32 0.00390625, %v1712_v55  ;;  %1738 = vadd.xlane.f32.xlu1 %v1737_v63  ;;  %v4633_v9 = vcombine.low %v1922_v3, %v1926_v5 }
 0x5e0   : > { %v4635_v63 = vcombine.low %v1923_v58, %v1927_v7  ;;  %v4636_v55 = vcombine.high %v1923_v58, %v1927_v7 }
 0x5e1   : > { %v5733_v15 = vsub.f32 %v5658_v6, %v1717_v14  ;;  %v5736_v16 = vsub.f32 %v5660_v8, %v1717_v14  ;;  %v1730_v17 = vmul.f32 %v5727_v10, %v5727_v10  ;;  %v1731_v2 = vmul.f32 %v5730_v13, %v5730_v13  ;;  %v1890_v8 = vld [vmem:[%s5404_s19 + $0x280] sm:$0xff] }
 0x5e2   : > { %v4602_v22 = vcombine.high %v1890_v8, %v1894_v20  ;;  %v4601_v24 = vcombine.low %v1890_v8, %v1894_v20  ;;  %2701 = vmatprep.subr.bf16.mxu1 %v4636_v55  ;;  %v1930_v14 = vld [vmem:[%s5404_s19 + $0x3c0] sm:$0xff]  ;;  %v5771_v20 = vld [vmem:[%s5404_s19 + $0x10] sm:$0xff] }
 0x5e3   : > { %v1740_v18 = vadd.f32 %v1731_v2, %v1730_v17  ;;  %v1732_v4 = vmul.f32 %v5733_v15, %v5733_v15  ;;  %v1733_v19 = vmul.f32 %v5736_v16, %v5736_v16  ;;  %v1934_v17 = vld [vmem:[%s5404_s19 + $0x3e0] sm:$0xff]  ;;  %v1931_v2 = vld [vmem:[%s5404_s19 + $0x3c8] sm:$0xff]  ;;  %2702 = vmatpush1.bf16.msra.mxu1 %v4635_v63  ;;  %v4526_v23 = vcombine.high %v5771_v20, %v5774_v21 }
 0x5e4   : > { %2640 = vmatprep.subr.bf16.mxu0 %v4602_v22  ;;  %v5777_v22 = vld [vmem:[%s5404_s19 + $0x18] sm:$0xff]  ;;  %v4525_v30 = vcombine.low %v5771_v20, %v5774_v21  ;;  %v5316_v63 = vld [vmem:[#allocation2] sm:$0xff] }
 0x5e5   : > { %1741 = vadd.xlane.f32.xlu0 %v1740_v18  ;;  %v1743_v6 = vadd.f32 %v1733_v19, %v1732_v4  ;;  %2641 = vmatpush1.bf16.msra.mxu0 %v4601_v24  ;;  %v4642_v18 = vcombine.high %v1930_v14, %v1934_v17  ;;  %v1935_v4 = vld [vmem:[%s5404_s19 + $0x3e8] sm:$0xff]  ;;  %v4641_v19 = vcombine.low %v1930_v14, %v1934_v17  ;;  %v5782_v24 = vld [vmem:[%s5404_s19 + $0x38] sm:$0xff] }
 0x5e6   : > { %2642 = vmatprep.subr.bf16.mxu0 %v4610_v34  ;;  %v4644_v8 = vcombine.high %v1931_v2, %v1935_v4  ;;  %v4527_v31 = vcombine.low %v5777_v22, %v5782_v24  ;;  %v4528_v32 = vcombine.high %v5777_v22, %v5782_v24  ;;  %v5317_v17 = vld [vmem:[#allocation2 + $0x18] sm:$0xff]  ;;  %v5322_v24 = vld [vmem:[#allocation2 + $0x30] sm:$0xff] }
 0x5e7   : > { %1744 = vadd.xlane.f32.xlu1 %v1743_v6  ;;  %v4643_v6 = vcombine.low %v1931_v2, %v1935_v4  ;;  %v5320_v20 = vld [vmem:[#allocation2 + $0x38] sm:$0xff] }
 0x5e8   : > { %2703 = vmatprep.subr.bf16.mxu1 %v4644_v8  ;;  %v1825_v8 = vld [vmem:[%s5404_s19 + $0x78] sm:$0xff] }
 0x5e9   : > { %2643 = vmatpush1.bf16.msra.mxu0 %v4609_v36  ;;  %2704 = vmatpush1.bf16.msra.mxu1 %v4643_v6  ;;  %v1821_v6 = vld [vmem:[%s5404_s19 + $0x58] sm:$0xff] }
 0x5ea   : > { %2644 = vmatprep.subr.bf16.mxu0 %v4618_v41  ;;  %2779 = vmatprep.subr.bf16.mxu1 %v4528_v32 }
 0x5ed   : > { %2645 = vmatpush1.bf16.msra.mxu0 %v4617_v43  ;;  %v1773_v43 = vrot.slane %v5636_v50, %v5529_v29 }
 0x5ee   : > { %2646 = vmatprep.subr.bf16.mxu0 %v4626_v54  ;;  %v1785_v54 = vrot.slane %v5633_v49, %v5536_v51 }
 0x5f1   : > { %2647 = vmatpush1.bf16.msra.mxu0 %v4625_v57 }
 0x5f2   : > { %2648 = vmatprep.subr.bf16.mxu0 %v4634_v60 }
 0x5f5   : > { %2649 = vmatpush1.bf16.msra.mxu0 %v4633_v9  ;;  %v5315_v9 = vld [vmem:[#allocation2 + $0x8] sm:$0xff] }
 0x5f6   : > { %2650 = vmatprep.subr.bf16.mxu0 %v4642_v18  ;;  %v5318_v18 = vld [vmem:[#allocation2 + $0x10] sm:$0xff] }
 0x5f9   : > { %2651 = vmatpush1.bf16.msra.mxu0 %v4641_v19  ;;  %v1824_v19 = vld [vmem:[%s5404_s19 + $0x70] sm:$0xff] }
 0x5fa   : > { %2726 = vmatprep.subr.bf16.mxu0 %v4526_v23 }
 0x66a   : > { %v1736_v33 = vpop.xlane.xlu0 %1735 }
 0x66b   : > { %v1746_v27 = vmul.f32 0.00390625, %v1736_v33 }
 0x66c   : > { %v1739_v34 = vpop.xlane.xlu1 %1738 }
 0x66d   : > { %v1750_v35 = vadd.f32 1e-05, %v1746_v27  ;;  %v1747_v36 = vmul.f32 0.00390625, %v1739_v34  ;;  %v4536_v34 = vcombine.high %v1821_v6, %v1825_v8 }
 0x66f   : > { %5235 = vrsqrt.f32 %v1750_v35  ;;  %v1751_v28 = vadd.f32 1e-05, %v1747_v36  ;;  %v1828_v36 = vld [vmem:[%s5404_s19 + $0x90] sm:$0xff] }
 0x671   : > { %5237 = vrsqrt.f32 %v1751_v28 }
 0x672   : > { %v1742_v37 = vpop.xlane.xlu0 %1741 }
 0x673   : > { %v1748_v38 = vmul.f32 0.00390625, %v1742_v37 }
 0x674   : > { %v1745_v39 = vpop.xlane.xlu1 %1744 }
 0x675   : > { %v1752_v40 = vadd.f32 1e-05, %v1748_v38  ;;  %v1749_v41 = vmul.f32 0.00390625, %v1745_v39  ;;  %v1832_v38 = vld [vmem:[%s5404_s19 + $0xb0] sm:$0xff]  ;;  %v1829_v39 = vld [vmem:[%s5404_s19 + $0x98] sm:$0xff] }
 0x677   : > { %5239 = vrsqrt.f32 %v1752_v40  ;;  %v1753_v42 = vadd.f32 1e-05, %v1749_v41 }
 0x679   : > { %v5236_v45 = vpop.eup %5235  ;;  %5241 = vrsqrt.f32 %v1753_v42 }
 0x67a   : > { %v1758_v46 = vmul.f32 %v5236_v45, %v5707_v59  ;;  %v1759_v47 = vmul.f32 %v5236_v45, %v5710_v61 }
 0x67b   : > { %v5238_v56 = vpop.eup %5237 }
 0x67c   : > { %v1760_v57 = vmul.f32 %v5238_v56, %v5713_v62  ;;  %v1761_v53 = vmul.f32 %v5238_v56, %v5716_v0  ;;  %v1775_v1 = vmul.f32 %v1773_v43, %v1759_v47  ;;  %v1774_v3 = vmul.f32 %v1769_v44, %v1758_v46  ;;  %v1820_v62 = vld [vmem:[%s5404_s19 + $0x50] sm:$0xff]  ;;  %v5319_v56 = vld [vmem:[#allocation2 + $0x28] sm:$0xff] }
 0x67d   : > { %v4534_v27 = vcombine.high %v1820_v62, %v1824_v19  ;;  %v4542_v46 = vcombine.high %v1828_v36, %v1832_v38 }
 0x67e   : > { %v1777_v5 = vmul.f32 %v1773_v43, %v1761_v53  ;;  %v1791_v58 = vadd.f32 %v1789_v48, %v1775_v1  ;;  %v1776_v60 = vmul.f32 %v1769_v44, %v1760_v57  ;;  %v1790_v59 = vadd.f32 %v1785_v54, %v1774_v3  ;;  %v1840_v53 = vld [vmem:[%s5404_s19 + $0xf0] sm:$0xff]  ;;  %v1837_v1 = vld [vmem:[%s5404_s19 + $0xd8] sm:$0xff] }
 0x67f   : > { %v1841_v3 = vld [vmem:[%s5404_s19 + $0xf8] sm:$0xff] }
 0x680   : > { %v1793_v61 = vadd.f32 %v1789_v48, %v1777_v5  ;;  %v1792_v50 = vadd.f32 %v1785_v54, %v1776_v60  ;;  %v5802_v49 = vadd.f32 %v5315_v9, %v1791_v58  ;;  %v5804_v55 = vadd.f32 %v5316_v63, %v1790_v59  ;;  %v1844_v59 = vld [vmem:[%s5404_s19 + $0x110] sm:$0xff]  ;;  %v1845_v9 = vld [vmem:[%s5404_s19 + $0x118] sm:$0xff] }
 0x681   : > { %v5240_v7 = vpop.eup %5239  ;;  %v1849_v63 = vld [vmem:[%s5404_s19 + $0x138] sm:$0xff] }
 0x682   : > { %v1762_v0 = vmul.f32 %v5240_v7, %v5727_v10  ;;  %v1763_v14 = vmul.f32 %v5240_v7, %v5730_v13  ;;  %v5809_v2 = vadd.f32 %v5317_v17, %v1793_v61  ;;  %v5811_v4 = vadd.f32 %v5318_v18, %v1792_v50  ;;  %v1848_v7 = vld [vmem:[%s5404_s19 + $0x130] sm:$0xff] }
 0x683   : > { %v5242_v23 = vpop.eup %5241  ;;  %v4552_v50 = vcombine.high %v1837_v1, %v1841_v3  ;;  %v4560_v17 = vcombine.high %v1845_v9, %v1849_v63  ;;  %v1852_v18 = vld [vmem:[%s5404_s19 + $0x150] sm:$0xff] }
 0x684   : > { %v1764_v32 = vmul.f32 %v5242_v23, %v5733_v15  ;;  %v1765_v10 = vmul.f32 %v5242_v23, %v5736_v16  ;;  %v1807_v13 = vpack.c.bf16 %v5809_v2, %v5802_v49  ;;  %v5822_v33 = vpack.c.bf16 %v5811_v4, %v5804_v55  ;;  %v1833_v15 = vld [vmem:[%s5404_s19 + $0xb8] sm:$0xff] }
 0x685   : > { %v1779_v35 = vmul.f32 %v1773_v43, %v1763_v14  ;;  %v1778_v28 = vmul.f32 %v1769_v44, %v1762_v0  ;;  %v4533_v16 = vcombine.low %v1820_v62, %v1824_v19  ;;  %v4544_v47 = vcombine.high %v1829_v39, %v1833_v15  ;;  %v1856_v19 = vld [vmem:[%s5404_s19 + $0x170] sm:$0xff] }
 0x686   : > { %2652 = vmatprep.mubr.bf16.mxu0 %v1807_v13  ;;  %2705 = vmatprep.mubr.bf16.mxu1 %v1807_v13  ;;  %v1781_v37 = vmul.f32 %v1773_v43, %v1765_v10  ;;  %v1780_v40 = vmul.f32 %v1769_v44, %v1764_v32  ;;  %v4535_v43 = vcombine.low %v1821_v6, %v1825_v8  ;;  %v1853_v6 = vld [vmem:[%s5404_s19 + $0x158] sm:$0xff] }
 0x687   : > { %2653 = vmatmul.mubr.bf16.vlgmr.msra.gmra.mrb[8].mxu0 %v5822_v33  ;;  %2706 = vmatmul.mubr.bf16.vlgmr.msra.gmra.mrb[40].mxu1 %v5822_v33  ;;  %v1795_v41 = vadd.f32 %v1789_v48, %v1779_v35  ;;  %v1794_v42 = vadd.f32 %v1785_v54, %v1778_v28  ;;  %v4543_v58 = vcombine.low %v1829_v39, %v1833_v15  ;;  %v1857_v8 = vld [vmem:[%s5404_s19 + $0x178] sm:$0xff]  ;;  %v1868_v15 = vld [vmem:[%s5404_s19 + $0x1d0] sm:$0xff] }
 0x688   : > { %2727 = vmatpush1.bf16.msra.mxu0 %v4525_v30  ;;  %2780 = vmatpush1.bf16.msra.mxu1 %v4527_v31  ;;  %v1797_v45 = vadd.f32 %v1789_v48, %v1781_v37  ;;  %v1796_v44 = vadd.f32 %v1785_v54, %v1780_v40  ;;  %v5321_v30 = vld [vmem:[#allocation2 + $0x20] sm:$0xff]  ;;  %v1836_v48 = vld [vmem:[%s5404_s19 + $0xd0] sm:$0xff]  ;;  %v4541_v54 = vcombine.low %v1828_v36, %v1832_v38  ;;  %v1861_v35 = vld [vmem:[%s5404_s19 + $0x198] sm:$0xff] }
 0x689   : > { %2728 = vmatprep.subr.bf16.mxu0 %v4534_v27  ;;  %2781 = vmatprep.subr.bf16.mxu1 %v4536_v34  ;;  %v5836_v57 = vadd.f32 %v5319_v56, %v1795_v41  ;;  %v5840_v22 = vadd.f32 %v5321_v30, %v1794_v42  ;;  %v4550_v61 = vcombine.high %v1836_v48, %v1840_v53  ;;  %v1860_v27 = vld [vmem:[%s5404_s19 + $0x190] sm:$0xff]  ;;  %v1865_v36 = vld [vmem:[%s5404_s19 + $0x1b8] sm:$0xff] }
 0x68a   : > { %v5838_v21 = vadd.f32 %v5320_v20, %v1797_v45  ;;  %v5842_v31 = vadd.f32 %v5322_v24, %v1796_v44  ;;  %v4549_v62 = vcombine.low %v1836_v48, %v1840_v53  ;;  %v4551_v0 = vcombine.low %v1837_v1, %v1841_v3  ;;  %v1864_v34 = vld [vmem:[%s5404_s19 + $0x1b0] sm:$0xff]  ;;  %v1873_v41 = vld [vmem:[%s5404_s19 + $0x1f8] sm:$0xff] }
 0x68b   : > { %v4558_v14 = vcombine.high %v1844_v59, %v1848_v7  ;;  %v4557_v23 = vcombine.low %v1844_v59, %v1848_v7  ;;  %v4559_v32 = vcombine.low %v1845_v9, %v1849_v63  ;;  %v4566_v10 = vcombine.high %v1852_v18, %v1856_v19  ;;  %v1872_v40 = vld [vmem:[%s5404_s19 + $0x1f0] sm:$0xff]  ;;  %v1877_v56 = vld [vmem:[%s5404_s19 + $0x218] sm:$0xff] }
 0x68c   : > { %2729 = vmatpush1.bf16.msra.mxu0 %v4533_v16  ;;  %2782 = vmatpush1.bf16.msra.mxu1 %v4535_v43  ;;  %v5850_v5 = vpack.c.bf16 %v5838_v21, %v5836_v57  ;;  %v5854_v60 = vpack.c.bf16 %v5842_v31, %v5840_v22  ;;  %v4565_v28 = vcombine.low %v1852_v18, %v1856_v19  ;;  %v1869_v16 = vld [vmem:[%s5404_s19 + $0x1d8] sm:$0xff]  ;;  %v1884_v53 = vld [vmem:[%s5404_s19 + $0x250] sm:$0xff] }
 0x68d   : > { %2730 = vmatprep.subr.bf16.mxu0 %v4542_v46  ;;  %2783 = vmatprep.subr.bf16.mxu1 %v4544_v47  ;;  %v4567_v37 = vcombine.low %v1853_v6, %v1857_v8  ;;  %v4574_v38 = vcombine.high %v1860_v27, %v1864_v34  ;;  %v4576_v39 = vcombine.high %v1861_v35, %v1865_v36  ;;  %v1876_v46 = vld [vmem:[%s5404_s19 + $0x210] sm:$0xff]  ;;  %v1881_v20 = vld [vmem:[%s5404_s19 + $0x238] sm:$0xff] }
 0x68e   : > { %2662 = vmatprep.mubr.bf16.mxu0 %v5850_v5  ;;  %2715 = vmatprep.mubr.bf16.mxu1 %v5850_v5  ;;  %v4573_v42 = vcombine.low %v1860_v27, %v1864_v34  ;;  %v4575_v43 = vcombine.low %v1861_v35, %v1865_v36  ;;  %v4582_v45 = vcombine.high %v1868_v15, %v1872_v40  ;;  %v1880_v47 = vld [vmem:[%s5404_s19 + $0x230] sm:$0xff]  ;;  %v1885_v3 = vld [vmem:[%s5404_s19 + $0x258] sm:$0xff] }
 0x68f   : > { %2663 = vmatmul.mubr.bf16.gmra.mrb[12].mxu0 %v5854_v60  ;;  %2716 = vmatmul.mubr.bf16.gmra.mrb[44].mxu1 %v5854_v60  ;;  %v4584_v44 = vcombine.high %v1869_v16, %v1873_v41  ;;  %v4581_v30 = vcombine.low %v1868_v15, %v1872_v40  ;;  %v4583_v24 = vcombine.low %v1869_v16, %v1873_v41  ;;  %v1888_v1 = vld [vmem:[%s5404_s19 + $0x270] sm:$0xff] }
 0x690   : > { %2731 = vmatpush1.bf16.msra.mxu0 %v4541_v54  ;;  %2784 = vmatpush1.bf16.msra.mxu1 %v4543_v58  ;;  %v4590_v48 = vcombine.high %v1876_v46, %v1880_v47  ;;  %v4592_v54 = vcombine.high %v1877_v56, %v1881_v20  ;;  %v1889_v58 = vld [vmem:[%s5404_s19 + $0x278] sm:$0xff]  ;;  %v4589_v59 = vcombine.low %v1876_v46, %v1880_v47  ;;  %v1892_v9 = vld [vmem:[%s5404_s19 + $0x290] sm:$0xff] }
 0x691   : > { %2758 = vmatprep.mubr.bf16.mxu0 %v1807_v13  ;;  %2811 = vmatprep.mubr.bf16.mxu1 %v1807_v13  ;;  %v4568_v13 = vcombine.high %v1853_v6, %v1857_v8  ;;  %v4600_v7 = vcombine.high %v1885_v3, %v1889_v58  ;;  %v1896_v63 = vld [vmem:[%s5404_s19 + $0x2b0] sm:$0xff] }
 0x692   : > { %2732 = vmatprep.subr.bf16.mxu0 %v4550_v61  ;;  %2785 = vmatprep.subr.bf16.mxu1 %v4552_v50  ;;  %v4591_v61 = vcombine.low %v1877_v56, %v1881_v20  ;;  %v4598_v50 = vcombine.high %v1884_v53, %v1888_v1  ;;  %v4606_v18 = vcombine.high %v1892_v9, %v1896_v63  ;;  %v1900_v6 = vld [vmem:[%s5404_s19 + $0x2d0] sm:$0xff] }
 0x693   : > { %v1904_v8 = vld [vmem:[%s5404_s19 + $0x2f0] sm:$0xff] }
 0x694   : > { %2733 = vmatpush1.bf16.msra.mxu0 %v4549_v62  ;;  %2786 = vmatpush1.bf16.msra.mxu1 %v4551_v0  ;;  %v1893_v62 = vld [vmem:[%s5404_s19 + $0x298] sm:$0xff]  ;;  %v4614_v27 = vcombine.high %v1900_v6, %v1904_v8  ;;  %v1908_v35 = vld [vmem:[%s5404_s19 + $0x310] sm:$0xff] }
 0x695   : > { %2734 = vmatprep.subr.bf16.mxu0 %v4558_v14  ;;  %2787 = vmatprep.subr.bf16.mxu1 %v4560_v17  ;;  %v1897_v0 = vld [vmem:[%s5404_s19 + $0x2b8] sm:$0xff]  ;;  %v4597_v14 = vcombine.low %v1884_v53, %v1888_v1  ;;  %v4599_v17 = vcombine.low %v1885_v3, %v1889_v58  ;;  %v1912_v36 = vld [vmem:[%s5404_s19 + $0x330] sm:$0xff] }
 0x696   : > { %v4608_v19 = vcombine.high %v1893_v62, %v1897_v0  ;;  %v4622_v15 = vcombine.high %v1908_v35, %v1912_v36  ;;  %v1916_v16 = vld [vmem:[%s5404_s19 + $0x350] sm:$0xff] }
 0x697   : > { %v1920_v41 = vld [vmem:[%s5404_s19 + $0x370] sm:$0xff] }
 0x698   : > { %2735 = vmatpush1.bf16.msra.mxu0 %v4557_v23  ;;  %2788 = vmatpush1.bf16.msra.mxu1 %v4559_v32  ;;  %v1901_v23 = vld [vmem:[%s5404_s19 + $0x2d8] sm:$0xff]  ;;  %v4630_v46 = vcombine.high %v1916_v16, %v1920_v41  ;;  %v1924_v56 = vld [vmem:[%s5404_s19 + $0x390] sm:$0xff] }
 0x699   : > { %2736 = vmatprep.subr.bf16.mxu0 %v4566_v10  ;;  %2789 = vmatprep.subr.bf16.mxu1 %v4568_v13  ;;  %v1905_v32 = vld [vmem:[%s5404_s19 + $0x2f8] sm:$0xff]  ;;  %v4605_v10 = vcombine.low %v1892_v9, %v1896_v63  ;;  %v4607_v13 = vcombine.low %v1893_v62, %v1897_v0  ;;  %v1928_v20 = vld [vmem:[%s5404_s19 + $0x3b0] sm:$0xff] }
 0x69a   : > { %v4616_v34 = vcombine.high %v1901_v23, %v1905_v32  ;;  %v4638_v53 = vcombine.high %v1924_v56, %v1928_v20  ;;  %v1932_v3 = vld [vmem:[%s5404_s19 + $0x3d0] sm:$0xff] }
 0x69b   : > { %v1936_v58 = vld [vmem:[%s5404_s19 + $0x3f0] sm:$0xff] }
 0x69c   : > { %2737 = vmatpush1.bf16.msra.mxu0 %v4565_v28  ;;  %2790 = vmatpush1.bf16.msra.mxu1 %v4567_v37  ;;  %v1909_v28 = vld [vmem:[%s5404_s19 + $0x318] sm:$0xff]  ;;  %v4646_v9 = vcombine.high %v1932_v3, %v1936_v58  ;;  %v4645_v62 = vcombine.low %v1932_v3, %v1936_v58 }
 0x69d   : > { %2738 = vmatprep.subr.bf16.mxu0 %v4574_v38  ;;  %2791 = vmatprep.subr.bf16.mxu1 %v4576_v39  ;;  %v1913_v37 = vld [vmem:[%s5404_s19 + $0x338] sm:$0xff]  ;;  %v4613_v38 = vcombine.low %v1900_v6, %v1904_v8  ;;  %v4615_v39 = vcombine.low %v1901_v23, %v1905_v32  ;;  %v5035_v6 = vld [vmem:[%s5409_s22 + $0x24] ss:$8 sps:$4 sm:$0xff]   ;;  %v5033_v8 = vld [vmem:[%s5409_s22 + $0x20] ss:$8 sps:$4 sm:$0xff]  }
 0x69e   : > { %v4624_v40 = vcombine.high %v1909_v28, %v1913_v37  ;;  %v5038_v23 = vld [vmem:[%s5409_s22 + $0x34] ss:$8 sps:$4 sm:$0xff]   ;;  %v5039_v32 = vld [vmem:[%s5409_s22 + $0x40] ss:$8 sps:$4 sm:$0xff]  }
 0x6a0   : > { %2739 = vmatpush1.bf16.msra.mxu0 %v4573_v42  ;;  %2792 = vmatpush1.bf16.msra.mxu1 %v4575_v43  ;;  %v1917_v42 = vld [vmem:[%s5404_s19 + $0x358] sm:$0xff] }
 0x6a1   : > { %2740 = vmatprep.subr.bf16.mxu0 %v4582_v45  ;;  %2793 = vmatprep.subr.bf16.mxu1 %v4584_v44  ;;  %v1921_v43 = vld [vmem:[%s5404_s19 + $0x378] sm:$0xff]  ;;  %v4621_v45 = vcombine.low %v1908_v35, %v1912_v36  ;;  %v4623_v44 = vcombine.low %v1909_v28, %v1913_v37  ;;  %v5053_v36 = vld [vmem:[%s5409_s22 + $0x84] ss:$8 sps:$4 sm:$0xff]   ;;  %v5051_v28 = vld [vmem:[%s5409_s22 + $0x80] ss:$8 sps:$4 sm:$0xff]  }
 0x6a2   : > { %v4632_v47 = vcombine.high %v1917_v42, %v1921_v43  ;;  %v5048_v35 = vld [vmem:[%s5409_s22 + $0x70] ss:$8 sps:$4 sm:$0xff]   ;;  %v5056_v37 = vld [vmem:[%s5409_s22 + $0x94] ss:$8 sps:$4 sm:$0xff]  }
 0x6a4   : > { %2741 = vmatpush1.bf16.msra.mxu0 %v4581_v30  ;;  %2794 = vmatpush1.bf16.msra.mxu1 %v4583_v24  ;;  %v1925_v30 = vld [vmem:[%s5404_s19 + $0x398] sm:$0xff] }
 0x6a5   : > { %2742 = vmatprep.subr.bf16.mxu0 %v4590_v48  ;;  %2795 = vmatprep.subr.bf16.mxu1 %v4592_v54  ;;  %v1929_v24 = vld [vmem:[%s5404_s19 + $0x3b8] sm:$0xff]  ;;  %v4629_v48 = vcombine.low %v1916_v16, %v1920_v41  ;;  %v4631_v54 = vcombine.low %v1917_v42, %v1921_v43  ;;  %v5065_v41 = vld [vmem:[%s5409_s22 + $0xc4] ss:$8 sps:$4 sm:$0xff]   ;;  %v5063_v42 = vld [vmem:[%s5409_s22 + $0xc0] ss:$8 sps:$4 sm:$0xff]  }
 0x6a6   : > { %v4640_v1 = vcombine.high %v1925_v30, %v1929_v24  ;;  %v5060_v16 = vld [vmem:[%s5409_s22 + $0xb0] ss:$8 sps:$4 sm:$0xff]   ;;  %v5068_v43 = vld [vmem:[%s5409_s22 + $0xd4] ss:$8 sps:$4 sm:$0xff]  }
 0x6a8   : > { %2743 = vmatpush1.bf16.msra.mxu0 %v4589_v59  ;;  %2796 = vmatpush1.bf16.msra.mxu1 %v4591_v61  ;;  %v1933_v59 = vld [vmem:[%s5404_s19 + $0x3d8] sm:$0xff] }
 0x6a9   : > { %2744 = vmatprep.subr.bf16.mxu0 %v4598_v50  ;;  %2797 = vmatprep.subr.bf16.mxu1 %v4600_v7  ;;  %v1937_v61 = vld [vmem:[%s5404_s19 + $0x3f8] sm:$0xff]  ;;  %v4637_v50 = vcombine.low %v1924_v56, %v1928_v20  ;;  %v4639_v7 = vcombine.low %v1925_v30, %v1929_v24  ;;  %v5077_v20 = vld [vmem:[%s5409_s22 + $0x104] ss:$8 sps:$4 sm:$0xff]  }
 0x6aa   : > { %v4648_v63 = vcombine.high %v1933_v59, %v1937_v61  ;;  %v4647_v0 = vcombine.low %v1933_v59, %v1937_v61  ;;  %v5072_v56 = vld [vmem:[%s5409_s22 + $0xf0] ss:$8 sps:$4 sm:$0xff]   ;;  %v5948_v30 = vld [vmem:[%s5419_s14] sm:$0xff] }
 0x6ab   : > { %v5952_v24 = vrot.slane %v5948_v30, %v5523_v26 }
 0x6ac   : > { %2745 = vmatpush1.bf16.msra.mxu0 %v4597_v14  ;;  %2798 = vmatpush1.bf16.msra.mxu1 %v4599_v17  ;;  %v5029_v14 = vld [vmem:[%s5409_s22 + $0x4] ss:$8 sps:$4 sm:$0xff]   ;;  %v5027_v17 = vld [vmem:[%s5409_s22] ss:$8 sps:$4 sm:$0xff]  }
 0x6ad   : > { %2746 = vmatprep.subr.bf16.mxu0 %v4606_v18  ;;  %2799 = vmatprep.subr.bf16.mxu1 %v4608_v19  ;;  %v5032_v18 = vld [vmem:[%s5409_s22 + $0x14] ss:$8 sps:$4 sm:$0xff]   ;;  %v5030_v19 = vld [vmem:[%s5409_s22 + $0x10] ss:$8 sps:$4 sm:$0xff]  }
 0x6b0   : > { %2747 = vmatpush1.bf16.msra.mxu0 %v4605_v10  ;;  %2800 = vmatpush1.bf16.msra.mxu1 %v4607_v13  ;;  %v5044_v10 = vld [vmem:[%s5409_s22 + $0x54] ss:$8 sps:$4 sm:$0xff]   ;;  %v5042_v13 = vld [vmem:[%s5409_s22 + $0x50] ss:$8 sps:$4 sm:$0xff]  }
 0x6b1   : > { %2748 = vmatprep.subr.bf16.mxu0 %v4614_v27  ;;  %2801 = vmatprep.subr.bf16.mxu1 %v4616_v34  ;;  %v5047_v27 = vld [vmem:[%s5409_s22 + $0x64] ss:$8 sps:$4 sm:$0xff]   ;;  %v5050_v34 = vld [vmem:[%s5409_s22 + $0x74] ss:$8 sps:$4 sm:$0xff]  }
 0x6b4   : > { %2749 = vmatpush1.bf16.msra.mxu0 %v4613_v38  ;;  %2802 = vmatpush1.bf16.msra.mxu1 %v4615_v39  ;;  %v5054_v38 = vld [vmem:[%s5409_s22 + $0x90] ss:$8 sps:$4 sm:$0xff]   ;;  %v5059_v39 = vld [vmem:[%s5409_s22 + $0xa4] ss:$8 sps:$4 sm:$0xff]  }
 0x6b5   : > { %2750 = vmatprep.subr.bf16.mxu0 %v4622_v15  ;;  %2803 = vmatprep.subr.bf16.mxu1 %v4624_v40  ;;  %v5057_v15 = vld [vmem:[%s5409_s22 + $0xa0] ss:$8 sps:$4 sm:$0xff]   ;;  %v5062_v40 = vld [vmem:[%s5409_s22 + $0xb4] ss:$8 sps:$4 sm:$0xff]  }
 0x6b8   : > { %2751 = vmatpush1.bf16.msra.mxu0 %v4621_v45  ;;  %2804 = vmatpush1.bf16.msra.mxu1 %v4623_v44  ;;  %v5066_v45 = vld [vmem:[%s5409_s22 + $0xd0] ss:$8 sps:$4 sm:$0xff]   ;;  %v5069_v44 = vld [vmem:[%s5409_s22 + $0xe0] ss:$8 sps:$4 sm:$0xff]  }
 0x6b9   : > { %2752 = vmatprep.subr.bf16.mxu0 %v4630_v46  ;;  %2805 = vmatprep.subr.bf16.mxu1 %v4632_v47  ;;  %v5071_v46 = vld [vmem:[%s5409_s22 + $0xe4] ss:$8 sps:$4 sm:$0xff]   ;;  %v5074_v47 = vld [vmem:[%s5409_s22 + $0xf4] ss:$8 sps:$4 sm:$0xff]  }
 0x6bc   : > { %2753 = vmatpush1.bf16.msra.mxu0 %v4629_v48  ;;  %2806 = vmatpush1.bf16.msra.mxu1 %v4631_v54  ;;  %v5956_v48 = vrot.slane %v5948_v30, %v5536_v51  ;;  %v5960_v54 = vrot.slane %v5948_v30, %v5529_v29 }
 0x6bd   : > { %2754 = vmatprep.subr.bf16.mxu0 %v4638_v53  ;;  %2807 = vmatprep.subr.bf16.mxu1 %v4640_v1  ;;  %v5964_v53 = vrot.slane %v5948_v30, %v5539_v52 }
 0x6c0   : > { %2755 = vmatpush1.bf16.msra.mxu0 %v4637_v50  ;;  %2808 = vmatpush1.bf16.msra.mxu1 %v4639_v7 }
 0x6c1   : > { %2756 = vmatprep.subr.bf16.mxu0 %v4646_v9  ;;  %2809 = vmatprep.subr.bf16.mxu1 %v4648_v63 }
 0x6c4   : > { %2757 = vmatpush1.bf16.msra.mxu0 %v4645_v62  ;;  %2810 = vmatpush1.bf16.msra.mxu1 %v4647_v0 }
 0x6c5   : > { %3912 = vmatprep.subr.bf16.mxu0 %v5029_v14 }
 0x6c7   : > { %2759 = vmatmul.mubr.bf16.vlgmr.msra.gmra.mrb[16].mxu0 %v5822_v33  ;;  %2812 = vmatmul.mubr.bf16.vlgmr.msra.gmra.mrb[48].mxu1 %v5822_v33  ;;  %v5036_v33 = vld [vmem:[%s5409_s22 + $0x30] ss:$8 sps:$4 sm:$0xff]  }
 0x6c8   : > { %2768 = vmatprep.mubr.bf16.mxu0 %v5850_v5  ;;  %2821 = vmatprep.mubr.bf16.mxu1 %v5850_v5  ;;  %v5041_v5 = vld [vmem:[%s5409_s22 + $0x44] ss:$8 sps:$4 sm:$0xff]  }
 0x6c9   : > { %3913 = vmatpush1.bf16.msra.mxu0 %v5027_v17 }
 0x6ca   : > { %3914 = vmatprep.subr.bf16.mxu0 %v5032_v18 }
 0x6cd   : > { %3915 = vmatpush1.bf16.msra.mxu0 %v5030_v19 }
 0x6ce   : > { %3916 = vmatprep.subr.bf16.mxu0 %v5035_v6 }
 0x6cf   : > { %2769 = vmatmul.mubr.bf16.gmra.mrb[20].mxu0 %v5854_v60  ;;  %2822 = vmatmul.mubr.bf16.gmra.mrb[52].mxu1 %v5854_v60  ;;  %v5045_v60 = vld [vmem:[%s5409_s22 + $0x60] ss:$8 sps:$4 sm:$0xff]  }
 0x6d1   : > { %3917 = vmatpush1.bf16.msra.mxu0 %v5033_v8 }
 0x6d2   : > { %3918 = vmatprep.subr.bf16.mxu0 %v5038_v23 }
 0x6d5   : > { %3919 = vmatpush1.bf16.msra.mxu0 %v5036_v33 }
 0x6d6   : > { %3920 = vmatprep.subr.bf16.mxu0 %v5041_v5 }
 0x6d9   : > { %3921 = vmatpush1.bf16.msra.mxu0 %v5039_v32 }
 0x6da   : > { %3922 = vmatprep.subr.bf16.mxu0 %v5044_v10 }
 0x6dd   : > { %3923 = vmatpush1.bf16.msra.mxu0 %v5042_v13 }
 0x6de   : > { %3924 = vmatprep.subr.bf16.mxu0 %v5047_v27 }
 0x6e1   : > { %3925 = vmatpush1.bf16.msra.mxu0 %v5045_v60 }
 0x6e2   : > { %3926 = vmatprep.subr.bf16.mxu0 %v5050_v34 }
 0x6e5   : > { %3927 = vmatpush1.bf16.msra.mxu0 %v5048_v35 }
 0x6e6   : > { %3928 = vmatprep.subr.bf16.mxu0 %v5053_v36 }
 0x6e9   : > { %3929 = vmatpush1.bf16.msra.mxu0 %v5051_v28 }
 0x6ea   : > { %3930 = vmatprep.subr.bf16.mxu0 %v5056_v37 }
 0x6ed   : > { %3931 = vmatpush1.bf16.msra.mxu0 %v5054_v38 }
 0x6ee   : > { %3932 = vmatprep.subr.bf16.mxu0 %v5059_v39 }
 0x6f1   : > { %3933 = vmatpush1.bf16.msra.mxu0 %v5057_v15 }
 0x6f2   : > { %3934 = vmatprep.subr.bf16.mxu0 %v5062_v40 }
 0x6f5   : > { %3935 = vmatpush1.bf16.msra.mxu0 %v5060_v16 }
 0x6f6   : > { %3936 = vmatprep.subr.bf16.mxu0 %v5065_v41 }
 0x6f9   : > { %3937 = vmatpush1.bf16.msra.mxu0 %v5063_v42 }
 0x6fa   : > { %3938 = vmatprep.subr.bf16.mxu0 %v5068_v43 }
 0x6fd   : > { %3939 = vmatpush1.bf16.msra.mxu0 %v5066_v45 }
 0x6fe   : > { %3940 = vmatprep.subr.bf16.mxu0 %v5071_v46 }
 0x701   : > { %3941 = vmatpush1.bf16.msra.mxu0 %v5069_v44 }
 0x702   : > { %3942 = vmatprep.subr.bf16.mxu0 %v5074_v47 }
 0x705   : > { %3943 = vmatpush1.bf16.msra.mxu0 %v5072_v56 }
 0x706   : > { %3965 = vmatprep.subr.bf16.mxu0 %v5077_v20 }
 0x75a   : > { %v2654_v1 = vpop.f32.mrb[8].mxu0  ;;  %v2707_v3 = vpop.f32.mrb[40].mxu1 }
 0x75b   : > { %v5967_v58 = vadd.f32 %v2654_v1, %v5952_v24  ;;  %v5970_v26 = vadd.f32 %v2707_v3, %v5956_v48  ;;  %v2656_v59 = vpop.f32.mrb[9].mxu0  ;;  %v2709_v61 = vpop.f32.mrb[41].mxu1 }
 0x75c   : > { %v5973_v51 = vadd.f32 %v2656_v59, %v5960_v54  ;;  %v5976_v29 = vadd.f32 %v2709_v61, %v5964_v53  ;;  %v2658_v50 = vpop.f32.mrb[10].mxu0  ;;  %v2711_v7 = vpop.f32.mrb[42].mxu1 }
 0x75d   : > { %v2832_v9 = vmul.f32 %v5967_v58, %v5967_v58  ;;  %v2834_v63 = vmul.f32 %v5970_v26, %v5970_v26  ;;  %v5983_v62 = vadd.f32 %v2658_v50, %v5952_v24  ;;  %v5986_v0 = vadd.f32 %v2711_v7, %v5956_v48  ;;  %v2660_v14 = vpop.f32.mrb[11].mxu0  ;;  %v2713_v17 = vpop.f32.mrb[43].mxu1 }
 0x75e   : > { %v2833_v18 = vmul.f32 %v5973_v51, %v5973_v51  ;;  %v2835_v19 = vmul.f32 %v5976_v29, %v5976_v29  ;;  %v5993_v6 = vadd.f32 %v2660_v14, %v5960_v54  ;;  %v5996_v8 = vadd.f32 %v2713_v17, %v5964_v53 }
 0x75f   : > { %v2864_v23 = vmul.f32 %v2832_v9, %v5967_v58  ;;  %v2866_v33 = vmul.f32 %v2834_v63, %v5970_v26  ;;  %v2840_v5 = vmul.f32 %v5983_v62, %v5983_v62  ;;  %v2842_v32 = vmul.f32 %v5986_v0, %v5986_v0 }
 0x760   : > { %v2865_v10 = vmul.f32 %v2833_v18, %v5973_v51  ;;  %v2867_v13 = vmul.f32 %v2835_v19, %v5976_v29  ;;  %v2841_v27 = vmul.f32 %v5993_v6, %v5993_v6  ;;  %v2843_v60 = vmul.f32 %v5996_v8, %v5996_v8 }
 0x761   : > { %v2896_v34 = vmul.f32 0.044715, %v2864_v23  ;;  %v2898_v35 = vmul.f32 0.044715, %v2866_v33  ;;  %v2872_v36 = vmul.f32 %v2840_v5, %v5983_v62  ;;  %v2874_v28 = vmul.f32 %v2842_v32, %v5986_v0 }
 0x762   : > { %v2897_v37 = vmul.f32 0.044715, %v2865_v10  ;;  %v2899_v38 = vmul.f32 0.044715, %v2867_v13  ;;  %v2873_v39 = vmul.f32 %v2841_v27, %v5993_v6  ;;  %v2875_v15 = vmul.f32 %v2843_v60, %v5996_v8  ;;  %v2664_v40 = vpop.f32.mrb[12].mxu0  ;;  %v2717_v16 = vpop.f32.mrb[44].mxu1 }
 0x763   : > { %v2928_v41 = vadd.f32 %v2896_v34, %v5967_v58  ;;  %v2930_v42 = vadd.f32 %v2898_v35, %v5970_v26  ;;  %v2904_v43 = vmul.f32 0.044715, %v2872_v36  ;;  %v2906_v45 = vmul.f32 0.044715, %v2874_v28  ;;  %v2666_v44 = vpop.f32.mrb[13].mxu0  ;;  %v2719_v46 = vpop.f32.mrb[45].mxu1 }
 0x764   : > { %v2929_v47 = vadd.f32 %v2897_v37, %v5973_v51  ;;  %v2931_v56 = vadd.f32 %v2899_v38, %v5976_v29  ;;  %v2905_v20 = vmul.f32 0.044715, %v2873_v39  ;;  %v2907_v1 = vmul.f32 0.044715, %v2875_v15  ;;  %v2668_v3 = vpop.f32.mrb[14].mxu0  ;;  %v2721_v59 = vpop.f32.mrb[46].mxu1 }
 0x765   : > { %v2960_v61 = vmul.f32 0.7978846, %v2928_v41  ;;  %v2962_v50 = vmul.f32 0.7978846, %v2930_v42  ;;  %v2936_v7 = vadd.f32 %v2904_v43, %v5983_v62  ;;  %v2938_v9 = vadd.f32 %v2906_v45, %v5986_v0  ;;  %v2670_v63 = vpop.f32.mrb[15].mxu0  ;;  %v2723_v14 = vpop.f32.mrb[47].mxu1 }
 0x766   : > { %v2961_v17 = vmul.f32 0.7978846, %v2929_v47  ;;  %v2963_v18 = vmul.f32 0.7978846, %v2931_v56  ;;  %v2937_v19 = vadd.f32 %v2905_v20, %v5993_v6  ;;  %v2939_v23 = vadd.f32 %v2907_v1, %v5996_v8 }
 0x767   : > { %5243 = vtanh.f32 %v2960_v61  ;;  %v2968_v33 = vmul.f32 0.7978846, %v2936_v7  ;;  %v2970_v5 = vmul.f32 0.7978846, %v2938_v9  ;;  %v6023_v32 = vadd.f32 %v2664_v40, %v5952_v24 }
 0x768   : > { %5245 = vtanh.f32 %v2962_v50  ;;  %v2969_v10 = vmul.f32 0.7978846, %v2937_v19  ;;  %v2971_v13 = vmul.f32 0.7978846, %v2939_v23  ;;  %v6026_v27 = vadd.f32 %v2717_v16, %v5956_v48 }
 0x769   : > { %5247 = vtanh.f32 %v2961_v17  ;;  %v2848_v60 = vmul.f32 %v6023_v32, %v6023_v32  ;;  %v6031_v34 = vadd.f32 %v2666_v44, %v5960_v54  ;;  %v6034_v35 = vadd.f32 %v2719_v46, %v5964_v53 }
 0x76a   : > { %5249 = vtanh.f32 %v2963_v18  ;;  %v2850_v36 = vmul.f32 %v6026_v27, %v6026_v27  ;;  %v6039_v28 = vadd.f32 %v2668_v3, %v5952_v24  ;;  %v6042_v37 = vadd.f32 %v2721_v59, %v5956_v48 }
 0x76b   : > { %5251 = vtanh.f32 %v2968_v33  ;;  %v2880_v38 = vmul.f32 %v2848_v60, %v6023_v32  ;;  %v2849_v39 = vmul.f32 %v6031_v34, %v6031_v34  ;;  %v2851_v15 = vmul.f32 %v6034_v35, %v6034_v35 }
 0x76c   : > { %5253 = vtanh.f32 %v2970_v5  ;;  %v2882_v40 = vmul.f32 %v2850_v36, %v6026_v27  ;;  %v2856_v16 = vmul.f32 %v6039_v28, %v6039_v28  ;;  %v2858_v24 = vmul.f32 %v6042_v37, %v6042_v37 }
 0x76d   : > { %5255 = vtanh.f32 %v2969_v10  ;;  %v2912_v48 = vmul.f32 0.044715, %v2880_v38  ;;  %v2881_v41 = vmul.f32 %v2849_v39, %v6031_v34  ;;  %v2883_v42 = vmul.f32 %v2851_v15, %v6034_v35 }
 0x76e   : > { %5257 = vtanh.f32 %v2971_v13  ;;  %v2914_v43 = vmul.f32 0.044715, %v2882_v40  ;;  %v2888_v45 = vmul.f32 %v2856_v16, %v6039_v28  ;;  %v2890_v44 = vmul.f32 %v2858_v24, %v6042_v37 }
 0x76f   : > { %v2944_v46 = vadd.f32 %v2912_v48, %v6023_v32  ;;  %v2913_v47 = vmul.f32 0.044715, %v2881_v41  ;;  %v2915_v56 = vmul.f32 0.044715, %v2883_v42  ;;  %v6060_v20 = vadd.f32 %v2670_v63, %v5960_v54 }
 0x770   : > { %v2946_v1 = vadd.f32 %v2914_v43, %v6026_v27  ;;  %v2920_v3 = vmul.f32 0.044715, %v2888_v45  ;;  %v2922_v59 = vmul.f32 0.044715, %v2890_v44  ;;  %v6064_v61 = vadd.f32 %v2723_v14, %v5964_v53 }
 0x771   : > { %v5244_v50 = vpop.eup %5243  ;;  %v2976_v7 = vmul.f32 0.7978846, %v2944_v46  ;;  %v2945_v9 = vadd.f32 %v2913_v47, %v6031_v34  ;;  %v2947_v17 = vadd.f32 %v2915_v56, %v6034_v35  ;;  %v2857_v18 = vmul.f32 %v6060_v20, %v6060_v20 }
 0x772   : > { %v5246_v19 = vpop.eup %5245  ;;  %v3024_v23 = vadd.f32 1.0, %v5244_v50  ;;  %v2978_v54 = vmul.f32 0.7978846, %v2946_v1  ;;  %v2952_v63 = vadd.f32 %v2920_v3, %v6039_v28  ;;  %v2954_v33 = vadd.f32 %v2922_v59, %v6042_v37 }
 0x773   : > { %v5248_v5 = vpop.eup %5247  ;;  %v3026_v10 = vadd.f32 1.0, %v5246_v19  ;;  %5259 = vtanh.f32 %v2976_v7  ;;  %v2977_v53 = vmul.f32 0.7978846, %v2945_v9  ;;  %v2979_v14 = vmul.f32 0.7978846, %v2947_v17 }
 0x774   : > { %v5250_v13 = vpop.eup %5249  ;;  %v3056_v60 = vmul.f32 0.5, %v3024_v23  ;;  %5261 = vtanh.f32 %v2978_v54  ;;  %v2984_v36 = vmul.f32 0.7978846, %v2952_v63  ;;  %v2986_v38 = vmul.f32 0.7978846, %v2954_v33 }
 0x775   : > { %v5252_v39 = vpop.eup %5251  ;;  %v3058_v15 = vmul.f32 0.5, %v3026_v10  ;;  %5263 = vtanh.f32 %v2977_v53  ;;  %v2889_v40 = vmul.f32 %v2857_v18, %v6060_v20  ;;  %v2859_v16 = vmul.f32 %v6064_v61, %v6064_v61 }
 0x776   : > { %v5254_v24 = vpop.eup %5253  ;;  %v3088_v48 = vmul.f32 %v3056_v60, %v5967_v58  ;;  %v3032_v41 = vadd.f32 1.0, %v5252_v39  ;;  %5265 = vtanh.f32 %v2979_v14  ;;  %v3025_v42 = vadd.f32 1.0, %v5248_v5 }
 0x777   : > { %v5256_v43 = vpop.eup %5255  ;;  %v6077_v45 = vmul.f32 %v3058_v15, %v5970_v26  ;;  %v3034_v44 = vadd.f32 1.0, %v5254_v24  ;;  %5267 = vtanh.f32 %v2984_v36  ;;  %v2921_v46 = vmul.f32 0.044715, %v2889_v40  ;;  %v5075_v36 = vld [vmem:[%s5409_s22 + $0x100] ss:$8 sps:$4 sm:$0xff]  }
 0x778   : > { %v5258_v47 = vpop.eup %5257  ;;  %v3064_v56 = vmul.f32 0.5, %v3032_v41  ;;  %5269 = vtanh.f32 %v2986_v38  ;;  %v2891_v1 = vmul.f32 %v2859_v16, %v6064_v61  ;;  %v3033_v3 = vadd.f32 1.0, %v5256_v43  ;;  %v5078_v41 = vld [vmem:[%s5409_s22 + $0x110] ss:$8 sps:$4 sm:$0xff]  }
 0x779   : > { %v3066_v59 = vmul.f32 0.5, %v3034_v44  ;;  %v2953_v50 = vadd.f32 %v2921_v46, %v6060_v20  ;;  %v3057_v58 = vmul.f32 0.5, %v3025_v42  ;;  %v3027_v7 = vadd.f32 1.0, %v5250_v13 }
 0x77a   : > { %v3096_v9 = vmul.f32 %v3064_v56, %v5983_v62  ;;  %v2923_v17 = vmul.f32 0.044715, %v2891_v1  ;;  %v3065_v18 = vmul.f32 0.5, %v3033_v3  ;;  %v3035_v26 = vadd.f32 1.0, %v5258_v47  ;;  %v5081_v3 = vld [vmem:[%s5409_s22 + $0x120] ss:$8 sps:$4 sm:$0xff]  }
 0x77b   : > { %v6083_v19 = vmul.f32 %v3066_v59, %v5986_v0  ;;  %v2985_v23 = vmul.f32 0.7978846, %v2953_v50  ;;  %v3089_v54 = vmul.f32 %v3057_v58, %v5973_v51  ;;  %v3059_v63 = vmul.f32 0.5, %v3027_v7  ;;  %v5086_v7 = vld [vmem:[%s5409_s22 + $0x134] ss:$8 sps:$4 sm:$0xff]  }
 0x77c   : > { %v3120_v33 = vpack.c.bf16 %v3096_v9, %v3088_v48  ;;  %v2955_v5 = vadd.f32 %v2923_v17, %v6064_v61  ;;  %v3097_v10 = vmul.f32 %v3065_v18, %v5993_v6  ;;  %v3067_v53 = vmul.f32 0.5, %v3035_v26  ;;  %v5080_v6 = vld [vmem:[%s5409_s22 + $0x114] ss:$8 sps:$4 sm:$0xff]  }
 0x77d   : > { %v5260_v14 = vpop.eup %5259  ;;  %v3122_v62 = vpack.c.bf16 %v6083_v19, %v6077_v45  ;;  %5271 = vtanh.f32 %v2985_v23  ;;  %v6091_v13 = vmul.f32 %v3059_v63, %v5976_v29  ;;  %v5129_v45 = vld [vmem:[%s5409_s22 + $0x220] ss:$8 sps:$4 sm:$0xff]  }
 0x77e   : > { %v5262_v0 = vpop.eup %5261  ;;  %v2987_v60 = vmul.f32 0.7978846, %v2955_v5  ;;  %v3121_v51 = vpack.c.bf16 %v3097_v10, %v3089_v54  ;;  %v3040_v38 = vadd.f32 1.0, %v5260_v14  ;;  %v3099_v39 = vmul.f32 %v3067_v53, %v5996_v8  ;;  %v5083_v8 = vld [vmem:[%s5409_s22 + $0x124] ss:$8 sps:$4 sm:$0xff]  }
 0x77f   : > { %v5264_v15 = vpop.eup %5263  ;;  %v3042_v40 = vadd.f32 1.0, %v5262_v0  ;;  %v5089_v5 = vld [vmem:[%s5409_s22 + $0x144] ss:$8 sps:$4 sm:$0xff]   ;;  %v5087_v0 = vld [vmem:[%s5409_s22 + $0x140] ss:$8 sps:$4 sm:$0xff]  }
 0x780   : > { %v5266_v16 = vpop.eup %5265  ;;  %5273 = vtanh.f32 %v2987_v60  ;;  %3944 = vmatprep.mubr.bf16.mxu0 %v3121_v51  ;;  %v3123_v24 = vpack.c.bf16 %v3099_v39, %v6091_v13  ;;  %v3072_v43 = vmul.f32 0.5, %v3040_v38  ;;  %v3041_v47 = vadd.f32 1.0, %v5264_v15  ;;  %v5092_v60 = vld [vmem:[%s5409_s22 + $0x154] ss:$8 sps:$4 sm:$0xff]   ;;  %v5095_v38 = vld [vmem:[%s5409_s22 + $0x164] ss:$8 sps:$4 sm:$0xff]  }
 0x781   : > { %v5268_v29 = vpop.eup %5267  ;;  %3945 = vmatmul.mubr.bf16.vlgmr.msra.gmra.mrb[24].mxu0 %v3120_v33  ;;  %v3074_v46 = vmul.f32 0.5, %v3042_v40  ;;  %v3043_v9 = vadd.f32 1.0, %v5266_v16  ;;  %v5084_v33 = vld [vmem:[%s5409_s22 + $0x130] ss:$8 sps:$4 sm:$0xff]   ;;  %v1966_v39 = vsub.s32 6, %v5520_v25  ;;  %v6140_v16 = vrot.slane %v5948_v30, %v5588_v12 }
 0x782   : > { %v5270_v48 = vpop.eup %5269  ;;  %3966 = vmatpush1.bf16.msra.mxu0 %v5075_v36  ;;  %v3048_v42 = vadd.f32 1.0, %v5268_v29  ;;  %v3104_v59 = vmul.f32 %v3072_v43, %v6023_v32  ;;  %v3073_v23 = vmul.f32 0.5, %v3041_v47  ;;  %v5093_v15 = vld [vmem:[%s5409_s22 + $0x160] ss:$8 sps:$4 sm:$0xff]   ;;  %v5098_v40 = vld [vmem:[%s5409_s22 + $0x174] ss:$8 sps:$4 sm:$0xff]  }
 0x783   : > { %3967 = vmatprep.subr.bf16.mxu0 %v5080_v6  ;;  %v3050_v44 = vadd.f32 1.0, %v5270_v48  ;;  %v6104_v17 = vmul.f32 %v3074_v46, %v6026_v27  ;;  %v3075_v27 = vmul.f32 0.5, %v3043_v9  ;;  %v6135_v6 = vrot.slane %v5948_v30, %v1966_v39  ;;  %v5096_v48 = vld [vmem:[%s5409_s22 + $0x170] ss:$8 sps:$4 sm:$0xff]  }
 0x784   : > { %v3080_v56 = vmul.f32 0.5, %v3048_v42 }
 0x785   : > { %v3082_v1 = vmul.f32 0.5, %v3050_v44  ;;  %v6118_v51 = vmul.f32 %v3075_v27, %v6034_v35  ;;  %v1970_v35 = vsub.s32 7, %v5520_v25  ;;  %v5101_v44 = vld [vmem:[%s5409_s22 + $0x184] ss:$8 sps:$4 sm:$0xff]   ;;  %v5104_v27 = vld [vmem:[%s5409_s22 + $0x194] ss:$8 sps:$4 sm:$0xff]  }
 0x786   : > { %3968 = vmatpush1.bf16.msra.mxu0 %v5078_v41  ;;  %v3112_v50 = vmul.f32 %v3080_v56, %v6039_v28 }
 0x787   : > { %v5272_v58 = vpop.eup %5271  ;;  %3969 = vmatprep.subr.bf16.mxu0 %v5083_v8  ;;  %v6107_v18 = vmul.f32 %v3082_v1, %v6042_v37  ;;  %v3105_v37 = vmul.f32 %v3073_v23, %v6031_v34 }
 0x788   : > { %v3049_v26 = vadd.f32 1.0, %v5272_v58  ;;  %v3128_v54 = vpack.c.bf16 %v3112_v50, %v3104_v59 }
 0x789   : > { %v3130_v32 = vpack.c.bf16 %v6107_v18, %v6104_v17 }
 0x78a   : > { %v5274_v28 = vpop.eup %5273  ;;  %v3081_v63 = vmul.f32 0.5, %v3049_v26  ;;  %3970 = vmatpush1.bf16.msra.mxu0 %v5081_v3 }
 0x78b   : > { %3971 = vmatprep.subr.bf16.mxu0 %v5086_v7  ;;  %v3051_v10 = vadd.f32 1.0, %v5274_v28  ;;  %v5099_v28 = vld [vmem:[%s5409_s22 + $0x180] ss:$8 sps:$4 sm:$0xff]  }
 0x78c   : > { %v3113_v53 = vmul.f32 %v3081_v63, %v6060_v20  ;;  %v5090_v20 = vld [vmem:[%s5409_s22 + $0x150] ss:$8 sps:$4 sm:$0xff]  }
 0x78d   : > { %v3083_v14 = vmul.f32 0.5, %v3051_v10 }
 0x78e   : > { %v3129_v13 = vpack.c.bf16 %v3113_v53, %v3105_v37  ;;  %3972 = vmatpush1.bf16.msra.mxu0 %v5084_v33 }
 0x78f   : > { %3973 = vmatprep.subr.bf16.mxu0 %v5089_v5  ;;  %v6121_v36 = vmul.f32 %v3083_v14, %v6064_v61  ;;  %v6132_v61 = vrot.slane %v5948_v30, %v5585_v11 }
 0x790   : > { %3954 = vmatprep.mubr.bf16.mxu0 %v3129_v13 }
 0x791   : > { %3955 = vmatmul.mubr.bf16.gmra.mrb[28].mxu0 %v3128_v54  ;;  %v3131_v34 = vpack.c.bf16 %v6121_v36, %v6118_v51  ;;  %v5134_v36 = vld [vmem:[%s5409_s22 + $0x234] ss:$8 sps:$4 sm:$0xff]  }
 0x792   : > { %3997 = vmatprep.mubr.bf16.mxu0 %v3123_v24  ;;  %3974 = vmatpush1.bf16.msra.mxu0 %v5087_v0  ;;  %v6143_v24 = vrot.slane %v5948_v30, %v1970_v35  ;;  %v5102_v0 = vld [vmem:[%s5409_s22 + $0x190] ss:$8 sps:$4 sm:$0xff]   ;;  %v5107_v35 = vld [vmem:[%s5409_s22 + $0x1a4] ss:$8 sps:$4 sm:$0xff]  }
 0x793   : > { %3975 = vmatprep.subr.bf16.mxu0 %v5092_v60 }
 0x796   : > { %3976 = vmatpush1.bf16.msra.mxu0 %v5090_v20 }
 0x797   : > { %3977 = vmatprep.subr.bf16.mxu0 %v5095_v38 }
 0x79a   : > { %3978 = vmatpush1.bf16.msra.mxu0 %v5093_v15  ;;  %v2760_v25 = vpop.f32.mrb[16].mxu0  ;;  %v2813_v29 = vpop.f32.mrb[48].mxu1 }
 0x79b   : > { %v6147_v41 = vadd.f32 %v2760_v25, %v6132_v61  ;;  %v6150_v42 = vadd.f32 %v2813_v29, %v6135_v6  ;;  %3979 = vmatprep.subr.bf16.mxu0 %v5098_v40  ;;  %v2762_v43 = vpop.f32.mrb[17].mxu0  ;;  %v2815_v8 = vpop.f32.mrb[49].mxu1 }
 0x79c   : > { %v6154_v46 = vadd.f32 %v2762_v43, %v6140_v16  ;;  %v6157_v30 = vadd.f32 %v2815_v8, %v6143_v24  ;;  %v2764_v47 = vpop.f32.mrb[18].mxu0  ;;  %v2817_v56 = vpop.f32.mrb[50].mxu1 }
 0x79d   : > { %v2836_v1 = vmul.f32 %v6147_v41, %v6147_v41  ;;  %v2838_v3 = vmul.f32 %v6150_v42, %v6150_v42  ;;  %v6164_v59 = vadd.f32 %v2764_v47, %v6132_v61  ;;  %v6167_v50 = vadd.f32 %v2817_v56, %v6135_v6  ;;  %v2766_v58 = vpop.f32.mrb[19].mxu0  ;;  %v2819_v7 = vpop.f32.mrb[51].mxu1 }
 0x79e   : > { %v2837_v9 = vmul.f32 %v6154_v46, %v6154_v46  ;;  %v2839_v26 = vmul.f32 %v6157_v30, %v6157_v30  ;;  %3980 = vmatpush1.bf16.msra.mxu0 %v5096_v48  ;;  %v6174_v23 = vadd.f32 %v2766_v58, %v6140_v16  ;;  %v6177_v54 = vadd.f32 %v2819_v7, %v6143_v24 }
 0x79f   : > { %v2868_v63 = vmul.f32 %v2836_v1, %v6147_v41  ;;  %v2870_v33 = vmul.f32 %v2838_v3, %v6150_v42  ;;  %v2844_v5 = vmul.f32 %v6164_v59, %v6164_v59  ;;  %v2846_v10 = vmul.f32 %v6167_v50, %v6167_v50  ;;  %3981 = vmatprep.subr.bf16.mxu0 %v5101_v44 }
 0x7a0   : > { %v2869_v37 = vmul.f32 %v2837_v9, %v6154_v46  ;;  %v2871_v53 = vmul.f32 %v2839_v26, %v6157_v30  ;;  %v2845_v14 = vmul.f32 %v6174_v23, %v6174_v23  ;;  %v2847_v13 = vmul.f32 %v6177_v54, %v6177_v54 }
 0x7a1   : > { %v2900_v60 = vmul.f32 0.044715, %v2868_v63  ;;  %v2902_v20 = vmul.f32 0.044715, %v2870_v33  ;;  %v2876_v38 = vmul.f32 %v2844_v5, %v6164_v59  ;;  %v2878_v39 = vmul.f32 %v2846_v10, %v6167_v50 }
 0x7a2   : > { %v2901_v15 = vmul.f32 0.044715, %v2869_v37  ;;  %v2903_v40 = vmul.f32 0.044715, %v2871_v53  ;;  %v2877_v25 = vmul.f32 %v2845_v14, %v6174_v23  ;;  %v2879_v29 = vmul.f32 %v2847_v13, %v6177_v54  ;;  %3982 = vmatpush1.bf16.msra.mxu0 %v5099_v28  ;;  %v2770_v48 = vpop.f32.mrb[20].mxu0  ;;  %v2823_v43 = vpop.f32.mrb[52].mxu1 }
 0x7a3   : > { %v2932_v8 = vadd.f32 %v2900_v60, %v6147_v41  ;;  %v2934_v44 = vadd.f32 %v2902_v20, %v6150_v42  ;;  %v2908_v47 = vmul.f32 0.044715, %v2876_v38  ;;  %v2910_v56 = vmul.f32 0.044715, %v2878_v39  ;;  %3983 = vmatprep.subr.bf16.mxu0 %v5104_v27  ;;  %v2772_v1 = vpop.f32.mrb[21].mxu0  ;;  %v2825_v3 = vpop.f32.mrb[53].mxu1 }
 0x7a4   : > { %v2933_v58 = vadd.f32 %v2901_v15, %v6154_v46  ;;  %v2935_v7 = vadd.f32 %v2903_v40, %v6157_v30  ;;  %v2909_v9 = vmul.f32 0.044715, %v2877_v25  ;;  %v2911_v26 = vmul.f32 0.044715, %v2879_v29  ;;  %v2774_v63 = vpop.f32.mrb[22].mxu0  ;;  %v2827_v28 = vpop.f32.mrb[54].mxu1 }
 0x7a5   : > { %v2964_v33 = vmul.f32 0.7978846, %v2932_v8  ;;  %v2966_v5 = vmul.f32 0.7978846, %v2934_v44  ;;  %v2940_v10 = vadd.f32 %v2908_v47, %v6164_v59  ;;  %v2942_v37 = vadd.f32 %v2910_v56, %v6167_v50  ;;  %v2776_v53 = vpop.f32.mrb[23].mxu0  ;;  %v2829_v27 = vpop.f32.mrb[55].mxu1 }
 0x7a6   : > { %v2965_v14 = vmul.f32 0.7978846, %v2933_v58  ;;  %v2967_v13 = vmul.f32 0.7978846, %v2935_v7  ;;  %v2941_v60 = vadd.f32 %v2909_v9, %v6174_v23  ;;  %v2943_v20 = vadd.f32 %v2911_v26, %v6177_v54  ;;  %3984 = vmatpush1.bf16.msra.mxu0 %v5102_v0  ;;  %v5105_v38 = vld [vmem:[%s5409_s22 + $0x1a0] ss:$8 sps:$4 sm:$0xff]  }
 0x7a7   : > { %5275 = vtanh.f32 %v2964_v33  ;;  %v2972_v39 = vmul.f32 0.7978846, %v2940_v10  ;;  %v2974_v15 = vmul.f32 0.7978846, %v2942_v37  ;;  %v6209_v40 = vadd.f32 %v2770_v48, %v6132_v61  ;;  %3985 = vmatprep.subr.bf16.mxu0 %v5107_v35  ;;  %v5110_v25 = vld [vmem:[%s5409_s22 + $0x1b4] ss:$8 sps:$4 sm:$0xff]  }
 0x7a8   : > { %5277 = vtanh.f32 %v2966_v5  ;;  %v2973_v29 = vmul.f32 0.7978846, %v2941_v60  ;;  %v2975_v8 = vmul.f32 0.7978846, %v2943_v20  ;;  %v6213_v44 = vadd.f32 %v2823_v43, %v6135_v6  ;;  %v5108_v58 = vld [vmem:[%s5409_s22 + $0x1b0] ss:$8 sps:$4 sm:$0xff]  }
 0x7a9   : > { %5279 = vtanh.f32 %v2965_v14  ;;  %v2852_v0 = vmul.f32 %v6209_v40, %v6209_v40  ;;  %v6218_v47 = vadd.f32 %v2772_v1, %v6140_v16  ;;  %v6221_v48 = vadd.f32 %v2825_v3, %v6143_v24  ;;  %v5113_v9 = vld [vmem:[%s5409_s22 + $0x1c4] ss:$8 sps:$4 sm:$0xff]   ;;  %v5111_v14 = vld [vmem:[%s5409_s22 + $0x1c0] ss:$8 sps:$4 sm:$0xff]  }
 0x7aa   : > { %5281 = vtanh.f32 %v2967_v13  ;;  %v2854_v35 = vmul.f32 %v6213_v44, %v6213_v44  ;;  %v6226_v56 = vadd.f32 %v2774_v63, %v6132_v61  ;;  %v6229_v43 = vadd.f32 %v2827_v28, %v6135_v6  ;;  %3986 = vmatpush1.bf16.msra.mxu0 %v5105_v38 }
 0x7ab   : > { %5283 = vtanh.f32 %v2972_v39  ;;  %v2884_v7 = vmul.f32 %v2852_v0, %v6209_v40  ;;  %v2853_v1 = vmul.f32 %v6218_v47, %v6218_v47  ;;  %v2855_v3 = vmul.f32 %v6221_v48, %v6221_v48  ;;  %3987 = vmatprep.subr.bf16.mxu0 %v5110_v25  ;;  %v5116_v39 = vld [vmem:[%s5409_s22 + $0x1d4] ss:$8 sps:$4 sm:$0xff]  }
 0x7ac   : > { %5285 = vtanh.f32 %v2974_v15  ;;  %v2886_v61 = vmul.f32 %v2854_v35, %v6213_v44  ;;  %v2860_v6 = vmul.f32 %v6226_v56, %v6226_v56  ;;  %v2862_v26 = vmul.f32 %v6229_v43, %v6229_v43 }
 0x7ad   : > { %5287 = vtanh.f32 %v2973_v29  ;;  %v2916_v63 = vmul.f32 0.044715, %v2884_v7  ;;  %v2885_v28 = vmul.f32 %v2853_v1, %v6218_v47  ;;  %v2887_v33 = vmul.f32 %v2855_v3, %v6221_v48 }
 0x7ae   : > { %5289 = vtanh.f32 %v2975_v8  ;;  %v2918_v5 = vmul.f32 0.044715, %v2886_v61  ;;  %v2892_v10 = vmul.f32 %v2860_v6, %v6226_v56  ;;  %v2894_v37 = vmul.f32 %v2862_v26, %v6229_v43  ;;  %3988 = vmatpush1.bf16.msra.mxu0 %v5108_v58 }
 0x7af   : > { %v2948_v13 = vadd.f32 %v2916_v63, %v6209_v40  ;;  %v2917_v60 = vmul.f32 0.044715, %v2885_v28  ;;  %v2919_v20 = vmul.f32 0.044715, %v2887_v33  ;;  %v6250_v38 = vadd.f32 %v2776_v53, %v6140_v16  ;;  %3989 = vmatprep.subr.bf16.mxu0 %v5113_v9  ;;  %v5114_v53 = vld [vmem:[%s5409_s22 + $0x1d0] ss:$8 sps:$4 sm:$0xff]  }
 0x7b0   : > { %v2950_v15 = vadd.f32 %v2918_v5, %v6213_v44  ;;  %v2924_v25 = vmul.f32 0.044715, %v2892_v10  ;;  %v2926_v29 = vmul.f32 0.044715, %v2894_v37  ;;  %v6255_v8 = vadd.f32 %v2829_v27, %v6143_v24  ;;  %v5119_v24 = vld [vmem:[%s5409_s22 + $0x1e4] ss:$8 sps:$4 sm:$0xff]  }
 0x7b1   : > { %v5276_v0 = vpop.eup %5275  ;;  %v2980_v35 = vmul.f32 0.7978846, %v2948_v13  ;;  %v2949_v58 = vadd.f32 %v2917_v60, %v6218_v47  ;;  %v2951_v7 = vadd.f32 %v2919_v20, %v6221_v48  ;;  %v2861_v16 = vmul.f32 %v6250_v38, %v6250_v38 }
 0x7b2   : > { %v5278_v1 = vpop.eup %5277  ;;  %v3028_v3 = vadd.f32 1.0, %v5276_v0  ;;  %v2982_v9 = vmul.f32 0.7978846, %v2950_v15  ;;  %v2956_v61 = vadd.f32 %v2924_v25, %v6226_v56  ;;  %v2958_v6 = vadd.f32 %v2926_v29, %v6229_v43  ;;  %3990 = vmatpush1.bf16.msra.mxu0 %v5111_v14  ;;  %v5117_v29 = vld [vmem:[%s5409_s22 + $0x1e0] ss:$8 sps:$4 sm:$0xff]  }
 0x7b3   : > { %v5280_v27 = vpop.eup %5279  ;;  %v3030_v26 = vadd.f32 1.0, %v5278_v1  ;;  %5291 = vtanh.f32 %v2980_v35  ;;  %v2981_v63 = vmul.f32 0.7978846, %v2949_v58  ;;  %v2983_v28 = vmul.f32 0.7978846, %v2951_v7  ;;  %3991 = vmatprep.subr.bf16.mxu0 %v5116_v39 }
 0x7b4   : > { %v5282_v33 = vpop.eup %5281  ;;  %v3060_v5 = vmul.f32 0.5, %v3028_v3  ;;  %5293 = vtanh.f32 %v2982_v9  ;;  %v2988_v10 = vmul.f32 0.7978846, %v2956_v61  ;;  %v2990_v37 = vmul.f32 0.7978846, %v2958_v6 }
 0x7b5   : > { %v5284_v13 = vpop.eup %5283  ;;  %v3062_v60 = vmul.f32 0.5, %v3030_v26  ;;  %5295 = vtanh.f32 %v2981_v63  ;;  %v2893_v20 = vmul.f32 %v2861_v16, %v6250_v38  ;;  %v2863_v14 = vmul.f32 %v6255_v8, %v6255_v8  ;;  %v5122_v1 = vld [vmem:[%s5409_s22 + $0x1f4] ss:$8 sps:$4 sm:$0xff]  }
 0x7b6   : > { %v5286_v15 = vpop.eup %5285  ;;  %v6269_v25 = vmul.f32 %v3060_v5, %v6147_v41  ;;  %v3036_v39 = vadd.f32 1.0, %v5284_v13  ;;  %5297 = vtanh.f32 %v2983_v28  ;;  %3992 = vmatpush1.bf16.msra.mxu0 %v5114_v53  ;;  %v3029_v0 = vadd.f32 1.0, %v5280_v27  ;;  %v5120_v28 = vld [vmem:[%s5409_s22 + $0x1f0] ss:$8 sps:$4 sm:$0xff]   ;;  %v5125_v13 = vld [vmem:[%s5409_s22 + $0x204] ss:$8 sps:$4 sm:$0xff]  }
 0x7b7   : > { %v5288_v35 = vpop.eup %5287  ;;  %v6273_v58 = vmul.f32 %v3062_v60, %v6150_v42  ;;  %v3038_v7 = vadd.f32 1.0, %v5286_v15  ;;  %5299 = vtanh.f32 %v2988_v10  ;;  %v2925_v16 = vmul.f32 0.044715, %v2893_v20  ;;  %3993 = vmatprep.subr.bf16.mxu0 %v5119_v24 }
 0x7b8   : > { %v5290_v3 = vpop.eup %5289  ;;  %v3068_v9 = vmul.f32 0.5, %v3036_v39  ;;  %5301 = vtanh.f32 %v2990_v37  ;;  %v2895_v41 = vmul.f32 %v2863_v14, %v6255_v8  ;;  %v3037_v61 = vadd.f32 1.0, %v5288_v35  ;;  %v5123_v35 = vld [vmem:[%s5409_s22 + $0x200] ss:$8 sps:$4 sm:$0xff]  }
 0x7b9   : > { %v3070_v53 = vmul.f32 0.5, %v3038_v7  ;;  %v2957_v6 = vadd.f32 %v2925_v16, %v6250_v38  ;;  %v3061_v27 = vmul.f32 0.5, %v3029_v0  ;;  %v3031_v26 = vadd.f32 1.0, %v5282_v33 }
 0x7ba   : > { %v6279_v42 = vmul.f32 %v3068_v9, %v6164_v59  ;;  %v2927_v63 = vmul.f32 0.044715, %v2895_v41  ;;  %3994 = vmatpush1.bf16.msra.mxu0 %v5117_v29  ;;  %v3069_v24 = vmul.f32 0.5, %v3037_v61  ;;  %v3039_v5 = vadd.f32 1.0, %v5290_v3  ;;  %v5128_v3 = vld [vmem:[%s5409_s22 + $0x214] ss:$8 sps:$4 sm:$0xff]  }
 0x7bb   : > { %v6283_v10 = vmul.f32 %v3070_v53, %v6167_v50  ;;  %v2989_v37 = vmul.f32 0.7978846, %v2957_v6  ;;  %3995 = vmatprep.subr.bf16.mxu0 %v5122_v1  ;;  %v3093_v60 = vmul.f32 %v3061_v27, %v6154_v46  ;;  %v3063_v20 = vmul.f32 0.5, %v3031_v26  ;;  %v5131_v26 = vld [vmem:[%s5409_s22 + $0x224] ss:$8 sps:$4 sm:$0xff]  }
 0x7bc   : > { %v3124_v33 = vpack.c.bf16 %v6279_v42, %v6269_v25  ;;  %v2959_v59 = vadd.f32 %v2927_v63, %v6255_v8  ;;  %v3101_v14 = vmul.f32 %v3069_v24, %v6174_v23  ;;  %v3071_v15 = vmul.f32 0.5, %v3039_v5  ;;  %v5180_v25 = vld [vmem:[%s5409_s22 + $0x330] ss:$8 sps:$4 sm:$0xff]   ;;  %v5185_v42 = vld [vmem:[%s5409_s22 + $0x344] ss:$8 sps:$4 sm:$0xff]  }
 0x7bd   : > { %v5292_v39 = vpop.eup %5291  ;;  %v3126_v50 = vpack.c.bf16 %v6283_v10, %v6273_v58  ;;  %5303 = vtanh.f32 %v2989_v37  ;;  %v6294_v29 = vmul.f32 %v3063_v20, %v6157_v30 }
 0x7be   : > { %v5294_v0 = vpop.eup %5293  ;;  %v2991_v46 = vmul.f32 0.7978846, %v2959_v59  ;;  %3996 = vmatpush1.bf16.msra.mxu0 %v5120_v28  ;;  %v3125_v7 = vpack.c.bf16 %v3101_v14, %v3093_v60  ;;  %v3044_v16 = vadd.f32 1.0, %v5292_v39  ;;  %v6298_v1 = vmul.f32 %v3071_v15, %v6177_v54  ;;  %v5126_v54 = vld [vmem:[%s5409_s22 + $0x210] ss:$8 sps:$4 sm:$0xff]  }
 0x7bf   : > { %v5296_v23 = vpop.eup %5295  ;;  %4018 = vmatprep.subr.bf16.mxu0 %v5125_v13  ;;  %v3046_v9 = vadd.f32 1.0, %v5294_v0  ;;  %v5137_v15 = vld [vmem:[%s5409_s22 + $0x244] ss:$8 sps:$4 sm:$0xff]  }
 0x7c0   : > { %v5298_v41 = vpop.eup %5297  ;;  %5305 = vtanh.f32 %v2991_v46  ;;  %v3127_v30 = vpack.c.bf16 %v6298_v1, %v6294_v29  ;;  %v3076_v27 = vmul.f32 0.5, %v3044_v16  ;;  %v3045_v24 = vadd.f32 1.0, %v5296_v23  ;;  %v5189_v29 = vld [vmem:[%s5409_s22 + $0x360] ss:$8 sps:$4 sm:$0xff]   ;;  %v5194_v1 = vld [vmem:[%s5409_s22 + $0x374] ss:$8 sps:$4 sm:$0xff]  }
 0x7c1   : > { %v5300_v61 = vpop.eup %5299  ;;  %3998 = vmatmul.mubr.bf16.vlgmr.msra.gmra.mrb[24].mxu0 %v3122_v62  ;;  %v3078_v28 = vmul.f32 0.5, %v3046_v9  ;;  %v5141_v9 = vld [vmem:[%s5409_s22 + $0x260] ss:$8 sps:$4 sm:$0xff]  }
 0x7c2   : > { %v5302_v53 = vpop.eup %5301  ;;  %4007 = vmatprep.mubr.bf16.mxu0 %v3131_v34  ;;  %4019 = vmatpush1.bf16.msra.mxu0 %v5123_v35  ;;  %v3052_v6 = vadd.f32 1.0, %v5300_v61  ;;  %v6313_v19 = vmul.f32 %v3076_v27, %v6209_v40  ;;  %v3047_v34 = vadd.f32 1.0, %v5298_v41  ;;  %v3077_v59 = vmul.f32 0.5, %v3045_v24  ;;  %v5144_v41 = vld [vmem:[%s5409_s22 + $0x270] ss:$8 sps:$4 sm:$0xff]  }
 0x7c3   : > { %4020 = vmatprep.subr.bf16.mxu0 %v5128_v3  ;;  %v3054_v63 = vadd.f32 1.0, %v5302_v53  ;;  %v6320_v13 = vmul.f32 %v3078_v28, %v6213_v44  ;;  %v5132_v44 = vld [vmem:[%s5409_s22 + $0x230] ss:$8 sps:$4 sm:$0xff]   ;;  %v5143_v3 = vld [vmem:[%s5409_s22 + $0x264] ss:$8 sps:$4 sm:$0xff]  }
 0x7c4   : > { %v3084_v5 = vmul.f32 0.5, %v3052_v6  ;;  %v3079_v0 = vmul.f32 0.5, %v3047_v34  ;;  %v3109_v46 = vmul.f32 %v3077_v59, %v6218_v47  ;;  %v5147_v61 = vld [vmem:[%s5409_s22 + $0x280] ss:$8 sps:$4 sm:$0xff]   ;;  %v5152_v53 = vld [vmem:[%s5409_s22 + $0x294] ss:$8 sps:$4 sm:$0xff]  }
 0x7c5   : > { %v3086_v37 = vmul.f32 0.5, %v3054_v63  ;;  %v5155_v6 = vld [vmem:[%s5409_s22 + $0x2a4] ss:$8 sps:$4 sm:$0xff]   ;;  %v5153_v27 = vld [vmem:[%s5409_s22 + $0x2a0] ss:$8 sps:$4 sm:$0xff]  }
 0x7c6   : > { %4021 = vmatpush1.bf16.msra.mxu0 %v5126_v54  ;;  %v6316_v62 = vmul.f32 %v3084_v5, %v6226_v56  ;;  %v6339_v16 = vmul.f32 %v3079_v0, %v6221_v48  ;;  %v5146_v48 = vld [vmem:[%s5409_s22 + $0x274] ss:$8 sps:$4 sm:$0xff]   ;;  %v5150_v54 = vld [vmem:[%s5409_s22 + $0x290] ss:$8 sps:$4 sm:$0xff]   ;;  %v5161_v28 = vld [vmem:[%s5409_s22 + $0x2c4] ss:$8 sps:$4 sm:$0xff]  }
 0x7c7   : > { %v5304_v51 = vpop.eup %5303  ;;  %4022 = vmatprep.subr.bf16.mxu0 %v5131_v26  ;;  %v6323_v60 = vmul.f32 %v3086_v37, %v6229_v43  ;;  %v5158_v26 = vld [vmem:[%s5409_s22 + $0x2b4] ss:$8 sps:$4 sm:$0xff]   ;;  %v5156_v63 = vld [vmem:[%s5409_s22 + $0x2b0] ss:$8 sps:$4 sm:$0xff]   ;;  %v5159_v24 = vld [vmem:[%s5409_s22 + $0x2c0] ss:$8 sps:$4 sm:$0xff]  }
 0x7c8   : > { %v3053_v20 = vadd.f32 1.0, %v5304_v51  ;;  %v3132_v40 = vpack.c.bf16 %v6316_v62, %v6313_v19  ;;  %v5164_v5 = vld [vmem:[%s5409_s22 + $0x2d4] ss:$8 sps:$4 sm:$0xff]   ;;  %v5162_v37 = vld [vmem:[%s5409_s22 + $0x2d0] ss:$8 sps:$4 sm:$0xff]  }
 0x7c9   : > { %4008 = vmatmul.mubr.bf16.gmra.mrb[28].mxu0 %v3130_v32  ;;  %v3134_v56 = vpack.c.bf16 %v6323_v60, %v6320_v13  ;;  %v5135_v32 = vld [vmem:[%s5409_s22 + $0x240] ss:$8 sps:$4 sm:$0xff]   ;;  %v5168_v34 = vld [vmem:[%s5409_s22 + $0x2f0] ss:$8 sps:$4 sm:$0xff]   ;;  %v5188_v0 = vld [vmem:[%s5409_s22 + $0x354] ss:$8 sps:$4 sm:$0xff]  }
 0x7ca   : > { %v5306_v14 = vpop.eup %5305  ;;  %4023 = vmatpush1.bf16.msra.mxu0 %v5129_v45  ;;  %4050 = vmatprep.mubr.bf16.mxu0 %v3125_v7  ;;  %v3085_v43 = vmul.f32 0.5, %v3053_v20  ;;  %v5140_v7 = vld [vmem:[%s5409_s22 + $0x254] ss:$8 sps:$4 sm:$0xff]   ;;  %v5167_v45 = vld [vmem:[%s5409_s22 + $0x2e4] ss:$8 sps:$4 sm:$0xff]  }
 0x7cb   : > { %4024 = vmatprep.subr.bf16.mxu0 %v5134_v36  ;;  %v3055_v39 = vadd.f32 1.0, %v5306_v14  ;;  %v5165_v51 = vld [vmem:[%s5409_s22 + $0x2e0] ss:$8 sps:$4 sm:$0xff]   ;;  %v5170_v36 = vld [vmem:[%s5409_s22 + $0x2f4] ss:$8 sps:$4 sm:$0xff]  }
 0x7cc   : > { %v3117_v17 = vmul.f32 %v3085_v43, %v6250_v38  ;;  %v5138_v38 = vld [vmem:[%s5409_s22 + $0x250] ss:$8 sps:$4 sm:$0xff]   ;;  %v5173_v20 = vld [vmem:[%s5409_s22 + $0x304] ss:$8 sps:$4 sm:$0xff]   ;;  %v5171_v59 = vld [vmem:[%s5409_s22 + $0x300] ss:$8 sps:$4 sm:$0xff]  }
 0x7cd   : > { %v3087_v18 = vmul.f32 0.5, %v3055_v39  ;;  %v5176_v14 = vld [vmem:[%s5409_s22 + $0x314] ss:$8 sps:$4 sm:$0xff]   ;;  %v5179_v43 = vld [vmem:[%s5409_s22 + $0x324] ss:$8 sps:$4 sm:$0xff]  }
 0x7ce   : > { %4025 = vmatpush1.bf16.msra.mxu0 %v5132_v44  ;;  %v3133_v35 = vpack.c.bf16 %v3117_v17, %v3109_v46  ;;  %v5174_v44 = vld [vmem:[%s5409_s22 + $0x310] ss:$8 sps:$4 sm:$0xff]   ;;  %v5182_v39 = vld [vmem:[%s5409_s22 + $0x334] ss:$8 sps:$4 sm:$0xff]   ;;  %v5191_v62 = vld [vmem:[%s5409_s22 + $0x364] ss:$8 sps:$4 sm:$0xff]  }
 0x7cf   : > { %4026 = vmatprep.subr.bf16.mxu0 %v5137_v15  ;;  %v6342_v23 = vmul.f32 %v3087_v18, %v6255_v8  ;;  %v5149_v8 = vld [vmem:[%s5409_s22 + $0x284] ss:$8 sps:$4 sm:$0xff]   ;;  %v5177_v15 = vld [vmem:[%s5409_s22 + $0x320] ss:$8 sps:$4 sm:$0xff]   ;;  %v5186_v19 = vld [vmem:[%s5409_s22 + $0x350] ss:$8 sps:$4 sm:$0xff]  }
 0x7d0   : > { %v5195_v46 = vld [vmem:[%s5409_s22 + $0x380] ss:$8 sps:$4 sm:$0xff]   ;;  %v5200_v17 = vld [vmem:[%s5409_s22 + $0x394] ss:$8 sps:$4 sm:$0xff]   ;;  %v5198_v18 = vld [vmem:[%s5409_s22 + $0x390] ss:$8 sps:$4 sm:$0xff]  }
 0x7d1   : > { %v3135_v47 = vpack.c.bf16 %v6342_v23, %v6339_v16 }
 0x7d2   : > { %4027 = vmatpush1.bf16.msra.mxu0 %v5135_v32  ;;  %v5203_v32 = vld [vmem:[%s5409_s22 + $0x3a4] ss:$8 sps:$4 sm:$0xff]  }
 0x7d3   : > { %4028 = vmatprep.subr.bf16.mxu0 %v5140_v7  ;;  %v5206_v7 = vld [vmem:[%s5409_s22 + $0x3b4] ss:$8 sps:$4 sm:$0xff]  }
 0x7d6   : > { %4029 = vmatpush1.bf16.msra.mxu0 %v5138_v38  ;;  %v5204_v38 = vld [vmem:[%s5409_s22 + $0x3b0] ss:$8 sps:$4 sm:$0xff]  }
 0x7d7   : > { %4030 = vmatprep.subr.bf16.mxu0 %v5143_v3  ;;  %v5209_v3 = vld [vmem:[%s5409_s22 + $0x3c4] ss:$8 sps:$4 sm:$0xff]  }
 0x7da   : > { %4031 = vmatpush1.bf16.msra.mxu0 %v5141_v9  ;;  %v5207_v9 = vld [vmem:[%s5409_s22 + $0x3c0] ss:$8 sps:$4 sm:$0xff]  }
 0x7db   : > { %4032 = vmatprep.subr.bf16.mxu0 %v5146_v48  ;;  %v5212_v48 = vld [vmem:[%s5409_s22 + $0x3d4] ss:$8 sps:$4 sm:$0xff]  }
 0x7de   : > { %4033 = vmatpush1.bf16.msra.mxu0 %v5144_v41  ;;  %v5210_v41 = vld [vmem:[%s5409_s22 + $0x3d0] ss:$8 sps:$4 sm:$0xff]  }
 0x7df   : > { %4034 = vmatprep.subr.bf16.mxu0 %v5149_v8  ;;  %v5215_v8 = vld [vmem:[%s5409_s22 + $0x3e4] ss:$8 sps:$4 sm:$0xff]  }
 0x7e2   : > { %4035 = vmatpush1.bf16.msra.mxu0 %v5147_v61  ;;  %v5213_v61 = vld [vmem:[%s5409_s22 + $0x3e0] ss:$8 sps:$4 sm:$0xff]  }
 0x7e3   : > { %4036 = vmatprep.subr.bf16.mxu0 %v5152_v53  ;;  %v5218_v53 = vld [vmem:[%s5409_s22 + $0x3f4] ss:$8 sps:$4 sm:$0xff]  }
 0x7e6   : > { %4037 = vmatpush1.bf16.msra.mxu0 %v5150_v54  ;;  %v5216_v54 = vld [vmem:[%s5409_s22 + $0x3f0] ss:$8 sps:$4 sm:$0xff]  }
 0x7e7   : > { %4038 = vmatprep.subr.bf16.mxu0 %v5155_v6  ;;  %v6418_v6 = vld [vmem:[%s5424_s18] sm:$0xff] }
 0x7ea   : > { %4039 = vmatpush1.bf16.msra.mxu0 %v5153_v27  ;;  %v3267_v27 = vrot.slane %v6418_v6, %v5539_v52 }
 0x7eb   : > { %4040 = vmatprep.subr.bf16.mxu0 %v5158_v26  ;;  %v6423_v26 = vld [vmem:[%s5424_s18 + $0x8] sm:$0xff] }
 0x7ee   : > { %4041 = vmatpush1.bf16.msra.mxu0 %v5156_v63  ;;  %v3271_v63 = vrot.slane %v6423_v26, %v5539_v52 }
 0x7ef   : > { %4042 = vmatprep.subr.bf16.mxu0 %v5161_v28 }
 0x7f2   : > { %4043 = vmatpush1.bf16.msra.mxu0 %v5159_v24 }
 0x7f3   : > { %4044 = vmatprep.subr.bf16.mxu0 %v5164_v5 }
 0x7f6   : > { %4045 = vmatpush1.bf16.msra.mxu0 %v5162_v37 }
 0x7f7   : > { %4046 = vmatprep.subr.bf16.mxu0 %v5167_v45 }
 0x7fa   : > { %4047 = vmatpush1.bf16.msra.mxu0 %v5165_v51 }
 0x7fb   : > { %4048 = vmatprep.subr.bf16.mxu0 %v5170_v36 }
 0x7fe   : > { %4049 = vmatpush1.bf16.msra.mxu0 %v5168_v34 }
 0x7ff   : > { %4071 = vmatprep.subr.bf16.mxu0 %v5173_v20 }
 0x801   : > { %4051 = vmatmul.mubr.bf16.vlgmr.msra.gmra.mrb[24].mxu0 %v3124_v33  ;;  %v5183_v33 = vld [vmem:[%s5409_s22 + $0x340] ss:$8 sps:$4 sm:$0xff]  }
 0x802   : > { %4060 = vmatprep.mubr.bf16.mxu0 %v3133_v35  ;;  %4072 = vmatpush1.bf16.msra.mxu0 %v5171_v59  ;;  %v5201_v35 = vld [vmem:[%s5409_s22 + $0x3a0] ss:$8 sps:$4 sm:$0xff]  }
 0x803   : > { %4073 = vmatprep.subr.bf16.mxu0 %v5176_v14 }
 0x806   : > { %4074 = vmatpush1.bf16.msra.mxu0 %v5174_v44 }
 0x807   : > { %4075 = vmatprep.subr.bf16.mxu0 %v5179_v43 }
 0x809   : > { %4061 = vmatmul.mubr.bf16.gmra.mrb[28].mxu0 %v3132_v40  ;;  %v5197_v40 = vld [vmem:[%s5409_s22 + $0x384] ss:$8 sps:$4 sm:$0xff]  }
 0x80a   : > { %4076 = vmatpush1.bf16.msra.mxu0 %v5177_v15  ;;  %4103 = vmatprep.mubr.bf16.mxu0 %v3127_v30  ;;  %v5192_v30 = vld [vmem:[%s5409_s22 + $0x370] ss:$8 sps:$4 sm:$0xff]  }
 0x80b   : > { %4077 = vmatprep.subr.bf16.mxu0 %v5182_v39 }
 0x80e   : > { %4078 = vmatpush1.bf16.msra.mxu0 %v5180_v25 }
 0x80f   : > { %4079 = vmatprep.subr.bf16.mxu0 %v5185_v42 }
 0x812   : > { %4080 = vmatpush1.bf16.msra.mxu0 %v5183_v33 }
 0x813   : > { %4081 = vmatprep.subr.bf16.mxu0 %v5188_v0 }
 0x816   : > { %4082 = vmatpush1.bf16.msra.mxu0 %v5186_v19 }
 0x817   : > { %4083 = vmatprep.subr.bf16.mxu0 %v5191_v62 }
 0x81a   : > { %4084 = vmatpush1.bf16.msra.mxu0 %v5189_v29 }
 0x81b   : > { %4085 = vmatprep.subr.bf16.mxu0 %v5194_v1 }
 0x81e   : > { %4086 = vmatpush1.bf16.msra.mxu0 %v5192_v30 }
 0x81f   : > { %4087 = vmatprep.subr.bf16.mxu0 %v5197_v40 }
 0x822   : > { %4088 = vmatpush1.bf16.msra.mxu0 %v5195_v46 }
 0x823   : > { %4089 = vmatprep.subr.bf16.mxu0 %v5200_v17 }
 0x826   : > { %4090 = vmatpush1.bf16.msra.mxu0 %v5198_v18 }
 0x827   : > { %4091 = vmatprep.subr.bf16.mxu0 %v5203_v32 }
 0x82a   : > { %4092 = vmatpush1.bf16.msra.mxu0 %v5201_v35 }
 0x82b   : > { %4093 = vmatprep.subr.bf16.mxu0 %v5206_v7 }
 0x82e   : > { %4094 = vmatpush1.bf16.msra.mxu0 %v5204_v38 }
 0x82f   : > { %4095 = vmatprep.subr.bf16.mxu0 %v5209_v3 }
 0x832   : > { %4096 = vmatpush1.bf16.msra.mxu0 %v5207_v9 }
 0x833   : > { %4097 = vmatprep.subr.bf16.mxu0 %v5212_v48 }
 0x836   : > { %4098 = vmatpush1.bf16.msra.mxu0 %v5210_v41 }
 0x837   : > { %4099 = vmatprep.subr.bf16.mxu0 %v5215_v8 }
 0x83a   : > { %4100 = vmatpush1.bf16.msra.mxu0 %v5213_v61 }
 0x83b   : > { %4101 = vmatprep.subr.bf16.mxu0 %v5218_v53 }
 0x83e   : > { %4102 = vmatpush1.bf16.msra.mxu0 %v5216_v54 }
 0x841   : > { %4104 = vmatmul.mubr.bf16.vlgmr.msra.gmra.mrb[24].mxu0 %v3126_v50 }
 0x842   : > { %4113 = vmatprep.mubr.bf16.mxu0 %v3135_v47 }
 0x849   : > { %4114 = vmatmul.mubr.bf16.gmra.mrb[28].mxu0 %v3134_v56 }
 0x914   : > { %v4105_v58 = vpop.f32.mrb[24].mxu0 }
 0x915   : > { %v4792_v10 = vadd.f32 %v4105_v58, %v3267_v27  ;;  %v4107_v50 = vpop.f32.mrb[25].mxu0 }
 0x916   : > { %v4793_v28 = vadd.f32 %v4107_v50, %v3271_v63  ;;  %v4109_v16 = vpop.f32.mrb[26].mxu0 }
 0x917   : > { %v4794_v23 = vadd.f32 %v4109_v16, %v3267_v27  ;;  %v4111_v47 = vpop.f32.mrb[27].mxu0 }
 0x918   : > { %v4795_v24 = vadd.f32 %v4111_v47, %v3271_v63  ;;  %v4124_v13 = vadd.f32 %v4793_v28, %v4792_v10 }
 0x91a   : > { %4125 = vadd.xlane.f32.xlu0 %v4124_v13  ;;  %v4127_v60 = vadd.f32 %v4795_v24, %v4794_v23  ;;  %v4191_v13 = vrot.slane %v6418_v6, %v5585_v11 }
 0x91c   : > { %v4115_v56 = vpop.f32.mrb[28].mxu0  ;;  %4128 = vadd.xlane.f32.xlu1 %v4127_v60  ;;  %v4195_v60 = vrot.slane %v6423_v26, %v5585_v11 }
 0x91d   : > { %v4796_v5 = vadd.f32 %v4115_v56, %v3267_v27  ;;  %v4117_v37 = vpop.f32.mrb[29].mxu0 }
 0x91e   : > { %v4797_v45 = vadd.f32 %v4117_v37, %v3271_v63  ;;  %v4119_v51 = vpop.f32.mrb[30].mxu0  ;;  %v4211_v37 = vrot.slane %v6423_v26, %v5588_v12 }
 0x91f   : > { %v4798_v36 = vadd.f32 %v4119_v51, %v3267_v27  ;;  %v4121_v34 = vpop.f32.mrb[31].mxu0 }
 0x920   : > { %v4799_v52 = vadd.f32 %v4121_v34, %v3271_v63  ;;  %v4130_v20 = vadd.f32 %v4797_v45, %v4796_v5 }
 0x922   : > { %4131 = vadd.xlane.f32.xlu0 %v4130_v20  ;;  %v4133_v59 = vadd.f32 %v4799_v52, %v4798_v36 }
 0x924   : > { %4134 = vadd.xlane.f32.xlu1 %v4133_v59 }
 0x9a7   : > { %v4126_v14 = vpop.xlane.xlu0 %4125 }
 0x9a8   : > { %v4136_v44 = vmul.f32 0.00390625, %v4126_v14 }
 0x9a9   : > { %v4129_v43 = vpop.xlane.xlu1 %4128 }
 0x9aa   : > { %v4140_v15 = vsub.f32 %v4792_v10, %v4136_v44  ;;  %v4141_v39 = vsub.f32 %v4793_v28, %v4136_v44  ;;  %v4137_v25 = vmul.f32 0.00390625, %v4129_v43 }
 0x9ac   : > { %v4142_v42 = vsub.f32 %v4794_v23, %v4137_v25  ;;  %v4143_v33 = vsub.f32 %v4795_v24, %v4137_v25  ;;  %v4148_v0 = vmul.f32 %v4140_v15, %v4140_v15  ;;  %v4149_v19 = vmul.f32 %v4141_v39, %v4141_v39 }
 0x9ae   : > { %v4156_v62 = vadd.f32 %v4149_v19, %v4148_v0  ;;  %v4150_v29 = vmul.f32 %v4142_v42, %v4142_v42  ;;  %v4151_v1 = vmul.f32 %v4143_v33, %v4143_v33 }
 0x9af   : > { %v4132_v30 = vpop.xlane.xlu0 %4131 }
 0x9b0   : > { %v4138_v40 = vmul.f32 0.00390625, %v4132_v30  ;;  %4157 = vadd.xlane.f32.xlu0 %v4156_v62  ;;  %v4159_v46 = vadd.f32 %v4151_v1, %v4150_v29 }
 0x9b1   : > { %v4135_v17 = vpop.xlane.xlu1 %4134 }
 0x9b2   : > { %v4144_v18 = vsub.f32 %v4796_v5, %v4138_v40  ;;  %v4145_v32 = vsub.f32 %v4797_v45, %v4138_v40  ;;  %v4139_v35 = vmul.f32 0.00390625, %v4135_v17  ;;  %4160 = vadd.xlane.f32.xlu1 %v4159_v46  ;;  %v4207_v5 = vrot.slane %v6418_v6, %v5588_v12 }
 0x9b4   : > { %v4146_v7 = vsub.f32 %v4798_v36, %v4139_v35  ;;  %v4147_v38 = vsub.f32 %v4799_v52, %v4139_v35  ;;  %v4152_v3 = vmul.f32 %v4144_v18, %v4144_v18  ;;  %v4153_v9 = vmul.f32 %v4145_v32, %v4145_v32 }
 0x9b6   : > { %v4162_v48 = vadd.f32 %v4153_v9, %v4152_v3  ;;  %v4154_v41 = vmul.f32 %v4146_v7, %v4146_v7  ;;  %v4155_v8 = vmul.f32 %v4147_v38, %v4147_v38 }
 0x9b8   : > { %4163 = vadd.xlane.f32.xlu0 %v4162_v48  ;;  %v4165_v61 = vadd.f32 %v4155_v8, %v4154_v41 }
 0x9ba   : > { %4166 = vadd.xlane.f32.xlu1 %v4165_v61 }
 0xa3d   : > { %v4158_v53 = vpop.xlane.xlu0 %4157 }
 0xa3e   : > { %v4168_v54 = vmul.f32 0.00390625, %v4158_v53 }
 0xa3f   : > { %v4161_v27 = vpop.xlane.xlu1 %4160 }
 0xa40   : > { %v4172_v63 = vadd.f32 1e-05, %v4168_v54  ;;  %v4169_v58 = vmul.f32 0.00390625, %v4161_v27 }
 0xa42   : > { %5307 = vrsqrt.f32 %v4172_v63  ;;  %v4173_v10 = vadd.f32 1e-05, %v4169_v58 }
 0xa44   : > { %5309 = vrsqrt.f32 %v4173_v10 }
 0xa45   : > { %v4164_v50 = vpop.xlane.xlu0 %4163 }
 0xa46   : > { %v4170_v28 = vmul.f32 0.00390625, %v4164_v50 }
 0xa47   : > { %v4167_v16 = vpop.xlane.xlu1 %4166 }
 0xa48   : > { %v4174_v23 = vadd.f32 1e-05, %v4170_v28  ;;  %v4171_v47 = vmul.f32 0.00390625, %v4167_v16 }
 0xa4a   : > { %5311 = vrsqrt.f32 %v4174_v23  ;;  %v4175_v24 = vadd.f32 1e-05, %v4171_v47 }
 0xa4c   : > { %v5308_v56 = vpop.eup %5307  ;;  %5313 = vrsqrt.f32 %v4175_v24 }
 0xa4d   : > { %v4180_v45 = vmul.f32 %v5308_v56, %v4140_v15  ;;  %v4181_v51 = vmul.f32 %v5308_v56, %v4141_v39 }
 0xa4e   : > { %v5310_v36 = vpop.eup %5309 }
 0xa4f   : > { %v4196_v34 = vmul.f32 %v4191_v13, %v4180_v45  ;;  %v4197_v52 = vmul.f32 %v4195_v60, %v4181_v51  ;;  %v4182_v20 = vmul.f32 %v5310_v36, %v4142_v42  ;;  %v4183_v59 = vmul.f32 %v5310_v36, %v4143_v33 }
 0xa51   : > { %v4212_v14 = vadd.f32 %v4207_v5, %v4196_v34  ;;  %v4213_v44 = vadd.f32 %v4211_v37, %v4197_v52  ;;  %v4198_v43 = vmul.f32 %v4191_v13, %v4182_v20  ;;  %v4199_v25 = vmul.f32 %v4195_v60, %v4183_v59 }
 0xa53   : > { %v4220_v11 = vadd.f32 %v4212_v14, %v5804_v55  ;;  %v4221_v0 = vadd.f32 %v4213_v44, %v5802_v49  ;;  %v4214_v19 = vadd.f32 %v4207_v5, %v4198_v43  ;;  %v4215_v6 = vadd.f32 %v4211_v37, %v4199_v25 }
 0xa54   : > { %v5312_v62 = vpop.eup %5311 }
 0xa55   : > { %4228 = vst [vmem:[#allocation2] sm:$0xff] %v4220_v11  ;;  %4229 = vst [vmem:[#allocation2 + $0x8] sm:$0xff] %v4221_v0  ;;  %v4222_v12 = vadd.f32 %v4214_v19, %v5811_v4  ;;  %v4223_v26 = vadd.f32 %v4215_v6, %v5809_v2  ;;  %v4184_v15 = vmul.f32 %v5312_v62, %v4144_v18 }
 0xa56   : > { %v4185_v39 = vmul.f32 %v5312_v62, %v4145_v32  ;;  %v5314_v42 = vpop.eup %5313 }
 0xa57   : > { %4230 = vst [vmem:[#allocation2 + $0x10] sm:$0xff] %v4222_v12  ;;  %4231 = vst [vmem:[#allocation2 + $0x18] sm:$0xff] %v4223_v26  ;;  %v4200_v33 = vmul.f32 %v4191_v13, %v4184_v15  ;;  %v4186_v1 = vmul.f32 %v5314_v42, %v4146_v7  ;;  %v4187_v55 = vmul.f32 %v5314_v42, %v4147_v38 }
 0xa58   : > { %v4201_v29 = vmul.f32 %v4195_v60, %v4185_v39 }
 0xa59   : > { %v4216_v30 = vadd.f32 %v4207_v5, %v4200_v33  ;;  %v4202_v40 = vmul.f32 %v4191_v13, %v4186_v1  ;;  %v4203_v46 = vmul.f32 %v4195_v60, %v4187_v55  ;;  %4239 = sbr.rel (%p4777_p5) target bundleno = 2666 (0xa6a), region = 60 }
 0xa5a   : > { %v4217_v49 = vadd.f32 %v4211_v37, %v4201_v29 }
 0xa5b   : > { %v4224_v17 = vadd.f32 %v4216_v30, %v5840_v22  ;;  %v4218_v4 = vadd.f32 %v4207_v5, %v4202_v40  ;;  %v4219_v3 = vadd.f32 %v4211_v37, %v4203_v46 }
 0xa5c   : > { %v4225_v35 = vadd.f32 %v4217_v49, %v5836_v57  ;;  %v4240_v32 = vld [vmem:[#allocation2] sm:$0xff] (!%p4777_p5)  ;;  %v4241_v7 = vld [vmem:[#allocation2 + $0x8] sm:$0xff] (!%p4777_p5) }
 0xa5d   : > { %4232 = vst [vmem:[#allocation2 + $0x20] sm:$0xff] %v4224_v17  ;;  %v4226_v2 = vadd.f32 %v4218_v4, %v5842_v31  ;;  %v4227_v18 = vadd.f32 %v4219_v3, %v5838_v21  ;;  %v4788_v9 = vpack.c.bf16 (!%p4777_p5), %v4241_v7, %v4240_v32 }
 0xa5e   : > { %4233 = vst [vmem:[#allocation2 + $0x28] sm:$0xff] %v4225_v35  ;;  %v4242_v38 = vld [vmem:[#allocation2 + $0x10] sm:$0xff] (!%p4777_p5)  ;;  %v4243_v22 = vld [vmem:[#allocation2 + $0x18] sm:$0xff] (!%p4777_p5) }
 0xa5f   : > { %4234 = vst [vmem:[#allocation2 + $0x30] sm:$0xff] %v4226_v2  ;;  %4235 = vst [vmem:[#allocation2 + $0x38] sm:$0xff] %v4227_v18  ;;  %v4789_v41 = vpack.c.bf16 (!%p4777_p5), %v4243_v22, %v4242_v38 }
 0xa60   : > { %4272 = vst [vmem:[%s6467_s8] sm:$0xff] %v4788_v9 }
 0xa61   : > { %4273 = vst [vmem:[%s6467_s8 + $0x8] sm:$0xff] %v4789_v41 }
 0xa64   : > { %v4244_v48 = vld [vmem:[#allocation2 + $0x20] sm:$0xff] }
 0xa65   : > { %v4245_v57 = vld [vmem:[#allocation2 + $0x28] sm:$0xff] }
 0xa66   : > { %v4790_v8 = vpack.c.bf16 %v4245_v57, %v4244_v48  ;;  %v4246_v61 = vld [vmem:[#allocation2 + $0x30] sm:$0xff]  ;;  %v4247_v53 = vld [vmem:[#allocation2 + $0x38] sm:$0xff] }
 0xa67   : > { %v4791_v21 = vpack.c.bf16 %v4247_v53, %v4246_v61 }
 0xa68   : > { %4274 = vst [vmem:[%s6467_s8 + $0x10] sm:$0xff] %v4790_v8 }
 0xa69   : > { %4275 = vst [vmem:[%s6467_s8 + $0x18] sm:$0xff] %v4791_v21 }
 0xa6a PF: > { %s18_s27 = sadd.s32 1, %s5331_s27  }
 0xa6b   : > { %p15_p6 = scmp.ge.s32.totalorder %s18_s27, 4  }
 0xa6d   :  { %17 = sbr.rel (!%p15_p6) target bundleno = 1 (0x1), region = 104 }

</bundles_post_ra>
